<compile_context>
chip_gen: v7x
topology: tpu7x:2x2x1
jax: 0.10.0
libtpu: 0.0.40
codegen_flags: <defaults>
</compile_context>

<pallas_src>
import numpy as np

import jax
import jax.numpy as jnp
from jax.experimental import pallas as pl
from jax.experimental.pallas import tpu as pltpu

# ----------------------------- model hyper-params ---------------------------
IMAGE_SIZE = 32
CHANNEL_NUM = 3
KERNEL_NUM = 16
Z_SIZE = 8
BATCH = 2
FEATURE_SIZE = IMAGE_SIZE // 8                      # 4
FEATURE_VOLUME = KERNEL_NUM * FEATURE_SIZE ** 2     # 256
BN_EPS = 1e-5

_VMEM = pl.BlockSpec(memory_space=pltpu.MemorySpace.VMEM)


# --------------------------- constant-prep helpers ---------------------------
def _row_grids(c, n, h):
    """Index grids for rows ordered (channel, batch, y) of a (c*n*h, w) slab."""
    c_r = np.repeat(np.arange(c), n * h)
    n_r = np.tile(np.repeat(np.arange(n), h), c)
    y_r = np.tile(np.arange(h), c * n)
    return c_r, n_r, y_r


def _conv_consts(w, n_batch, h_in, w_in, transposed):
    """Fold a 4x4 / stride-2 / pad-1 (transposed) conv into per-kx GEMM constants.

    Returns bw (4, R_out, R_in) bf16, gc (W_in, 4*W_out) bf16 and (Cout, Hout, Wout)
    such that  out = sum_kx bw[kx] @ (a @ gc)[:, kx*Wout:(kx+1)*Wout]
    with a laid out as (Cin*N*Hin, Win), rows ordered (ci, n, y).
    """
    w = jnp.asarray(w, jnp.float32)
    if transposed:
        c_in, c_out = int(w.shape[0]), int(w.shape[1])
        h_out, w_out = 2 * h_in, 2 * w_in
        wc = jnp.transpose(w, (1, 0, 2, 3))          # (Cout, Cin, 4, 4)
    else:
        c_out, c_in = int(w.shape[0]), int(w.shape[1])
        h_out, w_out = h_in // 2, w_in // 2
        wc = w

    co_r, no_r, oy_r = _row_grids(c_out, n_batch, h_out)    # output rows
    ci_r, ni_r, yi_r = _row_grids(c_in, n_batch, h_in)      # input rows
    same_n = no_r[:, None] == ni_r[None, :]

    bw_kx, gc_kx = [], []
    xi = np.arange(w_in)
    xo = np.arange(w_out)
    for kx in range(4):
        bw = jnp.zeros((co_r.size, ci_r.size), jnp.float32)
        for ky in range(4):
            if transposed:
                hit = oy_r[:, None] == 2 * yi_r[None, :] + ky - 1
            else:
                hit = yi_r[None, :] == 2 * oy_r[:, None] + ky - 1
            mask = jnp.asarray((same_n & hit).astype(np.float32))
            wexp = wc[:, :, ky, kx][co_r][:, ci_r]           # (R_out, R_in)
            bw = bw + wexp * mask
        bw_kx.append(bw)
        if transposed:
            g = xo[None, :] == 2 * xi[:, None] + kx - 1
        else:
            g = xi[:, None] == 2 * xo[None, :] + kx - 1
        gc_kx.append(jnp.asarray(g.astype(np.float32)))

    bw = jnp.stack(bw_kx).astype(jnp.bfloat16)               # (4, R_out, R_in)
    gc = jnp.concatenate(gc_kx, axis=1).astype(jnp.bfloat16)  # (Win, 4*Wout)
    return bw, gc, (c_out, h_out, w_out)


def _bn_consts(gamma, beta, c_out, n_batch, h_out):
    """Block-averaging projector + row-expanded gamma/beta for train-mode BN."""
    c_r, _, _ = _row_grids(c_out, n_batch, h_out)
    blk = jnp.asarray((c_r[:, None] == c_r[None, :]).astype(np.float32))   # (R, R)
    g_rows = jnp.asarray(gamma, jnp.float32)[c_r].reshape(-1, 1)
    b_rows = jnp.asarray(beta, jnp.float32)[c_r].reshape(-1, 1)
    return blk, g_rows, b_rows


def _latent_consts(qm_w, qm_b, qv_w, qv_b, proj_w, proj_b, n_batch):
    """Fold the NCHW flatten, q_mean|q_logvar and the projection into constants."""
    z, f, k = Z_SIZE, FEATURE_SIZE, KERNEL_NUM
    qw_cat = jnp.concatenate([jnp.asarray(qm_w), jnp.asarray(qv_w)], 0).astype(jnp.float32)
    qb_cat = jnp.concatenate([jnp.asarray(qm_b), jnp.asarray(qv_b)], 0).astype(jnp.float32)
    proj_w = jnp.asarray(proj_w, jnp.float32)
    proj_b = jnp.asarray(proj_b, jnp.float32)

    co_r, n_r, oy_r = _row_grids(k, n_batch, f)              # encoder-output rows (128,)
    t_o = np.repeat(np.arange(2 * z), n_batch)               # q output rows (32,)
    n_o = np.tile(np.arange(n_batch), 2 * z)
    z_i = np.repeat(np.arange(z), n_batch)                   # z column rows (16,)
    n_i = np.tile(np.arange(n_batch), z)
    q_mask = jnp.asarray((n_o[:, None] == n_r[None, :]).astype(np.float32))   # (32, 128)
    p_mask = jnp.asarray((n_r[:, None] == n_i[None, :]).astype(np.float32))   # (128, 16)

    qbw, pww = [], []
    for ox in range(f):
        j = co_r * (f * f) + oy_r * f + ox                   # PyTorch view(-1, 256) index
        qbw.append((qw_cat[t_o][:, j] * q_mask).astype(jnp.bfloat16))          # (32, 128)
        pww.append((proj_w[j][:, z_i] * p_mask).astype(jnp.bfloat16))          # (128, 16)

    qb_col = qb_cat[t_o].reshape(-1, 1)                       # (32, 1)
    j_full = co_r[:, None] * (f * f) + oy_r[:, None] * f + np.arange(f)[None, :]
    pb_mat = proj_b[j_full]                                   # (128, 4)
    return jnp.stack(qbw), qb_col, jnp.stack(pww), pb_mat


def prepare_params(params):
    """One-time weight preprocessing (hoisted out of the jitted forward)."""
    n = BATCH
    ops = []
    for name, h in (("enc1", 32), ("enc2", 16), ("enc3", 8)):
        bw, gc, (c_out, h_out, _) = _conv_consts(params[name + "_w"], n, h, h, transposed=False)
        blk, g_rows, b_rows = _bn_consts(params[name + "_g"], params[name + "_be"], c_out, n, h_out)
        ops += [bw, gc, blk, g_rows, b_rows]

    ops += list(_latent_consts(params["qm_w"], params["qm_b"], params["qv_w"],
                               params["qv_b"], params["proj_w"], params["proj_b"], n))

    for name, h in (("dec1", 4), ("dec2", 8)):
        bw, gc, (c_out, h_out, _) = _conv_consts(params[name + "_w"], n, h, h, transposed=True)
        blk, g_rows, b_rows = _bn_consts(params[name + "_g"], params[name + "_be"], c_out, n, h_out)
        ops += [bw, gc, blk, g_rows, b_rows]

    bw, gc, (c_out, h_out, _) = _conv_consts(params["dec3_w"], n, 16, 16, transposed=True)
    c_r, _, _ = _row_grids(c_out, n, h_out)
    bias_rows = jnp.asarray(params["dec3_b"], jnp.float32)[c_r].reshape(-1, 1)
    ops += [bw, gc, bias_rows]
    return ops


# ------------------------------- Pallas kernel -------------------------------
def _vae_kernel(x_ref, eps_ref,
                bw1, gc1, p1, g1, b1,
                bw2, gc2, p2, g2, b2,
                bw3, gc3, p3, g3, b3,
                qbw, qbc, pww, pbm,
                bw4, gc4, p4, g4, b4,
                bw5, gc5, p5, g5, b5,
                bw6, gc6, bias6,
                mean_ref, logvar_ref, recon_ref):
    f32 = jnp.float32
    bf16 = jnp.bfloat16
    n = BATCH

    def conv(a, bw_ref, gc_ref, w_out):
        """(Transposed) conv as 1 column-gather GEMM + 4 folded weight GEMMs."""
        a_bf = a.astype(bf16)
        colg = jnp.dot(a_bf, gc_ref[...], preferred_element_type=f32).astype(bf16)
        acc = None
        for kx in range(4):
            part = jnp.dot(bw_ref[kx], colg[:, kx * w_out:(kx + 1) * w_out],
                           preferred_element_type=f32)
            acc = part if acc is None else acc + part
        return acc                                            # (Cout*N*Hout, Wout) f32

    def bn(y, blk_ref, g_ref, be_ref, cnt, relu):
        """Train-mode BN, single-pass stats, reassociated gamma*rsqrt (+ReLU)."""
        inv_cnt = 1.0 / cnt
        s1 = jnp.sum(y, axis=1, keepdims=True)
        s2 = jnp.sum(y * y, axis=1, keepdims=True)
        mean_r = jnp.dot(blk_ref[...], s1, preferred_element_type=f32) * inv_cnt
        msq_r = jnp.dot(blk_ref[...], s2, preferred_element_type=f32) * inv_cnt
        var_r = msq_r - mean_r * mean_r
        scale = g_ref[...] * jax.lax.rsqrt(var_r + BN_EPS)
        shift = be_ref[...] - mean_r * scale
        out = y * scale + shift
        if relu:
            out = jnp.maximum(out, 0.0)
        return out

    # ------------------------------- encoder -------------------------------
    a = bn(conv(x_ref[...], bw1, gc1, 16), p1, g1, b1, n * 16.0 * 16.0, True)   # (128, 16)
    a = bn(conv(a, bw2, gc2, 8), p2, g2, b2, n * 8.0 * 8.0, True)               # (128, 8)
    h = bn(conv(a, bw3, gc3, 4), p3, g3, b3, n * 4.0 * 4.0, False)              # (128, 4)

    # -------------------- latent: q(z|x), reparam, project ------------------
    h_bf = h.astype(bf16)
    mv = qbc[...]                                             # (2*Z*N, 1) f32 (biases)
    for ox in range(FEATURE_SIZE):
        mv = mv + jnp.dot(qbw[ox], h_bf[:, ox:ox + 1], preferred_element_type=f32)
    zn = Z_SIZE * n
    mean = mv[:zn, :]
    logvar = mv[zn:, :]
    mean_ref[...] = mean
    logvar_ref[...] = logvar
    z = mean + eps_ref[...] * jnp.exp(0.5 * logvar)           # (Z*N, 1) f32
    z_bf = z.astype(bf16)

    d = pbm[...]                                              # (128, 4) projection bias
    for ox in range(FEATURE_SIZE):
        col = jnp.dot(pww[ox], z_bf, preferred_element_type=f32)          # (128, 1)
        onehot = (jax.lax.broadcasted_iota(jnp.int32, (1, FEATURE_SIZE), 1) == ox).astype(f32)
        d = d + col * onehot

    # ------------------------------- decoder -------------------------------
    a = bn(conv(d, bw4, gc4, 8), p4, g4, b4, n * 8.0 * 8.0, True)               # (128, 8)
    a = bn(conv(a, bw5, gc5, 16), p5, g5, b5, n * 16.0 * 16.0, True)            # (128, 16)
    y = conv(a, bw6, gc6, 32) + bias6[...]                                      # (192, 32)
    recon_ref[...] = jax.nn.sigmoid(y)


# ------------------------------ parameters ----------------------------------
def init_params(key):
    def nrm(k, shape, scale=0.05):
        return scale * jax.random.normal(k, shape, jnp.float32)

    ks = jax.random.split(key, 16)
    kn = KERNEL_NUM
    p = {
        # encoder (Conv2d weights are (Cout, Cin, kH, kW))
        "enc1_w": nrm(ks[0], (kn // 4, CHANNEL_NUM, 4, 4)), "enc1_b": nrm(ks[1], (kn // 4,)),
        "enc1_g": jnp.ones((kn // 4,), jnp.float32), "enc1_be": jnp.zeros((kn // 4,), jnp.float32),
        "enc2_w": nrm(ks[2], (kn // 2, kn // 4, 4, 4)), "enc2_b": nrm(ks[3], (kn // 2,)),
        "enc2_g": jnp.ones((kn // 2,), jnp.float32), "enc2_be": jnp.zeros((kn // 2,), jnp.float32),
        "enc3_w": nrm(ks[4], (kn, kn // 2, 4, 4)), "enc3_b": nrm(ks[5], (kn,)),
        "enc3_g": jnp.ones((kn,), jnp.float32), "enc3_be": jnp.zeros((kn,), jnp.float32),
        # latent heads (Linear weights are (out, in))
        "qm_w": nrm(ks[6], (Z_SIZE, FEATURE_VOLUME)), "qm_b": nrm(ks[7], (Z_SIZE,)),
        "qv_w": nrm(ks[8], (Z_SIZE, FEATURE_VOLUME)), "qv_b": nrm(ks[9], (Z_SIZE,)),
        "proj_w": nrm(ks[10], (FEATURE_VOLUME, Z_SIZE)), "proj_b": nrm(ks[11], (FEATURE_VOLUME,)),
        # decoder (ConvTranspose2d weights are (Cin, Cout, kH, kW))
        "dec1_w": nrm(ks[12], (kn, kn // 2, 4, 4)), "dec1_b": nrm(ks[13], (kn // 2,)),
        "dec1_g": jnp.ones((kn // 2,), jnp.float32), "dec1_be": jnp.zeros((kn // 2,), jnp.float32),
        "dec2_w": nrm(ks[14], (kn // 2, kn // 4, 4, 4)), "dec2_b": nrm(ks[15], (kn // 4,)),
        "dec2_g": jnp.ones((kn // 4,), jnp.float32), "dec2_be": jnp.zeros((kn // 4,), jnp.float32),
        "dec3_w": nrm(jax.random.fold_in(key, 100), (kn // 4, CHANNEL_NUM, 4, 4)),
        "dec3_b": nrm(jax.random.fold_in(key, 101), (CHANNEL_NUM,)),
    }
    return p


# ------------------------------ forward pass --------------------------------
def vae_forward(prep, x_nchw, eps_noise):
    n = x_nchw.shape[0]
    assert n == BATCH, "prepared constants are specialised to BATCH"
    # boundary layout only: (N,C,H,W) -> channel-major row slab (C*N*H, W)
    a0 = x_nchw.transpose(1, 0, 2, 3).reshape(CHANNEL_NUM * n * IMAGE_SIZE,
                                              IMAGE_SIZE).astype(jnp.float32)
    eps_col = eps_noise.T.reshape(Z_SIZE * n, 1).astype(jnp.float32)

    mean_col, logvar_col, recon = pl.pallas_call(
        _vae_kernel,
        out_shape=(
            jax.ShapeDtypeStruct((Z_SIZE * n, 1), jnp.float32),
            jax.ShapeDtypeStruct((Z_SIZE * n, 1), jnp.float32),
            jax.ShapeDtypeStruct((CHANNEL_NUM * n * IMAGE_SIZE, IMAGE_SIZE), jnp.float32),
        ),
        in_specs=[_VMEM] * (2 + len(prep)),
        out_specs=(_VMEM, _VMEM, _VMEM),
    )(a0, eps_col, *prep)

    mean = mean_col.reshape(Z_SIZE, n).T
    logvar = logvar_col.reshape(Z_SIZE, n).T
    x_reconstructed = recon.reshape(CHANNEL_NUM, n, IMAGE_SIZE,
                                    IMAGE_SIZE).transpose(1, 0, 2, 3)
    return (mean, logvar), x_reconstructed


# --------------------------------- main --------------------------------------
if __name__ == "__main__":
    key = jax.random.PRNGKey(0)
    k_param, k_x, k_eps = jax.random.split(key, 3)

    params = init_params(k_param)
    prep = prepare_params(params)        # one-time constant prep, outside the jit

    x = jax.random.normal(k_x, (BATCH, CHANNEL_NUM, IMAGE_SIZE, IMAGE_SIZE), jnp.float32)
    eps_noise = jax.random.normal(k_eps, (BATCH, Z_SIZE), jnp.float32)

    fwd = jax.jit(vae_forward)
    (mean, logvar), x_rec = fwd(prep, x, eps_noise)
    jax.block_until_ready((mean, logvar, x_rec))

    assert mean.shape == (BATCH, Z_SIZE)
    assert logvar.shape == (BATCH, Z_SIZE)
    assert x_rec.shape == (BATCH, CHANNEL_NUM, IMAGE_SIZE, IMAGE_SIZE)
    assert bool(jnp.isfinite(mean).all()) and bool(jnp.isfinite(logvar).all())
    assert bool(jnp.isfinite(x_rec).all())
    assert bool((x_rec >= 0.0).all()) and bool((x_rec <= 1.0).all())
    print("KERNEL_OK")
</pallas_src>

<mosaic_0001>
module attributes {stable_mosaic.version = 11 : i64} {
  func.func @_vae_kernel(%arg0: memref<192x32xf32, #tpu.memory_space<vmem>>, %arg1: memref<16x1xf32, #tpu.memory_space<vmem>>, %arg2: memref<4x128x192xbf16, #tpu.memory_space<vmem>>, %arg3: memref<32x64xbf16, #tpu.memory_space<vmem>>, %arg4: memref<128x128xf32, #tpu.memory_space<vmem>>, %arg5: memref<128x1xf32, #tpu.memory_space<vmem>>, %arg6: memref<128x1xf32, #tpu.memory_space<vmem>>, %arg7: memref<4x128x128xbf16, #tpu.memory_space<vmem>>, %arg8: memref<16x32xbf16, #tpu.memory_space<vmem>>, %arg9: memref<128x128xf32, #tpu.memory_space<vmem>>, %arg10: memref<128x1xf32, #tpu.memory_space<vmem>>, %arg11: memref<128x1xf32, #tpu.memory_space<vmem>>, %arg12: memref<4x128x128xbf16, #tpu.memory_space<vmem>>, %arg13: memref<8x16xbf16, #tpu.memory_space<vmem>>, %arg14: memref<128x128xf32, #tpu.memory_space<vmem>>, %arg15: memref<128x1xf32, #tpu.memory_space<vmem>>, %arg16: memref<128x1xf32, #tpu.memory_space<vmem>>, %arg17: memref<4x32x128xbf16, #tpu.memory_space<vmem>>, %arg18: memref<32x1xf32, #tpu.memory_space<vmem>>, %arg19: memref<4x128x16xbf16, #tpu.memory_space<vmem>>, %arg20: memref<128x4xf32, #tpu.memory_space<vmem>>, %arg21: memref<4x128x128xbf16, #tpu.memory_space<vmem>>, %arg22: memref<4x32xbf16, #tpu.memory_space<vmem>>, %arg23: memref<128x128xf32, #tpu.memory_space<vmem>>, %arg24: memref<128x1xf32, #tpu.memory_space<vmem>>, %arg25: memref<128x1xf32, #tpu.memory_space<vmem>>, %arg26: memref<4x128x128xbf16, #tpu.memory_space<vmem>>, %arg27: memref<8x64xbf16, #tpu.memory_space<vmem>>, %arg28: memref<128x128xf32, #tpu.memory_space<vmem>>, %arg29: memref<128x1xf32, #tpu.memory_space<vmem>>, %arg30: memref<128x1xf32, #tpu.memory_space<vmem>>, %arg31: memref<4x192x128xbf16, #tpu.memory_space<vmem>>, %arg32: memref<16x128xbf16, #tpu.memory_space<vmem>>, %arg33: memref<192x1xf32, #tpu.memory_space<vmem>>, %arg34: memref<16x1xf32, #tpu.memory_space<vmem>>, %arg35: memref<16x1xf32, #tpu.memory_space<vmem>>, %arg36: memref<192x32xf32, #tpu.memory_space<vmem>>) attributes {dimension_semantics = [], scalar_prefetch = 0 : i64, scratch_operands = 0 : i64, tpu.core_type = #tpu.core_type<tc>} {
    %c0 = arith.constant 0 : index
    %c0_0 = arith.constant 0 : index
    %0 = vector.load %arg0[%c0, %c0_0] : memref<192x32xf32, #tpu.memory_space<vmem>>, vector<192x32xf32>
    %1 = arith.truncf %0 : vector<192x32xf32> to vector<192x32xbf16>
    %c0_1 = arith.constant 0 : index
    %c0_2 = arith.constant 0 : index
    %2 = vector.load %arg3[%c0_1, %c0_2] : memref<32x64xbf16, #tpu.memory_space<vmem>>, vector<32x64xbf16>
    %cst = arith.constant dense<0.000000e+00> : vector<192x64xf32>
    %3 = tpu.matmul %1, %2, %cst {dimension_numbers = #tpu.dot_dimension_numbers<[1], [0], [0], [1], [0, 0, 1, 1], [], []>} : vector<192x32xbf16>, vector<32x64xbf16>, vector<192x64xf32> -> vector<192x64xf32>
    %4 = arith.truncf %3 : vector<192x64xf32> to vector<192x64xbf16>
    %c0_3 = arith.constant 0 : index
    %c0_4 = arith.constant 0 : index
    %c0_5 = arith.constant 0 : index
    %5 = vector.load %arg2[%c0_3, %c0_4, %c0_5] : memref<4x128x192xbf16, #tpu.memory_space<vmem>>, vector<1x128x192xbf16>
    %6 = vector.shape_cast %5 : vector<1x128x192xbf16> to vector<128x192xbf16>
    %7 = vector.extract_strided_slice %4 {offsets = [0, 0], sizes = [192, 16], strides = [1, 1]} : vector<192x64xbf16> to vector<192x16xbf16>
    %cst_6 = arith.constant dense<0.000000e+00> : vector<128x16xf32>
    %8 = tpu.matmul %6, %7, %cst_6 {dimension_numbers = #tpu.dot_dimension_numbers<[1], [0], [0], [1], [0, 0, 1, 1], [], []>} : vector<128x192xbf16>, vector<192x16xbf16>, vector<128x16xf32> -> vector<128x16xf32>
    %c1 = arith.constant 1 : index
    %c0_7 = arith.constant 0 : index
    %c0_8 = arith.constant 0 : index
    %9 = vector.load %arg2[%c1, %c0_7, %c0_8] : memref<4x128x192xbf16, #tpu.memory_space<vmem>>, vector<1x128x192xbf16>
    %10 = vector.shape_cast %9 : vector<1x128x192xbf16> to vector<128x192xbf16>
    %11 = vector.extract_strided_slice %4 {offsets = [0, 16], sizes = [192, 16], strides = [1, 1]} : vector<192x64xbf16> to vector<192x16xbf16>
    %cst_9 = arith.constant dense<0.000000e+00> : vector<128x16xf32>
    %12 = tpu.matmul %10, %11, %cst_9 {dimension_numbers = #tpu.dot_dimension_numbers<[1], [0], [0], [1], [0, 0, 1, 1], [], []>} : vector<128x192xbf16>, vector<192x16xbf16>, vector<128x16xf32> -> vector<128x16xf32>
    %13 = arith.addf %8, %12 : vector<128x16xf32>
    %c2 = arith.constant 2 : index
    %c0_10 = arith.constant 0 : index
    %c0_11 = arith.constant 0 : index
    %14 = vector.load %arg2[%c2, %c0_10, %c0_11] : memref<4x128x192xbf16, #tpu.memory_space<vmem>>, vector<1x128x192xbf16>
    %15 = vector.shape_cast %14 : vector<1x128x192xbf16> to vector<128x192xbf16>
    %16 = vector.extract_strided_slice %4 {offsets = [0, 32], sizes = [192, 16], strides = [1, 1]} : vector<192x64xbf16> to vector<192x16xbf16>
    %cst_12 = arith.constant dense<0.000000e+00> : vector<128x16xf32>
    %17 = tpu.matmul %15, %16, %cst_12 {dimension_numbers = #tpu.dot_dimension_numbers<[1], [0], [0], [1], [0, 0, 1, 1], [], []>} : vector<128x192xbf16>, vector<192x16xbf16>, vector<128x16xf32> -> vector<128x16xf32>
    %18 = arith.addf %13, %17 : vector<128x16xf32>
    %c3 = arith.constant 3 : index
    %c0_13 = arith.constant 0 : index
    %c0_14 = arith.constant 0 : index
    %19 = vector.load %arg2[%c3, %c0_13, %c0_14] : memref<4x128x192xbf16, #tpu.memory_space<vmem>>, vector<1x128x192xbf16>
    %20 = vector.shape_cast %19 : vector<1x128x192xbf16> to vector<128x192xbf16>
    %21 = vector.extract_strided_slice %4 {offsets = [0, 48], sizes = [192, 16], strides = [1, 1]} : vector<192x64xbf16> to vector<192x16xbf16>
    %cst_15 = arith.constant dense<0.000000e+00> : vector<128x16xf32>
    %22 = tpu.matmul %20, %21, %cst_15 {dimension_numbers = #tpu.dot_dimension_numbers<[1], [0], [0], [1], [0, 0, 1, 1], [], []>} : vector<128x192xbf16>, vector<192x16xbf16>, vector<128x16xf32> -> vector<128x16xf32>
    %23 = arith.addf %18, %22 : vector<128x16xf32>
    %cst_16 = arith.constant dense<0.000000e+00> : vector<128xf32>
    %24 = vector.multi_reduction <add>, %23, %cst_16 [1] : vector<128x16xf32> to vector<128xf32>
    %25 = vector.shape_cast %24 : vector<128xf32> to vector<128x1xf32>
    %26 = arith.mulf %23, %23 : vector<128x16xf32>
    %cst_17 = arith.constant dense<0.000000e+00> : vector<128xf32>
    %27 = vector.multi_reduction <add>, %26, %cst_17 [1] : vector<128x16xf32> to vector<128xf32>
    %28 = vector.shape_cast %27 : vector<128xf32> to vector<128x1xf32>
    %c0_18 = arith.constant 0 : index
    %c0_19 = arith.constant 0 : index
    %29 = vector.load %arg4[%c0_18, %c0_19] : memref<128x128xf32, #tpu.memory_space<vmem>>, vector<128x128xf32>
    %cst_20 = arith.constant dense<0.000000e+00> : vector<128x1xf32>
    %30 = tpu.matmul %29, %25, %cst_20 {dimension_numbers = #tpu.dot_dimension_numbers<[1], [0], [0], [1], [0, 0, 1, 1], [], []>} : vector<128x128xf32>, vector<128x1xf32>, vector<128x1xf32> -> vector<128x1xf32>
    %cst_21 = arith.constant 0.001953125 : f32
    %31 = vector.broadcast %cst_21 : f32 to vector<128x1xf32>
    %32 = arith.mulf %30, %31 : vector<128x1xf32>
    %c0_22 = arith.constant 0 : index
    %c0_23 = arith.constant 0 : index
    %33 = vector.load %arg4[%c0_22, %c0_23] : memref<128x128xf32, #tpu.memory_space<vmem>>, vector<128x128xf32>
    %cst_24 = arith.constant dense<0.000000e+00> : vector<128x1xf32>
    %34 = tpu.matmul %33, %28, %cst_24 {dimension_numbers = #tpu.dot_dimension_numbers<[1], [0], [0], [1], [0, 0, 1, 1], [], []>} : vector<128x128xf32>, vector<128x1xf32>, vector<128x1xf32> -> vector<128x1xf32>
    %cst_25 = arith.constant 0.001953125 : f32
    %35 = vector.broadcast %cst_25 : f32 to vector<128x1xf32>
    %36 = arith.mulf %34, %35 : vector<128x1xf32>
    %37 = arith.mulf %32, %32 : vector<128x1xf32>
    %38 = arith.subf %36, %37 : vector<128x1xf32>
    %c0_26 = arith.constant 0 : index
    %c0_27 = arith.constant 0 : index
    %39 = vector.load %arg5[%c0_26, %c0_27] : memref<128x1xf32, #tpu.memory_space<vmem>>, vector<128x1xf32>
    %cst_28 = arith.constant 9.99999974E-6 : f32
    %40 = vector.broadcast %cst_28 : f32 to vector<128x1xf32>
    %41 = arith.addf %38, %40 : vector<128x1xf32>
    %42 = math.rsqrt %41 : vector<128x1xf32>
    %43 = arith.mulf %39, %42 : vector<128x1xf32>
    %c0_29 = arith.constant 0 : index
    %c0_30 = arith.constant 0 : index
    %44 = vector.load %arg6[%c0_29, %c0_30] : memref<128x1xf32, #tpu.memory_space<vmem>>, vector<128x1xf32>
    %45 = arith.mulf %32, %43 : vector<128x1xf32>
    %46 = arith.subf %44, %45 : vector<128x1xf32>
    %47 = vector.broadcast %43 : vector<128x1xf32> to vector<128x16xf32>
    %48 = arith.mulf %23, %47 : vector<128x16xf32>
    %49 = vector.broadcast %46 : vector<128x1xf32> to vector<128x16xf32>
    %50 = arith.addf %48, %49 : vector<128x16xf32>
    %cst_31 = arith.constant 0.000000e+00 : f32
    %51 = vector.broadcast %cst_31 : f32 to vector<128x16xf32>
    %52 = arith.maximumf %50, %51 : vector<128x16xf32>
    %53 = arith.truncf %52 : vector<128x16xf32> to vector<128x16xbf16>
    %c0_32 = arith.constant 0 : index
    %c0_33 = arith.constant 0 : index
    %54 = vector.load %arg8[%c0_32, %c0_33] : memref<16x32xbf16, #tpu.memory_space<vmem>>, vector<16x32xbf16>
    %cst_34 = arith.constant dense<0.000000e+00> : vector<128x32xf32>
    %55 = tpu.matmul %53, %54, %cst_34 {dimension_numbers = #tpu.dot_dimension_numbers<[1], [0], [0], [1], [0, 0, 1, 1], [], []>} : vector<128x16xbf16>, vector<16x32xbf16>, vector<128x32xf32> -> vector<128x32xf32>
    %56 = arith.truncf %55 : vector<128x32xf32> to vector<128x32xbf16>
    %c0_35 = arith.constant 0 : index
    %c0_36 = arith.constant 0 : index
    %c0_37 = arith.constant 0 : index
    %57 = vector.load %arg7[%c0_35, %c0_36, %c0_37] : memref<4x128x128xbf16, #tpu.memory_space<vmem>>, vector<1x128x128xbf16>
    %58 = vector.shape_cast %57 : vector<1x128x128xbf16> to vector<128x128xbf16>
    %59 = vector.extract_strided_slice %56 {offsets = [0, 0], sizes = [128, 8], strides = [1, 1]} : vector<128x32xbf16> to vector<128x8xbf16>
    %cst_38 = arith.constant dense<0.000000e+00> : vector<128x8xf32>
    %60 = tpu.matmul %58, %59, %cst_38 {dimension_numbers = #tpu.dot_dimension_numbers<[1], [0], [0], [1], [0, 0, 1, 1], [], []>} : vector<128x128xbf16>, vector<128x8xbf16>, vector<128x8xf32> -> vector<128x8xf32>
    %c1_39 = arith.constant 1 : index
    %c0_40 = arith.constant 0 : index
    %c0_41 = arith.constant 0 : index
    %61 = vector.load %arg7[%c1_39, %c0_40, %c0_41] : memref<4x128x128xbf16, #tpu.memory_space<vmem>>, vector<1x128x128xbf16>
    %62 = vector.shape_cast %61 : vector<1x128x128xbf16> to vector<128x128xbf16>
    %63 = vector.extract_strided_slice %56 {offsets = [0, 8], sizes = [128, 8], strides = [1, 1]} : vector<128x32xbf16> to vector<128x8xbf16>
    %cst_42 = arith.constant dense<0.000000e+00> : vector<128x8xf32>
    %64 = tpu.matmul %62, %63, %cst_42 {dimension_numbers = #tpu.dot_dimension_numbers<[1], [0], [0], [1], [0, 0, 1, 1], [], []>} : vector<128x128xbf16>, vector<128x8xbf16>, vector<128x8xf32> -> vector<128x8xf32>
    %65 = arith.addf %60, %64 : vector<128x8xf32>
    %c2_43 = arith.constant 2 : index
    %c0_44 = arith.constant 0 : index
    %c0_45 = arith.constant 0 : index
    %66 = vector.load %arg7[%c2_43, %c0_44, %c0_45] : memref<4x128x128xbf16, #tpu.memory_space<vmem>>, vector<1x128x128xbf16>
    %67 = vector.shape_cast %66 : vector<1x128x128xbf16> to vector<128x128xbf16>
    %68 = vector.extract_strided_slice %56 {offsets = [0, 16], sizes = [128, 8], strides = [1, 1]} : vector<128x32xbf16> to vector<128x8xbf16>
    %cst_46 = arith.constant dense<0.000000e+00> : vector<128x8xf32>
    %69 = tpu.matmul %67, %68, %cst_46 {dimension_numbers = #tpu.dot_dimension_numbers<[1], [0], [0], [1], [0, 0, 1, 1], [], []>} : vector<128x128xbf16>, vector<128x8xbf16>, vector<128x8xf32> -> vector<128x8xf32>
    %70 = arith.addf %65, %69 : vector<128x8xf32>
    %c3_47 = arith.constant 3 : index
    %c0_48 = arith.constant 0 : index
    %c0_49 = arith.constant 0 : index
    %71 = vector.load %arg7[%c3_47, %c0_48, %c0_49] : memref<4x128x128xbf16, #tpu.memory_space<vmem>>, vector<1x128x128xbf16>
    %72 = vector.shape_cast %71 : vector<1x128x128xbf16> to vector<128x128xbf16>
    %73 = vector.extract_strided_slice %56 {offsets = [0, 24], sizes = [128, 8], strides = [1, 1]} : vector<128x32xbf16> to vector<128x8xbf16>
    %cst_50 = arith.constant dense<0.000000e+00> : vector<128x8xf32>
    %74 = tpu.matmul %72, %73, %cst_50 {dimension_numbers = #tpu.dot_dimension_numbers<[1], [0], [0], [1], [0, 0, 1, 1], [], []>} : vector<128x128xbf16>, vector<128x8xbf16>, vector<128x8xf32> -> vector<128x8xf32>
    %75 = arith.addf %70, %74 : vector<128x8xf32>
    %cst_51 = arith.constant dense<0.000000e+00> : vector<128xf32>
    %76 = vector.multi_reduction <add>, %75, %cst_51 [1] : vector<128x8xf32> to vector<128xf32>
    %77 = vector.shape_cast %76 : vector<128xf32> to vector<128x1xf32>
    %78 = arith.mulf %75, %75 : vector<128x8xf32>
    %cst_52 = arith.constant dense<0.000000e+00> : vector<128xf32>
    %79 = vector.multi_reduction <add>, %78, %cst_52 [1] : vector<128x8xf32> to vector<128xf32>
    %80 = vector.shape_cast %79 : vector<128xf32> to vector<128x1xf32>
    %c0_53 = arith.constant 0 : index
    %c0_54 = arith.constant 0 : index
    %81 = vector.load %arg9[%c0_53, %c0_54] : memref<128x128xf32, #tpu.memory_space<vmem>>, vector<128x128xf32>
    %cst_55 = arith.constant dense<0.000000e+00> : vector<128x1xf32>
    %82 = tpu.matmul %81, %77, %cst_55 {dimension_numbers = #tpu.dot_dimension_numbers<[1], [0], [0], [1], [0, 0, 1, 1], [], []>} : vector<128x128xf32>, vector<128x1xf32>, vector<128x1xf32> -> vector<128x1xf32>
    %cst_56 = arith.constant 7.812500e-03 : f32
    %83 = vector.broadcast %cst_56 : f32 to vector<128x1xf32>
    %84 = arith.mulf %82, %83 : vector<128x1xf32>
    %c0_57 = arith.constant 0 : index
    %c0_58 = arith.constant 0 : index
    %85 = vector.load %arg9[%c0_57, %c0_58] : memref<128x128xf32, #tpu.memory_space<vmem>>, vector<128x128xf32>
    %cst_59 = arith.constant dense<0.000000e+00> : vector<128x1xf32>
    %86 = tpu.matmul %85, %80, %cst_59 {dimension_numbers = #tpu.dot_dimension_numbers<[1], [0], [0], [1], [0, 0, 1, 1], [], []>} : vector<128x128xf32>, vector<128x1xf32>, vector<128x1xf32> -> vector<128x1xf32>
    %cst_60 = arith.constant 7.812500e-03 : f32
    %87 = vector.broadcast %cst_60 : f32 to vector<128x1xf32>
    %88 = arith.mulf %86, %87 : vector<128x1xf32>
    %89 = arith.mulf %84, %84 : vector<128x1xf32>
    %90 = arith.subf %88, %89 : vector<128x1xf32>
    %c0_61 = arith.constant 0 : index
    %c0_62 = arith.constant 0 : index
    %91 = vector.load %arg10[%c0_61, %c0_62] : memref<128x1xf32, #tpu.memory_space<vmem>>, vector<128x1xf32>
    %cst_63 = arith.constant 9.99999974E-6 : f32
    %92 = vector.broadcast %cst_63 : f32 to vector<128x1xf32>
    %93 = arith.addf %90, %92 : vector<128x1xf32>
    %94 = math.rsqrt %93 : vector<128x1xf32>
    %95 = arith.mulf %91, %94 : vector<128x1xf32>
    %c0_64 = arith.constant 0 : index
    %c0_65 = arith.constant 0 : index
    %96 = vector.load %arg11[%c0_64, %c0_65] : memref<128x1xf32, #tpu.memory_space<vmem>>, vector<128x1xf32>
    %97 = arith.mulf %84, %95 : vector<128x1xf32>
    %98 = arith.subf %96, %97 : vector<128x1xf32>
    %99 = vector.broadcast %95 : vector<128x1xf32> to vector<128x8xf32>
    %100 = arith.mulf %75, %99 : vector<128x8xf32>
    %101 = vector.broadcast %98 : vector<128x1xf32> to vector<128x8xf32>
    %102 = arith.addf %100, %101 : vector<128x8xf32>
    %cst_66 = arith.constant 0.000000e+00 : f32
    %103 = vector.broadcast %cst_66 : f32 to vector<128x8xf32>
    %104 = arith.maximumf %102, %103 : vector<128x8xf32>
    %105 = arith.truncf %104 : vector<128x8xf32> to vector<128x8xbf16>
    %c0_67 = arith.constant 0 : index
    %c0_68 = arith.constant 0 : index
    %106 = vector.load %arg13[%c0_67, %c0_68] : memref<8x16xbf16, #tpu.memory_space<vmem>>, vector<8x16xbf16>
    %cst_69 = arith.constant dense<0.000000e+00> : vector<128x16xf32>
    %107 = tpu.matmul %105, %106, %cst_69 {dimension_numbers = #tpu.dot_dimension_numbers<[1], [0], [0], [1], [0, 0, 1, 1], [], []>} : vector<128x8xbf16>, vector<8x16xbf16>, vector<128x16xf32> -> vector<128x16xf32>
    %108 = arith.truncf %107 : vector<128x16xf32> to vector<128x16xbf16>
    %c0_70 = arith.constant 0 : index
    %c0_71 = arith.constant 0 : index
    %c0_72 = arith.constant 0 : index
    %109 = vector.load %arg12[%c0_70, %c0_71, %c0_72] : memref<4x128x128xbf16, #tpu.memory_space<vmem>>, vector<1x128x128xbf16>
    %110 = vector.shape_cast %109 : vector<1x128x128xbf16> to vector<128x128xbf16>
    %111 = vector.extract_strided_slice %108 {offsets = [0, 0], sizes = [128, 4], strides = [1, 1]} : vector<128x16xbf16> to vector<128x4xbf16>
    %cst_73 = arith.constant dense<0.000000e+00> : vector<128x4xf32>
    %112 = tpu.matmul %110, %111, %cst_73 {dimension_numbers = #tpu.dot_dimension_numbers<[1], [0], [0], [1], [0, 0, 1, 1], [], []>} : vector<128x128xbf16>, vector<128x4xbf16>, vector<128x4xf32> -> vector<128x4xf32>
    %c1_74 = arith.constant 1 : index
    %c0_75 = arith.constant 0 : index
    %c0_76 = arith.constant 0 : index
    %113 = vector.load %arg12[%c1_74, %c0_75, %c0_76] : memref<4x128x128xbf16, #tpu.memory_space<vmem>>, vector<1x128x128xbf16>
    %114 = vector.shape_cast %113 : vector<1x128x128xbf16> to vector<128x128xbf16>
    %115 = vector.extract_strided_slice %108 {offsets = [0, 4], sizes = [128, 4], strides = [1, 1]} : vector<128x16xbf16> to vector<128x4xbf16>
    %cst_77 = arith.constant dense<0.000000e+00> : vector<128x4xf32>
    %116 = tpu.matmul %114, %115, %cst_77 {dimension_numbers = #tpu.dot_dimension_numbers<[1], [0], [0], [1], [0, 0, 1, 1], [], []>} : vector<128x128xbf16>, vector<128x4xbf16>, vector<128x4xf32> -> vector<128x4xf32>
    %117 = arith.addf %112, %116 : vector<128x4xf32>
    %c2_78 = arith.constant 2 : index
    %c0_79 = arith.constant 0 : index
    %c0_80 = arith.constant 0 : index
    %118 = vector.load %arg12[%c2_78, %c0_79, %c0_80] : memref<4x128x128xbf16, #tpu.memory_space<vmem>>, vector<1x128x128xbf16>
    %119 = vector.shape_cast %118 : vector<1x128x128xbf16> to vector<128x128xbf16>
    %120 = vector.extract_strided_slice %108 {offsets = [0, 8], sizes = [128, 4], strides = [1, 1]} : vector<128x16xbf16> to vector<128x4xbf16>
    %cst_81 = arith.constant dense<0.000000e+00> : vector<128x4xf32>
    %121 = tpu.matmul %119, %120, %cst_81 {dimension_numbers = #tpu.dot_dimension_numbers<[1], [0], [0], [1], [0, 0, 1, 1], [], []>} : vector<128x128xbf16>, vector<128x4xbf16>, vector<128x4xf32> -> vector<128x4xf32>
    %122 = arith.addf %117, %121 : vector<128x4xf32>
    %c3_82 = arith.constant 3 : index
    %c0_83 = arith.constant 0 : index
    %c0_84 = arith.constant 0 : index
    %123 = vector.load %arg12[%c3_82, %c0_83, %c0_84] : memref<4x128x128xbf16, #tpu.memory_space<vmem>>, vector<1x128x128xbf16>
    %124 = vector.shape_cast %123 : vector<1x128x128xbf16> to vector<128x128xbf16>
    %125 = vector.extract_strided_slice %108 {offsets = [0, 12], sizes = [128, 4], strides = [1, 1]} : vector<128x16xbf16> to vector<128x4xbf16>
    %cst_85 = arith.constant dense<0.000000e+00> : vector<128x4xf32>
    %126 = tpu.matmul %124, %125, %cst_85 {dimension_numbers = #tpu.dot_dimension_numbers<[1], [0], [0], [1], [0, 0, 1, 1], [], []>} : vector<128x128xbf16>, vector<128x4xbf16>, vector<128x4xf32> -> vector<128x4xf32>
    %127 = arith.addf %122, %126 : vector<128x4xf32>
    %cst_86 = arith.constant dense<0.000000e+00> : vector<128xf32>
    %128 = vector.multi_reduction <add>, %127, %cst_86 [1] : vector<128x4xf32> to vector<128xf32>
    %129 = vector.shape_cast %128 : vector<128xf32> to vector<128x1xf32>
    %130 = arith.mulf %127, %127 : vector<128x4xf32>
    %cst_87 = arith.constant dense<0.000000e+00> : vector<128xf32>
    %131 = vector.multi_reduction <add>, %130, %cst_87 [1] : vector<128x4xf32> to vector<128xf32>
    %132 = vector.shape_cast %131 : vector<128xf32> to vector<128x1xf32>
    %c0_88 = arith.constant 0 : index
    %c0_89 = arith.constant 0 : index
    %133 = vector.load %arg14[%c0_88, %c0_89] : memref<128x128xf32, #tpu.memory_space<vmem>>, vector<128x128xf32>
    %cst_90 = arith.constant dense<0.000000e+00> : vector<128x1xf32>
    %134 = tpu.matmul %133, %129, %cst_90 {dimension_numbers = #tpu.dot_dimension_numbers<[1], [0], [0], [1], [0, 0, 1, 1], [], []>} : vector<128x128xf32>, vector<128x1xf32>, vector<128x1xf32> -> vector<128x1xf32>
    %cst_91 = arith.constant 3.125000e-02 : f32
    %135 = vector.broadcast %cst_91 : f32 to vector<128x1xf32>
    %136 = arith.mulf %134, %135 : vector<128x1xf32>
    %c0_92 = arith.constant 0 : index
    %c0_93 = arith.constant 0 : index
    %137 = vector.load %arg14[%c0_92, %c0_93] : memref<128x128xf32, #tpu.memory_space<vmem>>, vector<128x128xf32>
    %cst_94 = arith.constant dense<0.000000e+00> : vector<128x1xf32>
    %138 = tpu.matmul %137, %132, %cst_94 {dimension_numbers = #tpu.dot_dimension_numbers<[1], [0], [0], [1], [0, 0, 1, 1], [], []>} : vector<128x128xf32>, vector<128x1xf32>, vector<128x1xf32> -> vector<128x1xf32>
    %cst_95 = arith.constant 3.125000e-02 : f32
    %139 = vector.broadcast %cst_95 : f32 to vector<128x1xf32>
    %140 = arith.mulf %138, %139 : vector<128x1xf32>
    %141 = arith.mulf %136, %136 : vector<128x1xf32>
    %142 = arith.subf %140, %141 : vector<128x1xf32>
    %c0_96 = arith.constant 0 : index
    %c0_97 = arith.constant 0 : index
    %143 = vector.load %arg15[%c0_96, %c0_97] : memref<128x1xf32, #tpu.memory_space<vmem>>, vector<128x1xf32>
    %cst_98 = arith.constant 9.99999974E-6 : f32
    %144 = vector.broadcast %cst_98 : f32 to vector<128x1xf32>
    %145 = arith.addf %142, %144 : vector<128x1xf32>
    %146 = math.rsqrt %145 : vector<128x1xf32>
    %147 = arith.mulf %143, %146 : vector<128x1xf32>
    %c0_99 = arith.constant 0 : index
    %c0_100 = arith.constant 0 : index
    %148 = vector.load %arg16[%c0_99, %c0_100] : memref<128x1xf32, #tpu.memory_space<vmem>>, vector<128x1xf32>
    %149 = arith.mulf %136, %147 : vector<128x1xf32>
    %150 = arith.subf %148, %149 : vector<128x1xf32>
    %151 = vector.broadcast %147 : vector<128x1xf32> to vector<128x4xf32>
    %152 = arith.mulf %127, %151 : vector<128x4xf32>
    %153 = vector.broadcast %150 : vector<128x1xf32> to vector<128x4xf32>
    %154 = arith.addf %152, %153 : vector<128x4xf32>
    %155 = arith.truncf %154 : vector<128x4xf32> to vector<128x4xbf16>
    %c0_101 = arith.constant 0 : index
    %c0_102 = arith.constant 0 : index
    %156 = vector.load %arg18[%c0_101, %c0_102] : memref<32x1xf32, #tpu.memory_space<vmem>>, vector<32x1xf32>
    %c0_103 = arith.constant 0 : index
    %c0_104 = arith.constant 0 : index
    %c0_105 = arith.constant 0 : index
    %157 = vector.load %arg17[%c0_103, %c0_104, %c0_105] : memref<4x32x128xbf16, #tpu.memory_space<vmem>>, vector<1x32x128xbf16>
    %158 = vector.shape_cast %157 : vector<1x32x128xbf16> to vector<32x128xbf16>
    %159 = vector.extract_strided_slice %155 {offsets = [0, 0], sizes = [128, 1], strides = [1, 1]} : vector<128x4xbf16> to vector<128x1xbf16>
    %cst_106 = arith.constant dense<0.000000e+00> : vector<32x1xf32>
    %160 = tpu.matmul %158, %159, %cst_106 {dimension_numbers = #tpu.dot_dimension_numbers<[1], [0], [0], [1], [0, 0, 1, 1], [], []>} : vector<32x128xbf16>, vector<128x1xbf16>, vector<32x1xf32> -> vector<32x1xf32>
    %161 = arith.addf %156, %160 : vector<32x1xf32>
    %c1_107 = arith.constant 1 : index
    %c0_108 = arith.constant 0 : index
    %c0_109 = arith.constant 0 : index
    %162 = vector.load %arg17[%c1_107, %c0_108, %c0_109] : memref<4x32x128xbf16, #tpu.memory_space<vmem>>, vector<1x32x128xbf16>
    %163 = vector.shape_cast %162 : vector<1x32x128xbf16> to vector<32x128xbf16>
    %164 = vector.extract_strided_slice %155 {offsets = [0, 1], sizes = [128, 1], strides = [1, 1]} : vector<128x4xbf16> to vector<128x1xbf16>
    %cst_110 = arith.constant dense<0.000000e+00> : vector<32x1xf32>
    %165 = tpu.matmul %163, %164, %cst_110 {dimension_numbers = #tpu.dot_dimension_numbers<[1], [0], [0], [1], [0, 0, 1, 1], [], []>} : vector<32x128xbf16>, vector<128x1xbf16>, vector<32x1xf32> -> vector<32x1xf32>
    %166 = arith.addf %161, %165 : vector<32x1xf32>
    %c2_111 = arith.constant 2 : index
    %c0_112 = arith.constant 0 : index
    %c0_113 = arith.constant 0 : index
    %167 = vector.load %arg17[%c2_111, %c0_112, %c0_113] : memref<4x32x128xbf16, #tpu.memory_space<vmem>>, vector<1x32x128xbf16>
    %168 = vector.shape_cast %167 : vector<1x32x128xbf16> to vector<32x128xbf16>
    %169 = vector.extract_strided_slice %155 {offsets = [0, 2], sizes = [128, 1], strides = [1, 1]} : vector<128x4xbf16> to vector<128x1xbf16>
    %cst_114 = arith.constant dense<0.000000e+00> : vector<32x1xf32>
    %170 = tpu.matmul %168, %169, %cst_114 {dimension_numbers = #tpu.dot_dimension_numbers<[1], [0], [0], [1], [0, 0, 1, 1], [], []>} : vector<32x128xbf16>, vector<128x1xbf16>, vector<32x1xf32> -> vector<32x1xf32>
    %171 = arith.addf %166, %170 : vector<32x1xf32>
    %c3_115 = arith.constant 3 : index
    %c0_116 = arith.constant 0 : index
    %c0_117 = arith.constant 0 : index
    %172 = vector.load %arg17[%c3_115, %c0_116, %c0_117] : memref<4x32x128xbf16, #tpu.memory_space<vmem>>, vector<1x32x128xbf16>
    %173 = vector.shape_cast %172 : vector<1x32x128xbf16> to vector<32x128xbf16>
    %174 = vector.extract_strided_slice %155 {offsets = [0, 3], sizes = [128, 1], strides = [1, 1]} : vector<128x4xbf16> to vector<128x1xbf16>
    %cst_118 = arith.constant dense<0.000000e+00> : vector<32x1xf32>
    %175 = tpu.matmul %173, %174, %cst_118 {dimension_numbers = #tpu.dot_dimension_numbers<[1], [0], [0], [1], [0, 0, 1, 1], [], []>} : vector<32x128xbf16>, vector<128x1xbf16>, vector<32x1xf32> -> vector<32x1xf32>
    %176 = arith.addf %171, %175 : vector<32x1xf32>
    %177 = vector.extract_strided_slice %176 {offsets = [0, 0], sizes = [16, 1], strides = [1, 1]} : vector<32x1xf32> to vector<16x1xf32>
    %178 = vector.extract_strided_slice %176 {offsets = [16, 0], sizes = [16, 1], strides = [1, 1]} : vector<32x1xf32> to vector<16x1xf32>
    %c0_119 = arith.constant 0 : index
    %c0_120 = arith.constant 0 : index
    %179 = vector.load %arg34[%c0_119, %c0_120] : memref<16x1xf32, #tpu.memory_space<vmem>>, vector<16x1xf32>
    tpu.vector_store %arg34[%c0_119, %c0_120], %177 {strides = array<i32>} : memref<16x1xf32, #tpu.memory_space<vmem>>, vector<16x1xf32>,
    %c0_121 = arith.constant 0 : index
    %c0_122 = arith.constant 0 : index
    %180 = vector.load %arg35[%c0_121, %c0_122] : memref<16x1xf32, #tpu.memory_space<vmem>>, vector<16x1xf32>
    tpu.vector_store %arg35[%c0_121, %c0_122], %178 {strides = array<i32>} : memref<16x1xf32, #tpu.memory_space<vmem>>, vector<16x1xf32>,
    %c0_123 = arith.constant 0 : index
    %c0_124 = arith.constant 0 : index
    %181 = vector.load %arg1[%c0_123, %c0_124] : memref<16x1xf32, #tpu.memory_space<vmem>>, vector<16x1xf32>
    %cst_125 = arith.constant 5.000000e-01 : f32
    %182 = vector.broadcast %cst_125 : f32 to vector<16x1xf32>
    %183 = arith.mulf %182, %178 : vector<16x1xf32>
    %184 = math.exp %183 : vector<16x1xf32>
    %185 = arith.mulf %181, %184 : vector<16x1xf32>
    %186 = arith.addf %177, %185 : vector<16x1xf32>
    %187 = arith.truncf %186 : vector<16x1xf32> to vector<16x1xbf16>
    %c0_126 = arith.constant 0 : index
    %c0_127 = arith.constant 0 : index
    %188 = vector.load %arg20[%c0_126, %c0_127] : memref<128x4xf32, #tpu.memory_space<vmem>>, vector<128x4xf32>
    %c0_128 = arith.constant 0 : index
    %c0_129 = arith.constant 0 : index
    %c0_130 = arith.constant 0 : index
    %189 = vector.load %arg19[%c0_128, %c0_129, %c0_130] : memref<4x128x16xbf16, #tpu.memory_space<vmem>>, vector<1x128x16xbf16>
    %190 = vector.shape_cast %189 : vector<1x128x16xbf16> to vector<128x16xbf16>
    %cst_131 = arith.constant dense<0.000000e+00> : vector<128x1xf32>
    %191 = tpu.matmul %190, %187, %cst_131 {dimension_numbers = #tpu.dot_dimension_numbers<[1], [0], [0], [1], [0, 0, 1, 1], [], []>} : vector<128x16xbf16>, vector<16x1xbf16>, vector<128x1xf32> -> vector<128x1xf32>
    %192 = tpu.iota {dimensions = array<i32: 1>} : vector<1x4xi32>
    %c0_i32 = arith.constant 0 : i32
    %193 = vector.broadcast %c0_i32 : i32 to vector<1x4xi32>
    %194 = arith.cmpi eq, %192, %193 : vector<1x4xi32>
    %195 = arith.extui %194 : vector<1x4xi1> to vector<1x4xi32>
    %196 = arith.sitofp %195 : vector<1x4xi32> to vector<1x4xf32>
    %197 = vector.broadcast %191 : vector<128x1xf32> to vector<128x4xf32>
    %198 = vector.broadcast %196 : vector<1x4xf32> to vector<128x4xf32>
    %199 = arith.mulf %197, %198 : vector<128x4xf32>
    %200 = arith.addf %188, %199 : vector<128x4xf32>
    %c1_132 = arith.constant 1 : index
    %c0_133 = arith.constant 0 : index
    %c0_134 = arith.constant 0 : index
    %201 = vector.load %arg19[%c1_132, %c0_133, %c0_134] : memref<4x128x16xbf16, #tpu.memory_space<vmem>>, vector<1x128x16xbf16>
    %202 = vector.shape_cast %201 : vector<1x128x16xbf16> to vector<128x16xbf16>
    %cst_135 = arith.constant dense<0.000000e+00> : vector<128x1xf32>
    %203 = tpu.matmul %202, %187, %cst_135 {dimension_numbers = #tpu.dot_dimension_numbers<[1], [0], [0], [1], [0, 0, 1, 1], [], []>} : vector<128x16xbf16>, vector<16x1xbf16>, vector<128x1xf32> -> vector<128x1xf32>
    %204 = tpu.iota {dimensions = array<i32: 1>} : vector<1x4xi32>
    %c1_i32 = arith.constant 1 : i32
    %205 = vector.broadcast %c1_i32 : i32 to vector<1x4xi32>
    %206 = arith.cmpi eq, %204, %205 : vector<1x4xi32>
    %207 = arith.extui %206 : vector<1x4xi1> to vector<1x4xi32>
    %208 = arith.sitofp %207 : vector<1x4xi32> to vector<1x4xf32>
    %209 = vector.broadcast %203 : vector<128x1xf32> to vector<128x4xf32>
    %210 = vector.broadcast %208 : vector<1x4xf32> to vector<128x4xf32>
    %211 = arith.mulf %209, %210 : vector<128x4xf32>
    %212 = arith.addf %200, %211 : vector<128x4xf32>
    %c2_136 = arith.constant 2 : index
    %c0_137 = arith.constant 0 : index
    %c0_138 = arith.constant 0 : index
    %213 = vector.load %arg19[%c2_136, %c0_137, %c0_138] : memref<4x128x16xbf16, #tpu.memory_space<vmem>>, vector<1x128x16xbf16>
    %214 = vector.shape_cast %213 : vector<1x128x16xbf16> to vector<128x16xbf16>
    %cst_139 = arith.constant dense<0.000000e+00> : vector<128x1xf32>
    %215 = tpu.matmul %214, %187, %cst_139 {dimension_numbers = #tpu.dot_dimension_numbers<[1], [0], [0], [1], [0, 0, 1, 1], [], []>} : vector<128x16xbf16>, vector<16x1xbf16>, vector<128x1xf32> -> vector<128x1xf32>
    %216 = tpu.iota {dimensions = array<i32: 1>} : vector<1x4xi32>
    %c2_i32 = arith.constant 2 : i32
    %217 = vector.broadcast %c2_i32 : i32 to vector<1x4xi32>
    %218 = arith.cmpi eq, %216, %217 : vector<1x4xi32>
    %219 = arith.extui %218 : vector<1x4xi1> to vector<1x4xi32>
    %220 = arith.sitofp %219 : vector<1x4xi32> to vector<1x4xf32>
    %221 = vector.broadcast %215 : vector<128x1xf32> to vector<128x4xf32>
    %222 = vector.broadcast %220 : vector<1x4xf32> to vector<128x4xf32>
    %223 = arith.mulf %221, %222 : vector<128x4xf32>
    %224 = arith.addf %212, %223 : vector<128x4xf32>
    %c3_140 = arith.constant 3 : index
    %c0_141 = arith.constant 0 : index
    %c0_142 = arith.constant 0 : index
    %225 = vector.load %arg19[%c3_140, %c0_141, %c0_142] : memref<4x128x16xbf16, #tpu.memory_space<vmem>>, vector<1x128x16xbf16>
    %226 = vector.shape_cast %225 : vector<1x128x16xbf16> to vector<128x16xbf16>
    %cst_143 = arith.constant dense<0.000000e+00> : vector<128x1xf32>
    %227 = tpu.matmul %226, %187, %cst_143 {dimension_numbers = #tpu.dot_dimension_numbers<[1], [0], [0], [1], [0, 0, 1, 1], [], []>} : vector<128x16xbf16>, vector<16x1xbf16>, vector<128x1xf32> -> vector<128x1xf32>
    %228 = tpu.iota {dimensions = array<i32: 1>} : vector<1x4xi32>
    %c3_i32 = arith.constant 3 : i32
    %229 = vector.broadcast %c3_i32 : i32 to vector<1x4xi32>
    %230 = arith.cmpi eq, %228, %229 : vector<1x4xi32>
    %231 = arith.extui %230 : vector<1x4xi1> to vector<1x4xi32>
    %232 = arith.sitofp %231 : vector<1x4xi32> to vector<1x4xf32>
    %233 = vector.broadcast %227 : vector<128x1xf32> to vector<128x4xf32>
    %234 = vector.broadcast %232 : vector<1x4xf32> to vector<128x4xf32>
    %235 = arith.mulf %233, %234 : vector<128x4xf32>
    %236 = arith.addf %224, %235 : vector<128x4xf32>
    %237 = arith.truncf %236 : vector<128x4xf32> to vector<128x4xbf16>
    %c0_144 = arith.constant 0 : index
    %c0_145 = arith.constant 0 : index
    %238 = vector.load %arg22[%c0_144, %c0_145] : memref<4x32xbf16, #tpu.memory_space<vmem>>, vector<4x32xbf16>
    %cst_146 = arith.constant dense<0.000000e+00> : vector<128x32xf32>
    %239 = tpu.matmul %237, %238, %cst_146 {dimension_numbers = #tpu.dot_dimension_numbers<[1], [0], [0], [1], [0, 0, 1, 1], [], []>} : vector<128x4xbf16>, vector<4x32xbf16>, vector<128x32xf32> -> vector<128x32xf32>
    %240 = arith.truncf %239 : vector<128x32xf32> to vector<128x32xbf16>
    %c0_147 = arith.constant 0 : index
    %c0_148 = arith.constant 0 : index
    %c0_149 = arith.constant 0 : index
    %241 = vector.load %arg21[%c0_147, %c0_148, %c0_149] : memref<4x128x128xbf16, #tpu.memory_space<vmem>>, vector<1x128x128xbf16>
    %242 = vector.shape_cast %241 : vector<1x128x128xbf16> to vector<128x128xbf16>
    %243 = vector.extract_strided_slice %240 {offsets = [0, 0], sizes = [128, 8], strides = [1, 1]} : vector<128x32xbf16> to vector<128x8xbf16>
    %cst_150 = arith.constant dense<0.000000e+00> : vector<128x8xf32>
    %244 = tpu.matmul %242, %243, %cst_150 {dimension_numbers = #tpu.dot_dimension_numbers<[1], [0], [0], [1], [0, 0, 1, 1], [], []>} : vector<128x128xbf16>, vector<128x8xbf16>, vector<128x8xf32> -> vector<128x8xf32>
    %c1_151 = arith.constant 1 : index
    %c0_152 = arith.constant 0 : index
    %c0_153 = arith.constant 0 : index
    %245 = vector.load %arg21[%c1_151, %c0_152, %c0_153] : memref<4x128x128xbf16, #tpu.memory_space<vmem>>, vector<1x128x128xbf16>
    %246 = vector.shape_cast %245 : vector<1x128x128xbf16> to vector<128x128xbf16>
    %247 = vector.extract_strided_slice %240 {offsets = [0, 8], sizes = [128, 8], strides = [1, 1]} : vector<128x32xbf16> to vector<128x8xbf16>
    %cst_154 = arith.constant dense<0.000000e+00> : vector<128x8xf32>
    %248 = tpu.matmul %246, %247, %cst_154 {dimension_numbers = #tpu.dot_dimension_numbers<[1], [0], [0], [1], [0, 0, 1, 1], [], []>} : vector<128x128xbf16>, vector<128x8xbf16>, vector<128x8xf32> -> vector<128x8xf32>
    %249 = arith.addf %244, %248 : vector<128x8xf32>
    %c2_155 = arith.constant 2 : index
    %c0_156 = arith.constant 0 : index
    %c0_157 = arith.constant 0 : index
    %250 = vector.load %arg21[%c2_155, %c0_156, %c0_157] : memref<4x128x128xbf16, #tpu.memory_space<vmem>>, vector<1x128x128xbf16>
    %251 = vector.shape_cast %250 : vector<1x128x128xbf16> to vector<128x128xbf16>
    %252 = vector.extract_strided_slice %240 {offsets = [0, 16], sizes = [128, 8], strides = [1, 1]} : vector<128x32xbf16> to vector<128x8xbf16>
    %cst_158 = arith.constant dense<0.000000e+00> : vector<128x8xf32>
    %253 = tpu.matmul %251, %252, %cst_158 {dimension_numbers = #tpu.dot_dimension_numbers<[1], [0], [0], [1], [0, 0, 1, 1], [], []>} : vector<128x128xbf16>, vector<128x8xbf16>, vector<128x8xf32> -> vector<128x8xf32>
    %254 = arith.addf %249, %253 : vector<128x8xf32>
    %c3_159 = arith.constant 3 : index
    %c0_160 = arith.constant 0 : index
    %c0_161 = arith.constant 0 : index
    %255 = vector.load %arg21[%c3_159, %c0_160, %c0_161] : memref<4x128x128xbf16, #tpu.memory_space<vmem>>, vector<1x128x128xbf16>
    %256 = vector.shape_cast %255 : vector<1x128x128xbf16> to vector<128x128xbf16>
    %257 = vector.extract_strided_slice %240 {offsets = [0, 24], sizes = [128, 8], strides = [1, 1]} : vector<128x32xbf16> to vector<128x8xbf16>
    %cst_162 = arith.constant dense<0.000000e+00> : vector<128x8xf32>
    %258 = tpu.matmul %256, %257, %cst_162 {dimension_numbers = #tpu.dot_dimension_numbers<[1], [0], [0], [1], [0, 0, 1, 1], [], []>} : vector<128x128xbf16>, vector<128x8xbf16>, vector<128x8xf32> -> vector<128x8xf32>
    %259 = arith.addf %254, %258 : vector<128x8xf32>
    %cst_163 = arith.constant dense<0.000000e+00> : vector<128xf32>
    %260 = vector.multi_reduction <add>, %259, %cst_163 [1] : vector<128x8xf32> to vector<128xf32>
    %261 = vector.shape_cast %260 : vector<128xf32> to vector<128x1xf32>
    %262 = arith.mulf %259, %259 : vector<128x8xf32>
    %cst_164 = arith.constant dense<0.000000e+00> : vector<128xf32>
    %263 = vector.multi_reduction <add>, %262, %cst_164 [1] : vector<128x8xf32> to vector<128xf32>
    %264 = vector.shape_cast %263 : vector<128xf32> to vector<128x1xf32>
    %c0_165 = arith.constant 0 : index
    %c0_166 = arith.constant 0 : index
    %265 = vector.load %arg23[%c0_165, %c0_166] : memref<128x128xf32, #tpu.memory_space<vmem>>, vector<128x128xf32>
    %cst_167 = arith.constant dense<0.000000e+00> : vector<128x1xf32>
    %266 = tpu.matmul %265, %261, %cst_167 {dimension_numbers = #tpu.dot_dimension_numbers<[1], [0], [0], [1], [0, 0, 1, 1], [], []>} : vector<128x128xf32>, vector<128x1xf32>, vector<128x1xf32> -> vector<128x1xf32>
    %cst_168 = arith.constant 7.812500e-03 : f32
    %267 = vector.broadcast %cst_168 : f32 to vector<128x1xf32>
    %268 = arith.mulf %266, %267 : vector<128x1xf32>
    %c0_169 = arith.constant 0 : index
    %c0_170 = arith.constant 0 : index
    %269 = vector.load %arg23[%c0_169, %c0_170] : memref<128x128xf32, #tpu.memory_space<vmem>>, vector<128x128xf32>
    %cst_171 = arith.constant dense<0.000000e+00> : vector<128x1xf32>
    %270 = tpu.matmul %269, %264, %cst_171 {dimension_numbers = #tpu.dot_dimension_numbers<[1], [0], [0], [1], [0, 0, 1, 1], [], []>} : vector<128x128xf32>, vector<128x1xf32>, vector<128x1xf32> -> vector<128x1xf32>
    %cst_172 = arith.constant 7.812500e-03 : f32
    %271 = vector.broadcast %cst_172 : f32 to vector<128x1xf32>
    %272 = arith.mulf %270, %271 : vector<128x1xf32>
    %273 = arith.mulf %268, %268 : vector<128x1xf32>
    %274 = arith.subf %272, %273 : vector<128x1xf32>
    %c0_173 = arith.constant 0 : index
    %c0_174 = arith.constant 0 : index
    %275 = vector.load %arg24[%c0_173, %c0_174] : memref<128x1xf32, #tpu.memory_space<vmem>>, vector<128x1xf32>
    %cst_175 = arith.constant 9.99999974E-6 : f32
    %276 = vector.broadcast %cst_175 : f32 to vector<128x1xf32>
    %277 = arith.addf %274, %276 : vector<128x1xf32>
    %278 = math.rsqrt %277 : vector<128x1xf32>
    %279 = arith.mulf %275, %278 : vector<128x1xf32>
    %c0_176 = arith.constant 0 : index
    %c0_177 = arith.constant 0 : index
    %280 = vector.load %arg25[%c0_176, %c0_177] : memref<128x1xf32, #tpu.memory_space<vmem>>, vector<128x1xf32>
    %281 = arith.mulf %268, %279 : vector<128x1xf32>
    %282 = arith.subf %280, %281 : vector<128x1xf32>
    %283 = vector.broadcast %279 : vector<128x1xf32> to vector<128x8xf32>
    %284 = arith.mulf %259, %283 : vector<128x8xf32>
    %285 = vector.broadcast %282 : vector<128x1xf32> to vector<128x8xf32>
    %286 = arith.addf %284, %285 : vector<128x8xf32>
    %cst_178 = arith.constant 0.000000e+00 : f32
    %287 = vector.broadcast %cst_178 : f32 to vector<128x8xf32>
    %288 = arith.maximumf %286, %287 : vector<128x8xf32>
    %289 = arith.truncf %288 : vector<128x8xf32> to vector<128x8xbf16>
    %c0_179 = arith.constant 0 : index
    %c0_180 = arith.constant 0 : index
    %290 = vector.load %arg27[%c0_179, %c0_180] : memref<8x64xbf16, #tpu.memory_space<vmem>>, vector<8x64xbf16>
    %cst_181 = arith.constant dense<0.000000e+00> : vector<128x64xf32>
    %291 = tpu.matmul %289, %290, %cst_181 {dimension_numbers = #tpu.dot_dimension_numbers<[1], [0], [0], [1], [0, 0, 1, 1], [], []>} : vector<128x8xbf16>, vector<8x64xbf16>, vector<128x64xf32> -> vector<128x64xf32>
    %292 = arith.truncf %291 : vector<128x64xf32> to vector<128x64xbf16>
    %c0_182 = arith.constant 0 : index
    %c0_183 = arith.constant 0 : index
    %c0_184 = arith.constant 0 : index
    %293 = vector.load %arg26[%c0_182, %c0_183, %c0_184] : memref<4x128x128xbf16, #tpu.memory_space<vmem>>, vector<1x128x128xbf16>
    %294 = vector.shape_cast %293 : vector<1x128x128xbf16> to vector<128x128xbf16>
    %295 = vector.extract_strided_slice %292 {offsets = [0, 0], sizes = [128, 16], strides = [1, 1]} : vector<128x64xbf16> to vector<128x16xbf16>
    %cst_185 = arith.constant dense<0.000000e+00> : vector<128x16xf32>
    %296 = tpu.matmul %294, %295, %cst_185 {dimension_numbers = #tpu.dot_dimension_numbers<[1], [0], [0], [1], [0, 0, 1, 1], [], []>} : vector<128x128xbf16>, vector<128x16xbf16>, vector<128x16xf32> -> vector<128x16xf32>
    %c1_186 = arith.constant 1 : index
    %c0_187 = arith.constant 0 : index
    %c0_188 = arith.constant 0 : index
    %297 = vector.load %arg26[%c1_186, %c0_187, %c0_188] : memref<4x128x128xbf16, #tpu.memory_space<vmem>>, vector<1x128x128xbf16>
    %298 = vector.shape_cast %297 : vector<1x128x128xbf16> to vector<128x128xbf16>
    %299 = vector.extract_strided_slice %292 {offsets = [0, 16], sizes = [128, 16], strides = [1, 1]} : vector<128x64xbf16> to vector<128x16xbf16>
    %cst_189 = arith.constant dense<0.000000e+00> : vector<128x16xf32>
    %300 = tpu.matmul %298, %299, %cst_189 {dimension_numbers = #tpu.dot_dimension_numbers<[1], [0], [0], [1], [0, 0, 1, 1], [], []>} : vector<128x128xbf16>, vector<128x16xbf16>, vector<128x16xf32> -> vector<128x16xf32>
    %301 = arith.addf %296, %300 : vector<128x16xf32>
    %c2_190 = arith.constant 2 : index
    %c0_191 = arith.constant 0 : index
    %c0_192 = arith.constant 0 : index
    %302 = vector.load %arg26[%c2_190, %c0_191, %c0_192] : memref<4x128x128xbf16, #tpu.memory_space<vmem>>, vector<1x128x128xbf16>
    %303 = vector.shape_cast %302 : vector<1x128x128xbf16> to vector<128x128xbf16>
    %304 = vector.extract_strided_slice %292 {offsets = [0, 32], sizes = [128, 16], strides = [1, 1]} : vector<128x64xbf16> to vector<128x16xbf16>
    %cst_193 = arith.constant dense<0.000000e+00> : vector<128x16xf32>
    %305 = tpu.matmul %303, %304, %cst_193 {dimension_numbers = #tpu.dot_dimension_numbers<[1], [0], [0], [1], [0, 0, 1, 1], [], []>} : vector<128x128xbf16>, vector<128x16xbf16>, vector<128x16xf32> -> vector<128x16xf32>
    %306 = arith.addf %301, %305 : vector<128x16xf32>
    %c3_194 = arith.constant 3 : index
    %c0_195 = arith.constant 0 : index
    %c0_196 = arith.constant 0 : index
    %307 = vector.load %arg26[%c3_194, %c0_195, %c0_196] : memref<4x128x128xbf16, #tpu.memory_space<vmem>>, vector<1x128x128xbf16>
    %308 = vector.shape_cast %307 : vector<1x128x128xbf16> to vector<128x128xbf16>
    %309 = vector.extract_strided_slice %292 {offsets = [0, 48], sizes = [128, 16], strides = [1, 1]} : vector<128x64xbf16> to vector<128x16xbf16>
    %cst_197 = arith.constant dense<0.000000e+00> : vector<128x16xf32>
    %310 = tpu.matmul %308, %309, %cst_197 {dimension_numbers = #tpu.dot_dimension_numbers<[1], [0], [0], [1], [0, 0, 1, 1], [], []>} : vector<128x128xbf16>, vector<128x16xbf16>, vector<128x16xf32> -> vector<128x16xf32>
    %311 = arith.addf %306, %310 : vector<128x16xf32>
    %cst_198 = arith.constant dense<0.000000e+00> : vector<128xf32>
    %312 = vector.multi_reduction <add>, %311, %cst_198 [1] : vector<128x16xf32> to vector<128xf32>
    %313 = vector.shape_cast %312 : vector<128xf32> to vector<128x1xf32>
    %314 = arith.mulf %311, %311 : vector<128x16xf32>
    %cst_199 = arith.constant dense<0.000000e+00> : vector<128xf32>
    %315 = vector.multi_reduction <add>, %314, %cst_199 [1] : vector<128x16xf32> to vector<128xf32>
    %316 = vector.shape_cast %315 : vector<128xf32> to vector<128x1xf32>
    %c0_200 = arith.constant 0 : index
    %c0_201 = arith.constant 0 : index
    %317 = vector.load %arg28[%c0_200, %c0_201] : memref<128x128xf32, #tpu.memory_space<vmem>>, vector<128x128xf32>
    %cst_202 = arith.constant dense<0.000000e+00> : vector<128x1xf32>
    %318 = tpu.matmul %317, %313, %cst_202 {dimension_numbers = #tpu.dot_dimension_numbers<[1], [0], [0], [1], [0, 0, 1, 1], [], []>} : vector<128x128xf32>, vector<128x1xf32>, vector<128x1xf32> -> vector<128x1xf32>
    %cst_203 = arith.constant 0.001953125 : f32
    %319 = vector.broadcast %cst_203 : f32 to vector<128x1xf32>
    %320 = arith.mulf %318, %319 : vector<128x1xf32>
    %c0_204 = arith.constant 0 : index
    %c0_205 = arith.constant 0 : index
    %321 = vector.load %arg28[%c0_204, %c0_205] : memref<128x128xf32, #tpu.memory_space<vmem>>, vector<128x128xf32>
    %cst_206 = arith.constant dense<0.000000e+00> : vector<128x1xf32>
    %322 = tpu.matmul %321, %316, %cst_206 {dimension_numbers = #tpu.dot_dimension_numbers<[1], [0], [0], [1], [0, 0, 1, 1], [], []>} : vector<128x128xf32>, vector<128x1xf32>, vector<128x1xf32> -> vector<128x1xf32>
    %cst_207 = arith.constant 0.001953125 : f32
    %323 = vector.broadcast %cst_207 : f32 to vector<128x1xf32>
    %324 = arith.mulf %322, %323 : vector<128x1xf32>
    %325 = arith.mulf %320, %320 : vector<128x1xf32>
    %326 = arith.subf %324, %325 : vector<128x1xf32>
    %c0_208 = arith.constant 0 : index
    %c0_209 = arith.constant 0 : index
    %327 = vector.load %arg29[%c0_208, %c0_209] : memref<128x1xf32, #tpu.memory_space<vmem>>, vector<128x1xf32>
    %cst_210 = arith.constant 9.99999974E-6 : f32
    %328 = vector.broadcast %cst_210 : f32 to vector<128x1xf32>
    %329 = arith.addf %326, %328 : vector<128x1xf32>
    %330 = math.rsqrt %329 : vector<128x1xf32>
    %331 = arith.mulf %327, %330 : vector<128x1xf32>
    %c0_211 = arith.constant 0 : index
    %c0_212 = arith.constant 0 : index
    %332 = vector.load %arg30[%c0_211, %c0_212] : memref<128x1xf32, #tpu.memory_space<vmem>>, vector<128x1xf32>
    %333 = arith.mulf %320, %331 : vector<128x1xf32>
    %334 = arith.subf %332, %333 : vector<128x1xf32>
    %335 = vector.broadcast %331 : vector<128x1xf32> to vector<128x16xf32>
    %336 = arith.mulf %311, %335 : vector<128x16xf32>
    %337 = vector.broadcast %334 : vector<128x1xf32> to vector<128x16xf32>
    %338 = arith.addf %336, %337 : vector<128x16xf32>
    %cst_213 = arith.constant 0.000000e+00 : f32
    %339 = vector.broadcast %cst_213 : f32 to vector<128x16xf32>
    %340 = arith.maximumf %338, %339 : vector<128x16xf32>
    %341 = arith.truncf %340 : vector<128x16xf32> to vector<128x16xbf16>
    %c0_214 = arith.constant 0 : index
    %c0_215 = arith.constant 0 : index
    %342 = vector.load %arg32[%c0_214, %c0_215] : memref<16x128xbf16, #tpu.memory_space<vmem>>, vector<16x128xbf16>
    %cst_216 = arith.constant dense<0.000000e+00> : vector<128x128xf32>
    %343 = tpu.matmul %341, %342, %cst_216 {dimension_numbers = #tpu.dot_dimension_numbers<[1], [0], [0], [1], [0, 0, 1, 1], [], []>} : vector<128x16xbf16>, vector<16x128xbf16>, vector<128x128xf32> -> vector<128x128xf32>
    %344 = arith.truncf %343 : vector<128x128xf32> to vector<128x128xbf16>
    %c0_217 = arith.constant 0 : index
    %c0_218 = arith.constant 0 : index
    %c0_219 = arith.constant 0 : index
    %345 = vector.load %arg31[%c0_217, %c0_218, %c0_219] : memref<4x192x128xbf16, #tpu.memory_space<vmem>>, vector<1x192x128xbf16>
    %346 = vector.shape_cast %345 : vector<1x192x128xbf16> to vector<192x128xbf16>
    %347 = vector.extract_strided_slice %344 {offsets = [0, 0], sizes = [128, 32], strides = [1, 1]} : vector<128x128xbf16> to vector<128x32xbf16>
    %cst_220 = arith.constant dense<0.000000e+00> : vector<192x32xf32>
    %348 = tpu.matmul %346, %347, %cst_220 {dimension_numbers = #tpu.dot_dimension_numbers<[1], [0], [0], [1], [0, 0, 1, 1], [], []>} : vector<192x128xbf16>, vector<128x32xbf16>, vector<192x32xf32> -> vector<192x32xf32>
    %c1_221 = arith.constant 1 : index
    %c0_222 = arith.constant 0 : index
    %c0_223 = arith.constant 0 : index
    %349 = vector.load %arg31[%c1_221, %c0_222, %c0_223] : memref<4x192x128xbf16, #tpu.memory_space<vmem>>, vector<1x192x128xbf16>
    %350 = vector.shape_cast %349 : vector<1x192x128xbf16> to vector<192x128xbf16>
    %351 = vector.extract_strided_slice %344 {offsets = [0, 32], sizes = [128, 32], strides = [1, 1]} : vector<128x128xbf16> to vector<128x32xbf16>
    %cst_224 = arith.constant dense<0.000000e+00> : vector<192x32xf32>
    %352 = tpu.matmul %350, %351, %cst_224 {dimension_numbers = #tpu.dot_dimension_numbers<[1], [0], [0], [1], [0, 0, 1, 1], [], []>} : vector<192x128xbf16>, vector<128x32xbf16>, vector<192x32xf32> -> vector<192x32xf32>
    %353 = arith.addf %348, %352 : vector<192x32xf32>
    %c2_225 = arith.constant 2 : index
    %c0_226 = arith.constant 0 : index
    %c0_227 = arith.constant 0 : index
    %354 = vector.load %arg31[%c2_225, %c0_226, %c0_227] : memref<4x192x128xbf16, #tpu.memory_space<vmem>>, vector<1x192x128xbf16>
    %355 = vector.shape_cast %354 : vector<1x192x128xbf16> to vector<192x128xbf16>
    %356 = vector.extract_strided_slice %344 {offsets = [0, 64], sizes = [128, 32], strides = [1, 1]} : vector<128x128xbf16> to vector<128x32xbf16>
    %cst_228 = arith.constant dense<0.000000e+00> : vector<192x32xf32>
    %357 = tpu.matmul %355, %356, %cst_228 {dimension_numbers = #tpu.dot_dimension_numbers<[1], [0], [0], [1], [0, 0, 1, 1], [], []>} : vector<192x128xbf16>, vector<128x32xbf16>, vector<192x32xf32> -> vector<192x32xf32>
    %358 = arith.addf %353, %357 : vector<192x32xf32>
    %c3_229 = arith.constant 3 : index
    %c0_230 = arith.constant 0 : index
    %c0_231 = arith.constant 0 : index
    %359 = vector.load %arg31[%c3_229, %c0_230, %c0_231] : memref<4x192x128xbf16, #tpu.memory_space<vmem>>, vector<1x192x128xbf16>
    %360 = vector.shape_cast %359 : vector<1x192x128xbf16> to vector<192x128xbf16>
    %361 = vector.extract_strided_slice %344 {offsets = [0, 96], sizes = [128, 32], strides = [1, 1]} : vector<128x128xbf16> to vector<128x32xbf16>
    %cst_232 = arith.constant dense<0.000000e+00> : vector<192x32xf32>
    %362 = tpu.matmul %360, %361, %cst_232 {dimension_numbers = #tpu.dot_dimension_numbers<[1], [0], [0], [1], [0, 0, 1, 1], [], []>} : vector<192x128xbf16>, vector<128x32xbf16>, vector<192x32xf32> -> vector<192x32xf32>
    %363 = arith.addf %358, %362 : vector<192x32xf32>
    %c0_233 = arith.constant 0 : index
    %c0_234 = arith.constant 0 : index
    %364 = vector.load %arg33[%c0_233, %c0_234] : memref<192x1xf32, #tpu.memory_space<vmem>>, vector<192x1xf32>
    %365 = vector.broadcast %364 : vector<192x1xf32> to vector<192x32xf32>
    %366 = arith.addf %363, %365 : vector<192x32xf32>
    %367 = arith.negf %366 : vector<192x32xf32>
    %368 = math.exp %367 : vector<192x32xf32>
    %cst_235 = arith.constant 1.000000e+00 : f32
    %369 = vector.broadcast %cst_235 : f32 to vector<192x32xf32>
    %370 = arith.addf %369, %368 : vector<192x32xf32>
    %371 = arith.divf %369, %370 : vector<192x32xf32>
    %c0_236 = arith.constant 0 : index
    %c0_237 = arith.constant 0 : index
    %372 = vector.load %arg36[%c0_236, %c0_237] : memref<192x32xf32, #tpu.memory_space<vmem>>, vector<192x32xf32>
    tpu.vector_store %arg36[%c0_236, %c0_237], %371 {strides = array<i32>} : memref<192x32xf32, #tpu.memory_space<vmem>>, vector<192x32xf32>,
    return
  }
}

</mosaic_0001>

<bundles_post_ra>
// kernel: vae_forward.1
= control target key start
LH: loop header
LB: loop body
LE: loop exit
PB: predicated region body
PF: predicated region fallthrough
CT: control target
= control target key end

     0   :  { %s16516_s3 = smov 3   ;;  %vm200_vm0 = vcmask 261120   ;;  %v16517_v38 = vmov 0   ;;  %s16518_s10 = smov 2   ;;  %vm531_vm1 = vcmask 523264   ;;  %vm1370_vm2 = vcmask 130048   ;;  %s19425_s0 = inlined_call_operand.smem [shape: u32[37], index: -1, kind: input, shape index: {}] }
   0x1   :  { %s12077_s6 = sld [smem:[%s19425_s0 + %s16516_s3]]   ;;  %749 = vmatprep.subr.bf16.mxu1 %v16517_v38  ;;  %15938 = vset.pattern.permute.xlu0 %v16517_v38  ;;  %s16519_s14 = smov 96   ;;  %vm3077_vm3 = vcmask 64512   ;;  %vm3913_vm4 = vcmask 1043456   ;;  %vm4781_vm5 = vcmask 31744   ;;  %vm5939_vm6 = vcmask 7168  }
   0x2   :  { %s16576_s9 = sld [smem:[%s19425_s0]]   ;;  %15939 = vset.pattern.permute.xlu1 %v16517_v38  ;;  %s16520_s15 = smov 80   ;;  %vm7179_vm7 = vcmask 1041408  }
   0x3   :  { %s16621_s13 = sld [smem:[%s19425_s0 + %s16518_s10]]   ;;  %s16521_s16 = smov 112  }
   0x4   :  { %s16522_s17 = smov 4   ;;  %s16523_s21 = smov 5  }
   0x5   :  { %s16929_s20 = sld [smem:[%s19425_s0 + %s16522_s17]]   ;;  %s16524_s25 = smov 6  }
   0x6   :  { %s17017_s24 = sld [smem:[%s19425_s0 + %s16523_s21]]   ;;  %s16525_s29 = smov 8  }
   0x7   :  { %v15940_v0 = vld [vmem:[%s12077_s6] sm:$0xff]   ;;  %v15941_v1 = vld [vmem:[%s12077_s6 + $0x8] sm:$0xff]   ;;  %s17042_s28 = sld [smem:[%s19425_s0 + %s16524_s25]]   ;;  %s16526_s3 = smov 120  }
   0x8   :  { %13702 = vmatprep.subr.bf16.mxu0 %v15940_v0  ;;  %v148_v2 = vld [vmem:[%s16576_s9] sm:$0xff]  ;;  %v149_v3 = vld [vmem:[%s16576_s9 + $0x8] sm:$0xff]  ;;  %v150_v5 = vld [vmem:[%s16576_s9 + $0x10] sm:$0xff]  ;;  %s12082_s2 = sld [smem:[%s19425_s0 + %s16525_s29]]   ;;  %s16527_s4 = smov 7  }
   0x9   :  { %13703 = vmatpush3.bf16.msra.mxu0 %v15940_v0  ;;  %v172_v4 = vpack.c.bf16 %v149_v3, %v148_v2  ;;  %v151_v6 = vld [vmem:[%s16576_s9 + $0x18] sm:$0xff]  ;;  %v152_v7 = vld [vmem:[%s16576_s9 + $0x20] sm:$0xff]  ;;  %v153_v8 = vld [vmem:[%s16576_s9 + $0x28] sm:$0xff]  ;;  %s17210_s7 = sld [smem:[%s19425_s0 + %s16527_s4]]   ;;  %s16528_s8 = smov 104  }
   0xa   :  { %13704 = vmatprep.subr.bf16.mxu0 %v15941_v1  ;;  %v173_v9 = vpack.c.bf16 %v151_v6, %v150_v5  ;;  %v174_v10 = vpack.c.bf16 %v153_v8, %v152_v7  ;;  %v154_v11 = vld [vmem:[%s16576_s9 + $0x30] sm:$0xff]  ;;  %v155_v12 = vld [vmem:[%s16576_s9 + $0x38] sm:$0xff]  ;;  %v156_v13 = vld [vmem:[%s16576_s9 + $0x40] sm:$0xff]  ;;  %s16534_s29 = smov 12   ;;  %s16535_s4 = smov 116  }
   0xb   :  { %13706 = vmatprep.mubr.msk.bf16.mxu0 %vm200_vm0, %v172_v4  ;;  %v157_v14 = vld [vmem:[%s16576_s9 + $0x48] sm:$0xff]  ;;  %v175_v15 = vpack.c.bf16 %v155_v12, %v154_v11  ;;  %v158_v17 = vld [vmem:[%s16576_s9 + $0x50] sm:$0xff]  ;;  %v159_v18 = vld [vmem:[%s16576_s9 + $0x58] sm:$0xff]  ;;  %s16536_s5 = smov 14   ;;  %s16537_s10 = smov 15  }
   0xc   :  { %v176_v16 = vpack.c.bf16 %v157_v14, %v156_v13  ;;  %v160_v19 = vld [vmem:[%s16576_s9 + $0x60] sm:$0xff]  ;;  %v161_v20 = vld [vmem:[%s16576_s9 + $0x68] sm:$0xff]  ;;  %v177_v21 = vpack.c.bf16 %v159_v18, %v158_v17  ;;  %v162_v23 = vld [vmem:[%s16576_s9 + $0x70] sm:$0xff]  ;;  %s16538_s17 = smov 16   ;;  %s16539_s21 = smov 17  }
   0xd   :  { %13705 = vmatpush3.bf16.msra.mxu0 %v15941_v1  ;;  %v178_v22 = vpack.c.bf16 %v161_v20, %v160_v19  ;;  %v163_v24 = vld [vmem:[%s16576_s9 + $0x78] sm:$0xff]  ;;  %v164_v25 = vld [vmem:[%s16576_s9 + $0x80] sm:$0xff]  ;;  %v165_v26 = vld [vmem:[%s16576_s9 + $0x88] sm:$0xff]  ;;  %s16540_s25 = smov 127   ;;  %s16541_s26 = smov 126  }
   0xe   :  { %v179_v27 = vpack.c.bf16 %v163_v24, %v162_v23  ;;  %v180_v28 = vpack.c.bf16 %v165_v26, %v164_v25  ;;  %v166_v29 = vld [vmem:[%s16576_s9 + $0x90] sm:$0xff]  ;;  %v167_v30 = vld [vmem:[%s16576_s9 + $0x98] sm:$0xff]  ;;  %v168_v31 = vld [vmem:[%s16576_s9 + $0xa0] sm:$0xff]  ;;  %556 = vmatprep.subr.bf16.mxu0 %v16517_v38 }
   0xf   :  { %v169_v32 = vld [vmem:[%s16576_s9 + $0xa8] sm:$0xff]  ;;  %v181_v33 = vpack.c.bf16 %v167_v30, %v166_v29  ;;  %v170_v35 = vld [vmem:[%s16576_s9 + $0xb0] sm:$0xff]  ;;  %v171_v36 = vld [vmem:[%s16576_s9 + $0xb8] sm:$0xff]  ;;  %s16529_s9 = smov 9  }
  0x10   :  { %13707 = vmatmul.mubr.msk.bf16.vlgmr.msra.gmra.mrb[0].mxu0 %vm200_vm0, %v173_v9  ;;  %v182_v34 = vpack.c.bf16 %v169_v32, %v168_v31  ;;  %v183_v37 = vpack.c.bf16 %v171_v36, %v170_v35  ;;  %v15944_v39 = vld [vmem:[%s16621_s13 + $0x4] ss:$8 sps:$4 sm:$0xff]   ;;  %v15942_v12 = vld [vmem:[%s16621_s13] ss:$8 sps:$4 sm:$0xff]   ;;  %v15945_v13 = vld [vmem:[%s16621_s13 + $0x14] ss:$8 sps:$4 sm:$0xff]   ;;  %s17415_s12 = sld [smem:[%s19425_s0 + %s16529_s9]]  }
  0x11   :  { %13710 = vmatprep.mubr.msk.bf16.mxu0 %vm200_vm0, %v174_v10  ;;  %12181 = vmatprep.mubr.msk.bf16.mxu1 %vm531_vm1, %v15944_v39  ;;  %v15947_v14 = vld [vmem:[%s16621_s13 + $0x10] ss:$8 sps:$4 sm:$0xff]   ;;  %v15951_v17 = vld [vmem:[%s16621_s13 + $0x34] ss:$8 sps:$4 sm:$0xff]   ;;  %v15954_v19 = vld [vmem:[%s16621_s13 + $0x44] ss:$8 sps:$4 sm:$0xff]   ;;  %s17783_s9 = sld [smem:[%s19425_s0 + %s16536_s5]]  }
  0x12   :  { %v15953_v18 = vld [vmem:[%s16621_s13 + $0x30] ss:$8 sps:$4 sm:$0xff]   ;;  %v15956_v20 = vld [vmem:[%s16621_s13 + $0x40] ss:$8 sps:$4 sm:$0xff]   ;;  %v15960_v23 = vld [vmem:[%s16621_s13 + $0x64] ss:$8 sps:$4 sm:$0xff]  }
  0x13   :  { %v15992_v24 = vld [vmem:[%s16621_s13 + $0x84] ss:$8 sps:$4 sm:$0xff]   ;;  %v15962_v25 = vld [vmem:[%s16621_s13 + $0x60] ss:$8 sps:$4 sm:$0xff]   ;;  %v15963_v26 = vld [vmem:[%s16621_s13 + $0x74] ss:$8 sps:$4 sm:$0xff]  }
  0x18   :  { %13711 = vmatmul.mubr.msk.bf16.gmra.mrb[4].mxu0 %vm200_vm0, %v175_v15  ;;  %v15948_v15 = vld [vmem:[%s16621_s13 + $0x24] ss:$8 sps:$4 sm:$0xff]  }
  0x19   :  { %13714 = vmatprep.mubr.msk.bf16.mxu0 %vm200_vm0, %v176_v16  ;;  %v15950_v16 = vld [vmem:[%s16621_s13 + $0x20] ss:$8 sps:$4 sm:$0xff]  }
  0x20   :  { %13715 = vmatmul.mubr.msk.bf16.gmra.mrb[8].mxu0 %vm200_vm0, %v177_v21  ;;  %v15957_v21 = vld [vmem:[%s16621_s13 + $0x54] ss:$8 sps:$4 sm:$0xff]  }
  0x21   :  { %13718 = vmatprep.mubr.msk.bf16.mxu0 %vm200_vm0, %v178_v22  ;;  %v15959_v22 = vld [vmem:[%s16621_s13 + $0x50] ss:$8 sps:$4 sm:$0xff]  }
  0x28   :  { %13719 = vmatmul.mubr.msk.bf16.gmra.mrb[12].mxu0 %vm200_vm0, %v179_v27  ;;  %v15965_v27 = vld [vmem:[%s16621_s13 + $0x70] ss:$8 sps:$4 sm:$0xff]  }
  0x29   :  { %13722 = vmatprep.mubr.msk.bf16.mxu0 %vm200_vm0, %v180_v28  ;;  %v15968_v28 = vld [vmem:[%s16621_s13 + $0x104] ss:$8 sps:$4 sm:$0xff]  }
  0x30   :  { %13723 = vmatmul.mubr.msk.bf16.gmra.mrb[16].mxu0 %vm200_vm0, %v181_v33 }
  0x31   :  { %13726 = vmatprep.mubr.msk.bf16.mxu0 %vm200_vm0, %v182_v34 }
  0x38   :  { %13727 = vmatmul.mubr.msk.bf16.gmra.mrb[20].mxu0 %vm200_vm0, %v183_v37 }
  0x39   :  { %12157 = vmatprep.mubr.msk.bf16.mxu0 %vm531_vm1, %v15992_v24  ;;  %v15999_v24 = vld [vmem:[%s16621_s13 + $0x194] ss:$8 sps:$4 sm:$0xff]  }
  0xe3   :  { %v13708_v40 = vpop.f32.mrb[0].mxu0 }
  0xe4   :  { %v271_v41 = vpop.f32.mrb[1].mxu0 }
  0xe5   :  { %v13709_v42 = vpop.f32.mrb[2].mxu0 }
  0xe6   :  { %v16625_v43 = vpack.c.bf16 %v13709_v42, %v13708_v40  ;;  %v274_v44 = vpop.f32.mrb[3].mxu0 }
  0xe7   :  { %v16627_v45 = vpack.c.bf16 %v274_v44, %v271_v41  ;;  %v15966_v44 = vld [vmem:[%s16621_s13 + $0x100] ss:$8 sps:$4 sm:$0xff]  }
  0xe9   :  { %935 = vrot.lane.b32.xlu0 %v16627_v45, %s16519_s14  ;;  %750 = vmatpush1.bf16.msra.mxu1 %v16627_v45 }
  0xea   :  { %751 = vmatprep.subr.bf16.mxu1 %v16517_v38 }
  0xeb   :  { %v13712_v46 = vpop.f32.mrb[4].mxu0 }
  0xec   :  { %v287_v47 = vpop.f32.mrb[5].mxu0 }
  0xed   :  { %937 = vrot.lane.b32.xlu0 %v16625_v43, %s16519_s14  ;;  %v13713_v48 = vpop.f32.mrb[6].mxu0  ;;  %752 = vmatpush1.bf16.msra.mxu1 %v16625_v43 }
  0xee   :  { %v16636_v49 = vpack.c.bf16 %v13713_v48, %v13712_v46  ;;  %v290_v50 = vpop.f32.mrb[7].mxu0  ;;  %753 = vmatprep.subr.bf16.mxu1 %v16517_v38  ;;  %v15969_v46 = vld [vmem:[%s16621_s13 + $0x114] ss:$8 sps:$4 sm:$0xff]  }
  0xef   :  { %v16639_v51 = vpack.c.bf16 %v290_v50, %v287_v47  ;;  %v15971_v50 = vld [vmem:[%s16621_s13 + $0x110] ss:$8 sps:$4 sm:$0xff]  }
  0xf1   :  { %939 = vrot.lane.b32.xlu1 %v16639_v51, %s16519_s14  ;;  %754 = vmatpush1.bf16.msra.mxu1 %v16639_v51 }
  0xf2   :  { %755 = vmatprep.subr.bf16.mxu1 %v16517_v38 }
  0xf3   :  { %v13716_v52 = vpop.f32.mrb[8].mxu0 }
  0xf4   :  { %v303_v53 = vpop.f32.mrb[9].mxu0 }
  0xf5   :  { %941 = vrot.lane.b32.xlu1 %v16636_v49, %s16519_s14  ;;  %v13717_v54 = vpop.f32.mrb[10].mxu0  ;;  %756 = vmatpush1.bf16.msra.mxu1 %v16636_v49 }
  0xf6   :  { %v16648_v55 = vpack.c.bf16 %v13717_v54, %v13716_v52  ;;  %v306_v56 = vpop.f32.mrb[11].mxu0  ;;  %757 = vmatprep.subr.bf16.mxu1 %v16517_v38  ;;  %v15972_v52 = vld [vmem:[%s16621_s13 + $0x124] ss:$8 sps:$4 sm:$0xff]  }
  0xf7   :  { %v370_v57 = vpack.c.bf16 %v306_v56, %v303_v53  ;;  %v15974_v56 = vld [vmem:[%s16621_s13 + $0x120] ss:$8 sps:$4 sm:$0xff]  }
  0xf9   :  { %945 = vrot.lane.b32.xlu1 %v16648_v55, %s16519_s14  ;;  %943 = vrot.lane.b32.xlu0 %v370_v57, %s16519_s14 }
  0xfa   :  { %758 = vmatpush1.bf16.msra.mxu1 %v370_v57 }
  0xfb   :  { %v13720_v58 = vpop.f32.mrb[12].mxu0  ;;  %759 = vmatprep.subr.bf16.mxu1 %v16517_v38 }
  0xfc   :  { %v319_v59 = vpop.f32.mrb[13].mxu0 }
  0xfd   :  { %v13721_v60 = vpop.f32.mrb[14].mxu0 }
  0xfe   :  { %v16655_v61 = vpack.c.bf16 %v13721_v60, %v13720_v58  ;;  %760 = vmatpush1.bf16.msra.mxu1 %v16648_v55  ;;  %v322_v62 = vpop.f32.mrb[15].mxu0  ;;  %v15975_v58 = vld [vmem:[%s16621_s13 + $0x134] ss:$8 sps:$4 sm:$0xff]  }
  0xff   :  { %v372_v63 = vpack.c.bf16 %v322_v62, %v319_v59  ;;  %761 = vmatprep.subr.bf16.mxu1 %v16517_v38  ;;  %v15977_v62 = vld [vmem:[%s16621_s13 + $0x130] ss:$8 sps:$4 sm:$0xff]  }
 0x100   :  { %949 = vrot.lane.b32.xlu1 %v16655_v61, %s16519_s14 }
 0x101   :  { %947 = vrot.lane.b32.xlu0 %v372_v63, %s16519_s14 }
 0x102   :  { %762 = vmatpush1.bf16.msra.mxu1 %v372_v63 }
 0x103   :  { %v13724_v0 = vpop.f32.mrb[16].mxu0  ;;  %763 = vmatprep.subr.bf16.mxu1 %v16517_v38 }
 0x104   :  { %v335_v1 = vpop.f32.mrb[17].mxu0 }
 0x105   :  { %v13725_v2 = vpop.f32.mrb[18].mxu0 }
 0x106   :  { %v375_v3 = vpack.c.bf16 %v13725_v2, %v13724_v0  ;;  %764 = vmatpush1.bf16.msra.mxu1 %v16655_v61  ;;  %v338_v4 = vpop.f32.mrb[19].mxu0  ;;  %v15978_v0 = vld [vmem:[%s16621_s13 + $0x144] ss:$8 sps:$4 sm:$0xff]  }
 0x107   :  { %v374_v5 = vpack.c.bf16 %v338_v4, %v335_v1  ;;  %765 = vmatprep.subr.bf16.mxu1 %v16517_v38  ;;  %v15980_v4 = vld [vmem:[%s16621_s13 + $0x140] ss:$8 sps:$4 sm:$0xff]  }
 0x108   :  { %953 = vrot.lane.b32.xlu1 %v375_v3, %s16519_s14 }
 0x109   :  { %951 = vrot.lane.b32.xlu0 %v374_v5, %s16519_s14 }
 0x10a   :  { %766 = vmatpush1.bf16.msra.mxu1 %v374_v5 }
 0x10b   :  { %v13728_v6 = vpop.f32.mrb[20].mxu0  ;;  %767 = vmatprep.subr.bf16.mxu1 %v16517_v38 }
 0x10c   :  { %v351_v7 = vpop.f32.mrb[21].mxu0 }
 0x10d   :  { %v13729_v8 = vpop.f32.mrb[22].mxu0 }
 0x10e   :  { %v377_v9 = vpack.c.bf16 %v13729_v8, %v13728_v6  ;;  %768 = vmatpush1.bf16.msra.mxu1 %v375_v3  ;;  %v354_v10 = vpop.f32.mrb[23].mxu0 }
 0x10f   :  { %v376_v11 = vpack.c.bf16 %v354_v10, %v351_v7  ;;  %769 = vmatprep.subr.bf16.mxu1 %v16517_v38 }
 0x110   :  { %957 = vrot.lane.b32.xlu1 %v377_v9, %s16519_s14 }
 0x111   :  { %955 = vrot.lane.b32.xlu0 %v376_v11, %s16519_s14 }
 0x112   :  { %770 = vmatpush1.bf16.msra.mxu1 %v376_v11 }
 0x113   :  { %771 = vmatprep.subr.bf16.mxu1 %v16517_v38 }
 0x114   :  { %1197 = vrot.lane.b32.xlu1 %v16627_v45, %s16520_s15 }
 0x115   :  { %495 = vrot.lane.b32.xlu0 %v16627_v45, %s16521_s16 }
 0x116   :  { %772 = vmatpush1.bf16.msra.mxu1 %v377_v9 }
 0x117   :  { %995 = vmatprep.subr.bf16.mxu1 %v16517_v38 }
 0x118   :  { %1199 = vrot.lane.b32.xlu1 %v16625_v43, %s16520_s15 }
 0x119   :  { %497 = vrot.lane.b32.xlu0 %v16625_v43, %s16521_s16  ;;  %782 = vmatmul.mubr.bf16.vlgmr.msra.gmra.mrb[0].mxu1 %v15942_v12 }
 0x11a   :  { %12182 = vmatprep.mubr.msk.bf16.mxu1 %vm531_vm1, %v15945_v13  ;;  %v15990_v13 = vld [vmem:[%s16621_s13 + $0x80] ss:$8 sps:$4 sm:$0xff]  }
 0x11c   :  { %1201 = vrot.lane.b32.xlu1 %v16639_v51, %s16520_s15 }
 0x11d   :  { %499 = vrot.lane.b32.xlu0 %v16639_v51, %s16521_s16 }
 0x120   :  { %1203 = vrot.lane.b32.xlu1 %v16636_v49, %s16520_s15 }
 0x121   :  { %501 = vrot.lane.b32.xlu0 %v16636_v49, %s16521_s16  ;;  %790 = vmatmul.mubr.bf16.gmra.mrb[4].mxu1 %v15947_v14  ;;  %v15996_v14 = vld [vmem:[%s16621_s13 + $0x94] ss:$8 sps:$4 sm:$0xff]  }
 0x122   :  { %12183 = vmatprep.mubr.msk.bf16.mxu1 %vm531_vm1, %v15948_v15 }
 0x124   :  { %1205 = vrot.lane.b32.xlu1 %v370_v57, %s16520_s15 }
 0x125   :  { %503 = vrot.lane.b32.xlu0 %v370_v57, %s16521_s16 }
 0x128   :  { %1207 = vrot.lane.b32.xlu1 %v16648_v55, %s16520_s15 }
 0x129   :  { %505 = vrot.lane.b32.xlu0 %v16648_v55, %s16521_s16  ;;  %798 = vmatmul.mubr.bf16.gmra.mrb[8].mxu1 %v15950_v16  ;;  %v15986_v16 = vld [vmem:[%s16621_s13 + $0x160] ss:$8 sps:$4 sm:$0xff]  }
 0x12a   :  { %12184 = vmatprep.mubr.msk.bf16.mxu1 %vm531_vm1, %v15951_v17  ;;  %v15987_v17 = vld [vmem:[%s16621_s13 + $0x174] ss:$8 sps:$4 sm:$0xff]  }
 0x12c   :  { %1209 = vrot.lane.b32.xlu1 %v372_v63, %s16520_s15 }
 0x12d   :  { %507 = vrot.lane.b32.xlu0 %v372_v63, %s16521_s16 }
 0x130   :  { %1211 = vrot.lane.b32.xlu1 %v16655_v61, %s16520_s15 }
 0x131   :  { %509 = vrot.lane.b32.xlu0 %v16655_v61, %s16521_s16  ;;  %806 = vmatmul.mubr.bf16.gmra.mrb[12].mxu1 %v15953_v18  ;;  %v15998_v18 = vld [vmem:[%s16621_s13 + $0x90] ss:$8 sps:$4 sm:$0xff]  }
 0x132   :  { %12185 = vmatprep.mubr.msk.bf16.mxu1 %vm531_vm1, %v15954_v19  ;;  %v16002_v19 = vld [vmem:[%s16621_s13 + $0xa4] ss:$8 sps:$4 sm:$0xff]  }
 0x134   :  { %1213 = vrot.lane.b32.xlu1 %v374_v5, %s16520_s15 }
 0x135   :  { %511 = vrot.lane.b32.xlu0 %v374_v5, %s16521_s16  ;;  %v15981_v5 = vld [vmem:[%s16621_s13 + $0x154] ss:$8 sps:$4 sm:$0xff]  }
 0x138   :  { %1215 = vrot.lane.b32.xlu1 %v375_v3, %s16520_s15 }
 0x139   :  { %513 = vrot.lane.b32.xlu0 %v375_v3, %s16521_s16  ;;  %814 = vmatmul.mubr.bf16.gmra.mrb[16].mxu1 %v15956_v20  ;;  %v15995_v20 = vld [vmem:[%s16621_s13 + $0x184] ss:$8 sps:$4 sm:$0xff]  }
 0x13a   :  { %12186 = vmatprep.mubr.msk.bf16.mxu1 %vm531_vm1, %v15957_v21  ;;  %v16004_v21 = vld [vmem:[%s16621_s13 + $0xa0] ss:$8 sps:$4 sm:$0xff]  }
 0x13c   :  { %1217 = vrot.lane.b32.xlu1 %v376_v11, %s16520_s15 }
 0x13d   :  { %515 = vrot.lane.b32.xlu0 %v376_v11, %s16521_s16  ;;  %v15984_v11 = vld [vmem:[%s16621_s13 + $0x164] ss:$8 sps:$4 sm:$0xff]  }
 0x140   :  { %1219 = vrot.lane.b32.xlu1 %v377_v9, %s16520_s15 }
 0x141   :  { %517 = vrot.lane.b32.xlu0 %v377_v9, %s16521_s16  ;;  %822 = vmatmul.mubr.bf16.gmra.mrb[20].mxu1 %v15959_v22  ;;  %v15983_v9 = vld [vmem:[%s16621_s13 + $0x150] ss:$8 sps:$4 sm:$0xff]   ;;  %v16008_v22 = vld [vmem:[%s16621_s13 + $0xb4] ss:$8 sps:$4 sm:$0xff]  }
 0x142   :  { %12187 = vmatprep.mubr.msk.bf16.mxu1 %vm531_vm1, %v15960_v23  ;;  %v15993_v23 = vld [vmem:[%s16621_s13 + $0x180] ss:$8 sps:$4 sm:$0xff]  }
 0x149   :  { %830 = vmatmul.mubr.bf16.gmra.mrb[24].mxu1 %v15962_v25  ;;  %v16010_v25 = vld [vmem:[%s16621_s13 + $0xb0] ss:$8 sps:$4 sm:$0xff]  }
 0x14a   :  { %12188 = vmatprep.mubr.msk.bf16.mxu1 %vm531_vm1, %v15963_v26  ;;  %v16014_v26 = vld [vmem:[%s16621_s13 + $0xc4] ss:$8 sps:$4 sm:$0xff]  }
 0x151   :  { %838 = vmatmul.mubr.bf16.gmra.mrb[28].mxu1 %v15965_v27  ;;  %v16001_v27 = vld [vmem:[%s16621_s13 + $0x190] ss:$8 sps:$4 sm:$0xff]  }
 0x152   :  { %12221 = vmatprep.mubr.msk.bf16.mxu1 %vm531_vm1, %v15968_v28  ;;  %v16005_v28 = vld [vmem:[%s16621_s13 + $0x1a4] ss:$8 sps:$4 sm:$0xff]  }
 0x15b   :  { %v936_v29 = vpop.permute.xlu0 %935 }
 0x15c   :  { %996 = vmatpush1.bf16.msra.mxu1 %v936_v29  ;;  %v16016_v29 = vld [vmem:[%s16621_s13 + $0xc0] ss:$8 sps:$4 sm:$0xff]  }
 0x15d   :  { %997 = vmatprep.subr.bf16.mxu1 %v16517_v38 }
 0x15f   :  { %v938_v30 = vpop.permute.xlu0 %937 }
 0x160   :  { %998 = vmatpush1.bf16.msra.mxu1 %v938_v30  ;;  %v16020_v30 = vld [vmem:[%s16621_s13 + $0xd4] ss:$8 sps:$4 sm:$0xff]  }
 0x161   :  { %999 = vmatprep.subr.bf16.mxu1 %v16517_v38 }
 0x163   :  { %v940_v31 = vpop.permute.xlu1 %939 }
 0x164   :  { %1000 = vmatpush1.bf16.msra.mxu1 %v940_v31  ;;  %v16007_v31 = vld [vmem:[%s16621_s13 + $0x1a0] ss:$8 sps:$4 sm:$0xff]  }
 0x165   :  { %1001 = vmatprep.subr.bf16.mxu1 %v16517_v38 }
 0x167   :  { %v942_v32 = vpop.permute.xlu1 %941 }
 0x168   :  { %1002 = vmatpush1.bf16.msra.mxu1 %v942_v32  ;;  %v16011_v32 = vld [vmem:[%s16621_s13 + $0x1b4] ss:$8 sps:$4 sm:$0xff]  }
 0x169   :  { %1003 = vmatprep.subr.bf16.mxu1 %v16517_v38 }
 0x16b   :  { %v944_v33 = vpop.permute.xlu0 %943  ;;  %v946_v34 = vpop.permute.xlu1 %945 }
 0x16c   :  { %1004 = vmatpush1.bf16.msra.mxu1 %v944_v33  ;;  %v16022_v33 = vld [vmem:[%s16621_s13 + $0xd0] ss:$8 sps:$4 sm:$0xff]  }
 0x16d   :  { %1005 = vmatprep.subr.bf16.mxu1 %v16517_v38 }
 0x170   :  { %1006 = vmatpush1.bf16.msra.mxu1 %v946_v34  ;;  %v16026_v34 = vld [vmem:[%s16621_s13 + $0xe4] ss:$8 sps:$4 sm:$0xff]  }
 0x171   :  { %1007 = vmatprep.subr.bf16.mxu1 %v16517_v38 }
 0x172   :  { %v950_v36 = vpop.permute.xlu1 %949 }
 0x173   :  { %v948_v35 = vpop.permute.xlu0 %947 }
 0x174   :  { %1008 = vmatpush1.bf16.msra.mxu1 %v948_v35  ;;  %v16013_v35 = vld [vmem:[%s16621_s13 + $0x1b0] ss:$8 sps:$4 sm:$0xff]  }
 0x175   :  { %1009 = vmatprep.subr.bf16.mxu1 %v16517_v38 }
 0x178   :  { %1010 = vmatpush1.bf16.msra.mxu1 %v950_v36  ;;  %v16017_v36 = vld [vmem:[%s16621_s13 + $0x1c4] ss:$8 sps:$4 sm:$0xff]  }
 0x179   :  { %1011 = vmatprep.subr.bf16.mxu1 %v16517_v38 }
 0x17a   :  { %v954_v39 = vpop.permute.xlu1 %953 }
 0x17b   :  { %v952_v37 = vpop.permute.xlu0 %951 }
 0x17c   :  { %1012 = vmatpush1.bf16.msra.mxu1 %v952_v37  ;;  %v16028_v37 = vld [vmem:[%s16621_s13 + $0xe0] ss:$8 sps:$4 sm:$0xff]  }
 0x17d   :  { %1013 = vmatprep.subr.bf16.mxu1 %v16517_v38 }
 0x180   :  { %1014 = vmatpush1.bf16.msra.mxu1 %v954_v39  ;;  %v16032_v39 = vld [vmem:[%s16621_s13 + $0xf4] ss:$8 sps:$4 sm:$0xff]  }
 0x181   :  { %1015 = vmatprep.subr.bf16.mxu1 %v16517_v38 }
 0x182   :  { %v958_v40 = vpop.permute.xlu1 %957 }
 0x183   :  { %v956_v41 = vpop.permute.xlu0 %955 }
 0x184   :  { %1016 = vmatpush1.bf16.msra.mxu1 %v956_v41  ;;  %v16023_v41 = vld [vmem:[%s16621_s13 + $0x1d4] ss:$8 sps:$4 sm:$0xff]  }
 0x185   :  { %1017 = vmatprep.subr.bf16.mxu1 %v16517_v38 }
 0x186   :  { %v1198_v42 = vpop.permute.xlu1 %1197 }
 0x187   :  { %v496_v43 = vpop.permute.xlu0 %495 }
 0x188   :  { %557 = vmatpush1.bf16.msra.mxu0 %v496_v43  ;;  %1018 = vmatpush1.bf16.msra.mxu1 %v958_v40  ;;  %v16019_v40 = vld [vmem:[%s16621_s13 + $0x1c0] ss:$8 sps:$4 sm:$0xff]   ;;  %v16025_v43 = vld [vmem:[%s16621_s13 + $0x1d0] ss:$8 sps:$4 sm:$0xff]  }
 0x189   :  { %558 = vmatprep.subr.bf16.mxu0 %v16517_v38  ;;  %1257 = vmatprep.subr.bf16.mxu1 %v16517_v38 }
 0x18a   :  { %v1200_v45 = vpop.permute.xlu1 %1199 }
 0x18b   :  { %v498_v47 = vpop.permute.xlu0 %497  ;;  %1028 = vmatmul.mubr.bf16.vlgmr.msra.gmra.mrb[0].mxu1 %v15966_v44  ;;  %v16029_v44 = vld [vmem:[%s16621_s13 + $0x1e4] ss:$8 sps:$4 sm:$0xff]  }
 0x18c   :  { %559 = vmatpush1.bf16.msra.mxu0 %v498_v47  ;;  %1258 = vmatpush1.bf16.msra.mxu1 %v1198_v42  ;;  %v16034_v42 = vld [vmem:[%s16621_s13 + $0xf0] ss:$8 sps:$4 sm:$0xff]  }
 0x18d   :  { %560 = vmatprep.subr.bf16.mxu0 %v16517_v38  ;;  %1259 = vmatprep.subr.bf16.mxu1 %v16517_v38  ;;  %v16037_v47 = vld [vmem:[%s16621_s13 + $0x1f0] ss:$8 sps:$4 sm:$0xff]  }
 0x18e   :  { %v1202_v48 = vpop.permute.xlu1 %1201  ;;  %12222 = vmatprep.mubr.msk.bf16.mxu1 %vm531_vm1, %v15969_v46  ;;  %v16035_v46 = vld [vmem:[%s16621_s13 + $0x1f4] ss:$8 sps:$4 sm:$0xff]  }
 0x18f   :  { %v500_v49 = vpop.permute.xlu0 %499 }
 0x190   :  { %561 = vmatpush1.bf16.msra.mxu0 %v500_v49  ;;  %1260 = vmatpush1.bf16.msra.mxu1 %v1200_v45  ;;  %v16031_v45 = vld [vmem:[%s16621_s13 + $0x1e0] ss:$8 sps:$4 sm:$0xff]  }
 0x191   :  { %562 = vmatprep.subr.bf16.mxu0 %v16517_v38  ;;  %1261 = vmatprep.subr.bf16.mxu1 %v16517_v38 }
 0x192   :  { %v1204_v51 = vpop.permute.xlu1 %1203 }
 0x193   :  { %v502_v53 = vpop.permute.xlu0 %501  ;;  %1036 = vmatmul.mubr.bf16.gmra.mrb[4].mxu1 %v15971_v50 }
 0x194   :  { %563 = vmatpush1.bf16.msra.mxu0 %v502_v53  ;;  %1262 = vmatpush1.bf16.msra.mxu1 %v1202_v48 }
 0x195   :  { %564 = vmatprep.subr.bf16.mxu0 %v16517_v38  ;;  %1263 = vmatprep.subr.bf16.mxu1 %v16517_v38 }
 0x196   :  { %v1206_v54 = vpop.permute.xlu1 %1205  ;;  %12223 = vmatprep.mubr.msk.bf16.mxu1 %vm531_vm1, %v15972_v52 }
 0x197   :  { %v504_v55 = vpop.permute.xlu0 %503 }
 0x198   :  { %565 = vmatpush1.bf16.msra.mxu0 %v504_v55  ;;  %1264 = vmatpush1.bf16.msra.mxu1 %v1204_v51 }
 0x199   :  { %566 = vmatprep.subr.bf16.mxu0 %v16517_v38  ;;  %1265 = vmatprep.subr.bf16.mxu1 %v16517_v38 }
 0x19a   :  { %v1208_v57 = vpop.permute.xlu1 %1207 }
 0x19b   :  { %v506_v59 = vpop.permute.xlu0 %505  ;;  %1044 = vmatmul.mubr.bf16.gmra.mrb[8].mxu1 %v15974_v56 }
 0x19c   :  { %567 = vmatpush1.bf16.msra.mxu0 %v506_v59  ;;  %1266 = vmatpush1.bf16.msra.mxu1 %v1206_v54 }
 0x19d   :  { %568 = vmatprep.subr.bf16.mxu0 %v16517_v38  ;;  %1267 = vmatprep.subr.bf16.mxu1 %v16517_v38 }
 0x19e   :  { %v1210_v60 = vpop.permute.xlu1 %1209  ;;  %12224 = vmatprep.mubr.msk.bf16.mxu1 %vm531_vm1, %v15975_v58 }
 0x19f   :  { %v508_v61 = vpop.permute.xlu0 %507 }
 0x1a0   :  { %569 = vmatpush1.bf16.msra.mxu0 %v508_v61  ;;  %1268 = vmatpush1.bf16.msra.mxu1 %v1208_v57 }
 0x1a1   :  { %570 = vmatprep.subr.bf16.mxu0 %v16517_v38  ;;  %1269 = vmatprep.subr.bf16.mxu1 %v16517_v38 }
 0x1a2   :  { %v1212_v63 = vpop.permute.xlu1 %1211 }
 0x1a3   :  { %v510_v1 = vpop.permute.xlu0 %509  ;;  %1052 = vmatmul.mubr.bf16.gmra.mrb[12].mxu1 %v15977_v62 }
 0x1a4   :  { %571 = vmatpush1.bf16.msra.mxu0 %v510_v1  ;;  %1270 = vmatpush1.bf16.msra.mxu1 %v1210_v60 }
 0x1a5   :  { %572 = vmatprep.subr.bf16.mxu0 %v16517_v38  ;;  %1271 = vmatprep.subr.bf16.mxu1 %v16517_v38 }
 0x1a6   :  { %v1214_v2 = vpop.permute.xlu1 %1213  ;;  %12225 = vmatprep.mubr.msk.bf16.mxu1 %vm531_vm1, %v15978_v0 }
 0x1a7   :  { %v512_v3 = vpop.permute.xlu0 %511 }
 0x1a8   :  { %573 = vmatpush1.bf16.msra.mxu0 %v512_v3  ;;  %1272 = vmatpush1.bf16.msra.mxu1 %v1212_v63 }
 0x1a9   :  { %574 = vmatprep.subr.bf16.mxu0 %v16517_v38  ;;  %1273 = vmatprep.subr.bf16.mxu1 %v16517_v38 }
 0x1aa   :  { %v1216_v6 = vpop.permute.xlu1 %1215 }
 0x1ab   :  { %v514_v7 = vpop.permute.xlu0 %513  ;;  %1060 = vmatmul.mubr.bf16.gmra.mrb[16].mxu1 %v15980_v4 }
 0x1ac   :  { %575 = vmatpush1.bf16.msra.mxu0 %v514_v7  ;;  %1274 = vmatpush1.bf16.msra.mxu1 %v1214_v2 }
 0x1ad   :  { %576 = vmatprep.subr.bf16.mxu0 %v16517_v38  ;;  %1275 = vmatprep.subr.bf16.mxu1 %v16517_v38 }
 0x1ae   :  { %12226 = vmatprep.mubr.msk.bf16.mxu1 %vm531_vm1, %v15981_v5  ;;  %v1218_v10 = vpop.permute.xlu1 %1217 }
 0x1af   :  { %v516_v8 = vpop.permute.xlu0 %515 }
 0x1b0   :  { %577 = vmatpush1.bf16.msra.mxu0 %v516_v8  ;;  %1276 = vmatpush1.bf16.msra.mxu1 %v1216_v6 }
 0x1b1   :  { %578 = vmatprep.subr.bf16.mxu0 %v16517_v38  ;;  %1277 = vmatprep.subr.bf16.mxu1 %v16517_v38 }
 0x1b2   :  { %v1220_v15 = vpop.permute.xlu1 %1219 }
 0x1b3   :  { %v518_v12 = vpop.permute.xlu0 %517  ;;  %1068 = vmatmul.mubr.bf16.gmra.mrb[20].mxu1 %v15983_v9 }
 0x1b4   :  { %579 = vmatpush1.bf16.msra.mxu0 %v518_v12  ;;  %1278 = vmatpush1.bf16.msra.mxu1 %v1218_v10 }
 0x1b5   :  { %1279 = vmatprep.subr.bf16.mxu1 %v16517_v38  ;;  %12227 = vmatprep.mubr.msk.bf16.mxu1 %vm531_vm1, %v15984_v11  ;;  %v15989_v38 = vld [vmem:[%s16621_s13 + $0x170] ss:$8 sps:$4 sm:$0xff]   ;;  %s16530_s13 = smov 10  }
 0x1b6   :  { %s17458_s19 = sld [smem:[%s19425_s0 + %s16530_s13]]  }
 0x1b7   :  { %589 = vmatmul.mubr.bf16.vlgmr.msra.gmra.mrb[24].mxu0 %v15990_v13  ;;  %s17863_s13 = sld [smem:[%s19425_s0 + %s16537_s10]]  }
 0x1b8   :  { %1280 = vmatpush1.bf16.msra.mxu1 %v1220_v15  ;;  %12158 = vmatprep.mubr.msk.bf16.mxu0 %vm531_vm1, %v15996_v14 }
 0x1bb   :  { %1076 = vmatmul.mubr.bf16.gmra.mrb[24].mxu1 %v15986_v16 }
 0x1bc   :  { %12228 = vmatprep.mubr.msk.bf16.mxu1 %vm531_vm1, %v15987_v17 }
 0x1bf   :  { %597 = vmatmul.mubr.bf16.gmra.mrb[28].mxu0 %v15998_v18 }
 0x1c0   :  { %12159 = vmatprep.mubr.msk.bf16.mxu0 %vm531_vm1, %v16002_v19 }
 0x1c3   :  { %1084 = vmatmul.mubr.bf16.gmra.mrb[28].mxu1 %v15989_v38 }
 0x1c4   :  { %12261 = vmatprep.mubr.msk.bf16.mxu1 %vm531_vm1, %v15995_v20 }
 0x1c7   :  { %605 = vmatmul.mubr.bf16.gmra.mrb[32].mxu0 %v16004_v21 }
 0x1c8   :  { %12160 = vmatprep.mubr.msk.bf16.mxu0 %vm531_vm1, %v16008_v22 }
 0x1cb   :  { %1290 = vmatmul.mubr.bf16.vlgmr.msra.gmra.mrb[0].mxu1 %v15993_v23 }
 0x1cc   :  { %12262 = vmatprep.mubr.msk.bf16.mxu1 %vm531_vm1, %v15999_v24 }
 0x1cf   :  { %613 = vmatmul.mubr.bf16.gmra.mrb[36].mxu0 %v16010_v25 }
 0x1d0   :  { %12161 = vmatprep.mubr.msk.bf16.mxu0 %vm531_vm1, %v16014_v26 }
 0x1d3   :  { %1298 = vmatmul.mubr.bf16.gmra.mrb[4].mxu1 %v16001_v27 }
 0x1d4   :  { %12263 = vmatprep.mubr.msk.bf16.mxu1 %vm531_vm1, %v16005_v28 }
 0x1d7   :  { %621 = vmatmul.mubr.bf16.gmra.mrb[40].mxu0 %v16016_v29 }
 0x1d8   :  { %12162 = vmatprep.mubr.msk.bf16.mxu0 %vm531_vm1, %v16020_v30 }
 0x1db   :  { %1306 = vmatmul.mubr.bf16.gmra.mrb[8].mxu1 %v16007_v31 }
 0x1dc   :  { %12264 = vmatprep.mubr.msk.bf16.mxu1 %vm531_vm1, %v16011_v32 }
 0x1df   :  { %629 = vmatmul.mubr.bf16.gmra.mrb[44].mxu0 %v16022_v33 }
 0x1e0   :  { %12163 = vmatprep.mubr.msk.bf16.mxu0 %vm531_vm1, %v16026_v34 }
 0x1e3   :  { %1314 = vmatmul.mubr.bf16.gmra.mrb[12].mxu1 %v16013_v35 }
 0x1e4   :  { %12265 = vmatprep.mubr.msk.bf16.mxu1 %vm531_vm1, %v16017_v36 }
 0x1e7   :  { %637 = vmatmul.mubr.bf16.gmra.mrb[48].mxu0 %v16028_v37 }
 0x1e8   :  { %12164 = vmatprep.mubr.msk.bf16.mxu0 %vm531_vm1, %v16032_v39 }
 0x1eb   :  { %1322 = vmatmul.mubr.bf16.gmra.mrb[16].mxu1 %v16019_v40 }
 0x1ec   :  { %12266 = vmatprep.mubr.msk.bf16.mxu1 %vm531_vm1, %v16023_v41 }
 0x1ef   :  { %645 = vmatmul.mubr.bf16.gmra.mrb[52].mxu0 %v16034_v42 }
 0x1f3   :  { %1330 = vmatmul.mubr.bf16.gmra.mrb[20].mxu1 %v16025_v43 }
 0x1f4   :  { %12267 = vmatprep.mubr.msk.bf16.mxu1 %vm531_vm1, %v16029_v44 }
 0x1fb   :  { %1338 = vmatmul.mubr.bf16.gmra.mrb[24].mxu1 %v16031_v45 }
 0x1fc   :  { %12268 = vmatprep.mubr.msk.bf16.mxu1 %vm531_vm1, %v16035_v46 }
 0x203   :  { %1346 = vmatmul.mubr.bf16.gmra.mrb[28].mxu1 %v16037_v47 }
 0x28a   :  { %v590_v48 = vpop.f32.mrb[24].mxu0 }
 0x28b   :  { %v592_v49 = vpop.f32.mrb[25].mxu0 }
 0x28c   :  { %v593_v50 = vpop.f32.mrb[26].mxu0 }
 0x28d   :  { %v595_v51 = vpop.f32.mrb[27].mxu0 }
 0x292   :  { %v598_v52 = vpop.f32.mrb[28].mxu0 }
 0x293   :  { %v600_v53 = vpop.f32.mrb[29].mxu0 }
 0x294   :  { %v601_v54 = vpop.f32.mrb[30].mxu0 }
 0x295   :  { %v603_v55 = vpop.f32.mrb[31].mxu0 }
 0x29a   :  { %v606_v56 = vpop.f32.mrb[32].mxu0 }
 0x29b   :  { %v608_v57 = vpop.f32.mrb[33].mxu0 }
 0x29c   :  { %v609_v58 = vpop.f32.mrb[34].mxu0 }
 0x29d   :  { %v611_v59 = vpop.f32.mrb[35].mxu0 }
 0x29e   :  { %v1291_v60 = vpop.f32.mrb[0].mxu1 }
 0x29f   :  { %v16837_v61 = vadd.f32 %v1291_v60, %v590_v48  ;;  %v1293_v62 = vpop.f32.mrb[1].mxu1 }
 0x2a0   :  { %v1294_v63 = vpop.f32.mrb[2].mxu1 }
 0x2a1   :  { %v16839_v0 = vadd.f32 %v1294_v63, %v593_v50  ;;  %v1296_v1 = vpop.f32.mrb[3].mxu1  ;;  %v1371_v2 = vsel %vm1370_vm2, %v16837_v61, 0.0 }
 0x2a2   :  { %1372 = vadd.xlane.f32.xlu0 %v1371_v2  ;;  %v614_v3 = vpop.f32.mrb[36].mxu0 }
 0x2a3   :  { %v1374_v4 = vsel %vm1370_vm2, %v16839_v0, 0.0  ;;  %v616_v5 = vpop.f32.mrb[37].mxu0 }
 0x2a4   :  { %1375 = vadd.xlane.f32.xlu1 %v1374_v4  ;;  %v617_v6 = vpop.f32.mrb[38].mxu0 }
 0x2a5   :  { %v619_v7 = vpop.f32.mrb[39].mxu0 }
 0x2a6   :  { %v1299_v8 = vpop.f32.mrb[4].mxu1 }
 0x2a7   :  { %v16845_v9 = vadd.f32 %v1299_v8, %v598_v52  ;;  %v1301_v10 = vpop.f32.mrb[5].mxu1 }
 0x2a8   :  { %v1302_v11 = vpop.f32.mrb[6].mxu1 }
 0x2a9   :  { %v16847_v12 = vadd.f32 %v1302_v11, %v601_v54  ;;  %v1304_v13 = vpop.f32.mrb[7].mxu1  ;;  %v1377_v14 = vsel %vm1370_vm2, %v16845_v9, 0.0 }
 0x2aa   :  { %1378 = vadd.xlane.f32.xlu0 %v1377_v14  ;;  %v622_v15 = vpop.f32.mrb[40].mxu0 }
 0x2ab   :  { %v624_v16 = vpop.f32.mrb[41].mxu0  ;;  %v1380_v18 = vsel %vm1370_vm2, %v16847_v12, 0.0 }
 0x2ac   :  { %v625_v17 = vpop.f32.mrb[42].mxu0 }
 0x2ad   :  { %v627_v19 = vpop.f32.mrb[43].mxu0 }
 0x2ae   :  { %1381 = vadd.xlane.f32.xlu0 %v1380_v18  ;;  %v1307_v38 = vpop.f32.mrb[8].mxu1  ;;  %v1419_v19 = vmul.f32 %v16837_v61, %v16837_v61 }
 0x2af   :  { %v16853_v20 = vadd.f32 %v1307_v38, %v606_v56  ;;  %v1309_v21 = vpop.f32.mrb[9].mxu1 }
 0x2b0   :  { %v1310_v22 = vpop.f32.mrb[10].mxu1  ;;  %v1420_v21 = vmul.f32 %v16839_v0, %v16839_v0 }
 0x2b1   :  { %v16855_v23 = vadd.f32 %v1310_v22, %v609_v58  ;;  %v1312_v24 = vpop.f32.mrb[11].mxu1  ;;  %v1383_v25 = vsel %vm1370_vm2, %v16853_v20, 0.0  ;;  %v1435_v22 = vsel %vm1370_vm2, %v1419_v19, 0.0 }
 0x2b2   :  { %1384 = vadd.xlane.f32.xlu1 %v1383_v25  ;;  %v630_v26 = vpop.f32.mrb[44].mxu0  ;;  %v1421_v24 = vmul.f32 %v16845_v9, %v16845_v9  ;;  %v1438_v25 = vsel %vm1370_vm2, %v1420_v21, 0.0 }
 0x2b3   :  { %v1386_v27 = vsel %vm1370_vm2, %v16855_v23, 0.0  ;;  %v632_v28 = vpop.f32.mrb[45].mxu0 }
 0x2b4   :  { %1387 = vadd.xlane.f32.xlu0 %v1386_v27  ;;  %v633_v29 = vpop.f32.mrb[46].mxu0  ;;  %v1441_v27 = vsel %vm1370_vm2, %v1421_v24, 0.0  ;;  %v1423_v28 = vmul.f32 %v16853_v20, %v16853_v20 }
 0x2b5   :  { %v635_v30 = vpop.f32.mrb[47].mxu0 }
 0x2b6   :  { %v1315_v31 = vpop.f32.mrb[12].mxu1  ;;  %v1424_v30 = vmul.f32 %v16855_v23, %v16855_v23 }
 0x2b7   :  { %v16861_v32 = vadd.f32 %v1315_v31, %v614_v3  ;;  %v1317_v33 = vpop.f32.mrb[13].mxu1  ;;  %v1447_v31 = vsel %vm1370_vm2, %v1423_v28, 0.0 }
 0x2b8   :  { %v1318_v34 = vpop.f32.mrb[14].mxu1 }
 0x2b9   :  { %v16863_v35 = vadd.f32 %v1318_v34, %v617_v6  ;;  %v1320_v36 = vpop.f32.mrb[15].mxu1  ;;  %v1389_v37 = vsel %vm1370_vm2, %v16861_v32, 0.0  ;;  %v1425_v33 = vmul.f32 %v16861_v32, %v16861_v32  ;;  %v1450_v34 = vsel %vm1370_vm2, %v1424_v30, 0.0 }
 0x2ba   :  { %1390 = vadd.xlane.f32.xlu1 %v1389_v37  ;;  %v638_v39 = vpop.f32.mrb[48].mxu0 }
 0x2bb   :  { %v1392_v40 = vsel %vm1370_vm2, %v16863_v35, 0.0  ;;  %v640_v41 = vpop.f32.mrb[49].mxu0  ;;  %v1426_v36 = vmul.f32 %v16863_v35, %v16863_v35  ;;  %v1453_v37 = vsel %vm1370_vm2, %v1425_v33, 0.0  ;;  %v16959_v33 = vld [vmem:[%s16929_s20 + $0x8] sm:$0xff] }
 0x2bc   :  { %1393 = vadd.xlane.f32.xlu0 %v1392_v40  ;;  %v641_v42 = vpop.f32.mrb[50].mxu0 }
 0x2bd   :  { %v643_v43 = vpop.f32.mrb[51].mxu0  ;;  %v1456_v40 = vsel %vm1370_vm2, %v1426_v36, 0.0  ;;  %v16962_v36 = vld [vmem:[%s16929_s20 + $0x10] sm:$0xff] }
 0x2be   :  { %v1323_v44 = vpop.f32.mrb[16].mxu1 }
 0x2bf   :  { %v16869_v45 = vadd.f32 %v1323_v44, %v622_v15  ;;  %v1325_v46 = vpop.f32.mrb[17].mxu1 }
 0x2c0   :  { %v1326_v47 = vpop.f32.mrb[18].mxu1 }
 0x2c1   :  { %v16871_v48 = vadd.f32 %v1326_v47, %v625_v17  ;;  %v1328_v49 = vpop.f32.mrb[19].mxu1  ;;  %v1395_v50 = vsel %vm1370_vm2, %v16869_v45, 0.0  ;;  %v16941_v47 = vld [vmem:[%s16929_s20] sm:$0xff] }
 0x2c2   :  { %1396 = vadd.xlane.f32.xlu1 %v1395_v50  ;;  %v646_v51 = vpop.f32.mrb[52].mxu0  ;;  %13762 = vmatprep.mubr.f32.mxu0 %v16941_v47 }
 0x2c3   :  { %v1398_v52 = vsel %vm1370_vm2, %v16871_v48, 0.0  ;;  %v648_v53 = vpop.f32.mrb[53].mxu0  ;;  %v1428_v41 = vmul.f32 %v16871_v48, %v16871_v48 }
 0x2c4   :  { %1399 = vadd.xlane.f32.xlu0 %v1398_v52  ;;  %v649_v54 = vpop.f32.mrb[54].mxu0 }
 0x2c5   :  { %v651_v55 = vpop.f32.mrb[55].mxu0  ;;  %v1462_v44 = vsel %vm1370_vm2, %v1428_v41, 0.0 }
 0x2c6   :  { %v1331_v56 = vpop.f32.mrb[20].mxu1 }
 0x2c7   :  { %v16877_v57 = vadd.f32 %v1331_v56, %v630_v26  ;;  %v1333_v58 = vpop.f32.mrb[21].mxu1  ;;  %v1422_v26 = vmul.f32 %v16847_v12, %v16847_v12 }
 0x2c8   :  { %v1334_v59 = vpop.f32.mrb[22].mxu1 }
 0x2c9   :  { %v16879_v60 = vadd.f32 %v1334_v59, %v633_v29  ;;  %v1336_v62 = vpop.f32.mrb[23].mxu1  ;;  %v1401_v63 = vsel %vm1370_vm2, %v16877_v57, 0.0  ;;  %v1444_v29 = vsel %vm1370_vm2, %v1422_v26, 0.0  ;;  %v1429_v43 = vmul.f32 %v16877_v57, %v16877_v57 }
 0x2ca   :  { %1402 = vadd.xlane.f32.xlu1 %v1401_v63 }
 0x2cb   :  { %v1404_v1 = vsel %vm1370_vm2, %v16879_v60, 0.0  ;;  %v1430_v46 = vmul.f32 %v16879_v60, %v16879_v60  ;;  %v1465_v49 = vsel %vm1370_vm2, %v1429_v43, 0.0 }
 0x2cc   :  { %1405 = vadd.xlane.f32.xlu0 %v1404_v1 }
 0x2ce   :  { %v1339_v2 = vpop.f32.mrb[24].mxu1 }
 0x2cf   :  { %v16885_v3 = vadd.f32 %v1339_v2, %v638_v39  ;;  %v1341_v4 = vpop.f32.mrb[25].mxu1  ;;  %v1427_v39 = vmul.f32 %v16869_v45, %v16869_v45 }
 0x2d0   :  { %v1342_v5 = vpop.f32.mrb[26].mxu1 }
 0x2d1   :  { %v16887_v6 = vadd.f32 %v1342_v5, %v641_v42  ;;  %v1344_v7 = vpop.f32.mrb[27].mxu1  ;;  %v1407_v8 = vsel %vm1370_vm2, %v16885_v3, 0.0  ;;  %v1459_v42 = vsel %vm1370_vm2, %v1427_v39, 0.0  ;;  %v1431_v50 = vmul.f32 %v16885_v3, %v16885_v3 }
 0x2d2   :  { %1408 = vadd.xlane.f32.xlu1 %v1407_v8 }
 0x2d3   :  { %v1410_v10 = vsel %vm1370_vm2, %v16887_v6, 0.0  ;;  %v1432_v52 = vmul.f32 %v16887_v6, %v16887_v6  ;;  %v1471_v53 = vsel %vm1370_vm2, %v1431_v50, 0.0  ;;  %v1489_v50 = vld [vmem:[%s16929_s20 + $0x30] sm:$0xff] }
 0x2d4   :  { %1411 = vadd.xlane.f32.xlu0 %v1410_v10 }
 0x2d5   :  { %v1474_v55 = vsel %vm1370_vm2, %v1432_v52, 0.0 }
 0x2d6   :  { %v1347_v11 = vpop.f32.mrb[28].mxu1 }
 0x2d7   :  { %v16893_v13 = vadd.f32 %v1347_v11, %v646_v51  ;;  %v1349_v14 = vpop.f32.mrb[29].mxu1  ;;  %v1468_v51 = vsel %vm1370_vm2, %v1430_v46, 0.0  ;;  %v1488_v46 = vld [vmem:[%s16929_s20 + $0x28] sm:$0xff] }
 0x2d8   :  { %v1350_v15 = vpop.f32.mrb[30].mxu1 }
 0x2d9   :  { %v16895_v16 = vadd.f32 %v1350_v15, %v649_v54  ;;  %v1352_v17 = vpop.f32.mrb[31].mxu1  ;;  %v1413_v18 = vsel %vm1370_vm2, %v16893_v13, 0.0  ;;  %v1433_v54 = vmul.f32 %v16893_v13, %v16893_v13 }
 0x2da   :  { %1414 = vadd.xlane.f32.xlu1 %v1413_v18 }
 0x2db   :  { %v1416_v38 = vsel %vm1370_vm2, %v16895_v16, 0.0  ;;  %v1434_v56 = vmul.f32 %v16895_v16, %v16895_v16  ;;  %v1477_v58 = vsel %vm1370_vm2, %v1433_v54, 0.0 }
 0x2dc   :  { %1417 = vadd.xlane.f32.xlu0 %v1416_v38 }
 0x2dd   :  { %v1480_v59 = vsel %vm1370_vm2, %v1434_v56, 0.0 }
 0x2de   :  { %1436 = vadd.xlane.f32.xlu1 %v1435_v22 }
 0x2e0   :  { %1439 = vadd.xlane.f32.xlu0 %v1438_v25 }
 0x2e2   :  { %1442 = vadd.xlane.f32.xlu1 %v1441_v27 }
 0x2e4   :  { %1445 = vadd.xlane.f32.xlu0 %v1444_v29 }
 0x2e6   :  { %1448 = vadd.xlane.f32.xlu1 %v1447_v31 }
 0x2e8   :  { %1451 = vadd.xlane.f32.xlu0 %v1450_v34 }
 0x2ea   :  { %1454 = vadd.xlane.f32.xlu1 %v1453_v37 }
 0x2ec   :  { %1457 = vadd.xlane.f32.xlu0 %v1456_v40  ;;  %v1486_v40 = vld [vmem:[%s16929_s20 + $0x18] sm:$0xff] }
 0x2ee   :  { %1460 = vadd.xlane.f32.xlu1 %v1459_v42  ;;  %v1487_v42 = vld [vmem:[%s16929_s20 + $0x20] sm:$0xff] }
 0x2f0   :  { %1463 = vadd.xlane.f32.xlu0 %v1462_v44 }
 0x2f2   :  { %1466 = vadd.xlane.f32.xlu1 %v1465_v49 }
 0x2f4   :  { %1469 = vadd.xlane.f32.xlu0 %v1468_v51 }
 0x2f6   :  { %1472 = vadd.xlane.f32.xlu1 %v1471_v53  ;;  %v1490_v53 = vld [vmem:[%s16929_s20 + $0x38] sm:$0xff] }
 0x2f8   :  { %1475 = vadd.xlane.f32.xlu0 %v1474_v55  ;;  %v1491_v55 = vld [vmem:[%s16929_s20 + $0x40] sm:$0xff] }
 0x2fa   :  { %1478 = vadd.xlane.f32.xlu1 %v1477_v58 }
 0x2fc   :  { %1481 = vadd.xlane.f32.xlu0 %v1480_v59  ;;  %v1492_v59 = vld [vmem:[%s16929_s20 + $0x48] sm:$0xff] }
 0x32f   :  { %v1373_v62 = vpop.xlane.xlu0 %1372 }
 0x331   :  { %v1376_v63 = vpop.xlane.xlu1 %1375 }
 0x332   :  { %v15204_v1 = vpack.c.bf16 %v1376_v63, %v1373_v62  ;;  %v1493_v63 = vld [vmem:[%s16929_s20 + $0x50] sm:$0xff] }
 0x334   :  { %15205 = vmatprep.subr.bf16.mxu0 %v15204_v1 }
 0x335   :  { %15207 = vmatpush3.bf16.msra.mxu0 %v15204_v1 }
 0x337   :  { %v1379_v2 = vpop.xlane.xlu0 %1378 }
 0x33b   :  { %v1382_v4 = vpop.xlane.xlu0 %1381 }
 0x33c   :  { %v15208_v5 = vpack.c.bf16 %v1382_v4, %v1379_v2  ;;  %v1494_v4 = vld [vmem:[%s16929_s20 + $0x58] sm:$0xff] }
 0x33e   :  { %15209 = vmatprep.subr.bf16.mxu0 %v15208_v5 }
 0x33f   :  { %15211 = vmatpush3.bf16.msra.mxu0 %v15208_v5  ;;  %v1385_v7 = vpop.xlane.xlu1 %1384 }
 0x341   :  { %v1388_v8 = vpop.xlane.xlu0 %1387 }
 0x342   :  { %v15212_v10 = vpack.c.bf16 %v1388_v8, %v1385_v7  ;;  %v1495_v7 = vld [vmem:[%s16929_s20 + $0x60] sm:$0xff] }
 0x344   :  { %15213 = vmatprep.subr.bf16.mxu0 %v15212_v10 }
 0x345   :  { %15215 = vmatpush3.bf16.msra.mxu0 %v15212_v10 }
 0x347   :  { %v1391_v11 = vpop.xlane.xlu1 %1390 }
 0x349   :  { %v1394_v14 = vpop.xlane.xlu0 %1393 }
 0x34a   :  { %v15216_v15 = vpack.c.bf16 %v1394_v14, %v1391_v11  ;;  %v1496_v11 = vld [vmem:[%s16929_s20 + $0x68] sm:$0xff] }
 0x34c   :  { %15217 = vmatprep.subr.bf16.mxu0 %v15216_v15 }
 0x34d   :  { %15219 = vmatpush3.bf16.msra.mxu0 %v15216_v15  ;;  %v1497_v15 = vld [vmem:[%s16929_s20 + $0x70] sm:$0xff] }
 0x34f   :  { %v1397_v17 = vpop.xlane.xlu1 %1396 }
 0x351   :  { %v1400_v18 = vpop.xlane.xlu0 %1399 }
 0x352   :  { %v15220_v19 = vpack.c.bf16 %v1400_v18, %v1397_v17 }
 0x354   :  { %15221 = vmatprep.subr.bf16.mxu0 %v15220_v19 }
 0x355   :  { %15223 = vmatpush3.bf16.msra.mxu0 %v15220_v19  ;;  %v1498_v19 = vld [vmem:[%s16929_s20 + $0x78] sm:$0xff]  ;;  %s16531_s20 = smov 11  }
 0x356   :  { %s17471_s23 = sld [smem:[%s19425_s0 + %s16531_s20]]  }
 0x357   :  { %v1403_v38 = vpop.xlane.xlu1 %1402  ;;  %s17876_s20 = sld [smem:[%s19425_s0 + %s16538_s17]]  }
 0x359   :  { %v1406_v21 = vpop.xlane.xlu0 %1405 }
 0x35a   :  { %v15224_v22 = vpack.c.bf16 %v1406_v21, %v1403_v38 }
 0x35c   :  { %15225 = vmatprep.subr.bf16.mxu0 %v15224_v22 }
 0x35d   :  { %15227 = vmatpush3.bf16.msra.mxu0 %v15224_v22 }
 0x35f   :  { %v1409_v24 = vpop.xlane.xlu1 %1408 }
 0x361   :  { %v1412_v25 = vpop.xlane.xlu0 %1411 }
 0x362   :  { %v15228_v26 = vpack.c.bf16 %v1412_v25, %v1409_v24 }
 0x364   :  { %15229 = vmatprep.subr.bf16.mxu0 %v15228_v26 }
 0x365   :  { %15231 = vmatpush3.bf16.msra.mxu0 %v15228_v26 }
 0x367   :  { %v1415_v27 = vpop.xlane.xlu1 %1414 }
 0x369   :  { %v1418_v28 = vpop.xlane.xlu0 %1417 }
 0x36a   :  { %v15232_v29 = vpack.c.bf16 %v1418_v28, %v1415_v27 }
 0x36b   :  { %v1437_v30 = vpop.xlane.xlu1 %1436 }
 0x36c   :  { %15233 = vmatprep.subr.bf16.mxu0 %v15232_v29 }
 0x36d   :  { %15235 = vmatpush3.bf16.msra.mxu0 %v15232_v29  ;;  %v1440_v31 = vpop.xlane.xlu0 %1439 }
 0x36e   :  { %v15236_v34 = vpack.c.bf16 %v1440_v31, %v1437_v30 }
 0x36f   :  { %v1443_v37 = vpop.xlane.xlu1 %1442 }
 0x370   :  { %13763 = vmatmul.mubr.f32.vlgmr.msra.gmra.mrb[56].mxu0 %v16959_v33  ;;  %15237 = vmatprep.subr.bf16.mxu0 %v15236_v34 }
 0x371   :  { %15239 = vmatpush3.bf16.msra.mxu0 %v15236_v34  ;;  %v1446_v39 = vpop.xlane.xlu0 %1445  ;;  %13765 = vmatprep.mubr.f32.mxu0 %v16962_v36 }
 0x372   :  { %v15240_v41 = vpack.c.bf16 %v1446_v39, %v1443_v37 }
 0x373   :  { %v1449_v43 = vpop.xlane.xlu1 %1448 }
 0x374   :  { %13766 = vmatmul.mubr.f32.gmra.mrb[58].mxu0 %v1486_v40  ;;  %15241 = vmatprep.subr.bf16.mxu0 %v15240_v41 }
 0x375   :  { %15243 = vmatpush3.bf16.msra.mxu0 %v15240_v41  ;;  %v1452_v44 = vpop.xlane.xlu0 %1451  ;;  %13768 = vmatprep.mubr.f32.mxu0 %v1487_v42 }
 0x376   :  { %v15244_v49 = vpack.c.bf16 %v1452_v44, %v1449_v43 }
 0x377   :  { %v1455_v51 = vpop.xlane.xlu1 %1454 }
 0x378   :  { %13769 = vmatmul.mubr.f32.gmra.mrb[60].mxu0 %v1488_v46  ;;  %15245 = vmatprep.subr.bf16.mxu0 %v15244_v49 }
 0x379   :  { %15247 = vmatpush3.bf16.msra.mxu0 %v15244_v49  ;;  %v1458_v52 = vpop.xlane.xlu0 %1457  ;;  %13771 = vmatprep.mubr.f32.mxu0 %v1489_v50 }
 0x37a   :  { %v15248_v54 = vpack.c.bf16 %v1458_v52, %v1455_v51 }
 0x37b   :  { %v1461_v56 = vpop.xlane.xlu1 %1460 }
 0x37c   :  { %13772 = vmatmul.mubr.f32.gmra.mrb[62].mxu0 %v1490_v53  ;;  %15249 = vmatprep.subr.bf16.mxu0 %v15248_v54 }
 0x37d   :  { %15251 = vmatpush3.bf16.msra.mxu0 %v15248_v54  ;;  %v1464_v58 = vpop.xlane.xlu0 %1463  ;;  %13774 = vmatprep.mubr.f32.mxu0 %v1491_v55 }
 0x37e   :  { %v15252_v62 = vpack.c.bf16 %v1464_v58, %v1461_v56 }
 0x37f   :  { %v1467_v1 = vpop.xlane.xlu1 %1466 }
 0x380   :  { %13775 = vmatmul.mubr.f32.gmra.mrb[64].mxu0 %v1492_v59  ;;  %15253 = vmatprep.subr.bf16.mxu0 %v15252_v62 }
 0x381   :  { %15255 = vmatpush3.bf16.msra.mxu0 %v15252_v62  ;;  %v1470_v2 = vpop.xlane.xlu0 %1469  ;;  %13777 = vmatprep.mubr.f32.mxu0 %v1493_v63 }
 0x382   :  { %v15256_v5 = vpack.c.bf16 %v1470_v2, %v1467_v1 }
 0x383   :  { %v1473_v8 = vpop.xlane.xlu1 %1472 }
 0x384   :  { %13778 = vmatmul.mubr.f32.gmra.mrb[66].mxu0 %v1494_v4  ;;  %15257 = vmatprep.subr.bf16.mxu0 %v15256_v5 }
 0x385   :  { %15259 = vmatpush3.bf16.msra.mxu0 %v15256_v5  ;;  %v1476_v10 = vpop.xlane.xlu0 %1475  ;;  %13780 = vmatprep.mubr.f32.mxu0 %v1495_v7 }
 0x386   :  { %v15260_v14 = vpack.c.bf16 %v1476_v10, %v1473_v8 }
 0x387   :  { %v1479_v17 = vpop.xlane.xlu1 %1478 }
 0x388   :  { %13781 = vmatmul.mubr.f32.gmra.mrb[68].mxu0 %v1496_v11  ;;  %15261 = vmatprep.subr.bf16.mxu0 %v15260_v14 }
 0x389   :  { %15263 = vmatpush3.bf16.msra.mxu0 %v15260_v14  ;;  %v1482_v18 = vpop.xlane.xlu0 %1481  ;;  %13783 = vmatprep.mubr.f32.mxu0 %v1497_v15 }
 0x38a   :  { %v15264_v38 = vpack.c.bf16 %v1482_v18, %v1479_v17 }
 0x38c   :  { %13784 = vmatmul.mubr.f32.gmra.mrb[70].mxu0 %v1498_v19  ;;  %15265 = vmatprep.subr.bf16.mxu0 %v15264_v38 }
 0x38d   :  { %15267 = vmatpush3.bf16.msra.mxu0 %v15264_v38  ;;  %13818 = vmatprep.mubr.f32.mxu0 %v16941_v47 }
 0x390   :  { %13819 = vmatmul.mubr.f32.vlgmr.msra.gmra.mrb[72].mxu0 %v16959_v33 }
 0x391   :  { %13821 = vmatprep.mubr.f32.mxu0 %v16962_v36 }
 0x394   :  { %13822 = vmatmul.mubr.f32.gmra.mrb[74].mxu0 %v1486_v40 }
 0x395   :  { %13824 = vmatprep.mubr.f32.mxu0 %v1487_v42 }
 0x398   :  { %13825 = vmatmul.mubr.f32.gmra.mrb[76].mxu0 %v1488_v46 }
 0x399   :  { %13827 = vmatprep.mubr.f32.mxu0 %v1489_v50 }
 0x39c   :  { %13828 = vmatmul.mubr.f32.gmra.mrb[78].mxu0 %v1490_v53 }
 0x39d   :  { %13830 = vmatprep.mubr.f32.mxu0 %v1491_v55 }
 0x3a0   :  { %13831 = vmatmul.mubr.f32.gmra.mrb[80].mxu0 %v1492_v59 }
 0x3a1   :  { %13833 = vmatprep.mubr.f32.mxu0 %v1493_v63 }
 0x3a4   :  { %13834 = vmatmul.mubr.f32.gmra.mrb[82].mxu0 %v1494_v4 }
 0x3a5   :  { %13836 = vmatprep.mubr.f32.mxu0 %v1495_v7 }
 0x3a8   :  { %13837 = vmatmul.mubr.f32.gmra.mrb[84].mxu0 %v1496_v11 }
 0x3a9   :  { %13839 = vmatprep.mubr.f32.mxu0 %v1497_v15 }
 0x3ac   :  { %13840 = vmatmul.mubr.f32.gmra.mrb[86].mxu0 %v1498_v19 }
 0x443   :  { %v13764_v21 = vpop.f32.mrb[56].mxu0 }
 0x444   :  { %v1565_v22 = vpop.f32.mrb[57].mxu0  ;;  %v16992_v39 = vmul.f32 0.001953125, %v13764_v21 }
 0x445   :  { %v16996_v41 = vmul.f32 0.001953125, %v1565_v22 }
 0x446   :  { %v1822_v43 = vmul.f32 %v16992_v39, %v16992_v39 }
 0x447   :  { %v13767_v47 = vpop.f32.mrb[58].mxu0  ;;  %v1821_v50 = vmul.f32 %v16996_v41, %v16996_v41 }
 0x448   :  { %v1575_v24 = vpop.f32.mrb[59].mxu0  ;;  %v17000_v44 = vmul.f32 0.001953125, %v13767_v47 }
 0x449   :  { %v17004_v51 = vmul.f32 0.001953125, %v1575_v24 }
 0x44a   :  { %v1824_v56 = vmul.f32 %v17000_v44, %v17000_v44 }
 0x44b   :  { %v13770_v25 = vpop.f32.mrb[60].mxu0  ;;  %v1823_v1 = vmul.f32 %v17004_v51, %v17004_v51 }
 0x44c   :  { %v1585_v26 = vpop.f32.mrb[61].mxu0  ;;  %v17008_v58 = vmul.f32 0.001953125, %v13770_v25 }
 0x44d   :  { %v17012_v2 = vmul.f32 0.001953125, %v1585_v26 }
 0x44e   :  { %v1826_v11 = vmul.f32 %v17008_v58, %v17008_v58 }
 0x44f   :  { %v13773_v27 = vpop.f32.mrb[62].mxu0  ;;  %v1825_v19 = vmul.f32 %v17012_v2, %v17012_v2 }
 0x450   :  { %v1595_v28 = vpop.f32.mrb[63].mxu0  ;;  %v17021_v14 = vmul.f32 0.001953125, %v13773_v27 }
 0x451   :  { %v17025_v38 = vmul.f32 0.001953125, %v1595_v28 }
 0x452   :  { %v1828_v27 = vmul.f32 %v17021_v14, %v17021_v14 }
 0x453   :  { %v13776_v29 = vpop.f32.mrb[64].mxu0 }
 0x454   :  { %v1605_v30 = vpop.f32.mrb[65].mxu0  ;;  %v17027_v24 = vmul.f32 0.001953125, %v13776_v29 }
 0x457   :  { %v16982_v31 = vpop.f32.mrb[66].mxu0 }
 0x458   :  { %v16984_v33 = vpop.f32.mrb[67].mxu0 }
 0x45b   :  { %v16986_v34 = vpop.f32.mrb[68].mxu0 }
 0x45c   :  { %v16988_v36 = vpop.f32.mrb[69].mxu0 }
 0x45f   :  { %v16990_v37 = vpop.f32.mrb[70].mxu0 }
 0x460   :  { %v16994_v40 = vpop.f32.mrb[71].mxu0 }
 0x463   :  { %v13820_v42 = vpop.f32.mrb[72].mxu0 }
 0x464   :  { %v1806_v46 = vmul.f32 0.001953125, %v13820_v42  ;;  %v1726_v49 = vpop.f32.mrb[73].mxu0  ;;  %v17031_v42 = vmul.f32 0.001953125, %v1605_v30 }
 0x465   :  { %v1805_v52 = vmul.f32 0.001953125, %v1726_v49  ;;  %v1827_v49 = vmul.f32 %v17025_v38, %v17025_v38 }
 0x466   :  { %v1838_v53 = vsub.f32 %v1806_v46, %v1822_v43 }
 0x467   :  { %v1837_v54 = vsub.f32 %v1805_v52, %v1821_v50  ;;  %v13823_v55 = vpop.f32.mrb[74].mxu0 }
 0x468   :  { %v1870_v59 = vadd.f32 1e-05, %v1838_v53  ;;  %v1808_v62 = vmul.f32 0.001953125, %v13823_v55  ;;  %v1736_v63 = vpop.f32.mrb[75].mxu0  ;;  %v1854_v53 = vld [vmem:[%s17017_s24 + $0x8] sm:$0xff] }
 0x469   :  { %v1869_v4 = vadd.f32 1e-05, %v1837_v54  ;;  %v1807_v5 = vmul.f32 0.001953125, %v1736_v63  ;;  %v1830_v54 = vmul.f32 %v17027_v24, %v17027_v24  ;;  %v17047_v63 = vmul.f32 0.001953125, %v16982_v31 }
 0x46a   :  { %16256 = vrsqrt.f32 %v1870_v59  ;;  %v1840_v7 = vsub.f32 %v1808_v62, %v1824_v56  ;;  %v1853_v59 = vld [vmem:[%s17017_s24] sm:$0xff]  ;;  %v1829_v62 = vmul.f32 %v17031_v42, %v17031_v42  ;;  %v17057_v31 = vmul.f32 0.001953125, %v16988_v36 }
 0x46b   :  { %16258 = vrsqrt.f32 %v1869_v4  ;;  %v1839_v8 = vsub.f32 %v1807_v5, %v1823_v1  ;;  %v13826_v10 = vpop.f32.mrb[76].mxu0 }
 0x46c   :  { %v1872_v15 = vadd.f32 1e-05, %v1840_v7  ;;  %v1810_v17 = vmul.f32 0.001953125, %v13826_v10  ;;  %v1746_v18 = vpop.f32.mrb[77].mxu0 }
 0x46d   :  { %v1871_v21 = vadd.f32 1e-05, %v1839_v8  ;;  %v1809_v22 = vmul.f32 0.001953125, %v1746_v18  ;;  %v17050_v8 = vmul.f32 0.001953125, %v16984_v33 }
 0x46e   :  { %16260 = vrsqrt.f32 %v1872_v15  ;;  %v1842_v47 = vsub.f32 %v1810_v17, %v1826_v11  ;;  %v17053_v17 = vmul.f32 0.001953125, %v16986_v34  ;;  %v1832_v34 = vmul.f32 %v17047_v63, %v17047_v63 }
 0x46f   :  { %16262 = vrsqrt.f32 %v1871_v21  ;;  %v1841_v25 = vsub.f32 %v1809_v22, %v1825_v19  ;;  %v13829_v26 = vpop.f32.mrb[78].mxu0  ;;  %v1856_v21 = vld [vmem:[%s17017_s24 + $0x18] sm:$0xff] }
 0x470   :  { %v1874_v43 = vadd.f32 1e-05, %v1842_v47  ;;  %v1812_v46 = vmul.f32 0.001953125, %v13829_v26  ;;  %v1756_v28 = vpop.f32.mrb[79].mxu0 }
 0x471   :  { %v1873_v50 = vadd.f32 1e-05, %v1841_v25  ;;  %v1811_v52 = vmul.f32 0.001953125, %v1756_v28  ;;  %v1855_v25 = vld [vmem:[%s17017_s24 + $0x10] sm:$0xff] }
 0x472   :  { %16264 = vrsqrt.f32 %v1874_v43  ;;  %v1844_v29 = vsub.f32 %v1812_v46, %v1828_v27 }
 0x473   :  { %16266 = vrsqrt.f32 %v1873_v50  ;;  %v1843_v55 = vsub.f32 %v1811_v52, %v1827_v49  ;;  %v13832_v56 = vpop.f32.mrb[80].mxu0  ;;  %v1831_v49 = vmul.f32 %v17050_v8, %v17050_v8 }
 0x474   :  { %v16257_v30 = vpop.eup %16256  ;;  %v1876_v1 = vadd.f32 1e-05, %v1844_v29  ;;  %v1814_v4 = vmul.f32 0.001953125, %v13832_v56  ;;  %v1766_v5 = vpop.f32.mrb[81].mxu0  ;;  %v1834_v29 = vmul.f32 %v17053_v17, %v17053_v17  ;;  %v1833_v56 = vmul.f32 %v17057_v31, %v17057_v31 }
 0x475   :  { %v16259_v7 = vpop.eup %16258  ;;  %v1875_v10 = vadd.f32 1e-05, %v1843_v55  ;;  %v1813_v11 = vmul.f32 0.001953125, %v1766_v5  ;;  %v1902_v15 = vmul.f32 %v16257_v30, %v1854_v53  ;;  %v1858_v55 = vld [vmem:[%s17017_s24 + $0x28] sm:$0xff]  ;;  %v17079_v5 = vmul.f32 0.001953125, %v16990_v37 }
 0x476   :  { %16268 = vrsqrt.f32 %v1876_v1  ;;  %v1846_v18 = vsub.f32 %v1814_v4, %v1830_v54  ;;  %v1901_v19 = vmul.f32 %v16259_v7, %v1853_v59  ;;  %v1918_v30 = vld [vmem:[%s17042_s28 + $0x8] sm:$0xff] }
 0x477   :  { %16270 = vrsqrt.f32 %v1875_v10  ;;  %v1845_v22 = vsub.f32 %v1813_v11, %v1829_v62  ;;  %1972 = vperm.xlu0 %15938, %v1902_v15   ;;  %v13835_v47 = vpop.f32.mrb[82].mxu0  ;;  %v1934_v33 = vmul.f32 %v1902_v15, %v16992_v39  ;;  %v1857_v62 = vld [vmem:[%s17017_s24 + $0x20] sm:$0xff] }
 0x478   :  { %v16261_v26 = vpop.eup %16260  ;;  %v1878_v27 = vadd.f32 1e-05, %v1846_v18  ;;  %v1816_v43 = vmul.f32 0.001953125, %v13835_v47  ;;  %1967 = vperm.xlu1 %15939, %v1901_v19   ;;  %v1776_v46 = vpop.f32.mrb[83].mxu0  ;;  %v17064_v36 = vmul.f32 %v1901_v19, %v16996_v41  ;;  %v17085_v19 = vmul.f32 0.001953125, %v16994_v40 }
 0x479   :  { %v16263_v28 = vpop.eup %16262  ;;  %v1877_v39 = vadd.f32 1e-05, %v1845_v22  ;;  %v1815_v50 = vmul.f32 0.001953125, %v1776_v46  ;;  %v1904_v52 = vmul.f32 %v16261_v26, %v1856_v21  ;;  %v1950_v37 = vsub.f32 %v1918_v30, %v1934_v33  ;;  %v1860_v26 = vld [vmem:[%s17017_s24 + $0x38] sm:$0xff]  ;;  %v1917_v30 = vld [vmem:[%s17042_s28] sm:$0xff] }
 0x47a   :  { %16272 = vrsqrt.f32 %v1878_v27  ;;  %v1848_v53 = vsub.f32 %v1816_v43, %v1832_v34  ;;  %v1903_v54 = vmul.f32 %v16263_v28, %v1855_v25  ;;  %v1859_v43 = vld [vmem:[%s17017_s24 + $0x30] sm:$0xff]  ;;  %v1836_v46 = vmul.f32 %v17079_v5, %v17079_v5 }
 0x47b   :  { %16274 = vrsqrt.f32 %v1877_v39  ;;  %v1847_v41 = vsub.f32 %v1815_v50, %v1831_v49  ;;  %v13838_v59 = vpop.f32.mrb[84].mxu0  ;;  %v17076_v1 = vmul.f32 %v1904_v52, %v17000_v44 }
 0x47c   :  { %v16265_v4 = vpop.eup %16264  ;;  %v1880_v7 = vadd.f32 1e-05, %v1848_v53  ;;  %v1818_v10 = vmul.f32 0.001953125, %v13838_v59  ;;  %1982 = vperm.xlu1 %15939, %v1904_v52   ;;  %v1786_v11 = vpop.f32.mrb[85].mxu0  ;;  %v17082_v15 = vmul.f32 %v1903_v54, %v17004_v51 }
 0x47d   :  { %v16267_v18 = vpop.eup %16266  ;;  %v1879_v21 = vadd.f32 1e-05, %v1847_v41  ;;  %v1817_v44 = vmul.f32 0.001953125, %v1786_v11  ;;  %v17087_v22 = vmul.f32 %v16265_v4, %v1858_v55  ;;  %v1862_v41 = vld [vmem:[%s17017_s24 + $0x48] sm:$0xff]  ;;  %v1861_v4 = vld [vmem:[%s17017_s24 + $0x40] sm:$0xff] }
 0x47e   :  { %16276 = vrsqrt.f32 %v1880_v7  ;;  %v1850_v47 = vsub.f32 %v1818_v10, %v1834_v29  ;;  %v17089_v25 = vmul.f32 %v16267_v18, %v1857_v62  ;;  %v1921_v62 = vld [vmem:[%s17042_s28 + $0x20] sm:$0xff] }
 0x47f   :  { %16278 = vrsqrt.f32 %v1879_v21  ;;  %v1849_v34 = vsub.f32 %v1817_v44, %v1833_v56  ;;  %v13841_v27 = vpop.f32.mrb[86].mxu0  ;;  %v17095_v51 = vmul.f32 %v17087_v22, %v17008_v58  ;;  %v1835_v58 = vmul.f32 %v17085_v19, %v17085_v19 }
 0x480   :  { %v16269_v40 = vpop.eup %16268  ;;  %v1882_v28 = vadd.f32 1e-05, %v1850_v47  ;;  %v1820_v49 = vmul.f32 0.001953125, %v13841_v27  ;;  %2068 = vperm.xlu1 %15939, %v1950_v37   ;;  %v1796_v33 = vpop.f32.mrb[87].mxu0  ;;  %v1937_v39 = vmul.f32 %v17089_v25, %v17012_v2  ;;  %v1949_v47 = vsub.f32 %v1917_v30, %v17064_v36  ;;  %v1923_v27 = vld [vmem:[%s17042_s28 + $0x30] sm:$0xff] }
 0x481   :  { %v16271_v50 = vpop.eup %16270  ;;  %v1881_v52 = vadd.f32 1e-05, %v1849_v34  ;;  %v1819_v29 = vmul.f32 0.001953125, %v1796_v33  ;;  %v17103_v53 = vmul.f32 %v16269_v40, %v1860_v26  ;;  %v1920_v34 = vld [vmem:[%s17042_s28 + $0x18] sm:$0xff] }
 0x482   :  { %16280 = vrsqrt.f32 %v1882_v28  ;;  %v1852_v55 = vsub.f32 %v1820_v49, %v1836_v46  ;;  %v1907_v56 = vmul.f32 %v16271_v50, %v1859_v43  ;;  %v1953_v37 = vsub.f32 %v1921_v62, %v1937_v39  ;;  %v1863_v43 = vld [vmem:[%s17017_s24 + $0x50] sm:$0xff]  ;;  %v1866_v39 = vld [vmem:[%s17017_s24 + $0x68] sm:$0xff]  ;;  %v1865_v50 = vld [vmem:[%s17017_s24 + $0x60] sm:$0xff] }
 0x483   :  { %16282 = vrsqrt.f32 %v1881_v52  ;;  %v1851_v59 = vsub.f32 %v1819_v29, %v1835_v58  ;;  %v17111_v2 = vmul.f32 %v17103_v53, %v17021_v14  ;;  %v1864_v14 = vld [vmem:[%s17017_s24 + $0x58] sm:$0xff]  ;;  %v1952_v28 = vsub.f32 %v1920_v34, %v17076_v1  ;;  %v1919_v1 = vld [vmem:[%s17042_s28 + $0x10] sm:$0xff] }
 0x484   :  { %v16273_v7 = vpop.eup %16272  ;;  %v1884_v10 = vadd.f32 1e-05, %v1852_v55  ;;  %1977 = vperm.xlu1 %15939, %v1903_v54   ;;  %1997 = vperm.xlu0 %15938, %v1907_v56   ;;  %v1939_v11 = vmul.f32 %v1907_v56, %v17025_v38  ;;  %v1868_v56 = vld [vmem:[%s17017_s24 + $0x78] sm:$0xff] }
 0x485   :  { %v16275_v18 = vpop.eup %16274  ;;  %v1883_v21 = vadd.f32 1e-05, %v1851_v59  ;;  %v17114_v44 = vmul.f32 %v16273_v7, %v1862_v41  ;;  %v1930_v41 = vld [vmem:[%s17042_s28 + $0x68] sm:$0xff]  ;;  %v1867_v59 = vld [vmem:[%s17017_s24 + $0x70] sm:$0xff]  ;;  %s16532_s24 = smov 13  }
 0x486   :  { %16284 = vrsqrt.f32 %v1884_v10  ;;  %v1909_v26 = vmul.f32 %v16275_v18, %v1861_v4  ;;  %v1955_v49 = vsub.f32 %v1923_v27, %v1939_v11  ;;  %v1951_v10 = vsub.f32 %v1919_v1, %v17082_v15  ;;  %v1925_v18 = vld [vmem:[%s17042_s28 + $0x40] sm:$0xff]  ;;  %s12087_s27 = sld [smem:[%s19425_s0 + %s16532_s24]]  }
 0x487   :  { %16286 = vrsqrt.f32 %v1883_v21  ;;  %v17123_v54 = vmul.f32 %v17114_v44, %v17027_v24  ;;  %v1929_v27 = vld [vmem:[%s17042_s28 + $0x60] sm:$0xff]  ;;  %s17987_s24 = sld [smem:[%s19425_s0 + %s16539_s21]]  }
 0x488   :  { %v16277_v38 = vpop.eup %16276  ;;  %2063 = vperm.xlu1 %15939, %v1949_v47   ;;  %2083 = vperm.xlu0 %15938, %v1953_v37   ;;  %v1941_v40 = vmul.f32 %v1909_v26, %v17031_v42  ;;  %v16038_v37 = vld [vmem:[%s12082_s2] sm:$0xff]   ;;  %s17605_s2 = sld [smem:[%s19425_s0 + %s16534_s29]]  }
 0x489   :  { %v16279_v36 = vpop.eup %16278  ;;  %v1912_v46 = vmul.f32 %v16277_v38, %v1864_v14  ;;  %13842 = vmatprep.subr.bf16.mxu0 %v16038_v37  ;;  %v1922_v14 = vld [vmem:[%s17042_s28 + $0x28] sm:$0xff] }
 0x48a   :  { %v1911_v33 = vmul.f32 %v16279_v36, %v1863_v43  ;;  %13843 = vmatpush3.bf16.msra.mxu0 %v16038_v37  ;;  %v1931_v43 = vld [vmem:[%s17042_s28 + $0x70] sm:$0xff] }
 0x48b   :  { %v1944_v24 = vmul.f32 %v1912_v46, %v17047_v63 }
 0x48c   :  { %v16281_v58 = vpop.eup %16280  ;;  %2078 = vperm.xlu1 %15939, %v1952_v28   ;;  %2093 = vperm.xlu0 %15938, %v1955_v49   ;;  %v1943_v52 = vmul.f32 %v1911_v33, %v17050_v8 }
 0x48d   :  { %v16283_v42 = vpop.eup %16282  ;;  %v1914_v29 = vmul.f32 %v16281_v58, %v1866_v39 }
 0x48e   :  { %v1913_v55 = vmul.f32 %v16283_v42, %v1865_v50 }
 0x48f   :  { %v1946_v30 = vmul.f32 %v1914_v29, %v17053_v17  ;;  %v1932_v17 = vld [vmem:[%s17042_s28 + $0x78] sm:$0xff] }
 0x490   :  { %v16285_v63 = vpop.eup %16284  ;;  %1992 = vperm.xlu1 %15939, %v17087_v22   ;;  %2007 = vperm.xlu0 %15938, %v1909_v26   ;;  %v1945_v8 = vmul.f32 %v1913_v55, %v17057_v31  ;;  %v1957_v31 = vsub.f32 %v1925_v18, %v1941_v40  ;;  %v1927_v26 = vld [vmem:[%s17042_s28 + $0x50] sm:$0xff]  ;;  %v1926_v40 = vld [vmem:[%s17042_s28 + $0x48] sm:$0xff] }
 0x491   :  { %v16287_v62 = vpop.eup %16286  ;;  %v1916_v4 = vmul.f32 %v16285_v63, %v1868_v56  ;;  %v1962_v7 = vsub.f32 %v1930_v41, %v1946_v30  ;;  %v1959_v15 = vsub.f32 %v1927_v26, %v1943_v52 }
 0x492   :  { %v1915_v11 = vmul.f32 %v16287_v62, %v1867_v59 }
 0x493   :  { %v1948_v21 = vmul.f32 %v1916_v4, %v17079_v5  ;;  %v1954_v5 = vsub.f32 %v1922_v14, %v17095_v51  ;;  %v1958_v51 = vsub.f32 %v1926_v40, %v17123_v54 }
 0x494   :  { %2073 = vperm.xlu1 %15939, %v1951_v10   ;;  %2017 = vperm.xlu0 %15938, %v1911_v33   ;;  %v1947_v22 = vmul.f32 %v1915_v11, %v17085_v19  ;;  %v1924_v19 = vld [vmem:[%s17042_s28 + $0x38] sm:$0xff] }
 0x495   :  { %v1964_v47 = vsub.f32 %v1932_v17, %v1948_v21  ;;  %v1956_v34 = vsub.f32 %v1924_v19, %v17111_v2 }
 0x496   :  { %v1963_v38 = vsub.f32 %v1931_v43, %v1947_v22 }
 0x498   :  { %1987 = vperm.xlu1 %15939, %v17089_v25   ;;  %2103 = vperm.xlu0 %15938, %v1957_v31   ;;  %v1961_v25 = vsub.f32 %v1929_v27, %v1945_v8 }
 0x49c   :  { %2002 = vperm.xlu1 %15939, %v17103_v53   ;;  %2113 = vperm.xlu0 %15938, %v1959_v15   ;;  %v1928_v53 = vld [vmem:[%s17042_s28 + $0x58] sm:$0xff]  ;;  %s16533_s28 = smov 124  }
 0x49d   :  { %v1960_v36 = vsub.f32 %v1928_v53, %v1944_v24 }
 0x4a0   :  { %2088 = vperm.xlu1 %15939, %v1954_v5   ;;  %2027 = vperm.xlu0 %15938, %v1913_v55  }
 0x4a4   :  { %2098 = vperm.xlu1 %15939, %v1956_v34   ;;  %2037 = vperm.xlu0 %15938, %v1915_v11  }
 0x4a8   :  { %2012 = vperm.xlu1 %15939, %v17114_v44   ;;  %2123 = vperm.xlu0 %15938, %v1961_v25  }
 0x4ac   :  { %2022 = vperm.xlu1 %15939, %v1912_v46   ;;  %2133 = vperm.xlu0 %15938, %v1963_v38  }
 0x4b0   :  { %2108 = vperm.xlu1 %15939, %v1958_v51  }
 0x4b4   :  { %2118 = vperm.xlu1 %15939, %v1960_v36  }
 0x4b8   :  { %2032 = vperm.xlu1 %15939, %v1914_v29  }
 0x4bc   :  { %2042 = vperm.xlu1 %15939, %v1916_v4  }
 0x4c0   :  { %2128 = vperm.xlu1 %15939, %v1962_v7  }
 0x4c4   :  { %2138 = vperm.xlu1 %15939, %v1964_v47  }
 0x4f6   :  { %v1973_v49 = vpop.permute.xlu0 %1972 }
 0x4f7   :  { %v1968_v2 = vpop.permute.xlu1 %1967  ;;  %v2046_v50 = vmul.f32 %v16839_v0, %v1973_v49 }
 0x4f8   :  { %v2045_v46 = vmul.f32 %v16837_v61, %v1968_v2 }
 0x4fb   :  { %v1983_v28 = vpop.permute.xlu1 %1982 }
 0x4fc   :  { %v2048_v59 = vmul.f32 %v16847_v12, %v1983_v28 }
 0x4ff   :  { %v2069_v33 = vpop.permute.xlu1 %2068 }
 0x500   :  { %v2142_v58 = vadd.f32 %v2069_v33, %v2046_v50 }
 0x502   :  { %v2158_v24 = vmax.f32 %v2142_v58, 0.0 }
 0x503   :  { %v1978_v44 = vpop.permute.xlu1 %1977  ;;  %v1998_v39 = vpop.permute.xlu0 %1997 }
 0x504   :  { %v2047_v30 = vmul.f32 %v16845_v9, %v1978_v44  ;;  %v2051_v9 = vmul.f32 %v16861_v32, %v1998_v39 }
 0x507   :  { %v2064_v54 = vpop.permute.xlu1 %2063  ;;  %v2084_v42 = vpop.permute.xlu0 %2083 }
 0x508   :  { %v2141_v52 = vadd.f32 %v2064_v54, %v2045_v46 }
 0x50a   :  { %v2157_v55 = vmax.f32 %v2141_v52, 0.0 }
 0x50b   :  { %v2079_v29 = vpop.permute.xlu1 %2078  ;;  %v2094_v41 = vpop.permute.xlu0 %2093 }
 0x50c   :  { %v2173_v56 = vpack.c.bf16 %v2158_v24, %v2157_v55  ;;  %v2144_v63 = vadd.f32 %v2079_v29, %v2048_v59  ;;  %v2147_v31 = vadd.f32 %v2094_v41, %v2051_v9 }
 0x50e   :  { %13844 = vmatprep.mubr.msk.bf16.mxu0 %vm1370_vm2, %v2173_v56  ;;  %v2160_v62 = vmax.f32 %v2144_v63, 0.0  ;;  %v2163_v34 = vmax.f32 %v2147_v31, 0.0 }
 0x50f   :  { %v1993_v1 = vpop.permute.xlu1 %1992  ;;  %v2008_v61 = vpop.permute.xlu0 %2007 }
 0x510   :  { %v2050_v21 = vmul.f32 %v16855_v23, %v1993_v1  ;;  %v2053_v38 = vmul.f32 %v16869_v45, %v2008_v61 }
 0x513   :  { %v2074_v0 = vpop.permute.xlu1 %2073  ;;  %v2018_v17 = vpop.permute.xlu0 %2017 }
 0x514   :  { %v2143_v8 = vadd.f32 %v2074_v0, %v2047_v30  ;;  %v2055_v36 = vmul.f32 %v16877_v57, %v2018_v17 }
 0x516   :  { %v2159_v4 = vmax.f32 %v2143_v8, 0.0 }
 0x517   :  { %v1988_v7 = vpop.permute.xlu1 %1987  ;;  %v2104_v37 = vpop.permute.xlu0 %2103 }
 0x518   :  { %v2174_v10 = vpack.c.bf16 %v2160_v62, %v2159_v4  ;;  %v2049_v11 = vmul.f32 %v16853_v20, %v1988_v7  ;;  %v2149_v51 = vadd.f32 %v2104_v37, %v2053_v38 }
 0x51a   :  { %13845 = vmatmul.mubr.msk.bf16.vlgmr.msra.gmra.mrb[88].mxu0 %vm1370_vm2, %v2174_v10  ;;  %v2145_v22 = vadd.f32 %v2084_v42, %v2049_v11  ;;  %v2165_v28 = vmax.f32 %v2149_v51, 0.0 }
 0x51b   :  { %v2003_v18 = vpop.permute.xlu1 %2002  ;;  %v2114_v25 = vpop.permute.xlu0 %2113 }
 0x51c   :  { %v2161_v26 = vmax.f32 %v2145_v22, 0.0  ;;  %v2052_v15 = vmul.f32 %v16863_v35, %v2003_v18  ;;  %v2151_v49 = vadd.f32 %v2114_v25, %v2055_v36 }
 0x51e   :  { %v2167_v54 = vmax.f32 %v2151_v49, 0.0  ;;  %v16041_v49 = vld [vmem:[%s17210_s7 + $0x50] sm:$0xff]  }
 0x51f   :  { %v2089_v12 = vpop.permute.xlu1 %2088  ;;  %v2028_v40 = vpop.permute.xlu0 %2027 }
 0x520   :  { %v2146_v47 = vadd.f32 %v2089_v12, %v2050_v21  ;;  %v2057_v24 = vmul.f32 %v16885_v3, %v2028_v40 }
 0x522   :  { %v2162_v14 = vmax.f32 %v2146_v47, 0.0 }
 0x523   :  { %v2099_v5 = vpop.permute.xlu1 %2098  ;;  %v2038_v39 = vpop.permute.xlu0 %2037 }
 0x524   :  { %v2175_v19 = vpack.c.bf16 %v2162_v14, %v2161_v26  ;;  %v2148_v20 = vadd.f32 %v2099_v5, %v2052_v15  ;;  %v2059_v41 = vmul.f32 %v16893_v13, %v2038_v39  ;;  %v16044_v39 = vld [vmem:[%s17210_s7 + $0x68] sm:$0xff]  }
 0x526   :  { %v2164_v27 = vmax.f32 %v2148_v20, 0.0  ;;  %13848 = vmatprep.mubr.msk.bf16.mxu0 %vm1370_vm2, %v2175_v19  ;;  %v16039_v19 = vld [vmem:[%s17210_s7 + $0x40] sm:$0xff]  }
 0x527   :  { %v2013_v23 = vpop.permute.xlu1 %2012 }
 0x528   :  { %v2176_v43 = vpack.c.bf16 %v2164_v27, %v2163_v34  ;;  %v2054_v35 = vmul.f32 %v16871_v48, %v2013_v23  ;;  %v2124_v48 = vpop.permute.xlu0 %2123 }
 0x529   :  { %v2153_v55 = vadd.f32 %v2124_v48, %v2057_v24  ;;  %v16050_v48 = vld [vmem:[%s17210_s7 + $0x18] sm:$0xff]   ;;  %v16051_v24 = vld [vmem:[%s17210_s7 + $0x20] sm:$0xff]  }
 0x52a   :  { %13849 = vmatmul.mubr.msk.bf16.gmra.mrb[92].mxu0 %vm1370_vm2, %v2176_v43 }
 0x52b   :  { %v2023_v32 = vpop.permute.xlu1 %2022  ;;  %v2169_v59 = vmax.f32 %v2153_v55, 0.0 }
 0x52c   :  { %v2056_v33 = vmul.f32 %v16879_v60, %v2023_v32  ;;  %v2134_v29 = vpop.permute.xlu0 %2133 }
 0x52d   :  { %v2155_v30 = vadd.f32 %v2134_v29, %v2059_v41 }
 0x52f   :  { %v2109_v53 = vpop.permute.xlu1 %2108  ;;  %v2171_v4 = vmax.f32 %v2155_v30, 0.0  ;;  %v16055_v30 = vld [vmem:[%s17210_s7 + $0x80] sm:$0xff]  }
 0x530   :  { %v2150_v2 = vadd.f32 %v2109_v53, %v2054_v35 }
 0x532   :  { %v2166_v44 = vmax.f32 %v2150_v2, 0.0 }
 0x533   :  { %v2119_v50 = vpop.permute.xlu1 %2118 }
 0x534   :  { %v2177_v46 = vpack.c.bf16 %v2166_v44, %v2165_v28  ;;  %v2152_v58 = vadd.f32 %v2119_v50, %v2056_v33  ;;  %v16040_v28 = vld [vmem:[%s17210_s7 + $0x48] sm:$0xff]   ;;  %v16042_v33 = vld [vmem:[%s17210_s7 + $0x58] sm:$0xff]   ;;  %v16043_v44 = vld [vmem:[%s17210_s7 + $0x60] sm:$0xff]  }
 0x535   :  { %v16045_v50 = vld [vmem:[%s17210_s7 + $0x70] sm:$0xff]  }
 0x536   :  { %v2168_v52 = vmax.f32 %v2152_v58, 0.0  ;;  %13852 = vmatprep.mubr.msk.bf16.mxu0 %vm1370_vm2, %v2177_v46  ;;  %v16046_v46 = vld [vmem:[%s17210_s7 + $0x78] sm:$0xff]   ;;  %v16047_v58 = vld [vmem:[%s17210_s7] sm:$0xff]  }
 0x537   :  { %v2033_v45 = vpop.permute.xlu1 %2032 }
 0x538   :  { %v2178_v42 = vpack.c.bf16 %v2168_v52, %v2167_v54  ;;  %v2058_v60 = vmul.f32 %v16887_v6, %v2033_v45  ;;  %v16048_v54 = vld [vmem:[%s17210_s7 + $0x8] sm:$0xff]   ;;  %v16049_v45 = vld [vmem:[%s17210_s7 + $0x10] sm:$0xff]  }
 0x53a   :  { %13853 = vmatmul.mubr.msk.bf16.gmra.mrb[96].mxu0 %vm1370_vm2, %v2178_v42 }
 0x53b   :  { %v2043_v57 = vpop.permute.xlu1 %2042 }
 0x53c   :  { %v2060_v63 = vmul.f32 %v16895_v16, %v2043_v57 }
 0x53f   :  { %v2129_v56 = vpop.permute.xlu1 %2128 }
 0x540   :  { %v2154_v1 = vadd.f32 %v2129_v56, %v2058_v60  ;;  %v16052_v60 = vld [vmem:[%s17210_s7 + $0x28] sm:$0xff]   ;;  %v16053_v56 = vld [vmem:[%s17210_s7 + $0x30] sm:$0xff]  }
 0x542   :  { %v2170_v0 = vmax.f32 %v2154_v1, 0.0  ;;  %v16054_v1 = vld [vmem:[%s17210_s7 + $0x38] sm:$0xff]  }
 0x543   :  { %v2139_v8 = vpop.permute.xlu1 %2138 }
 0x544   :  { %v2179_v61 = vpack.c.bf16 %v2170_v0, %v2169_v59  ;;  %v2156_v62 = vadd.f32 %v2139_v8, %v2060_v63  ;;  %v16056_v0 = vld [vmem:[%s17210_s7 + $0x88] sm:$0xff]  }
 0x546   :  { %v2172_v7 = vmax.f32 %v2156_v62, 0.0  ;;  %13856 = vmatprep.mubr.msk.bf16.mxu0 %vm1370_vm2, %v2179_v61  ;;  %v16057_v61 = vld [vmem:[%s17210_s7 + $0x90] sm:$0xff]  }
 0x548   :  { %v2180_v3 = vpack.c.bf16 %v2172_v7, %v2171_v4  ;;  %v16058_v4 = vld [vmem:[%s17210_s7 + $0x98] sm:$0xff]  }
 0x54a   :  { %13857 = vmatmul.mubr.msk.bf16.gmra.mrb[100].mxu0 %vm1370_vm2, %v2180_v3  ;;  %v16059_v3 = vld [vmem:[%s17210_s7 + $0xa0] sm:$0xff]  }
 0x54b   :  { %13876 = vmatprep.mubr.bf16.mxu0 %v16039_v19 }
 0x5ed   :  { %v13846_v6 = vpop.f32.mrb[88].mxu0 }
 0x5ee   :  { %v2247_v10 = vpop.f32.mrb[89].mxu0 }
 0x5ef   :  { %v13847_v11 = vpop.f32.mrb[90].mxu0 }
 0x5f0   :  { %v17183_v13 = vpack.c.bf16 %v13847_v11, %v13846_v6  ;;  %v2250_v17 = vpop.f32.mrb[91].mxu0 }
 0x5f1   :  { %v17185_v18 = vpack.c.bf16 %v2250_v17, %v2247_v10  ;;  %v16060_v10 = vld [vmem:[%s17210_s7 + $0xa8] sm:$0xff]  }
 0x5f2   :  { %2409 = vrot.lane.b32.xlu1 %v17183_v13, %s16526_s3 }
 0x5f3   :  { %2407 = vrot.lane.b32.xlu0 %v17185_v18, %s16526_s3 }
 0x5fd   :  { %v13850_v16 = vpop.f32.mrb[92].mxu0 }
 0x5fe   :  { %v2263_v21 = vpop.f32.mrb[93].mxu0 }
 0x5ff   :  { %v13851_v22 = vpop.f32.mrb[94].mxu0 }
 0x600   :  { %v17191_v12 = vpack.c.bf16 %v13851_v22, %v13850_v16  ;;  %v2266_v9 = vpop.f32.mrb[95].mxu0 }
 0x601   :  { %v17193_v47 = vpack.c.bf16 %v2266_v9, %v2263_v21  ;;  %v16063_v21 = vld [vmem:[%s17210_s7 + $0xc0] sm:$0xff]   ;;  %v16065_v9 = vld [vmem:[%s17210_s7 + $0xd0] sm:$0xff]  }
 0x602   :  { %2413 = vrot.lane.b32.xlu1 %v17191_v12, %s16526_s3 }
 0x603   :  { %2411 = vrot.lane.b32.xlu0 %v17193_v47, %s16526_s3 }
 0x60d   :  { %v13854_v37 = vpop.f32.mrb[96].mxu0 }
 0x60e   :  { %v2279_v31 = vpop.f32.mrb[97].mxu0 }
 0x60f   :  { %v13855_v26 = vpop.f32.mrb[98].mxu0 }
 0x610   :  { %v17199_v15 = vpack.c.bf16 %v13855_v26, %v13854_v37  ;;  %v2282_v14 = vpop.f32.mrb[99].mxu0  ;;  %v16067_v37 = vld [vmem:[%s17210_s7 + $0xe0] sm:$0xff]   ;;  %v16069_v26 = vld [vmem:[%s17210_s7 + $0xf0] sm:$0xff]  }
 0x611   :  { %v17201_v5 = vpack.c.bf16 %v2282_v14, %v2279_v31  ;;  %v16068_v31 = vld [vmem:[%s17210_s7 + $0xe8] sm:$0xff]  }
 0x612   :  { %2417 = vrot.lane.b32.xlu1 %v17199_v15, %s16526_s3 }
 0x613   :  { %2415 = vrot.lane.b32.xlu0 %v17201_v5, %s16526_s3 }
 0x61d   :  { %v13858_v20 = vpop.f32.mrb[100].mxu0 }
 0x61e   :  { %v2295_v34 = vpop.f32.mrb[101].mxu0 }
 0x61f   :  { %v13859_v27 = vpop.f32.mrb[102].mxu0 }
 0x620   :  { %v17213_v25 = vpack.c.bf16 %v13859_v27, %v13858_v20  ;;  %v2298_v23 = vpop.f32.mrb[103].mxu0 }
 0x621   :  { %v17215_v43 = vpack.c.bf16 %v2298_v23, %v2295_v34 }
 0x622   :  { %2421 = vrot.lane.b32.xlu1 %v17213_v25, %s16526_s3 }
 0x623   :  { %2419 = vrot.lane.b32.xlu0 %v17215_v43, %s16526_s3 }
 0x626   :  { %2740 = vrot.lane.b32.xlu1 %v17183_v13, %s16521_s16 }
 0x627   :  { %2738 = vrot.lane.b32.xlu0 %v17185_v18, %s16521_s16 }
 0x62a   :  { %2744 = vrot.lane.b32.xlu1 %v17191_v12, %s16521_s16 }
 0x62b   :  { %2742 = vrot.lane.b32.xlu0 %v17193_v47, %s16521_s16 }
 0x62e   :  { %2748 = vrot.lane.b32.xlu1 %v17199_v15, %s16521_s16 }
 0x62f   :  { %2746 = vrot.lane.b32.xlu0 %v17201_v5, %s16521_s16 }
 0x632   :  { %2752 = vrot.lane.b32.xlu1 %v17213_v25, %s16521_s16 }
 0x633   :  { %2750 = vrot.lane.b32.xlu0 %v17215_v43, %s16521_s16 }
 0x636   :  { %2942 = vrot.lane.b32.xlu1 %v17183_v13, %s16528_s8 }
 0x637   :  { %2940 = vrot.lane.b32.xlu0 %v17185_v18, %s16528_s8 }
 0x63a   :  { %2946 = vrot.lane.b32.xlu1 %v17191_v12, %s16528_s8 }
 0x63b   :  { %2944 = vrot.lane.b32.xlu0 %v17193_v47, %s16528_s8 }
 0x63e   :  { %2950 = vrot.lane.b32.xlu1 %v17199_v15, %s16528_s8 }
 0x63f   :  { %2948 = vrot.lane.b32.xlu0 %v17201_v5, %s16528_s8 }
 0x642   :  { %2954 = vrot.lane.b32.xlu1 %v17213_v25, %s16528_s8 }
 0x643   :  { %2952 = vrot.lane.b32.xlu0 %v17215_v43, %s16528_s8 }
 0x664   :  { %v2410_v38 = vpop.permute.xlu1 %2409 }
 0x665   :  { %v2408_v32 = vpop.permute.xlu0 %2407 }
 0x666   :  { %13860 = vmatprep.subr.bf16.mxu0 %v2408_v32 }
 0x667   :  { %13861 = vmatpush3.bf16.msra.mxu0 %v2408_v32 }
 0x668   :  { %13862 = vmatprep.subr.bf16.mxu0 %v2410_v38 }
 0x66b   :  { %13863 = vmatpush3.bf16.msra.mxu0 %v2410_v38 }
 0x674   :  { %v2414_v51 = vpop.permute.xlu1 %2413 }
 0x675   :  { %v2412_v40 = vpop.permute.xlu0 %2411 }
 0x676   :  { %13864 = vmatprep.subr.bf16.mxu0 %v2412_v40 }
 0x677   :  { %13865 = vmatpush3.bf16.msra.mxu0 %v2412_v40 }
 0x678   :  { %13866 = vmatprep.subr.bf16.mxu0 %v2414_v51 }
 0x67b   :  { %13867 = vmatpush3.bf16.msra.mxu0 %v2414_v51 }
 0x684   :  { %v2418_v53 = vpop.permute.xlu1 %2417 }
 0x685   :  { %v2416_v35 = vpop.permute.xlu0 %2415 }
 0x686   :  { %13868 = vmatprep.subr.bf16.mxu0 %v2416_v35 }
 0x687   :  { %13869 = vmatpush3.bf16.msra.mxu0 %v2416_v35 }
 0x688   :  { %13870 = vmatprep.subr.bf16.mxu0 %v2418_v53 }
 0x68b   :  { %13871 = vmatpush3.bf16.msra.mxu0 %v2418_v53 }
 0x694   :  { %v2422_v2 = vpop.permute.xlu1 %2421 }
 0x695   :  { %v2420_v36 = vpop.permute.xlu0 %2419 }
 0x696   :  { %13872 = vmatprep.subr.bf16.mxu0 %v2420_v36 }
 0x697   :  { %13873 = vmatpush3.bf16.msra.mxu0 %v2420_v36 }
 0x698   :  { %13874 = vmatprep.subr.bf16.mxu0 %v2422_v2  ;;  %v2741_v42 = vpop.permute.xlu1 %2740 }
 0x699   :  { %v2739_v52 = vpop.permute.xlu0 %2738 }
 0x69b   :  { %13875 = vmatpush3.bf16.msra.mxu0 %v2422_v2 }
 0x69c   :  { %13892 = vmatprep.subr.bf16.mxu0 %v17185_v18  ;;  %v2745_v55 = vpop.permute.xlu1 %2744 }
 0x69d   :  { %v2743_v57 = vpop.permute.xlu0 %2742 }
 0x69e   :  { %13877 = vmatmul.mubr.bf16.vlgmr.msra.gmra.mrb[104].mxu0 %v16040_v28 }
 0x69f   :  { %13893 = vmatpush3.bf16.msra.mxu0 %v17185_v18  ;;  %13880 = vmatprep.mubr.bf16.mxu0 %v16041_v49  ;;  %v16062_v18 = vld [vmem:[%s17210_s7 + $0xb8] sm:$0xff]  }
 0x6a0   :  { %13894 = vmatprep.subr.bf16.mxu0 %v17183_v13  ;;  %v2749_v41 = vpop.permute.xlu1 %2748 }
 0x6a1   :  { %v2747_v29 = vpop.permute.xlu0 %2746 }
 0x6a3   :  { %13895 = vmatpush3.bf16.msra.mxu0 %v17183_v13  ;;  %v16061_v13 = vld [vmem:[%s17210_s7 + $0xb0] sm:$0xff]  }
 0x6a4   :  { %13896 = vmatprep.subr.bf16.mxu0 %v17193_v47  ;;  %v2753_v63 = vpop.permute.xlu1 %2752 }
 0x6a5   :  { %v2751_v59 = vpop.permute.xlu0 %2750 }
 0x6a6   :  { %13881 = vmatmul.mubr.bf16.gmra.mrb[108].mxu0 %v16042_v33 }
 0x6a7   :  { %13897 = vmatpush3.bf16.msra.mxu0 %v17193_v47  ;;  %13884 = vmatprep.mubr.bf16.mxu0 %v16043_v44  ;;  %v16066_v47 = vld [vmem:[%s17210_s7 + $0xd8] sm:$0xff]  }
 0x6a8   :  { %13898 = vmatprep.subr.bf16.mxu0 %v17191_v12  ;;  %v2943_v62 = vpop.permute.xlu1 %2942 }
 0x6a9   :  { %v2941_v8 = vpop.permute.xlu0 %2940 }
 0x6ab   :  { %13899 = vmatpush3.bf16.msra.mxu0 %v17191_v12  ;;  %v16064_v12 = vld [vmem:[%s17210_s7 + $0xc8] sm:$0xff]  }
 0x6ac   :  { %13900 = vmatprep.subr.bf16.mxu0 %v17201_v5  ;;  %v2947_v6 = vpop.permute.xlu1 %2946 }
 0x6ad   :  { %v2945_v7 = vpop.permute.xlu0 %2944 }
 0x6ae   :  { %13885 = vmatmul.mubr.bf16.gmra.mrb[112].mxu0 %v16044_v39 }
 0x6af   :  { %13901 = vmatpush3.bf16.msra.mxu0 %v17201_v5  ;;  %13888 = vmatprep.mubr.bf16.mxu0 %v16045_v50 }
 0x6b0   :  { %13902 = vmatprep.subr.bf16.mxu0 %v17199_v15  ;;  %v2951_v17 = vpop.permute.xlu1 %2950 }
 0x6b1   :  { %v2949_v11 = vpop.permute.xlu0 %2948 }
 0x6b3   :  { %13903 = vmatpush3.bf16.msra.mxu0 %v17199_v15  ;;  %v16070_v15 = vld [vmem:[%s17210_s7 + $0xf8] sm:$0xff]   ;;  %s16545_s7 = smov 35  }
 0x6b4   :  { %13904 = vmatprep.subr.bf16.mxu0 %v17215_v43  ;;  %v2955_v22 = vpop.permute.xlu1 %2954  ;;  %s12109_s11 = sld [smem:[%s19425_s0 + %s16545_s7]]  }
 0x6b5   :  { %v2953_v16 = vpop.permute.xlu0 %2952 }
 0x6b6   :  { %13889 = vmatmul.mubr.bf16.gmra.mrb[116].mxu0 %v16046_v46 }
 0x6b7   :  { %13905 = vmatpush3.bf16.msra.mxu0 %v17215_v43  ;;  %13908 = vmatprep.mubr.bf16.mxu0 %v16047_v58 }
 0x6b8   :  { %13906 = vmatprep.subr.bf16.mxu0 %v17213_v25 }
 0x6bb   :  { %13907 = vmatpush3.bf16.msra.mxu0 %v17213_v25 }
 0x6bc   :  { %13924 = vmatprep.subr.bf16.mxu0 %v2739_v52 }
 0x6be   :  { %13909 = vmatmul.mubr.bf16.vlgmr.msra.gmra.mrb[104].mxu0 %v16048_v54 }
 0x6bf   :  { %13925 = vmatpush3.bf16.msra.mxu0 %v2739_v52  ;;  %13912 = vmatprep.mubr.bf16.mxu0 %v16049_v45 }
 0x6c0   :  { %13926 = vmatprep.subr.bf16.mxu0 %v2741_v42 }
 0x6c3   :  { %13927 = vmatpush3.bf16.msra.mxu0 %v2741_v42 }
 0x6c4   :  { %13928 = vmatprep.subr.bf16.mxu0 %v2743_v57 }
 0x6c6   :  { %13913 = vmatmul.mubr.bf16.gmra.mrb[108].mxu0 %v16050_v48 }
 0x6c7   :  { %13929 = vmatpush3.bf16.msra.mxu0 %v2743_v57  ;;  %13916 = vmatprep.mubr.bf16.mxu0 %v16051_v24 }
 0x6c8   :  { %13930 = vmatprep.subr.bf16.mxu0 %v2745_v55 }
 0x6cb   :  { %13931 = vmatpush3.bf16.msra.mxu0 %v2745_v55 }
 0x6cc   :  { %13932 = vmatprep.subr.bf16.mxu0 %v2747_v29 }
 0x6ce   :  { %13917 = vmatmul.mubr.bf16.gmra.mrb[112].mxu0 %v16052_v60 }
 0x6cf   :  { %13933 = vmatpush3.bf16.msra.mxu0 %v2747_v29  ;;  %13920 = vmatprep.mubr.bf16.mxu0 %v16053_v56 }
 0x6d0   :  { %13934 = vmatprep.subr.bf16.mxu0 %v2749_v41 }
 0x6d3   :  { %13935 = vmatpush3.bf16.msra.mxu0 %v2749_v41 }
 0x6d4   :  { %13936 = vmatprep.subr.bf16.mxu0 %v2751_v59 }
 0x6d6   :  { %13921 = vmatmul.mubr.bf16.gmra.mrb[116].mxu0 %v16054_v1 }
 0x6d7   :  { %13937 = vmatpush3.bf16.msra.mxu0 %v2751_v59  ;;  %13940 = vmatprep.mubr.bf16.mxu0 %v16055_v30 }
 0x6d8   :  { %13938 = vmatprep.subr.bf16.mxu0 %v2753_v63 }
 0x6db   :  { %13939 = vmatpush3.bf16.msra.mxu0 %v2753_v63 }
 0x6dc   :  { %13956 = vmatprep.subr.bf16.mxu0 %v2941_v8 }
 0x6de   :  { %13941 = vmatmul.mubr.bf16.vlgmr.msra.gmra.mrb[104].mxu0 %v16056_v0 }
 0x6df   :  { %13957 = vmatpush3.bf16.msra.mxu0 %v2941_v8  ;;  %13944 = vmatprep.mubr.bf16.mxu0 %v16057_v61 }
 0x6e0   :  { %13958 = vmatprep.subr.bf16.mxu0 %v2943_v62 }
 0x6e3   :  { %13959 = vmatpush3.bf16.msra.mxu0 %v2943_v62 }
 0x6e4   :  { %13960 = vmatprep.subr.bf16.mxu0 %v2945_v7 }
 0x6e6   :  { %13945 = vmatmul.mubr.bf16.gmra.mrb[108].mxu0 %v16058_v4 }
 0x6e7   :  { %13961 = vmatpush3.bf16.msra.mxu0 %v2945_v7  ;;  %13948 = vmatprep.mubr.bf16.mxu0 %v16059_v3 }
 0x6e8   :  { %13962 = vmatprep.subr.bf16.mxu0 %v2947_v6 }
 0x6eb   :  { %13963 = vmatpush3.bf16.msra.mxu0 %v2947_v6 }
 0x6ec   :  { %13964 = vmatprep.subr.bf16.mxu0 %v2949_v11 }
 0x6ee   :  { %13949 = vmatmul.mubr.bf16.gmra.mrb[112].mxu0 %v16060_v10 }
 0x6ef   :  { %13965 = vmatpush3.bf16.msra.mxu0 %v2949_v11  ;;  %13952 = vmatprep.mubr.bf16.mxu0 %v16061_v13 }
 0x6f0   :  { %13966 = vmatprep.subr.bf16.mxu0 %v2951_v17 }
 0x6f3   :  { %13967 = vmatpush3.bf16.msra.mxu0 %v2951_v17 }
 0x6f4   :  { %13968 = vmatprep.subr.bf16.mxu0 %v2953_v16 }
 0x6f6   :  { %13953 = vmatmul.mubr.bf16.gmra.mrb[116].mxu0 %v16062_v18 }
 0x6f7   :  { %13969 = vmatpush3.bf16.msra.mxu0 %v2953_v16  ;;  %13972 = vmatprep.mubr.bf16.mxu0 %v16063_v21 }
 0x6f8   :  { %13970 = vmatprep.subr.bf16.mxu0 %v2955_v22 }
 0x6fb   :  { %13971 = vmatpush3.bf16.msra.mxu0 %v2955_v22 }
 0x6fe   :  { %13973 = vmatmul.mubr.bf16.vlgmr.msra.gmra.mrb[104].mxu0 %v16064_v12 }
 0x6ff   :  { %13976 = vmatprep.mubr.bf16.mxu0 %v16065_v9 }
 0x706   :  { %13977 = vmatmul.mubr.bf16.gmra.mrb[108].mxu0 %v16066_v47 }
 0x707   :  { %13980 = vmatprep.mubr.bf16.mxu0 %v16067_v37 }
 0x70e   :  { %13981 = vmatmul.mubr.bf16.gmra.mrb[112].mxu0 %v16068_v31 }
 0x70f   :  { %13984 = vmatprep.mubr.bf16.mxu0 %v16069_v26 }
 0x716   :  { %13985 = vmatmul.mubr.bf16.gmra.mrb[116].mxu0 %v16070_v15 }
 0x7d1   :  { %v17300_v14 = vpop.f32.mrb[104].mxu0 }
 0x7d2   :  { %v3128_v5 = vmul.f32 %v17300_v14, %v17300_v14  ;;  %v17304_v19 = vpop.f32.mrb[105].mxu0  ;;  %v3084_v20 = vsel %vm3077_vm3, %v17300_v14, 0.0 }
 0x7d3   :  { %3085 = vadd.xlane.f32.xlu1 %v3084_v20  ;;  %v17308_v34 = vpop.f32.mrb[106].mxu0  ;;  %v3078_v27 = vsel %vm3077_vm3, %v17304_v19, 0.0  ;;  %v3126_v43 = vmul.f32 %v17304_v19, %v17304_v19 }
 0x7d4   :  { %3079 = vadd.xlane.f32.xlu0 %v3078_v27  ;;  %v17312_v25 = vpop.f32.mrb[107].mxu0  ;;  %v3148_v23 = vsel %vm3077_vm3, %v3128_v5, 0.0  ;;  %v3087_v32 = vsel %vm3077_vm3, %v17308_v34, 0.0  ;;  %v3129_v35 = vmul.f32 %v17308_v34, %v17308_v34  ;;  %v3190_v5 = vld [vmem:[%s17415_s12] sm:$0xff] }
 0x7d5   :  { %v3081_v51 = vsel %vm3077_vm3, %v17312_v25, 0.0  ;;  %v3142_v36 = vsel %vm3077_vm3, %v3126_v43, 0.0  ;;  %v3127_v49 = vmul.f32 %v17312_v25, %v17312_v25  ;;  %14020 = vmatprep.mubr.f32.mxu0 %v3190_v5  ;;  %14076 = vmatprep.mubr.f32.mxu1 %v3190_v5  ;;  %v3191_v5 = vld [vmem:[%s17415_s12 + $0x8] sm:$0xff] }
 0x7d6   :  { %v3151_v33 = vsel %vm3077_vm3, %v3129_v35, 0.0 }
 0x7d7   :  { %3149 = vadd.xlane.f32.xlu1 %v3148_v23  ;;  %v3145_v54 = vsel %vm3077_vm3, %v3127_v49, 0.0 }
 0x7d8   :  { %3088 = vadd.xlane.f32.xlu0 %v3087_v32 }
 0x7d9   :  { %v17319_v38 = vpop.f32.mrb[108].mxu0 }
 0x7da   :  { %v17321_v40 = vpop.f32.mrb[109].mxu0  ;;  %v3096_v28 = vsel %vm3077_vm3, %v17319_v38, 0.0  ;;  %v3132_v39 = vmul.f32 %v17319_v38, %v17319_v38 }
 0x7db   :  { %3082 = vadd.xlane.f32.xlu1 %v3081_v51  ;;  %v17327_v53 = vpop.f32.mrb[110].mxu0  ;;  %v3090_v46 = vsel %vm3077_vm3, %v17321_v40, 0.0  ;;  %v3130_v45 = vmul.f32 %v17321_v40, %v17321_v40 }
 0x7dc   :  { %3143 = vadd.xlane.f32.xlu0 %v3142_v36  ;;  %v17330_v2 = vpop.f32.mrb[111].mxu0  ;;  %v3160_v42 = vsel %vm3077_vm3, %v3132_v39, 0.0  ;;  %v3099_v48 = vsel %vm3077_vm3, %v17327_v53, 0.0  ;;  %v3133_v60 = vmul.f32 %v17327_v53, %v17327_v53 }
 0x7dd   :  { %v3154_v55 = vsel %vm3077_vm3, %v3130_v45, 0.0  ;;  %v3093_v56 = vsel %vm3077_vm3, %v17330_v2, 0.0  ;;  %v3131_v59 = vmul.f32 %v17330_v2, %v17330_v2 }
 0x7de   :  { %v3163_v30 = vsel %vm3077_vm3, %v3133_v60, 0.0 }
 0x7df   :  { %3097 = vadd.xlane.f32.xlu1 %v3096_v28  ;;  %v3157_v8 = vsel %vm3077_vm3, %v3131_v59, 0.0 }
 0x7e0   :  { %3152 = vadd.xlane.f32.xlu0 %v3151_v33 }
 0x7e1   :  { %v17337_v44 = vpop.f32.mrb[112].mxu0 }
 0x7e2   :  { %v17341_v50 = vpop.f32.mrb[113].mxu0  ;;  %v3108_v1 = vsel %vm3077_vm3, %v17337_v44, 0.0  ;;  %v3136_v63 = vmul.f32 %v17337_v44, %v17337_v44 }
 0x7e3   :  { %3091 = vadd.xlane.f32.xlu1 %v3090_v46  ;;  %v17345_v58 = vpop.f32.mrb[114].mxu0  ;;  %v3102_v0 = vsel %vm3077_vm3, %v17341_v50, 0.0  ;;  %v3134_v61 = vmul.f32 %v17341_v50, %v17341_v50 }
 0x7e4   :  { %3146 = vadd.xlane.f32.xlu0 %v3145_v54  ;;  %v17348_v52 = vpop.f32.mrb[115].mxu0  ;;  %v3172_v62 = vsel %vm3077_vm3, %v3136_v63, 0.0  ;;  %v3111_v4 = vsel %vm3077_vm3, %v17345_v58, 0.0  ;;  %v3137_v3 = vmul.f32 %v17345_v58, %v17345_v58 }
 0x7e5   :  { %v3166_v7 = vsel %vm3077_vm3, %v3134_v61, 0.0  ;;  %v3105_v6 = vsel %vm3077_vm3, %v17348_v52, 0.0  ;;  %v3135_v11 = vmul.f32 %v17348_v52, %v17348_v52 }
 0x7e6   :  { %v3175_v13 = vsel %vm3077_vm3, %v3137_v3, 0.0 }
 0x7e7   :  { %3161 = vadd.xlane.f32.xlu1 %v3160_v42  ;;  %v3169_v16 = vsel %vm3077_vm3, %v3135_v11, 0.0 }
 0x7e8   :  { %3100 = vadd.xlane.f32.xlu0 %v3099_v48 }
 0x7e9   :  { %v17355_v57 = vpop.f32.mrb[116].mxu0 }
 0x7ea   :  { %v17357_v24 = vpop.f32.mrb[117].mxu0  ;;  %v3120_v10 = vsel %vm3077_vm3, %v17355_v57, 0.0  ;;  %v3140_v21 = vmul.f32 %v17355_v57, %v17355_v57 }
 0x7eb   :  { %3155 = vadd.xlane.f32.xlu1 %v3154_v55  ;;  %v17362_v29 = vpop.f32.mrb[118].mxu0  ;;  %v3138_v17 = vmul.f32 %v17357_v24, %v17357_v24  ;;  %v3114_v18 = vsel %vm3077_vm3, %v17357_v24, 0.0 }
 0x7ec   :  { %3094 = vadd.xlane.f32.xlu0 %v3093_v56  ;;  %v17366_v41 = vpop.f32.mrb[119].mxu0  ;;  %v3123_v12 = vsel %vm3077_vm3, %v17362_v29, 0.0  ;;  %v3184_v9 = vsel %vm3077_vm3, %v3140_v21, 0.0  ;;  %v3141_v31 = vmul.f32 %v17362_v29, %v17362_v29 }
 0x7ed   :  { %v3178_v22 = vsel %vm3077_vm3, %v3138_v17, 0.0  ;;  %v3139_v47 = vmul.f32 %v17366_v41, %v17366_v41  ;;  %v3117_v37 = vsel %vm3077_vm3, %v17366_v41, 0.0 }
 0x7ee   :  { %v3187_v15 = vsel %vm3077_vm3, %v3141_v31, 0.0 }
 0x7ef   :  { %3109 = vadd.xlane.f32.xlu1 %v3108_v1  ;;  %v3181_v26 = vsel %vm3077_vm3, %v3139_v47, 0.0 }
 0x7f0   :  { %3164 = vadd.xlane.f32.xlu0 %v3163_v30 }
 0x7f3   :  { %3103 = vadd.xlane.f32.xlu1 %v3102_v0 }
 0x7f4   :  { %3158 = vadd.xlane.f32.xlu0 %v3157_v8 }
 0x7f7   :  { %3173 = vadd.xlane.f32.xlu1 %v3172_v62 }
 0x7f8   :  { %3112 = vadd.xlane.f32.xlu0 %v3111_v4 }
 0x7fb   :  { %3167 = vadd.xlane.f32.xlu1 %v3166_v7 }
 0x7fc   :  { %3106 = vadd.xlane.f32.xlu0 %v3105_v6 }
 0x7ff   :  { %3121 = vadd.xlane.f32.xlu1 %v3120_v10 }
 0x800   :  { %3176 = vadd.xlane.f32.xlu0 %v3175_v13 }
 0x803   :  { %3115 = vadd.xlane.f32.xlu1 %v3114_v18 }
 0x804   :  { %3170 = vadd.xlane.f32.xlu0 %v3169_v16 }
 0x807   :  { %3179 = vadd.xlane.f32.xlu1 %v3178_v22 }
 0x808   :  { %3124 = vadd.xlane.f32.xlu0 %v3123_v12 }
 0x80b   :  { %3185 = vadd.xlane.f32.xlu1 %v3184_v9 }
 0x80c   :  { %3118 = vadd.xlane.f32.xlu0 %v3117_v37 }
 0x810   :  { %3182 = vadd.xlane.f32.xlu0 %v3181_v26 }
 0x814   :  { %3188 = vadd.xlane.f32.xlu0 %v3187_v15 }
 0x860   :  { %v3086_v20 = vpop.xlane.xlu1 %3085 }
 0x861   :  { %v3080_v27 = vpop.xlane.xlu0 %3079 }
 0x864   :  { %v3150_v23 = vpop.xlane.xlu1 %3149 }
 0x865   :  { %v3089_v43 = vpop.xlane.xlu0 %3088 }
 0x866   :  { %v15272_v36 = vpack.c.bf16 %v3089_v43, %v3086_v20  ;;  %v3194_v43 = vld [vmem:[%s17415_s12 + $0x20] sm:$0xff] }
 0x868   :  { %v3083_v32 = vpop.xlane.xlu1 %3082 }
 0x869   :  { %v15268_v51 = vpack.c.bf16 %v3083_v32, %v3080_v27  ;;  %v3144_v35 = vpop.xlane.xlu0 %3143  ;;  %v3192_v27 = vld [vmem:[%s17415_s12 + $0x10] sm:$0xff]  ;;  %v3195_v32 = vld [vmem:[%s17415_s12 + $0x28] sm:$0xff] }
 0x86b   :  { %15269 = vmatprep.subr.bf16.mxu0 %v15268_v51 }
 0x86c   :  { %15271 = vmatpush3.bf16.msra.mxu0 %v15268_v51  ;;  %v3098_v28 = vpop.xlane.xlu1 %3097  ;;  %v3196_v51 = vld [vmem:[%s17415_s12 + $0x30] sm:$0xff] }
 0x86d   :  { %v3153_v49 = vpop.xlane.xlu0 %3152  ;;  %15273 = vmatprep.subr.bf16.mxu0 %v15272_v36 }
 0x86e   :  { %v15304_v54 = vpack.c.bf16 %v3153_v49, %v3150_v23  ;;  %v3193_v23 = vld [vmem:[%s17415_s12 + $0x18] sm:$0xff]  ;;  %v3200_v49 = vld [vmem:[%s17415_s12 + $0x50] sm:$0xff] }
 0x870   :  { %15275 = vmatpush3.bf16.msra.mxu0 %v15272_v36  ;;  %v3092_v33 = vpop.xlane.xlu1 %3091  ;;  %v3198_v36 = vld [vmem:[%s17415_s12 + $0x40] sm:$0xff] }
 0x871   :  { %v3147_v39 = vpop.xlane.xlu0 %3146 }
 0x872   :  { %v15300_v46 = vpack.c.bf16 %v3147_v39, %v3144_v35  ;;  %v3197_v35 = vld [vmem:[%s17415_s12 + $0x38] sm:$0xff]  ;;  %v3202_v39 = vld [vmem:[%s17415_s12 + $0x60] sm:$0xff] }
 0x874   :  { %15301 = vmatprep.subr.bf16.mxu1 %v15300_v46  ;;  %v3162_v45 = vpop.xlane.xlu1 %3161 }
 0x875   :  { %15303 = vmatpush3.bf16.msra.mxu1 %v15300_v46  ;;  %v3101_v42 = vpop.xlane.xlu0 %3100  ;;  %v3203_v46 = vld [vmem:[%s17415_s12 + $0x68] sm:$0xff] }
 0x876   :  { %15305 = vmatprep.subr.bf16.mxu1 %v15304_v54  ;;  %v15280_v56 = vpack.c.bf16 %v3101_v42, %v3098_v28  ;;  %v3199_v28 = vld [vmem:[%s17415_s12 + $0x48] sm:$0xff] }
 0x878   :  { %v3156_v48 = vpop.xlane.xlu1 %3155 }
 0x879   :  { %15307 = vmatpush3.bf16.msra.mxu1 %v15304_v54  ;;  %v3095_v55 = vpop.xlane.xlu0 %3094  ;;  %v3204_v54 = vld [vmem:[%s17415_s12 + $0x70] sm:$0xff] }
 0x87a   :  { %v15276_v60 = vpack.c.bf16 %v3095_v55, %v3092_v33  ;;  %v3201_v33 = vld [vmem:[%s17415_s12 + $0x58] sm:$0xff] }
 0x87c   :  { %15277 = vmatprep.subr.bf16.mxu0 %v15276_v60  ;;  %v3110_v1 = vpop.xlane.xlu1 %3109 }
 0x87d   :  { %15279 = vmatpush3.bf16.msra.mxu0 %v15276_v60  ;;  %v3165_v59 = vpop.xlane.xlu0 %3164 }
 0x87e   :  { %15281 = vmatprep.subr.bf16.mxu0 %v15280_v56  ;;  %v15312_v8 = vpack.c.bf16 %v3165_v59, %v3162_v45  ;;  %v3205_v45 = vld [vmem:[%s17415_s12 + $0x78] sm:$0xff]  ;;  %s16546_s12 = smov 34  }
 0x87f   :  { %s12108_s18 = sld [smem:[%s19425_s0 + %s16546_s12]]  }
 0x880   :  { %v3104_v30 = vpop.xlane.xlu1 %3103 }
 0x881   :  { %15283 = vmatpush3.bf16.msra.mxu0 %v15280_v56  ;;  %v3159_v63 = vpop.xlane.xlu0 %3158 }
 0x882   :  { %v15308_v0 = vpack.c.bf16 %v3159_v63, %v3156_v48 }
 0x884   :  { %15309 = vmatprep.subr.bf16.mxu1 %v15308_v0  ;;  %v3174_v61 = vpop.xlane.xlu1 %3173 }
 0x885   :  { %15311 = vmatpush3.bf16.msra.mxu1 %v15308_v0  ;;  %v3113_v62 = vpop.xlane.xlu0 %3112 }
 0x886   :  { %15313 = vmatprep.subr.bf16.mxu1 %v15312_v8  ;;  %v15288_v6 = vpack.c.bf16 %v3113_v62, %v3110_v1 }
 0x888   :  { %v3168_v4 = vpop.xlane.xlu1 %3167 }
 0x889   :  { %15315 = vmatpush3.bf16.msra.mxu1 %v15312_v8  ;;  %v3107_v7 = vpop.xlane.xlu0 %3106 }
 0x88a   :  { %v15284_v3 = vpack.c.bf16 %v3107_v7, %v3104_v30 }
 0x88c   :  { %15285 = vmatprep.subr.bf16.mxu0 %v15284_v3  ;;  %v3122_v11 = vpop.xlane.xlu1 %3121 }
 0x88d   :  { %15287 = vmatpush3.bf16.msra.mxu0 %v15284_v3  ;;  %v3177_v10 = vpop.xlane.xlu0 %3176 }
 0x88e   :  { %15289 = vmatprep.subr.bf16.mxu0 %v15288_v6  ;;  %v15320_v18 = vpack.c.bf16 %v3177_v10, %v3174_v61 }
 0x890   :  { %v3116_v16 = vpop.xlane.xlu1 %3115 }
 0x891   :  { %15291 = vmatpush3.bf16.msra.mxu0 %v15288_v6  ;;  %v3171_v13 = vpop.xlane.xlu0 %3170 }
 0x892   :  { %v15316_v17 = vpack.c.bf16 %v3171_v13, %v3168_v4 }
 0x894   :  { %15317 = vmatprep.subr.bf16.mxu1 %v15316_v17  ;;  %v3180_v9 = vpop.xlane.xlu1 %3179 }
 0x895   :  { %15319 = vmatpush3.bf16.msra.mxu1 %v15316_v17  ;;  %v3125_v21 = vpop.xlane.xlu0 %3124 }
 0x896   :  { %15321 = vmatprep.subr.bf16.mxu1 %v15320_v18  ;;  %v15296_v47 = vpack.c.bf16 %v3125_v21, %v3122_v11 }
 0x898   :  { %v3186_v26 = vpop.xlane.xlu1 %3185 }
 0x899   :  { %15323 = vmatpush3.bf16.msra.mxu1 %v15320_v18  ;;  %v3119_v22 = vpop.xlane.xlu0 %3118 }
 0x89a   :  { %v15292_v12 = vpack.c.bf16 %v3119_v22, %v3116_v16 }
 0x89c   :  { %15293 = vmatprep.subr.bf16.mxu0 %v15292_v12 }
 0x89d   :  { %15295 = vmatpush3.bf16.msra.mxu0 %v15292_v12  ;;  %v3183_v37 = vpop.xlane.xlu0 %3182 }
 0x89e   :  { %v15324_v31 = vpack.c.bf16 %v3183_v37, %v3180_v9  ;;  %15297 = vmatprep.subr.bf16.mxu0 %v15296_v47 }
 0x8a0   :  { %15325 = vmatprep.subr.bf16.mxu1 %v15324_v31 }
 0x8a1   :  { %15299 = vmatpush3.bf16.msra.mxu0 %v15296_v47  ;;  %15327 = vmatpush3.bf16.msra.mxu1 %v15324_v31  ;;  %v3189_v15 = vpop.xlane.xlu0 %3188 }
 0x8a2   :  { %v15328_v20 = vpack.c.bf16 %v3189_v15, %v3186_v26 }
 0x8a4   :  { %15329 = vmatprep.subr.bf16.mxu1 %v15328_v20  ;;  %14021 = vmatmul.mubr.f32.vlgmr.msra.gmra.mrb[120].mxu0 %v3191_v5 }
 0x8a5   :  { %15331 = vmatpush3.bf16.msra.mxu1 %v15328_v20  ;;  %14023 = vmatprep.mubr.f32.mxu0 %v3192_v27 }
 0x8a8   :  { %14077 = vmatmul.mubr.f32.vlgmr.msra.gmra.mrb[32].mxu1 %v3191_v5  ;;  %14024 = vmatmul.mubr.f32.gmra.mrb[122].mxu0 %v3193_v23 }
 0x8a9   :  { %14079 = vmatprep.mubr.f32.mxu1 %v3192_v27  ;;  %14026 = vmatprep.mubr.f32.mxu0 %v3194_v43 }
 0x8ac   :  { %14080 = vmatmul.mubr.f32.gmra.mrb[34].mxu1 %v3193_v23  ;;  %14027 = vmatmul.mubr.f32.gmra.mrb[124].mxu0 %v3195_v32 }
 0x8ad   :  { %14082 = vmatprep.mubr.f32.mxu1 %v3194_v43  ;;  %14029 = vmatprep.mubr.f32.mxu0 %v3196_v51 }
 0x8b0   :  { %14083 = vmatmul.mubr.f32.gmra.mrb[36].mxu1 %v3195_v32  ;;  %14030 = vmatmul.mubr.f32.gmra.mrb[126].mxu0 %v3197_v35 }
 0x8b1   :  { %14085 = vmatprep.mubr.f32.mxu1 %v3196_v51  ;;  %14032 = vmatprep.mubr.f32.mxu0 %v3198_v36 }
 0x8b4   :  { %14086 = vmatmul.mubr.f32.gmra.mrb[38].mxu1 %v3197_v35  ;;  %14033 = vmatmul.mubr.f32.gmra.mrb[128].mxu0 %v3199_v28 }
 0x8b5   :  { %14088 = vmatprep.mubr.f32.mxu1 %v3198_v36  ;;  %14035 = vmatprep.mubr.f32.mxu0 %v3200_v49 }
 0x8b8   :  { %14089 = vmatmul.mubr.f32.gmra.mrb[40].mxu1 %v3199_v28  ;;  %14036 = vmatmul.mubr.f32.gmra.mrb[130].mxu0 %v3201_v33 }
 0x8b9   :  { %14091 = vmatprep.mubr.f32.mxu1 %v3200_v49  ;;  %14038 = vmatprep.mubr.f32.mxu0 %v3202_v39 }
 0x8bc   :  { %14092 = vmatmul.mubr.f32.gmra.mrb[42].mxu1 %v3201_v33  ;;  %14039 = vmatmul.mubr.f32.gmra.mrb[132].mxu0 %v3203_v46 }
 0x8bd   :  { %14094 = vmatprep.mubr.f32.mxu1 %v3202_v39  ;;  %14041 = vmatprep.mubr.f32.mxu0 %v3204_v54 }
 0x8c0   :  { %14095 = vmatmul.mubr.f32.gmra.mrb[44].mxu1 %v3203_v46  ;;  %14042 = vmatmul.mubr.f32.gmra.mrb[134].mxu0 %v3205_v45 }
 0x8c1   :  { %14097 = vmatprep.mubr.f32.mxu1 %v3204_v54 }
 0x8c4   :  { %14098 = vmatmul.mubr.f32.gmra.mrb[46].mxu1 %v3205_v45 }
 0x977   :  { %v14022_v42 = vpop.f32.mrb[120].mxu0 }
 0x978   :  { %v17433_v48 = vmul.f32 0.0078125, %v14022_v42  ;;  %v3272_v55 = vpop.f32.mrb[121].mxu0 }
 0x979   :  { %v17435_v60 = vmul.f32 0.0078125, %v3272_v55 }
 0x97a   :  { %v3529_v56 = vmul.f32 %v17433_v48, %v17433_v48 }
 0x97b   :  { %v3528_v1 = vmul.f32 %v17435_v60, %v17435_v60  ;;  %v14078_v59 = vpop.f32.mrb[32].mxu1  ;;  %v14025_v30 = vpop.f32.mrb[122].mxu0 }
 0x97c   :  { %v3513_v63 = vmul.f32 0.0078125, %v14078_v59  ;;  %v3433_v0 = vpop.f32.mrb[33].mxu1  ;;  %v17441_v8 = vmul.f32 0.0078125, %v14025_v30  ;;  %v3282_v61 = vpop.f32.mrb[123].mxu0 }
 0x97d   :  { %v3512_v62 = vmul.f32 0.0078125, %v3433_v0  ;;  %v17443_v4 = vmul.f32 0.0078125, %v3282_v61 }
 0x97e   :  { %v3545_v7 = vsub.f32 %v3513_v63, %v3529_v56  ;;  %v3531_v3 = vmul.f32 %v17441_v8, %v17441_v8 }
 0x97f   :  { %v3544_v6 = vsub.f32 %v3512_v62, %v3528_v1  ;;  %v3530_v10 = vmul.f32 %v17443_v4, %v17443_v4  ;;  %v14081_v11 = vpop.f32.mrb[34].mxu1  ;;  %v14028_v13 = vpop.f32.mrb[124].mxu0 }
 0x980   :  { %v3577_v17 = vadd.f32 1e-05, %v3545_v7  ;;  %v3515_v18 = vmul.f32 0.0078125, %v14081_v11  ;;  %v3443_v16 = vpop.f32.mrb[35].mxu1  ;;  %v17449_v21 = vmul.f32 0.0078125, %v14028_v13  ;;  %v3292_v22 = vpop.f32.mrb[125].mxu0 }
 0x981   :  { %v3576_v12 = vadd.f32 1e-05, %v3544_v6  ;;  %v3514_v9 = vmul.f32 0.0078125, %v3443_v16  ;;  %v17451_v47 = vmul.f32 0.0078125, %v3292_v22  ;;  %v3561_v7 = vld [vmem:[%s17458_s19 + $0x8] sm:$0xff]  ;;  %v3560_v13 = vld [vmem:[%s17458_s19] sm:$0xff] }
 0x982   :  { %16288 = vrsqrt.f32 %v3577_v17  ;;  %v3547_v37 = vsub.f32 %v3515_v18, %v3531_v3  ;;  %v3533_v31 = vmul.f32 %v17449_v21, %v17449_v21 }
 0x983   :  { %16290 = vrsqrt.f32 %v3576_v12  ;;  %v3546_v26 = vsub.f32 %v3514_v9, %v3530_v10  ;;  %v3532_v15 = vmul.f32 %v17451_v47, %v17451_v47  ;;  %v14084_v5 = vpop.f32.mrb[36].mxu1  ;;  %v14031_v20 = vpop.f32.mrb[126].mxu0 }
 0x984   :  { %v3579_v27 = vadd.f32 1e-05, %v3547_v37  ;;  %v3517_v23 = vmul.f32 0.0078125, %v14084_v5  ;;  %v3453_v43 = vpop.f32.mrb[37].mxu1  ;;  %v17462_v32 = vmul.f32 0.0078125, %v14031_v20  ;;  %v3302_v51 = vpop.f32.mrb[127].mxu0 }
 0x985   :  { %v3578_v35 = vadd.f32 1e-05, %v3546_v26  ;;  %v3516_v36 = vmul.f32 0.0078125, %v3453_v43  ;;  %v17464_v28 = vmul.f32 0.0078125, %v3302_v51  ;;  %v3563_v43 = vld [vmem:[%s17458_s19 + $0x18] sm:$0xff]  ;;  %v3625_v51 = vld [vmem:[%s17471_s23 + $0x8] sm:$0xff] }
 0x986   :  { %16292 = vrsqrt.f32 %v3579_v27  ;;  %v3549_v49 = vsub.f32 %v3517_v23, %v3533_v31  ;;  %v3535_v33 = vmul.f32 %v17462_v32, %v17462_v32 }
 0x987   :  { %16294 = vrsqrt.f32 %v3578_v35  ;;  %v3548_v39 = vsub.f32 %v3516_v36, %v3532_v15  ;;  %v3534_v46 = vmul.f32 %v17464_v28, %v17464_v28  ;;  %v14087_v54 = vpop.f32.mrb[38].mxu1  ;;  %v14034_v45 = vpop.f32.mrb[128].mxu0 }
 0x988   :  { %v3581_v42 = vadd.f32 1e-05, %v3549_v49  ;;  %v3519_v55 = vmul.f32 0.0078125, %v14087_v54  ;;  %v3463_v56 = vpop.f32.mrb[39].mxu1  ;;  %v17475_v1 = vmul.f32 0.0078125, %v14034_v45  ;;  %v3312_v59 = vpop.f32.mrb[129].mxu0 }
 0x989   :  { %v3580_v30 = vadd.f32 1e-05, %v3548_v39  ;;  %v3518_v63 = vmul.f32 0.0078125, %v3463_v56  ;;  %v17477_v0 = vmul.f32 0.0078125, %v3312_v59 }
 0x98a   :  { %16296 = vrsqrt.f32 %v3581_v42  ;;  %v3551_v61 = vsub.f32 %v3519_v55, %v3535_v33  ;;  %v3537_v62 = vmul.f32 %v17475_v1, %v17475_v1  ;;  %v3624_v33 = vld [vmem:[%s17471_s23] sm:$0xff] }
 0x98b   :  { %16298 = vrsqrt.f32 %v3580_v30  ;;  %v3550_v3 = vsub.f32 %v3518_v63, %v3534_v46  ;;  %v3536_v6 = vmul.f32 %v17477_v0, %v17477_v0  ;;  %v14090_v10 = vpop.f32.mrb[40].mxu1  ;;  %v14037_v11 = vpop.f32.mrb[130].mxu0  ;;  %v3562_v46 = vld [vmem:[%s17458_s19 + $0x10] sm:$0xff] }
 0x98c   :  { %v16289_v17 = vpop.eup %16288  ;;  %v3583_v18 = vadd.f32 1e-05, %v3551_v61  ;;  %v3521_v16 = vmul.f32 0.0078125, %v14090_v10  ;;  %v3473_v22 = vpop.f32.mrb[41].mxu1  ;;  %v17485_v12 = vmul.f32 0.0078125, %v14037_v11 }
 0x98d   :  { %v3322_v9 = vpop.f32.mrb[131].mxu0  ;;  %v16291_v37 = vpop.eup %16290  ;;  %v3582_v31 = vadd.f32 1e-05, %v3550_v3  ;;  %v3520_v26 = vmul.f32 0.0078125, %v3473_v22  ;;  %v3609_v5 = vmul.f32 %v16289_v17, %v3561_v7  ;;  %v3626_v17 = vld [vmem:[%s17471_s23 + $0x10] sm:$0xff]  ;;  %v3564_v22 = vld [vmem:[%s17458_s19 + $0x20] sm:$0xff] }
 0x98e   :  { %v17487_v15 = vmul.f32 0.0078125, %v3322_v9  ;;  %16300 = vrsqrt.f32 %v3583_v18  ;;  %v3553_v20 = vsub.f32 %v3521_v16, %v3537_v62  ;;  %v3539_v27 = vmul.f32 %v17485_v12, %v17485_v12 }
 0x98f   :  { %v3608_v23 = vmul.f32 %v16291_v37, %v3560_v13  ;;  %16302 = vrsqrt.f32 %v3582_v31  ;;  %v3552_v35 = vsub.f32 %v3520_v26, %v3536_v6  ;;  %3679 = vperm.xlu0 %15938, %v3609_v5   ;;  %v14093_v49 = vpop.f32.mrb[42].mxu1  ;;  %v3641_v39 = vmul.f32 %v3609_v5, %v17433_v48  ;;  %v14040_v54 = vpop.f32.mrb[132].mxu0 }
 0x990   :  { %v3538_v36 = vmul.f32 %v17487_v15, %v17487_v15  ;;  %v16293_v45 = vpop.eup %16292  ;;  %v3585_v42 = vadd.f32 1e-05, %v3553_v20  ;;  %v3523_v55 = vmul.f32 0.0078125, %v14093_v49  ;;  %v3483_v56 = vpop.f32.mrb[43].mxu1  ;;  %v17499_v30 = vmul.f32 0.0078125, %v14040_v54 }
 0x991   :  { %3674 = vperm.xlu1 %15939, %v3608_v23   ;;  %v3640_v59 = vmul.f32 %v3608_v23, %v17435_v60  ;;  %v3332_v63 = vpop.f32.mrb[133].mxu0  ;;  %v16295_v61 = vpop.eup %16294  ;;  %v3584_v62 = vadd.f32 1e-05, %v3552_v35  ;;  %v3522_v7 = vmul.f32 0.0078125, %v3483_v56  ;;  %v3611_v3 = vmul.f32 %v16293_v45, %v3563_v43 }
 0x992   :  { %v3657_v6 = vsub.f32 %v3625_v51, %v3641_v39  ;;  %16304 = vrsqrt.f32 %v3585_v42  ;;  %v3555_v48 = vsub.f32 %v3523_v55, %v3539_v27  ;;  %v3610_v11 = vmul.f32 %v16295_v61, %v3562_v46 }
 0x993   :  { %v3656_v10 = vsub.f32 %v3624_v33, %v3640_v59  ;;  %16306 = vrsqrt.f32 %v3584_v62  ;;  %v3554_v13 = vsub.f32 %v3522_v7, %v3538_v36  ;;  %v3541_v18 = vmul.f32 %v17499_v30, %v17499_v30  ;;  %v14096_v16 = vpop.f32.mrb[44].mxu1  ;;  %v14043_v9 = vpop.f32.mrb[134].mxu0  ;;  %v3565_v33 = vld [vmem:[%s17458_s19 + $0x28] sm:$0xff]  ;;  %v3566_v59 = vld [vmem:[%s17458_s19 + $0x30] sm:$0xff] }
 0x994   :  { %v17504_v60 = vmul.f32 0.0078125, %v3332_v63  ;;  %v16297_v37 = vpop.eup %16296  ;;  %v3587_v31 = vadd.f32 1e-05, %v3555_v48  ;;  %v3642_v26 = vmul.f32 %v3610_v11, %v17443_v4  ;;  %v3525_v5 = vmul.f32 0.0078125, %v14096_v16  ;;  %v3493_v20 = vpop.f32.mrb[45].mxu1  ;;  %v3567_v4 = vld [vmem:[%s17458_s19 + $0x38] sm:$0xff] }
 0x995   :  { %3770 = vperm.xlu0 %15938, %v3656_v10   ;;  %3689 = vperm.xlu1 %15939, %v3611_v3   ;;  %v17508_v27 = vmul.f32 0.0078125, %v14043_v9  ;;  %v3342_v23 = vpop.f32.mrb[135].mxu0  ;;  %v16299_v43 = vpop.eup %16298  ;;  %v3586_v51 = vadd.f32 1e-05, %v3554_v13  ;;  %v3524_v36 = vmul.f32 0.0078125, %v3493_v20  ;;  %v3643_v7 = vmul.f32 %v3611_v3, %v17441_v8  ;;  %v3568_v8 = vld [vmem:[%s17458_s19 + $0x40] sm:$0xff] }
 0x996   :  { %v3540_v35 = vmul.f32 %v17504_v60, %v17504_v60  ;;  %v17512_v49 = vmul.f32 0.0078125, %v3342_v23  ;;  %16308 = vrsqrt.f32 %v3587_v31  ;;  %v3658_v39 = vsub.f32 %v3626_v17, %v3642_v26  ;;  %v3569_v26 = vld [vmem:[%s17458_s19 + $0x48] sm:$0xff] }
 0x997   :  { %v3557_v46 = vsub.f32 %v3525_v5, %v3541_v18  ;;  %v3612_v54 = vmul.f32 %v16299_v43, %v3564_v22  ;;  %16310 = vrsqrt.f32 %v3586_v51  ;;  %v3543_v42 = vmul.f32 %v17508_v27, %v17508_v27  ;;  %v14099_v56 = vpop.f32.mrb[46].mxu1 }
 0x998   :  { %v3556_v45 = vsub.f32 %v3524_v36, %v3540_v35  ;;  %v3542_v55 = vmul.f32 %v17512_v49, %v17512_v49  ;;  %v16301_v63 = vpop.eup %16300  ;;  %v3527_v62 = vmul.f32 0.0078125, %v14099_v56  ;;  %v3503_v48 = vpop.f32.mrb[47].mxu1  ;;  %v3613_v10 = vmul.f32 %v16297_v37, %v3565_v33  ;;  %v3630_v56 = vld [vmem:[%s17471_s23 + $0x30] sm:$0xff] }
 0x999   :  { %3775 = vperm.xlu1 %15939, %v3657_v6   ;;  %3780 = vperm.xlu0 %15938, %v3658_v39   ;;  %v3589_v61 = vadd.f32 1e-05, %v3557_v46  ;;  %v16303_v13 = vpop.eup %16302  ;;  %v3526_v18 = vmul.f32 0.0078125, %v3503_v48  ;;  %v3644_v16 = vmul.f32 %v3612_v54, %v17451_v47  ;;  %v3615_v22 = vmul.f32 %v16301_v63, %v3567_v4  ;;  %v3627_v6 = vld [vmem:[%s17471_s23 + $0x18] sm:$0xff]  ;;  %v3570_v46 = vld [vmem:[%s17458_s19 + $0x50] sm:$0xff] }
 0x99a   :  { %v3588_v17 = vadd.f32 1e-05, %v3556_v45  ;;  %v3559_v9 = vsub.f32 %v3527_v62, %v3543_v42  ;;  %v3614_v31 = vmul.f32 %v16303_v13, %v3566_v59  ;;  %v3645_v20 = vmul.f32 %v3613_v10, %v17449_v21  ;;  %v3571_v39 = vld [vmem:[%s17458_s19 + $0x58] sm:$0xff]  ;;  %v3628_v21 = vld [vmem:[%s17471_s23 + $0x20] sm:$0xff] }
 0x99b   :  { %16312 = vrsqrt.f32 %v3589_v61  ;;  %v3558_v5 = vsub.f32 %v3526_v18, %v3542_v55  ;;  %v3647_v23 = vmul.f32 %v3615_v22, %v17462_v32  ;;  %v3659_v36 = vsub.f32 %v3627_v6, %v3643_v7  ;;  %v3573_v55 = vld [vmem:[%s17458_s19 + $0x68] sm:$0xff]  ;;  %v3575_v13 = vld [vmem:[%s17458_s19 + $0x78] sm:$0xff] }
 0x99c   :  { %16314 = vrsqrt.f32 %v3588_v17  ;;  %v16305_v3 = vpop.eup %16304  ;;  %v3591_v37 = vadd.f32 1e-05, %v3559_v9  ;;  %v3646_v47 = vmul.f32 %v3614_v31, %v17464_v28  ;;  %v3660_v45 = vsub.f32 %v3628_v21, %v3644_v16  ;;  %v3888_v17 = vld [vmem:[%s12087_s27] sm:$0xf]  ;;  %v3629_v18 = vld [vmem:[%s17471_s23 + $0x28] sm:$0xff]  ;;  %v3574_v16 = vld [vmem:[%s17458_s19 + $0x70] sm:$0xff] }
 0x99d   :  { %3684 = vperm.xlu1 %15939, %v3610_v11   ;;  %3694 = vperm.xlu0 %15938, %v3612_v54   ;;  %v16307_v43 = vpop.eup %16306  ;;  %v3590_v51 = vadd.f32 1e-05, %v3558_v5  ;;  %v3617_v35 = vmul.f32 %v16305_v3, %v3569_v26  ;;  %v3661_v6 = vsub.f32 %v3629_v18, %v3645_v20  ;;  %v3631_v3 = vld [vmem:[%s17471_s23 + $0x38] sm:$0xff]  ;;  %v3638_v21 = vld [vmem:[%s17471_s23 + $0x70] sm:$0xff]  ;;  %s16542_s27 = smov 125  }
 0x99e   :  { %16316 = vrsqrt.f32 %v3591_v37  ;;  %v3616_v33 = vmul.f32 %v16307_v43, %v3568_v8  ;;  %v3662_v7 = vsub.f32 %v3630_v56, %v3646_v47  ;;  %15886 = vmatprep.subr.msk.bf16.mxu0 %vm3913_vm4, %v3888_v17  ;;  %v3639_v8 = vld [vmem:[%s17471_s23 + $0x78] sm:$0xff]  ;;  %v3663_v47 = vsub.f32 %v3631_v3, %v3647_v23  ;;  %v3632_v43 = vld [vmem:[%s17471_s23 + $0x40] sm:$0xff] }
 0x99f   :  { %16318 = vrsqrt.f32 %v3590_v51  ;;  %v3649_v11 = vmul.f32 %v3617_v35, %v17475_v1  ;;  %v3572_v1 = vld [vmem:[%s17458_s19 + $0x60] sm:$0xff]  ;;  %v3634_v51 = vld [vmem:[%s17471_s23 + $0x50] sm:$0xff]  ;;  %s16547_s19 = smov 1  }
 0x9a0   :  { %v16309_v54 = vpop.eup %16308  ;;  %v3648_v32 = vmul.f32 %v3616_v33, %v17477_v0  ;;  %v3636_v23 = vld [vmem:[%s17471_s23 + $0x60] sm:$0xff]  ;;  %s12075_s22 = sld [smem:[%s19425_s0 + %s16547_s19]]  }
 0x9a1   :  { %3785 = vperm.xlu1 %15939, %v3659_v36   ;;  %3704 = vperm.xlu0 %15938, %v3614_v31   ;;  %v16311_v28 = vpop.eup %16310  ;;  %v3619_v4 = vmul.f32 %v16309_v54, %v3571_v39  ;;  %v3633_v36 = vld [vmem:[%s17471_s23 + $0x48] sm:$0xff] }
 0x9a2   :  { %v3618_v42 = vmul.f32 %v16311_v28, %v3570_v46 }
 0x9a3   :  { %v3651_v59 = vmul.f32 %v3619_v4, %v17485_v12  ;;  %v3915_v12 = vsel %vm3913_vm4, %v3888_v17, 0 }
 0x9a4   :  { %v3650_v0 = vmul.f32 %v3618_v42, %v17487_v15  ;;  %14101 = vmatpush3.bf16.msra.mxu0 %v3915_v12 }
 0x9a5   :  { %v16313_v63 = vpop.eup %16312  ;;  %3699 = vperm.xlu1 %15939, %v3613_v10   ;;  %3790 = vperm.xlu0 %15938, %v3660_v45  }
 0x9a6   :  { %v16315_v61 = vpop.eup %16314  ;;  %v3621_v62 = vmul.f32 %v16313_v63, %v3573_v55  ;;  %v3666_v20 = vsub.f32 %v3634_v51, %v3650_v0 }
 0x9a7   :  { %v3620_v48 = vmul.f32 %v16315_v61, %v3572_v1 }
 0x9a8   :  { %v3653_v9 = vmul.f32 %v3621_v62, %v17499_v30  ;;  %v16317_v10 = vpop.eup %16316 }
 0x9a9   :  { %3709 = vperm.xlu1 %15939, %v3615_v22   ;;  %3800 = vperm.xlu0 %15938, %v3662_v7   ;;  %v3652_v15 = vmul.f32 %v3620_v48, %v17504_v60  ;;  %v16319_v31 = vpop.eup %16318  ;;  %v3623_v26 = vmul.f32 %v16317_v10, %v3575_v13  ;;  %v3664_v60 = vsub.f32 %v3632_v43, %v3648_v32 }
 0x9aa   :  { %v3622_v5 = vmul.f32 %v16319_v31, %v3574_v16 }
 0x9ab   :  { %v3655_v30 = vmul.f32 %v3623_v26, %v17508_v27  ;;  %v3665_v27 = vsub.f32 %v3633_v36, %v3649_v11  ;;  %v3668_v39 = vsub.f32 %v3636_v23, %v3652_v15 }
 0x9ac   :  { %v3654_v22 = vmul.f32 %v3622_v5, %v17512_v49 }
 0x9ad   :  { %3795 = vperm.xlu1 %15939, %v3661_v6   ;;  %3714 = vperm.xlu0 %15938, %v3616_v33   ;;  %v3671_v37 = vsub.f32 %v3639_v8, %v3655_v30  ;;  %v3635_v33 = vld [vmem:[%s17471_s23 + $0x58] sm:$0xff] }
 0x9ae   :  { %v3667_v49 = vsub.f32 %v3635_v33, %v3651_v59  ;;  %v3670_v46 = vsub.f32 %v3638_v21, %v3654_v22 }
 0x9b1   :  { %3805 = vperm.xlu1 %15939, %v3663_v47   ;;  %3724 = vperm.xlu0 %15938, %v3618_v42  }
 0x9b5   :  { %3719 = vperm.xlu1 %15939, %v3617_v35   ;;  %3810 = vperm.xlu0 %15938, %v3664_v60   ;;  %v3637_v35 = vld [vmem:[%s17471_s23 + $0x68] sm:$0xff]  ;;  %s16548_s23 = smov 22  }
 0x9b6   :  { %v3669_v54 = vsub.f32 %v3637_v35, %v3653_v9 }
 0x9b9   :  { %3729 = vperm.xlu1 %15939, %v3619_v4   ;;  %3820 = vperm.xlu0 %15938, %v3666_v20  }
 0x9bd   :  { %3815 = vperm.xlu1 %15939, %v3665_v27   ;;  %3734 = vperm.xlu0 %15938, %v3620_v48  }
 0x9c1   :  { %3825 = vperm.xlu1 %15939, %v3667_v49   ;;  %3744 = vperm.xlu0 %15938, %v3622_v5  }
 0x9c5   :  { %3739 = vperm.xlu1 %15939, %v3621_v62   ;;  %3830 = vperm.xlu0 %15938, %v3668_v39  }
 0x9c9   :  { %3749 = vperm.xlu1 %15939, %v3623_v26   ;;  %3840 = vperm.xlu0 %15938, %v3670_v46  }
 0x9cd   :  { %3835 = vperm.xlu1 %15939, %v3669_v54  }
 0x9d1   :  { %3845 = vperm.xlu1 %15939, %v3671_v37  }
 0xa0e   :  { %v3680_v32 = vpop.permute.xlu0 %3679 }
 0xa0f   :  { %v3753_v42 = vmul.f32 %v3680_v32, %v17312_v25 }
 0xa10   :  { %v3675_v11 = vpop.permute.xlu1 %3674 }
 0xa11   :  { %v3752_v45 = vmul.f32 %v3675_v11, %v17304_v19 }
 0xa14   :  { %v3771_v28 = vpop.permute.xlu0 %3770  ;;  %v3690_v4 = vpop.permute.xlu1 %3689 }
 0xa15   :  { %v3848_v55 = vadd.f32 %v3771_v28, %v3752_v45  ;;  %v3755_v13 = vmul.f32 %v17308_v34, %v3690_v4 }
 0xa17   :  { %v3864_v63 = vmax.f32 %v3848_v55, 0.0 }
 0xa18   :  { %v3776_v56 = vpop.permute.xlu1 %3775  ;;  %v3781_v1 = vpop.permute.xlu0 %3780 }
 0xa19   :  { %v3849_v59 = vadd.f32 %v3776_v56, %v3753_v42 }
 0xa1b   :  { %v3865_v0 = vmax.f32 %v3849_v59, 0.0 }
 0xa1c   :  { %v3685_v61 = vpop.permute.xlu1 %3684  ;;  %v3695_v62 = vpop.permute.xlu0 %3694 }
 0xa1d   :  { %v3880_v7 = vpack.c.bf16 %v3865_v0, %v3864_v63  ;;  %v3754_v48 = vmul.f32 %v17300_v14, %v3685_v61  ;;  %v3756_v6 = vmul.f32 %v3695_v62, %v17321_v40 }
 0xa1f   :  { %v3850_v17 = vadd.f32 %v3781_v1, %v3754_v48  ;;  %14102 = vmatprep.mubr.msk.bf16.mxu0 %vm3077_vm3, %v3880_v7 }
 0xa20   :  { %v3786_v18 = vpop.permute.xlu1 %3785  ;;  %v3705_v19 = vpop.permute.xlu0 %3704 }
 0xa21   :  { %v3851_v16 = vadd.f32 %v3786_v18, %v3755_v13  ;;  %v3866_v25 = vmax.f32 %v3850_v17, 0.0  ;;  %v3758_v3 = vmul.f32 %v17319_v38, %v3705_v19 }
 0xa23   :  { %v3867_v9 = vmax.f32 %v3851_v16, 0.0 }
 0xa24   :  { %v3700_v12 = vpop.permute.xlu1 %3699  ;;  %v3791_v10 = vpop.permute.xlu0 %3790 }
 0xa25   :  { %v3881_v15 = vpack.c.bf16 %v3867_v9, %v3866_v25  ;;  %v3757_v14 = vmul.f32 %v3700_v12, %v17330_v2  ;;  %v3852_v34 = vadd.f32 %v3791_v10, %v3756_v6 }
 0xa27   :  { %14103 = vmatmul.mubr.msk.bf16.vlgmr.msra.gmra.mrb[136].mxu0 %vm3077_vm3, %v3881_v15  ;;  %v3868_v22 = vmax.f32 %v3852_v34, 0.0 }
 0xa28   :  { %v3710_v31 = vpop.permute.xlu1 %3709  ;;  %v3801_v26 = vpop.permute.xlu0 %3800 }
 0xa29   :  { %v3759_v37 = vmul.f32 %v17327_v53, %v3710_v31  ;;  %v3854_v47 = vadd.f32 %v3801_v26, %v3758_v3 }
 0xa2b   :  { %v3870_v27 = vmax.f32 %v3854_v47, 0.0 }
 0xa2c   :  { %v3796_v5 = vpop.permute.xlu1 %3795  ;;  %v3715_v8 = vpop.permute.xlu0 %3714 }
 0xa2d   :  { %v3853_v30 = vadd.f32 %v3796_v5, %v3757_v14  ;;  %v3760_v39 = vmul.f32 %v3715_v8, %v17341_v50 }
 0xa2f   :  { %v3869_v43 = vmax.f32 %v3853_v30, 0.0 }
 0xa30   :  { %v3806_v60 = vpop.permute.xlu1 %3805  ;;  %v3725_v51 = vpop.permute.xlu0 %3724 }
 0xa31   :  { %v3882_v20 = vpack.c.bf16 %v3869_v43, %v3868_v22  ;;  %v3855_v36 = vadd.f32 %v3806_v60, %v3759_v37  ;;  %v3762_v54 = vmul.f32 %v17337_v44, %v3725_v51 }
 0xa33   :  { %v3871_v33 = vmax.f32 %v3855_v36, 0.0  ;;  %14106 = vmatprep.mubr.msk.bf16.mxu0 %vm3077_vm3, %v3882_v20 }
 0xa34   :  { %v3720_v40 = vpop.permute.xlu1 %3719  ;;  %v3811_v2 = vpop.permute.xlu0 %3810 }
 0xa35   :  { %v3883_v49 = vpack.c.bf16 %v3871_v33, %v3870_v27  ;;  %v3761_v53 = vmul.f32 %v3720_v40, %v17348_v52  ;;  %v3856_v21 = vadd.f32 %v3811_v2, %v3760_v39 }
 0xa37   :  { %14107 = vmatmul.mubr.msk.bf16.gmra.mrb[140].mxu0 %vm3077_vm3, %v3883_v49  ;;  %v3872_v11 = vmax.f32 %v3856_v21, 0.0  ;;  %v16071_v49 = vld [vmem:[%s17605_s2 + $0x40] sm:$0xff]  }
 0xa38   :  { %v3730_v38 = vpop.permute.xlu1 %3729  ;;  %v3821_v23 = vpop.permute.xlu0 %3820  ;;  %14134 = vmatprep.mubr.bf16.mxu1 %v16071_v49 }
 0xa39   :  { %v3763_v28 = vmul.f32 %v17345_v58, %v3730_v38  ;;  %v3858_v4 = vadd.f32 %v3821_v23, %v3762_v54 }
 0xa3b   :  { %v3874_v59 = vmax.f32 %v3858_v4, 0.0  ;;  %v16074_v4 = vld [vmem:[%s17605_s2 + $0x58] sm:$0xff]  }
 0xa3c   :  { %v3816_v46 = vpop.permute.xlu1 %3815  ;;  %v3735_v35 = vpop.permute.xlu0 %3734 }
 0xa3d   :  { %v3857_v32 = vadd.f32 %v3816_v46, %v3761_v53  ;;  %v3764_v61 = vmul.f32 %v3735_v35, %v17357_v24 }
 0xa3f   :  { %v3873_v45 = vmax.f32 %v3857_v32, 0.0 }
 0xa40   :  { %v3826_v42 = vpop.permute.xlu1 %3825  ;;  %v3745_v55 = vpop.permute.xlu0 %3744 }
 0xa41   :  { %v3884_v56 = vpack.c.bf16 %v3873_v45, %v3872_v11  ;;  %v3859_v1 = vadd.f32 %v3826_v42, %v3763_v28  ;;  %v3766_v13 = vmul.f32 %v17355_v57, %v3745_v55  ;;  %v16072_v11 = vld [vmem:[%s17605_s2 + $0x48] sm:$0xff]   ;;  %v16073_v28 = vld [vmem:[%s17605_s2 + $0x50] sm:$0xff]   ;;  %v16075_v45 = vld [vmem:[%s17605_s2 + $0x60] sm:$0xff]  }
 0xa42   :  { %v16076_v42 = vld [vmem:[%s17605_s2 + $0x68] sm:$0xff]   ;;  %v16077_v55 = vld [vmem:[%s17605_s2 + $0x70] sm:$0xff]  }
 0xa43   :  { %v3875_v63 = vmax.f32 %v3859_v1, 0.0  ;;  %14110 = vmatprep.mubr.msk.bf16.mxu0 %vm3077_vm3, %v3884_v56  ;;  %v16078_v56 = vld [vmem:[%s17605_s2 + $0x78] sm:$0xff]   ;;  %v16079_v1 = vld [vmem:[%s17605_s2] sm:$0xff]  }
 0xa44   :  { %v3740_v50 = vpop.permute.xlu1 %3739  ;;  %v3831_v0 = vpop.permute.xlu0 %3830 }
 0xa45   :  { %v3885_v52 = vpack.c.bf16 %v3875_v63, %v3874_v59  ;;  %v3765_v58 = vmul.f32 %v3740_v50, %v17366_v41  ;;  %v3860_v62 = vadd.f32 %v3831_v0, %v3764_v61  ;;  %v16080_v59 = vld [vmem:[%s17605_s2 + $0x8] sm:$0xff]   ;;  %v16081_v50 = vld [vmem:[%s17605_s2 + $0x10] sm:$0xff]   ;;  %v16082_v0 = vld [vmem:[%s17605_s2 + $0x18] sm:$0xff]  }
 0xa46   :  { %v16083_v61 = vld [vmem:[%s17605_s2 + $0x20] sm:$0xff]  }
 0xa47   :  { %14111 = vmatmul.mubr.msk.bf16.gmra.mrb[144].mxu0 %vm3077_vm3, %v3885_v52  ;;  %v3876_v18 = vmax.f32 %v3860_v62, 0.0  ;;  %v16084_v62 = vld [vmem:[%s17605_s2 + $0x28] sm:$0xff]  }
 0xa48   :  { %v3750_v44 = vpop.permute.xlu1 %3749  ;;  %v3841_v7 = vpop.permute.xlu0 %3840 }
 0xa49   :  { %v3767_v19 = vmul.f32 %v17362_v29, %v3750_v44  ;;  %v3862_v16 = vadd.f32 %v3841_v7, %v3766_v13 }
 0xa4b   :  { %v3878_v15 = vmax.f32 %v3862_v16, 0.0 }
 0xa4c   :  { %v3836_v48 = vpop.permute.xlu1 %3835 }
 0xa4d   :  { %v3861_v17 = vadd.f32 %v3836_v48, %v3765_v58  ;;  %v16085_v48 = vld [vmem:[%s17605_s2 + $0x30] sm:$0xff]  }
 0xa4f   :  { %v3877_v25 = vmax.f32 %v3861_v17, 0.0  ;;  %v16086_v17 = vld [vmem:[%s17605_s2 + $0x38] sm:$0xff]  }
 0xa50   :  { %v3846_v9 = vpop.permute.xlu1 %3845 }
 0xa51   :  { %v3886_v12 = vpack.c.bf16 %v3877_v25, %v3876_v18  ;;  %v3863_v10 = vadd.f32 %v3846_v9, %v3767_v19  ;;  %v16087_v19 = vld [vmem:[%s17605_s2 + $0x80] sm:$0xff]   ;;  %v16088_v25 = vld [vmem:[%s17605_s2 + $0x88] sm:$0xff]  }
 0xa53   :  { %v3879_v31 = vmax.f32 %v3863_v10, 0.0  ;;  %14114 = vmatprep.mubr.msk.bf16.mxu0 %vm3077_vm3, %v3886_v12  ;;  %v16089_v12 = vld [vmem:[%s17605_s2 + $0x90] sm:$0xff]  }
 0xa55   :  { %v3887_v24 = vpack.c.bf16 %v3879_v31, %v3878_v15  ;;  %v16090_v15 = vld [vmem:[%s17605_s2 + $0x98] sm:$0xff]  }
 0xa57   :  { %14115 = vmatmul.mubr.msk.bf16.gmra.mrb[148].mxu0 %vm3077_vm3, %v3887_v24  ;;  %v16091_v24 = vld [vmem:[%s17605_s2 + $0xa0] sm:$0xff]  }
 0xafa   :  { %v14104_v41 = vpop.f32.mrb[136].mxu0 }
 0xafb   :  { %v3951_v26 = vpop.f32.mrb[137].mxu0 }
 0xafc   :  { %v14105_v6 = vpop.f32.mrb[138].mxu0 }
 0xafd   :  { %v17584_v57 = vpack.c.bf16 %v14105_v6, %v14104_v41  ;;  %v3954_v14 = vpop.f32.mrb[139].mxu0 }
 0xafe   :  { %v17586_v34 = vpack.c.bf16 %v3954_v14, %v3951_v26  ;;  %v16092_v26 = vld [vmem:[%s17605_s2 + $0xa8] sm:$0xff]  }
 0xaff   :  { %4113 = vrot.lane.b32.xlu1 %v17584_v57, %s16533_s28 }
 0xb00   :  { %4111 = vrot.lane.b32.xlu0 %v17586_v34, %s16533_s28 }
 0xb0a   :  { %v14108_v29 = vpop.f32.mrb[140].mxu0 }
 0xb0b   :  { %v3967_v5 = vpop.f32.mrb[141].mxu0 }
 0xb0c   :  { %v14109_v8 = vpop.f32.mrb[142].mxu0 }
 0xb0d   :  { %v17590_v3 = vpack.c.bf16 %v14109_v8, %v14108_v29  ;;  %v3970_v30 = vpop.f32.mrb[143].mxu0 }
 0xb0e   :  { %v17592_v22 = vpack.c.bf16 %v3970_v30, %v3967_v5  ;;  %v16095_v5 = vld [vmem:[%s17605_s2 + $0xc0] sm:$0xff]   ;;  %v16097_v30 = vld [vmem:[%s17605_s2 + $0xd0] sm:$0xff]  }
 0xb0f   :  { %4117 = vrot.lane.b32.xlu1 %v17590_v3, %s16533_s28 }
 0xb10   :  { %4115 = vrot.lane.b32.xlu0 %v17592_v22, %s16533_s28 }
 0xb1a   :  { %v14112_v37 = vpop.f32.mrb[144].mxu0 }
 0xb1b   :  { %v3983_v47 = vpop.f32.mrb[145].mxu0 }
 0xb1c   :  { %v14113_v43 = vpop.f32.mrb[146].mxu0 }
 0xb1d   :  { %v17596_v60 = vpack.c.bf16 %v14113_v43, %v14112_v37  ;;  %v3986_v51 = vpop.f32.mrb[147].mxu0  ;;  %v16099_v37 = vld [vmem:[%s17605_s2 + $0xe0] sm:$0xff]   ;;  %v16101_v43 = vld [vmem:[%s17605_s2 + $0xf0] sm:$0xff]  }
 0xb1e   :  { %v17598_v20 = vpack.c.bf16 %v3986_v51, %v3983_v47  ;;  %v16100_v47 = vld [vmem:[%s17605_s2 + $0xe8] sm:$0xff]  }
 0xb1f   :  { %4121 = vrot.lane.b32.xlu1 %v17596_v60, %s16533_s28 }
 0xb20   :  { %4119 = vrot.lane.b32.xlu0 %v17598_v20, %s16533_s28 }
 0xb2a   :  { %v14116_v36 = vpop.f32.mrb[148].mxu0 }
 0xb2b   :  { %v3999_v27 = vpop.f32.mrb[149].mxu0 }
 0xb2c   :  { %v14117_v33 = vpop.f32.mrb[150].mxu0 }
 0xb2d   :  { %v17607_v40 = vpack.c.bf16 %v14117_v33, %v14116_v36  ;;  %v4002_v2 = vpop.f32.mrb[151].mxu0 }
 0xb2e   :  { %v17610_v38 = vpack.c.bf16 %v4002_v2, %v3999_v27 }
 0xb2f   :  { %4125 = vrot.lane.b32.xlu1 %v17607_v40, %s16533_s28 }
 0xb30   :  { %4123 = vrot.lane.b32.xlu0 %v17610_v38, %s16533_s28  ;;  %s16543_s28 = smov 19  }
 0xb31   :  { %s18052_s1 = sld [smem:[%s19425_s0 + %s16543_s28]]  }
 0xb33   :  { %4444 = vrot.lane.b32.xlu1 %v17584_v57, %s16526_s3 }
 0xb34   :  { %4442 = vrot.lane.b32.xlu0 %v17586_v34, %s16526_s3 }
 0xb37   :  { %4448 = vrot.lane.b32.xlu1 %v17590_v3, %s16526_s3 }
 0xb38   :  { %4446 = vrot.lane.b32.xlu0 %v17592_v22, %s16526_s3 }
 0xb3b   :  { %4452 = vrot.lane.b32.xlu1 %v17596_v60, %s16526_s3 }
 0xb3c   :  { %4450 = vrot.lane.b32.xlu0 %v17598_v20, %s16526_s3 }
 0xb3f   :  { %4456 = vrot.lane.b32.xlu1 %v17607_v40, %s16526_s3 }
 0xb40   :  { %4454 = vrot.lane.b32.xlu0 %v17610_v38, %s16526_s3 }
 0xb43   :  { %4646 = vrot.lane.b32.xlu1 %v17584_v57, %s16535_s4 }
 0xb44   :  { %4644 = vrot.lane.b32.xlu0 %v17586_v34, %s16535_s4 }
 0xb47   :  { %4650 = vrot.lane.b32.xlu1 %v17590_v3, %s16535_s4 }
 0xb48   :  { %4648 = vrot.lane.b32.xlu0 %v17592_v22, %s16535_s4 }
 0xb4b   :  { %4654 = vrot.lane.b32.xlu1 %v17596_v60, %s16535_s4 }
 0xb4c   :  { %4652 = vrot.lane.b32.xlu0 %v17598_v20, %s16535_s4 }
 0xb4f   :  { %4658 = vrot.lane.b32.xlu1 %v17607_v40, %s16535_s4 }
 0xb50   :  { %4656 = vrot.lane.b32.xlu0 %v17610_v38, %s16535_s4 }
 0xb71   :  { %v4114_v39 = vpop.permute.xlu1 %4113 }
 0xb72   :  { %v4112_v23 = vpop.permute.xlu0 %4111 }
 0xb73   :  { %14118 = vmatprep.subr.bf16.mxu1 %v4112_v23 }
 0xb74   :  { %14119 = vmatpush3.bf16.msra.mxu1 %v4112_v23 }
 0xb75   :  { %14120 = vmatprep.subr.bf16.mxu1 %v4114_v39 }
 0xb78   :  { %14121 = vmatpush3.bf16.msra.mxu1 %v4114_v39 }
 0xb81   :  { %v4118_v21 = vpop.permute.xlu1 %4117 }
 0xb82   :  { %v4116_v53 = vpop.permute.xlu0 %4115 }
 0xb83   :  { %14122 = vmatprep.subr.bf16.mxu1 %v4116_v53 }
 0xb84   :  { %14123 = vmatpush3.bf16.msra.mxu1 %v4116_v53 }
 0xb85   :  { %14124 = vmatprep.subr.bf16.mxu1 %v4118_v21 }
 0xb88   :  { %14125 = vmatpush3.bf16.msra.mxu1 %v4118_v21 }
 0xb91   :  { %v4122_v35 = vpop.permute.xlu1 %4121 }
 0xb92   :  { %v4120_v46 = vpop.permute.xlu0 %4119 }
 0xb93   :  { %14126 = vmatprep.subr.bf16.mxu1 %v4120_v46 }
 0xb94   :  { %14127 = vmatpush3.bf16.msra.mxu1 %v4120_v46 }
 0xb95   :  { %14128 = vmatprep.subr.bf16.mxu1 %v4122_v35 }
 0xb98   :  { %14129 = vmatpush3.bf16.msra.mxu1 %v4122_v35 }
 0xba1   :  { %v4126_v32 = vpop.permute.xlu1 %4125 }
 0xba2   :  { %v4124_v54 = vpop.permute.xlu0 %4123 }
 0xba3   :  { %14130 = vmatprep.subr.bf16.mxu1 %v4124_v54 }
 0xba4   :  { %14131 = vmatpush3.bf16.msra.mxu1 %v4124_v54 }
 0xba5   :  { %14132 = vmatprep.subr.bf16.mxu1 %v4126_v32  ;;  %v4445_v52 = vpop.permute.xlu1 %4444 }
 0xba6   :  { %v4443_v63 = vpop.permute.xlu0 %4442 }
 0xba8   :  { %14133 = vmatpush3.bf16.msra.mxu1 %v4126_v32 }
 0xba9   :  { %14150 = vmatprep.subr.bf16.mxu1 %v17586_v34  ;;  %v4449_v58 = vpop.permute.xlu1 %4448 }
 0xbaa   :  { %v4447_v44 = vpop.permute.xlu0 %4446 }
 0xbab   :  { %14135 = vmatmul.mubr.bf16.vlgmr.msra.gmra.mrb[48].mxu1 %v16072_v11 }
 0xbac   :  { %14151 = vmatpush3.bf16.msra.mxu1 %v17586_v34  ;;  %14138 = vmatprep.mubr.bf16.mxu1 %v16073_v28  ;;  %v16094_v34 = vld [vmem:[%s17605_s2 + $0xb8] sm:$0xff]  }
 0xbad   :  { %14152 = vmatprep.subr.bf16.mxu1 %v17584_v57  ;;  %v4453_v13 = vpop.permute.xlu1 %4452 }
 0xbae   :  { %v4451_v7 = vpop.permute.xlu0 %4450 }
 0xbb0   :  { %14153 = vmatpush3.bf16.msra.mxu1 %v17584_v57  ;;  %v16093_v57 = vld [vmem:[%s17605_s2 + $0xb0] sm:$0xff]  }
 0xbb1   :  { %14154 = vmatprep.subr.bf16.mxu1 %v17592_v22  ;;  %v4457_v16 = vpop.permute.xlu1 %4456 }
 0xbb2   :  { %v4455_v18 = vpop.permute.xlu0 %4454 }
 0xbb3   :  { %14139 = vmatmul.mubr.bf16.gmra.mrb[52].mxu1 %v16074_v4 }
 0xbb4   :  { %14155 = vmatpush3.bf16.msra.mxu1 %v17592_v22  ;;  %14142 = vmatprep.mubr.bf16.mxu1 %v16075_v45  ;;  %v16098_v22 = vld [vmem:[%s17605_s2 + $0xd8] sm:$0xff]  }
 0xbb5   :  { %14156 = vmatprep.subr.bf16.mxu1 %v17590_v3  ;;  %v4647_v10 = vpop.permute.xlu1 %4646 }
 0xbb6   :  { %v4645_v9 = vpop.permute.xlu0 %4644 }
 0xbb8   :  { %14157 = vmatpush3.bf16.msra.mxu1 %v17590_v3  ;;  %v16096_v3 = vld [vmem:[%s17605_s2 + $0xc8] sm:$0xff]  }
 0xbb9   :  { %14158 = vmatprep.subr.bf16.mxu1 %v17598_v20  ;;  %v4651_v41 = vpop.permute.xlu1 %4650 }
 0xbba   :  { %v4649_v31 = vpop.permute.xlu0 %4648 }
 0xbbb   :  { %14143 = vmatmul.mubr.bf16.gmra.mrb[56].mxu1 %v16076_v42 }
 0xbbc   :  { %14159 = vmatpush3.bf16.msra.mxu1 %v17598_v20  ;;  %14146 = vmatprep.mubr.bf16.mxu1 %v16077_v55 }
 0xbbd   :  { %14160 = vmatprep.subr.bf16.mxu1 %v17596_v60  ;;  %v4655_v14 = vpop.permute.xlu1 %4654 }
 0xbbe   :  { %v4653_v6 = vpop.permute.xlu0 %4652 }
 0xbc0   :  { %14161 = vmatpush3.bf16.msra.mxu1 %v17596_v60  ;;  %v16102_v60 = vld [vmem:[%s17605_s2 + $0xf8] sm:$0xff]   ;;  %s16544_s2 = smov 18  }
 0xbc1   :  { %14162 = vmatprep.subr.bf16.mxu1 %v17610_v38  ;;  %v4659_v8 = vpop.permute.xlu1 %4658  ;;  %s12092_s6 = sld [smem:[%s19425_s0 + %s16544_s2]]  }
 0xbc2   :  { %v4657_v29 = vpop.permute.xlu0 %4656 }
 0xbc3   :  { %14147 = vmatmul.mubr.bf16.gmra.mrb[60].mxu1 %v16078_v56 }
 0xbc4   :  { %14163 = vmatpush3.bf16.msra.mxu1 %v17610_v38  ;;  %14166 = vmatprep.mubr.bf16.mxu1 %v16079_v1 }
 0xbc5   :  { %14164 = vmatprep.subr.bf16.mxu1 %v17607_v40 }
 0xbc8   :  { %14165 = vmatpush3.bf16.msra.mxu1 %v17607_v40 }
 0xbc9   :  { %14182 = vmatprep.subr.bf16.mxu1 %v4443_v63 }
 0xbcb   :  { %14167 = vmatmul.mubr.bf16.vlgmr.msra.gmra.mrb[48].mxu1 %v16080_v59 }
 0xbcc   :  { %14183 = vmatpush3.bf16.msra.mxu1 %v4443_v63  ;;  %14170 = vmatprep.mubr.bf16.mxu1 %v16081_v50 }
 0xbcd   :  { %14184 = vmatprep.subr.bf16.mxu1 %v4445_v52 }
 0xbd0   :  { %14185 = vmatpush3.bf16.msra.mxu1 %v4445_v52 }
 0xbd1   :  { %14186 = vmatprep.subr.bf16.mxu1 %v4447_v44 }
 0xbd3   :  { %14171 = vmatmul.mubr.bf16.gmra.mrb[52].mxu1 %v16082_v0 }
 0xbd4   :  { %14187 = vmatpush3.bf16.msra.mxu1 %v4447_v44  ;;  %14174 = vmatprep.mubr.bf16.mxu1 %v16083_v61 }
 0xbd5   :  { %14188 = vmatprep.subr.bf16.mxu1 %v4449_v58 }
 0xbd8   :  { %14189 = vmatpush3.bf16.msra.mxu1 %v4449_v58 }
 0xbd9   :  { %14190 = vmatprep.subr.bf16.mxu1 %v4451_v7 }
 0xbdb   :  { %14175 = vmatmul.mubr.bf16.gmra.mrb[56].mxu1 %v16084_v62 }
 0xbdc   :  { %14191 = vmatpush3.bf16.msra.mxu1 %v4451_v7  ;;  %14178 = vmatprep.mubr.bf16.mxu1 %v16085_v48 }
 0xbdd   :  { %14192 = vmatprep.subr.bf16.mxu1 %v4453_v13 }
 0xbe0   :  { %14193 = vmatpush3.bf16.msra.mxu1 %v4453_v13 }
 0xbe1   :  { %14194 = vmatprep.subr.bf16.mxu1 %v4455_v18 }
 0xbe3   :  { %14179 = vmatmul.mubr.bf16.gmra.mrb[60].mxu1 %v16086_v17 }
 0xbe4   :  { %14195 = vmatpush3.bf16.msra.mxu1 %v4455_v18  ;;  %14198 = vmatprep.mubr.bf16.mxu1 %v16087_v19 }
 0xbe5   :  { %14196 = vmatprep.subr.bf16.mxu1 %v4457_v16 }
 0xbe8   :  { %14197 = vmatpush3.bf16.msra.mxu1 %v4457_v16 }
 0xbe9   :  { %14214 = vmatprep.subr.bf16.mxu1 %v4645_v9 }
 0xbeb   :  { %14199 = vmatmul.mubr.bf16.vlgmr.msra.gmra.mrb[48].mxu1 %v16088_v25 }
 0xbec   :  { %14215 = vmatpush3.bf16.msra.mxu1 %v4645_v9  ;;  %14202 = vmatprep.mubr.bf16.mxu1 %v16089_v12 }
 0xbed   :  { %14216 = vmatprep.subr.bf16.mxu1 %v4647_v10 }
 0xbf0   :  { %14217 = vmatpush3.bf16.msra.mxu1 %v4647_v10 }
 0xbf1   :  { %14218 = vmatprep.subr.bf16.mxu1 %v4649_v31 }
 0xbf3   :  { %14203 = vmatmul.mubr.bf16.gmra.mrb[52].mxu1 %v16090_v15 }
 0xbf4   :  { %14219 = vmatpush3.bf16.msra.mxu1 %v4649_v31  ;;  %14206 = vmatprep.mubr.bf16.mxu1 %v16091_v24 }
 0xbf5   :  { %14220 = vmatprep.subr.bf16.mxu1 %v4651_v41 }
 0xbf8   :  { %14221 = vmatpush3.bf16.msra.mxu1 %v4651_v41 }
 0xbf9   :  { %14222 = vmatprep.subr.bf16.mxu1 %v4653_v6 }
 0xbfb   :  { %14207 = vmatmul.mubr.bf16.gmra.mrb[56].mxu1 %v16092_v26 }
 0xbfc   :  { %14223 = vmatpush3.bf16.msra.mxu1 %v4653_v6  ;;  %14210 = vmatprep.mubr.bf16.mxu1 %v16093_v57 }
 0xbfd   :  { %14224 = vmatprep.subr.bf16.mxu1 %v4655_v14 }
 0xc00   :  { %14225 = vmatpush3.bf16.msra.mxu1 %v4655_v14 }
 0xc01   :  { %14226 = vmatprep.subr.bf16.mxu1 %v4657_v29 }
 0xc03   :  { %14211 = vmatmul.mubr.bf16.gmra.mrb[60].mxu1 %v16094_v34 }
 0xc04   :  { %14227 = vmatpush3.bf16.msra.mxu1 %v4657_v29  ;;  %14230 = vmatprep.mubr.bf16.mxu1 %v16095_v5 }
 0xc05   :  { %14228 = vmatprep.subr.bf16.mxu1 %v4659_v8 }
 0xc08   :  { %14229 = vmatpush3.bf16.msra.mxu1 %v4659_v8 }
 0xc0b   :  { %14231 = vmatmul.mubr.bf16.vlgmr.msra.gmra.mrb[48].mxu1 %v16096_v3 }
 0xc0c   :  { %14234 = vmatprep.mubr.bf16.mxu1 %v16097_v30 }
 0xc13   :  { %14235 = vmatmul.mubr.bf16.gmra.mrb[52].mxu1 %v16098_v22 }
 0xc14   :  { %14238 = vmatprep.mubr.bf16.mxu1 %v16099_v37  ;;  %v17798_v37 = vld [vmem:[%s17783_s9] sm:$0xff] }
 0xc15   :  { %14278 = vmatprep.mubr.f32.mxu0 %v17798_v37 }
 0xc1b   :  { %14239 = vmatmul.mubr.bf16.gmra.mrb[56].mxu1 %v16100_v47 }
 0xc1c   :  { %14242 = vmatprep.mubr.bf16.mxu1 %v16101_v43 }
 0xc23   :  { %14243 = vmatmul.mubr.bf16.gmra.mrb[60].mxu1 %v16102_v60 }
 0xcde   :  { %v17685_v51 = vpop.f32.mrb[48].mxu1 }
 0xcdf   :  { %v17687_v20 = vpop.f32.mrb[49].mxu1  ;;  %v4788_v2 = vsel %vm4781_vm5, %v17685_v51, 0.0  ;;  %v4832_v58 = vmul.f32 %v17685_v51, %v17685_v51 }
 0xce0   :  { %v17689_v36 = vpop.f32.mrb[50].mxu1  ;;  %v4782_v27 = vsel %vm4781_vm5, %v17687_v20, 0.0  ;;  %v4830_v0 = vmul.f32 %v17687_v20, %v17687_v20 }
 0xce1   :  { %4783 = vadd.xlane.f32.xlu0 %v4782_v27  ;;  %v17693_v33 = vpop.f32.mrb[51].mxu1  ;;  %v4791_v39 = vsel %vm4781_vm5, %v17689_v36, 0.0  ;;  %v4833_v13 = vmul.f32 %v17689_v36, %v17689_v36  ;;  %v4852_v18 = vsel %vm4781_vm5, %v4832_v58, 0.0 }
 0xce2   :  { %v4785_v40 = vsel %vm4781_vm5, %v17693_v33, 0.0  ;;  %v4831_v62 = vmul.f32 %v17693_v33, %v17693_v33  ;;  %v4846_v7 = vsel %vm4781_vm5, %v4830_v0, 0.0 }
 0xce3   :  { %4786 = vadd.xlane.f32.xlu1 %v4785_v40  ;;  %v4855_v12 = vsel %vm4781_vm5, %v4833_v13, 0.0 }
 0xce4   :  { %v4849_v19 = vsel %vm4781_vm5, %v4831_v62, 0.0 }
 0xce5   :  { %4789 = vadd.xlane.f32.xlu0 %v4788_v2 }
 0xce6   :  { %v17699_v49 = vpop.f32.mrb[52].mxu1 }
 0xce7   :  { %v17701_v38 = vpop.f32.mrb[53].mxu1  ;;  %v4800_v46 = vsel %vm4781_vm5, %v17699_v49, 0.0  ;;  %v4836_v16 = vmul.f32 %v17699_v49, %v17699_v49 }
 0xce8   :  { %v17703_v23 = vpop.f32.mrb[54].mxu1  ;;  %v4794_v53 = vsel %vm4781_vm5, %v17701_v38, 0.0  ;;  %v4834_v17 = vmul.f32 %v17701_v38, %v17701_v38 }
 0xce9   :  { %4792 = vadd.xlane.f32.xlu0 %v4791_v39  ;;  %4795 = vadd.xlane.f32.xlu1 %v4794_v53  ;;  %v17709_v21 = vpop.f32.mrb[55].mxu1  ;;  %v4803_v28 = vsel %vm4781_vm5, %v17703_v23, 0.0  ;;  %v4837_v10 = vmul.f32 %v17703_v23, %v17703_v23  ;;  %v4864_v31 = vsel %vm4781_vm5, %v4836_v16, 0.0 }
 0xcea   :  { %v4797_v35 = vsel %vm4781_vm5, %v17709_v21, 0.0  ;;  %v4835_v25 = vmul.f32 %v17709_v21, %v17709_v21  ;;  %v4858_v9 = vsel %vm4781_vm5, %v4834_v17, 0.0 }
 0xceb   :  { %v4867_v57 = vsel %vm4781_vm5, %v4837_v10, 0.0  ;;  %v17807_v10 = vld [vmem:[%s17783_s9 + $0x8] sm:$0xff] }
 0xcec   :  { %v4861_v24 = vsel %vm4781_vm5, %v4835_v25, 0.0 }
 0xced   :  { %4801 = vadd.xlane.f32.xlu1 %v4800_v46  ;;  %4798 = vadd.xlane.f32.xlu0 %v4797_v35 }
 0xcee   :  { %v17715_v54 = vpop.f32.mrb[56].mxu1 }
 0xcef   :  { %v17717_v32 = vpop.f32.mrb[57].mxu1  ;;  %v4812_v42 = vsel %vm4781_vm5, %v17715_v54, 0.0  ;;  %v4840_v41 = vmul.f32 %v17715_v54, %v17715_v54 }
 0xcf0   :  { %v17719_v11 = vpop.f32.mrb[58].mxu1  ;;  %v4806_v4 = vsel %vm4781_vm5, %v17717_v32, 0.0  ;;  %v4838_v15 = vmul.f32 %v17717_v32, %v17717_v32 }
 0xcf1   :  { %4804 = vadd.xlane.f32.xlu0 %v4803_v28  ;;  %4807 = vadd.xlane.f32.xlu1 %v4806_v4  ;;  %v17725_v45 = vpop.f32.mrb[59].mxu1  ;;  %v4815_v63 = vsel %vm4781_vm5, %v17719_v11, 0.0  ;;  %v4841_v14 = vmul.f32 %v17719_v11, %v17719_v11  ;;  %v4876_v29 = vsel %vm4781_vm5, %v4840_v41, 0.0 }
 0xcf2   :  { %v4809_v55 = vsel %vm4781_vm5, %v17725_v45, 0.0  ;;  %v4839_v26 = vmul.f32 %v17725_v45, %v17725_v45  ;;  %v4870_v6 = vsel %vm4781_vm5, %v4838_v15, 0.0 }
 0xcf3   :  { %v4879_v22 = vsel %vm4781_vm5, %v4841_v14, 0.0 }
 0xcf4   :  { %v4873_v5 = vsel %vm4781_vm5, %v4839_v26, 0.0  ;;  %v4897_v26 = vld [vmem:[%s17783_s9 + $0x18] sm:$0xff] }
 0xcf5   :  { %4813 = vadd.xlane.f32.xlu1 %v4812_v42  ;;  %4810 = vadd.xlane.f32.xlu0 %v4809_v55 }
 0xcf6   :  { %v17731_v56 = vpop.f32.mrb[60].mxu1 }
 0xcf7   :  { %v17733_v1 = vpop.f32.mrb[61].mxu1  ;;  %v4824_v44 = vsel %vm4781_vm5, %v17731_v56, 0.0  ;;  %v4844_v8 = vmul.f32 %v17731_v56, %v17731_v56 }
 0xcf8   :  { %v17735_v59 = vpop.f32.mrb[62].mxu1  ;;  %v4818_v50 = vsel %vm4781_vm5, %v17733_v1, 0.0  ;;  %v4842_v34 = vmul.f32 %v17733_v1, %v17733_v1 }
 0xcf9   :  { %4816 = vadd.xlane.f32.xlu0 %v4815_v63  ;;  %4819 = vadd.xlane.f32.xlu1 %v4818_v50  ;;  %v17741_v52 = vpop.f32.mrb[63].mxu1  ;;  %v4827_v48 = vsel %vm4781_vm5, %v17735_v59, 0.0  ;;  %v4845_v47 = vmul.f32 %v17735_v59, %v17735_v59  ;;  %v4888_v43 = vsel %vm4781_vm5, %v4844_v8, 0.0  ;;  %v4900_v8 = vld [vmem:[%s17783_s9 + $0x30] sm:$0xff] }
 0xcfa   :  { %v4821_v61 = vsel %vm4781_vm5, %v17741_v52, 0.0  ;;  %v4843_v3 = vmul.f32 %v17741_v52, %v17741_v52  ;;  %v4882_v30 = vsel %vm4781_vm5, %v4842_v34, 0.0 }
 0xcfb   :  { %v4891_v27 = vsel %vm4781_vm5, %v4845_v47, 0.0 }
 0xcfc   :  { %v4885_v60 = vsel %vm4781_vm5, %v4843_v3, 0.0 }
 0xcfd   :  { %4825 = vadd.xlane.f32.xlu1 %v4824_v44  ;;  %4822 = vadd.xlane.f32.xlu0 %v4821_v61 }
 0xd01   :  { %4847 = vadd.xlane.f32.xlu1 %v4846_v7  ;;  %4828 = vadd.xlane.f32.xlu0 %v4827_v48 }
 0xd05   :  { %4853 = vadd.xlane.f32.xlu1 %v4852_v18  ;;  %4850 = vadd.xlane.f32.xlu0 %v4849_v19 }
 0xd09   :  { %4859 = vadd.xlane.f32.xlu1 %v4858_v9  ;;  %4856 = vadd.xlane.f32.xlu0 %v4855_v12 }
 0xd0d   :  { %4865 = vadd.xlane.f32.xlu1 %v4864_v31  ;;  %4862 = vadd.xlane.f32.xlu0 %v4861_v24  ;;  %v17810_v31 = vld [vmem:[%s17783_s9 + $0x10] sm:$0xff] }
 0xd11   :  { %4871 = vadd.xlane.f32.xlu1 %v4870_v6  ;;  %4868 = vadd.xlane.f32.xlu0 %v4867_v57  ;;  %v4898_v57 = vld [vmem:[%s17783_s9 + $0x20] sm:$0xff] }
 0xd15   :  { %4877 = vadd.xlane.f32.xlu1 %v4876_v29  ;;  %4874 = vadd.xlane.f32.xlu0 %v4873_v5  ;;  %v4899_v29 = vld [vmem:[%s17783_s9 + $0x28] sm:$0xff] }
 0xd19   :  { %4883 = vadd.xlane.f32.xlu1 %v4882_v30  ;;  %4880 = vadd.xlane.f32.xlu0 %v4879_v22  ;;  %v4901_v22 = vld [vmem:[%s17783_s9 + $0x38] sm:$0xff] }
 0xd1d   :  { %4889 = vadd.xlane.f32.xlu1 %v4888_v43  ;;  %4886 = vadd.xlane.f32.xlu0 %v4885_v60  ;;  %v4902_v43 = vld [vmem:[%s17783_s9 + $0x40] sm:$0xff] }
 0xd21   :  { %4892 = vadd.xlane.f32.xlu0 %v4891_v27 }
 0xd6e   :  { %v4784_v40 = vpop.xlane.xlu0 %4783 }
 0xd70   :  { %v4787_v2 = vpop.xlane.xlu1 %4786 }
 0xd71   :  { %v15332_v39 = vpack.c.bf16 %v4787_v2, %v4784_v40  ;;  %v4903_v40 = vld [vmem:[%s17783_s9 + $0x48] sm:$0xff] }
 0xd72   :  { %v4790_v53 = vpop.xlane.xlu0 %4789 }
 0xd73   :  { %15333 = vmatprep.subr.bf16.mxu0 %v15332_v39 }
 0xd74   :  { %15335 = vmatpush3.bf16.msra.mxu0 %v15332_v39  ;;  %v4904_v39 = vld [vmem:[%s17783_s9 + $0x50] sm:$0xff] }
 0xd76   :  { %v4793_v46 = vpop.xlane.xlu0 %4792  ;;  %v4796_v35 = vpop.xlane.xlu1 %4795 }
 0xd77   :  { %v15336_v28 = vpack.c.bf16 %v4793_v46, %v4790_v53  ;;  %v4905_v46 = vld [vmem:[%s17783_s9 + $0x58] sm:$0xff] }
 0xd79   :  { %15337 = vmatprep.subr.bf16.mxu0 %v15336_v28 }
 0xd7a   :  { %15339 = vmatpush3.bf16.msra.mxu0 %v15336_v28  ;;  %v4802_v4 = vpop.xlane.xlu1 %4801  ;;  %v4799_v42 = vpop.xlane.xlu0 %4798  ;;  %v4906_v28 = vld [vmem:[%s17783_s9 + $0x60] sm:$0xff] }
 0xd7b   :  { %v15340_v55 = vpack.c.bf16 %v4799_v42, %v4796_v35 }
 0xd7d   :  { %15341 = vmatprep.subr.bf16.mxu0 %v15340_v55 }
 0xd7e   :  { %15343 = vmatpush3.bf16.msra.mxu0 %v15340_v55  ;;  %v4805_v63 = vpop.xlane.xlu0 %4804  ;;  %v4808_v50 = vpop.xlane.xlu1 %4807  ;;  %v4907_v55 = vld [vmem:[%s17783_s9 + $0x68] sm:$0xff] }
 0xd7f   :  { %v15344_v0 = vpack.c.bf16 %v4805_v63, %v4802_v4 }
 0xd81   :  { %15345 = vmatprep.subr.bf16.mxu0 %v15344_v0 }
 0xd82   :  { %15347 = vmatpush3.bf16.msra.mxu0 %v15344_v0  ;;  %v4814_v44 = vpop.xlane.xlu1 %4813  ;;  %v4811_v61 = vpop.xlane.xlu0 %4810 }
 0xd83   :  { %v15348_v58 = vpack.c.bf16 %v4811_v61, %v4808_v50  ;;  %v4908_v50 = vld [vmem:[%s17783_s9 + $0x70] sm:$0xff]  ;;  %v4909_v61 = vld [vmem:[%s17783_s9 + $0x78] sm:$0xff]  ;;  %s16553_s9 = smov 24  }
 0xd84   :  { %s18629_s12 = sld [smem:[%s19425_s0 + %s16553_s9]]  }
 0xd85   :  { %15349 = vmatprep.subr.bf16.mxu0 %v15348_v58 }
 0xd86   :  { %15351 = vmatpush3.bf16.msra.mxu0 %v15348_v58  ;;  %v4817_v62 = vpop.xlane.xlu0 %4816  ;;  %v4820_v7 = vpop.xlane.xlu1 %4819 }
 0xd87   :  { %v15352_v48 = vpack.c.bf16 %v4817_v62, %v4814_v44 }
 0xd89   :  { %15353 = vmatprep.subr.bf16.mxu0 %v15352_v48 }
 0xd8a   :  { %15355 = vmatpush3.bf16.msra.mxu0 %v15352_v48  ;;  %v4826_v13 = vpop.xlane.xlu1 %4825  ;;  %v4823_v17 = vpop.xlane.xlu0 %4822 }
 0xd8b   :  { %v15356_v18 = vpack.c.bf16 %v4823_v17, %v4820_v7 }
 0xd8d   :  { %15357 = vmatprep.subr.bf16.mxu0 %v15356_v18 }
 0xd8e   :  { %v4848_v19 = vpop.xlane.xlu1 %4847  ;;  %15359 = vmatpush3.bf16.msra.mxu0 %v15356_v18  ;;  %v4829_v16 = vpop.xlane.xlu0 %4828 }
 0xd8f   :  { %v15360_v25 = vpack.c.bf16 %v4829_v16, %v4826_v13 }
 0xd91   :  { %15361 = vmatprep.subr.bf16.mxu0 %v15360_v25 }
 0xd92   :  { %v4854_v9 = vpop.xlane.xlu1 %4853  ;;  %15363 = vmatpush3.bf16.msra.mxu0 %v15360_v25  ;;  %v4851_v12 = vpop.xlane.xlu0 %4850 }
 0xd93   :  { %v15364_v15 = vpack.c.bf16 %v4851_v12, %v4848_v19 }
 0xd95   :  { %14279 = vmatmul.mubr.f32.vlgmr.msra.gmra.mrb[152].mxu0 %v17807_v10  ;;  %15365 = vmatprep.subr.bf16.mxu0 %v15364_v15 }
 0xd96   :  { %v4860_v24 = vpop.xlane.xlu1 %4859  ;;  %15367 = vmatpush3.bf16.msra.mxu0 %v15364_v15  ;;  %v4857_v41 = vpop.xlane.xlu0 %4856  ;;  %14281 = vmatprep.mubr.f32.mxu0 %v17810_v31 }
 0xd97   :  { %v15368_v6 = vpack.c.bf16 %v4857_v41, %v4854_v9 }
 0xd99   :  { %14282 = vmatmul.mubr.f32.gmra.mrb[154].mxu0 %v4897_v26  ;;  %15369 = vmatprep.subr.bf16.mxu0 %v15368_v6 }
 0xd9a   :  { %v4866_v14 = vpop.xlane.xlu1 %4865  ;;  %15371 = vmatpush3.bf16.msra.mxu0 %v15368_v6  ;;  %v4863_v34 = vpop.xlane.xlu0 %4862  ;;  %14284 = vmatprep.mubr.f32.mxu0 %v4898_v57 }
 0xd9b   :  { %v15372_v5 = vpack.c.bf16 %v4863_v34, %v4860_v24 }
 0xd9d   :  { %14285 = vmatmul.mubr.f32.gmra.mrb[156].mxu0 %v4899_v29  ;;  %15373 = vmatprep.subr.bf16.mxu0 %v15372_v5 }
 0xd9e   :  { %v4872_v3 = vpop.xlane.xlu1 %4871  ;;  %15375 = vmatpush3.bf16.msra.mxu0 %v15372_v5  ;;  %v4869_v30 = vpop.xlane.xlu0 %4868  ;;  %14287 = vmatprep.mubr.f32.mxu0 %v4900_v8 }
 0xd9f   :  { %v15376_v47 = vpack.c.bf16 %v4869_v30, %v4866_v14 }
 0xda1   :  { %14288 = vmatmul.mubr.f32.gmra.mrb[158].mxu0 %v4901_v22  ;;  %15377 = vmatprep.subr.bf16.mxu0 %v15376_v47 }
 0xda2   :  { %v4878_v60 = vpop.xlane.xlu1 %4877  ;;  %15379 = vmatpush3.bf16.msra.mxu0 %v15376_v47  ;;  %v4875_v27 = vpop.xlane.xlu0 %4874  ;;  %14290 = vmatprep.mubr.f32.mxu0 %v4902_v43 }
 0xda3   :  { %v15380_v2 = vpack.c.bf16 %v4875_v27, %v4872_v3 }
 0xda5   :  { %14291 = vmatmul.mubr.f32.gmra.mrb[160].mxu0 %v4903_v40  ;;  %15381 = vmatprep.subr.bf16.mxu0 %v15380_v2 }
 0xda6   :  { %15383 = vmatpush3.bf16.msra.mxu0 %v15380_v2  ;;  %v4881_v53 = vpop.xlane.xlu0 %4880  ;;  %14293 = vmatprep.mubr.f32.mxu0 %v4904_v39  ;;  %v4884_v4 = vpop.xlane.xlu1 %4883 }
 0xda7   :  { %v15384_v35 = vpack.c.bf16 %v4881_v53, %v4878_v60 }
 0xda9   :  { %14294 = vmatmul.mubr.f32.gmra.mrb[162].mxu0 %v4905_v46  ;;  %15385 = vmatprep.subr.bf16.mxu0 %v15384_v35 }
 0xdaa   :  { %15387 = vmatpush3.bf16.msra.mxu0 %v15384_v35  ;;  %v4887_v42 = vpop.xlane.xlu0 %4886  ;;  %14296 = vmatprep.mubr.f32.mxu0 %v4906_v28  ;;  %v4890_v0 = vpop.xlane.xlu1 %4889 }
 0xdab   :  { %v15388_v63 = vpack.c.bf16 %v4887_v42, %v4884_v4 }
 0xdad   :  { %14297 = vmatmul.mubr.f32.gmra.mrb[164].mxu0 %v4907_v55  ;;  %15389 = vmatprep.subr.bf16.mxu0 %v15388_v63 }
 0xdae   :  { %15391 = vmatpush3.bf16.msra.mxu0 %v15388_v63  ;;  %v4893_v44 = vpop.xlane.xlu0 %4892  ;;  %14299 = vmatprep.mubr.f32.mxu0 %v4908_v50 }
 0xdaf   :  { %v15392_v58 = vpack.c.bf16 %v4893_v44, %v4890_v0 }
 0xdb1   :  { %14300 = vmatmul.mubr.f32.gmra.mrb[166].mxu0 %v4909_v61  ;;  %15393 = vmatprep.subr.bf16.mxu0 %v15392_v58 }
 0xdb2   :  { %15395 = vmatpush3.bf16.msra.mxu0 %v15392_v58  ;;  %14334 = vmatprep.mubr.f32.mxu0 %v17798_v37 }
 0xdb5   :  { %14335 = vmatmul.mubr.f32.vlgmr.msra.gmra.mrb[168].mxu0 %v17807_v10 }
 0xdb6   :  { %14337 = vmatprep.mubr.f32.mxu0 %v17810_v31 }
 0xdb9   :  { %14338 = vmatmul.mubr.f32.gmra.mrb[170].mxu0 %v4897_v26 }
 0xdba   :  { %14340 = vmatprep.mubr.f32.mxu0 %v4898_v57 }
 0xdbd   :  { %14341 = vmatmul.mubr.f32.gmra.mrb[172].mxu0 %v4899_v29 }
 0xdbe   :  { %14343 = vmatprep.mubr.f32.mxu0 %v4900_v8 }
 0xdc1   :  { %14344 = vmatmul.mubr.f32.gmra.mrb[174].mxu0 %v4901_v22 }
 0xdc2   :  { %14346 = vmatprep.mubr.f32.mxu0 %v4902_v43 }
 0xdc5   :  { %14347 = vmatmul.mubr.f32.gmra.mrb[176].mxu0 %v4903_v40 }
 0xdc6   :  { %14349 = vmatprep.mubr.f32.mxu0 %v4904_v39 }
 0xdc9   :  { %14350 = vmatmul.mubr.f32.gmra.mrb[178].mxu0 %v4905_v46 }
 0xdca   :  { %14352 = vmatprep.mubr.f32.mxu0 %v4906_v28 }
 0xdcd   :  { %14353 = vmatmul.mubr.f32.gmra.mrb[180].mxu0 %v4907_v55 }
 0xdce   :  { %14355 = vmatprep.mubr.f32.mxu0 %v4908_v50 }
 0xdd1   :  { %14356 = vmatmul.mubr.f32.gmra.mrb[182].mxu0 %v4909_v61 }
 0xe68   :  { %v14280_v62 = vpop.f32.mrb[152].mxu0 }
 0xe69   :  { %v4976_v7 = vpop.f32.mrb[153].mxu0  ;;  %v17838_v24 = vmul.f32 0.03125, %v14280_v62 }
 0xe6a   :  { %v17842_v26 = vmul.f32 0.03125, %v4976_v7 }
 0xe6b   :  { %v5233_v57 = vmul.f32 %v17838_v24, %v17838_v24 }
 0xe6c   :  { %v14283_v37 = vpop.f32.mrb[154].mxu0  ;;  %v5232_v5 = vmul.f32 %v17842_v26, %v17842_v26 }
 0xe6d   :  { %v4986_v48 = vpop.f32.mrb[155].mxu0  ;;  %v17846_v14 = vmul.f32 0.03125, %v14283_v37 }
 0xe6e   :  { %v17850_v8 = vmul.f32 0.03125, %v4986_v48 }
 0xe6f   :  { %v5235_v43 = vmul.f32 %v17846_v14, %v17846_v14 }
 0xe70   :  { %v14286_v13 = vpop.f32.mrb[156].mxu0  ;;  %v5234_v39 = vmul.f32 %v17850_v8, %v17850_v8 }
 0xe71   :  { %v4996_v17 = vpop.f32.mrb[157].mxu0  ;;  %v17854_v60 = vmul.f32 0.03125, %v14286_v13 }
 0xe72   :  { %v17858_v53 = vmul.f32 0.03125, %v4996_v17 }
 0xe73   :  { %v5237_v55 = vmul.f32 %v17854_v60, %v17854_v60 }
 0xe74   :  { %v14289_v18 = vpop.f32.mrb[158].mxu0  ;;  %v5236_v61 = vmul.f32 %v17858_v53, %v17858_v53 }
 0xe75   :  { %v5006_v19 = vpop.f32.mrb[159].mxu0  ;;  %v17867_v63 = vmul.f32 0.03125, %v14289_v18 }
 0xe76   :  { %v17871_v58 = vmul.f32 0.03125, %v5006_v19 }
 0xe77   :  { %v5239_v18 = vmul.f32 %v17867_v63, %v17867_v63 }
 0xe78   :  { %v14292_v16 = vpop.f32.mrb[160].mxu0 }
 0xe79   :  { %v5016_v25 = vpop.f32.mrb[161].mxu0  ;;  %v17878_v48 = vmul.f32 0.03125, %v14292_v16 }
 0xe7a   :  { %v17882_v19 = vmul.f32 0.03125, %v5016_v25 }
 0xe7c   :  { %v14295_v9 = vpop.f32.mrb[162].mxu0 }
 0xe7d   :  { %v17830_v12 = vpop.f32.mrb[163].mxu0 }
 0xe80   :  { %v17832_v10 = vpop.f32.mrb[164].mxu0 }
 0xe81   :  { %v17834_v15 = vpop.f32.mrb[165].mxu0 }
 0xe84   :  { %v17836_v31 = vpop.f32.mrb[166].mxu0 }
 0xe85   :  { %v17840_v41 = vpop.f32.mrb[167].mxu0 }
 0xe88   :  { %v14336_v6 = vpop.f32.mrb[168].mxu0 }
 0xe89   :  { %v5217_v34 = vmul.f32 0.03125, %v14336_v6  ;;  %v5137_v29 = vpop.f32.mrb[169].mxu0 }
 0xe8a   :  { %v5216_v3 = vmul.f32 0.03125, %v5137_v29  ;;  %v5238_v29 = vmul.f32 %v17871_v58, %v17871_v58 }
 0xe8b   :  { %v5249_v30 = vsub.f32 %v5217_v34, %v5233_v57 }
 0xe8c   :  { %v5248_v22 = vsub.f32 %v5216_v3, %v5232_v5  ;;  %v14339_v47 = vpop.f32.mrb[170].mxu0  ;;  %v17886_v5 = vmul.f32 0.03125, %v14295_v9  ;;  %v17895_v9 = vmul.f32 0.03125, %v17830_v12  ;;  %v5267_v12 = vld [vmem:[%s17863_s13 + $0x18] sm:$0xff] }
 0xe8d   :  { %v5281_v27 = vadd.f32 1e-05, %v5249_v30  ;;  %v5219_v40 = vmul.f32 0.03125, %v14339_v47  ;;  %v5147_v2 = vpop.f32.mrb[171].mxu0  ;;  %v5241_v47 = vmul.f32 %v17878_v48, %v17878_v48 }
 0xe8e   :  { %v5280_v46 = vadd.f32 1e-05, %v5248_v22  ;;  %v5218_v35 = vmul.f32 0.03125, %v5147_v2  ;;  %v5265_v22 = vld [vmem:[%s17863_s13 + $0x8] sm:$0xff]  ;;  %v5240_v2 = vmul.f32 %v17882_v19, %v17882_v19 }
 0xe8f   :  { %16320 = vrsqrt.f32 %v5281_v27  ;;  %v5251_v28 = vsub.f32 %v5219_v40, %v5235_v43  ;;  %v5264_v27 = vld [vmem:[%s17863_s13] sm:$0xff] }
 0xe90   :  { %16322 = vrsqrt.f32 %v5280_v46  ;;  %v5250_v4 = vsub.f32 %v5218_v35, %v5234_v39  ;;  %v14342_v42 = vpop.f32.mrb[172].mxu0 }
 0xe91   :  { %v5283_v50 = vadd.f32 1e-05, %v5251_v28  ;;  %v5221_v0 = vmul.f32 0.03125, %v14342_v42  ;;  %v5157_v44 = vpop.f32.mrb[173].mxu0 }
 0xe92   :  { %v5282_v62 = vadd.f32 1e-05, %v5250_v4  ;;  %v5220_v7 = vmul.f32 0.03125, %v5157_v44  ;;  %v5243_v4 = vmul.f32 %v17886_v5, %v17886_v5 }
 0xe93   :  { %16324 = vrsqrt.f32 %v5283_v50  ;;  %v5253_v37 = vsub.f32 %v5221_v0, %v5237_v55  ;;  %v17900_v0 = vmul.f32 0.03125, %v17832_v10  ;;  %v5242_v10 = vmul.f32 %v17895_v9, %v17895_v9 }
 0xe94   :  { %16326 = vrsqrt.f32 %v5282_v62  ;;  %v5252_v13 = vsub.f32 %v5220_v7, %v5236_v61  ;;  %v14345_v17 = vpop.f32.mrb[174].mxu0  ;;  %v5329_v62 = vld [vmem:[%s17876_s20 + $0x8] sm:$0xff]  ;;  %v17905_v7 = vmul.f32 0.03125, %v17834_v15 }
 0xe95   :  { %v5285_v6 = vadd.f32 1e-05, %v5253_v37  ;;  %v5223_v57 = vmul.f32 0.03125, %v14345_v17  ;;  %v5167_v34 = vpop.f32.mrb[175].mxu0 }
 0xe96   :  { %v5284_v3 = vadd.f32 1e-05, %v5252_v13  ;;  %v5222_v16 = vmul.f32 0.03125, %v5167_v34 }
 0xe97   :  { %16328 = vrsqrt.f32 %v5285_v6  ;;  %v5255_v30 = vsub.f32 %v5223_v57, %v5239_v18  ;;  %v5266_v18 = vld [vmem:[%s17863_s13 + $0x10] sm:$0xff] }
 0xe98   :  { %16330 = vrsqrt.f32 %v5284_v3  ;;  %v5254_v43 = vsub.f32 %v5222_v16, %v5238_v29  ;;  %v14348_v25 = vpop.f32.mrb[176].mxu0 }
 0xe99   :  { %v16321_v40 = vpop.eup %16320  ;;  %v5287_v39 = vadd.f32 1e-05, %v5255_v30  ;;  %v5225_v46 = vmul.f32 0.03125, %v14348_v25  ;;  %v5177_v35 = vpop.f32.mrb[177].mxu0 }
 0xe9a   :  { %v16323_v28 = vpop.eup %16322  ;;  %v5286_v42 = vadd.f32 1e-05, %v5254_v43  ;;  %v5224_v55 = vmul.f32 0.03125, %v5177_v35  ;;  %v5313_v50 = vmul.f32 %v16321_v40, %v5265_v22  ;;  %v5244_v40 = vmul.f32 %v17905_v7, %v17905_v7 }
 0xe9b   :  { %16332 = vrsqrt.f32 %v5287_v39  ;;  %v5257_v44 = vsub.f32 %v5225_v46, %v5241_v47  ;;  %v5312_v61 = vmul.f32 %v16323_v28, %v5264_v27  ;;  %v5245_v47 = vmul.f32 %v17900_v0, %v17900_v0  ;;  %v5269_v27 = vld [vmem:[%s17863_s13 + $0x28] sm:$0xff]  ;;  %v5330_v39 = vld [vmem:[%s17876_s20 + $0x10] sm:$0xff]  ;;  %v5268_v46 = vld [vmem:[%s17863_s13 + $0x20] sm:$0xff] }
 0xe9c   :  { %16334 = vrsqrt.f32 %v5286_v42  ;;  %v5256_v37 = vsub.f32 %v5224_v55, %v5240_v2  ;;  %5383 = vperm.xlu0 %15938, %v5313_v50   ;;  %v14351_v13 = vpop.f32.mrb[178].mxu0  ;;  %v5345_v17 = vmul.f32 %v5313_v50, %v17838_v24  ;;  %v17925_v42 = vmul.f32 0.03125, %v17836_v31 }
 0xe9d   :  { %v16325_v6 = vpop.eup %16324  ;;  %v5289_v57 = vadd.f32 1e-05, %v5257_v44  ;;  %v5227_v34 = vmul.f32 0.03125, %v14351_v13  ;;  %5378 = vperm.xlu1 %15939, %v5312_v61   ;;  %v5187_v29 = vpop.f32.mrb[179].mxu0  ;;  %v17912_v15 = vmul.f32 %v5312_v61, %v17842_v26 }
 0xe9e   :  { %v16327_v3 = vpop.eup %16326  ;;  %v5288_v16 = vadd.f32 1e-05, %v5256_v37  ;;  %v5226_v30 = vmul.f32 0.03125, %v5187_v29  ;;  %v5361_v22 = vsub.f32 %v5329_v62, %v5345_v17  ;;  %v5315_v24 = vmul.f32 %v16325_v6, %v5267_v12 }
 0xe9f   :  { %16336 = vrsqrt.f32 %v5289_v57  ;;  %v5259_v43 = vsub.f32 %v5227_v34, %v5243_v4  ;;  %v5314_v25 = vmul.f32 %v16327_v3, %v5266_v18  ;;  %v17929_v62 = vmul.f32 0.03125, %v17840_v41  ;;  %v5271_v18 = vld [vmem:[%s17863_s13 + $0x38] sm:$0xff]  ;;  %v5328_v57 = vld [vmem:[%s17876_s20] sm:$0xff]  ;;  %v5270_v34 = vld [vmem:[%s17863_s13 + $0x30] sm:$0xff] }
 0xea0   :  { %16338 = vrsqrt.f32 %v5288_v16  ;;  %v5258_v2 = vsub.f32 %v5226_v30, %v5242_v10  ;;  %v14354_v26 = vpop.f32.mrb[180].mxu0  ;;  %v17922_v35 = vmul.f32 %v5315_v24, %v17846_v14  ;;  %v5247_v29 = vmul.f32 %v17925_v42, %v17925_v42 }
 0xea1   :  { %v16329_v28 = vpop.eup %16328  ;;  %v5291_v55 = vadd.f32 1e-05, %v5259_v43  ;;  %v5229_v4 = vmul.f32 0.03125, %v14354_v26  ;;  %5479 = vperm.xlu1 %15939, %v5361_v22   ;;  %5388 = vperm.xlu0 %15938, %v5314_v25   ;;  %v5197_v50 = vpop.f32.mrb[181].mxu0  ;;  %v5346_v44 = vmul.f32 %v5314_v25, %v17850_v8  ;;  %v5273_v26 = vld [vmem:[%s17863_s13 + $0x48] sm:$0xff] }
 0xea2   :  { %v16331_v61 = vpop.eup %16330  ;;  %v5290_v14 = vadd.f32 1e-05, %v5258_v2  ;;  %v5228_v12 = vmul.f32 0.03125, %v5197_v50  ;;  %v17931_v37 = vmul.f32 %v16329_v28, %v5269_v27  ;;  %v5360_v2 = vsub.f32 %v5328_v57, %v17912_v15  ;;  %v5332_v28 = vld [vmem:[%s17876_s20 + $0x20] sm:$0xff] }
 0xea3   :  { %16340 = vrsqrt.f32 %v5291_v55  ;;  %v5261_v31 = vsub.f32 %v5229_v4, %v5245_v47  ;;  %v5362_v13 = vsub.f32 %v5330_v39, %v5346_v44  ;;  %v5316_v17 = vmul.f32 %v16331_v61, %v5268_v46  ;;  %v5331_v46 = vld [vmem:[%s17876_s20 + $0x18] sm:$0xff] }
 0xea4   :  { %16342 = vrsqrt.f32 %v5290_v14  ;;  %v5260_v6 = vsub.f32 %v5228_v12, %v5244_v40  ;;  %v14357_v10 = vpop.f32.mrb[182].mxu0  ;;  %v17938_v8 = vmul.f32 %v17931_v37, %v17854_v60  ;;  %v5246_v60 = vmul.f32 %v17929_v62, %v17929_v62 }
 0xea5   :  { %v16333_v41 = vpop.eup %16332  ;;  %v5293_v3 = vadd.f32 1e-05, %v5261_v31  ;;  %v5231_v16 = vmul.f32 0.03125, %v14357_v10  ;;  %5393 = vperm.xlu1 %15939, %v5315_v24   ;;  %5484 = vperm.xlu0 %15938, %v5362_v13   ;;  %v5207_v30 = vpop.f32.mrb[183].mxu0  ;;  %v5348_v22 = vmul.f32 %v5316_v17, %v17858_v53  ;;  %v5272_v53 = vld [vmem:[%s17863_s13 + $0x40] sm:$0xff]  ;;  %v5363_v12 = vsub.f32 %v5331_v46, %v17922_v35  ;;  %v5277_v35 = vld [vmem:[%s17863_s13 + $0x68] sm:$0xff] }
 0xea6   :  { %v16335_v47 = vpop.eup %16334  ;;  %v5292_v43 = vadd.f32 1e-05, %v5260_v6  ;;  %v5230_v25 = vmul.f32 0.03125, %v5207_v30  ;;  %v17945_v27 = vmul.f32 %v16333_v41, %v5271_v18  ;;  %v5275_v18 = vld [vmem:[%s17863_s13 + $0x58] sm:$0xff]  ;;  %v5333_v41 = vld [vmem:[%s17876_s20 + $0x28] sm:$0xff] }
 0xea7   :  { %16344 = vrsqrt.f32 %v5293_v3  ;;  %v5263_v40 = vsub.f32 %v5231_v16, %v5247_v29  ;;  %v5318_v24 = vmul.f32 %v16335_v47, %v5270_v34  ;;  %v5364_v31 = vsub.f32 %v5332_v28, %v5348_v22  ;;  %v5334_v29 = vld [vmem:[%s17876_s20 + $0x30] sm:$0xff]  ;;  %v5276_v3 = vld [vmem:[%s17863_s13 + $0x60] sm:$0xff]  ;;  %v5335_v46 = vld [vmem:[%s17876_s20 + $0x38] sm:$0xff] }
 0xea8   :  { %16346 = vrsqrt.f32 %v5292_v43  ;;  %v5262_v39 = vsub.f32 %v5230_v25, %v5246_v60  ;;  %v5351_v55 = vmul.f32 %v17945_v27, %v17867_v63  ;;  %v5274_v63 = vld [vmem:[%s17863_s13 + $0x50] sm:$0xff]  ;;  %v5365_v47 = vsub.f32 %v5333_v41, %v17938_v8  ;;  %v5279_v25 = vld [vmem:[%s17863_s13 + $0x78] sm:$0xff]  ;;  %v5336_v28 = vld [vmem:[%s17876_s20 + $0x40] sm:$0xff] }
 0xea9   :  { %v16337_v4 = vpop.eup %16336  ;;  %v5295_v50 = vadd.f32 1e-05, %v5263_v40  ;;  %5474 = vperm.xlu1 %15939, %v5360_v2   ;;  %5398 = vperm.xlu0 %15938, %v5316_v17   ;;  %v5350_v44 = vmul.f32 %v5318_v24, %v17871_v58  ;;  %v5278_v40 = vld [vmem:[%s17863_s13 + $0x70] sm:$0xff]  ;;  %s16554_s13 = smov 25  }
 0xeaa   :  { %v16339_v61 = vpop.eup %16338  ;;  %v5294_v15 = vadd.f32 1e-05, %v5262_v39  ;;  %v5321_v14 = vmul.f32 %v16337_v4, %v5273_v26  ;;  %v5343_v39 = vld [vmem:[%s17876_s20 + $0x78] sm:$0xff]  ;;  %v5367_v4 = vsub.f32 %v5335_v46, %v5351_v55  ;;  %v5341_v55 = vld [vmem:[%s17876_s20 + $0x68] sm:$0xff]  ;;  %s18644_s19 = sld [smem:[%s19425_s0 + %s16554_s13]]  }
 0xeab   :  { %16348 = vrsqrt.f32 %v5295_v50  ;;  %v5320_v13 = vmul.f32 %v16339_v61, %v5272_v53  ;;  %v5366_v60 = vsub.f32 %v5334_v29, %v5350_v44  ;;  %v5337_v50 = vld [vmem:[%s17876_s20 + $0x48] sm:$0xff]  ;;  %v5338_v44 = vld [vmem:[%s17876_s20 + $0x50] sm:$0xff] }
 0xeac   :  { %16350 = vrsqrt.f32 %v5294_v15  ;;  %v5353_v6 = vmul.f32 %v5321_v14, %v17878_v48  ;;  %v5340_v15 = vld [vmem:[%s17876_s20 + $0x60] sm:$0xff] }
 0xead   :  { %v16341_v17 = vpop.eup %16340  ;;  %5489 = vperm.xlu1 %15939, %v5363_v12   ;;  %5494 = vperm.xlu0 %15938, %v5364_v31   ;;  %v5352_v58 = vmul.f32 %v5320_v13, %v17882_v19  ;;  %v5342_v31 = vld [vmem:[%s17876_s20 + $0x70] sm:$0xff] }
 0xeae   :  { %v16343_v10 = vpop.eup %16342  ;;  %v5323_v57 = vmul.f32 %v16341_v17, %v5275_v18  ;;  %v5369_v61 = vsub.f32 %v5337_v50, %v5353_v6 }
 0xeaf   :  { %v5322_v34 = vmul.f32 %v16343_v10, %v5274_v63 }
 0xeb0   :  { %v5355_v16 = vmul.f32 %v5323_v57, %v17886_v5 }
 0xeb1   :  { %v16345_v30 = vpop.eup %16344  ;;  %5403 = vperm.xlu1 %15939, %v17931_v37   ;;  %5408 = vperm.xlu0 %15938, %v5318_v24   ;;  %v5354_v48 = vmul.f32 %v5322_v34, %v17895_v9 }
 0xeb2   :  { %v16347_v22 = vpop.eup %16346  ;;  %v5325_v19 = vmul.f32 %v16345_v30, %v5277_v35 }
 0xeb3   :  { %v5324_v43 = vmul.f32 %v16347_v22, %v5276_v3 }
 0xeb4   :  { %v5357_v2 = vmul.f32 %v5325_v19, %v17900_v0 }
 0xeb5   :  { %v16349_v5 = vpop.eup %16348  ;;  %5499 = vperm.xlu1 %15939, %v5365_v47   ;;  %5504 = vperm.xlu0 %15938, %v5366_v60   ;;  %v5356_v37 = vmul.f32 %v5324_v43, %v17905_v7  ;;  %v5368_v7 = vsub.f32 %v5336_v28, %v5352_v58  ;;  %v16103_v58 = vld [vmem:[%s17987_s24] sm:$0xff]  }
 0xeb6   :  { %v16351_v9 = vpop.eup %16350  ;;  %v5327_v24 = vmul.f32 %v16349_v5, %v5279_v25  ;;  %14374 = vmatprep.mubr.bf16.mxu0 %v16103_v58 }
 0xeb7   :  { %v5326_v26 = vmul.f32 %v16351_v9, %v5278_v40  ;;  %v5372_v12 = vsub.f32 %v5340_v15, %v5356_v37 }
 0xeb8   :  { %v5359_v8 = vmul.f32 %v5327_v24, %v17925_v42  ;;  %v5370_v42 = vsub.f32 %v5338_v44, %v5354_v48 }
 0xeb9   :  { %5413 = vperm.xlu1 %15939, %v17945_v27   ;;  %5418 = vperm.xlu0 %15938, %v5320_v13   ;;  %v5358_v0 = vmul.f32 %v5326_v26, %v17929_v62  ;;  %v5339_v27 = vld [vmem:[%s17876_s20 + $0x58] sm:$0xff]  ;;  %v5373_v13 = vsub.f32 %v5341_v55, %v5357_v2  ;;  %s16555_s20 = smov 27  }
 0xeba   :  { %v5375_v53 = vsub.f32 %v5343_v39, %v5359_v8  ;;  %v5371_v62 = vsub.f32 %v5339_v27, %v5355_v16 }
 0xebb   :  { %v5374_v18 = vsub.f32 %v5342_v31, %v5358_v0 }
 0xebd   :  { %5509 = vperm.xlu1 %15939, %v5367_v4   ;;  %5514 = vperm.xlu0 %15938, %v5368_v7  }
 0xec1   :  { %5423 = vperm.xlu1 %15939, %v5321_v14   ;;  %5428 = vperm.xlu0 %15938, %v5322_v34  }
 0xec5   :  { %5519 = vperm.xlu1 %15939, %v5369_v61   ;;  %5524 = vperm.xlu0 %15938, %v5370_v42  }
 0xec9   :  { %5433 = vperm.xlu1 %15939, %v5323_v57   ;;  %5438 = vperm.xlu0 %15938, %v5324_v43  }
 0xecd   :  { %5529 = vperm.xlu1 %15939, %v5371_v62   ;;  %5534 = vperm.xlu0 %15938, %v5372_v12  }
 0xed1   :  { %5443 = vperm.xlu1 %15939, %v5325_v19   ;;  %5448 = vperm.xlu0 %15938, %v5326_v26  }
 0xed5   :  { %5539 = vperm.xlu1 %15939, %v5373_v13   ;;  %5544 = vperm.xlu0 %15938, %v5374_v18  }
 0xed9   :  { %5453 = vperm.xlu1 %15939, %v5327_v24  }
 0xedd   :  { %5549 = vperm.xlu1 %15939, %v5375_v53  }
 0xf1b   :  { %v5384_v14 = vpop.permute.xlu0 %5383 }
 0xf1c   :  { %v5379_v63 = vpop.permute.xlu1 %5378  ;;  %v5457_v34 = vmul.f32 %v5384_v14, %v17693_v33 }
 0xf1d   :  { %v5456_v35 = vmul.f32 %v5379_v63, %v17687_v20 }
 0xf20   :  { %v5480_v6 = vpop.permute.xlu1 %5479  ;;  %v5389_v17 = vpop.permute.xlu0 %5388 }
 0xf21   :  { %v5553_v3 = vadd.f32 %v5480_v6, %v5457_v34  ;;  %v5458_v30 = vmul.f32 %v17685_v51, %v5389_v17 }
 0xf24   :  { %v5394_v10 = vpop.permute.xlu1 %5393  ;;  %v5485_v57 = vpop.permute.xlu0 %5484 }
 0xf25   :  { %v5459_v48 = vmul.f32 %v17689_v36, %v5394_v10  ;;  %v5554_v60 = vadd.f32 %v5485_v57, %v5458_v30 }
 0xf28   :  { %v5475_v41 = vpop.permute.xlu1 %5474  ;;  %v5399_v29 = vpop.permute.xlu0 %5398 }
 0xf29   :  { %v5552_v16 = vadd.f32 %v5475_v41, %v5456_v35  ;;  %v5460_v36 = vmul.f32 %v5399_v29, %v17701_v38 }
 0xf2b   :  { %v17994_v22 = vpack.c.bf16 %v5553_v3, %v5552_v16  ;;  %v16104_v3 = vld [vmem:[%s17987_s24 + $0x8] sm:$0xff]   ;;  %v16105_v16 = vld [vmem:[%s17987_s24 + $0x10] sm:$0xff]  }
 0xf2c   :  { %v5490_v19 = vpop.permute.xlu1 %5489  ;;  %v5495_v47 = vpop.permute.xlu0 %5494 }
 0xf2d   :  { %v5555_v43 = vadd.f32 %v5490_v19, %v5459_v48  ;;  %14358 = vmatprep.subr.bf16.mxu0 %v17994_v22  ;;  %5674 = vrot.lane.b32.xlu0 %v17994_v22, %s16540_s25  ;;  %v5556_v5 = vadd.f32 %v5495_v47, %v5460_v36 }
 0xf2e   :  { %14359 = vmatpush3.bf16.msra.mxu0 %v17994_v22 }
 0xf2f   :  { %v18000_v20 = vpack.c.bf16 %v5555_v43, %v5554_v60  ;;  %v16106_v43 = vld [vmem:[%s17987_s24 + $0x18] sm:$0xff]  }
 0xf30   :  { %v5404_v33 = vpop.permute.xlu1 %5403  ;;  %v5409_v51 = vpop.permute.xlu0 %5408 }
 0xf31   :  { %14360 = vmatprep.subr.bf16.mxu0 %v18000_v20  ;;  %5676 = vrot.lane.b32.xlu1 %v18000_v20, %s16540_s25  ;;  %v5461_v25 = vmul.f32 %v5404_v33, %v17709_v21  ;;  %v5462_v39 = vmul.f32 %v17699_v49, %v5409_v51  ;;  %v16107_v33 = vld [vmem:[%s17987_s24 + $0x20] sm:$0xff]  }
 0xf32   :  { %14361 = vmatpush3.bf16.msra.mxu0 %v18000_v20 }
 0xf34   :  { %v5500_v40 = vpop.permute.xlu1 %5499  ;;  %v5505_v2 = vpop.permute.xlu0 %5504 }
 0xf35   :  { %v5557_v37 = vadd.f32 %v5500_v40, %v5461_v25  ;;  %v5558_v28 = vadd.f32 %v5505_v2, %v5462_v39 }
 0xf37   :  { %v18008_v9 = vpack.c.bf16 %v5557_v37, %v5556_v5 }
 0xf38   :  { %v5414_v24 = vpop.permute.xlu1 %5413  ;;  %v5419_v26 = vpop.permute.xlu0 %5418 }
 0xf39   :  { %14362 = vmatprep.subr.bf16.mxu0 %v18008_v9  ;;  %5678 = vrot.lane.b32.xlu0 %v18008_v9, %s16540_s25  ;;  %v5463_v38 = vmul.f32 %v17703_v23, %v5414_v24  ;;  %v5464_v7 = vmul.f32 %v5419_v26, %v17717_v32  ;;  %v16109_v26 = vld [vmem:[%s17987_s24 + $0x30] sm:$0xff]  }
 0xf3a   :  { %14363 = vmatpush3.bf16.msra.mxu0 %v18008_v9 }
 0xf3c   :  { %v5510_v21 = vpop.permute.xlu1 %5509  ;;  %v5515_v46 = vpop.permute.xlu0 %5514 }
 0xf3d   :  { %v5559_v8 = vadd.f32 %v5510_v21, %v5463_v38  ;;  %v5560_v44 = vadd.f32 %v5515_v46, %v5464_v7  ;;  %v16112_v7 = vld [vmem:[%s18052_s1 + $0x30] sm:$0xff]  }
 0xf3e   :  { %14452 = vmatprep.mubr.msk.bf16.mxu1 %vm1370_vm2, %v16112_v7 }
 0xf3f   :  { %v18016_v0 = vpack.c.bf16 %v5559_v8, %v5558_v28 }
 0xf40   :  { %v5424_v53 = vpop.permute.xlu1 %5423  ;;  %v5429_v4 = vpop.permute.xlu0 %5428 }
 0xf41   :  { %14364 = vmatprep.subr.bf16.mxu0 %v18016_v0  ;;  %5680 = vrot.lane.b32.xlu1 %v18016_v0, %s16540_s25  ;;  %v5465_v49 = vmul.f32 %v5424_v53, %v17725_v45  ;;  %v5466_v62 = vmul.f32 %v17715_v54, %v5429_v4  ;;  %v16110_v53 = vld [vmem:[%s17987_s24 + $0x38] sm:$0xff]   ;;  %v16111_v4 = vld [vmem:[%s18052_s1] sm:$0xff]  }
 0xf42   :  { %14365 = vmatpush3.bf16.msra.mxu0 %v18016_v0 }
 0xf44   :  { %v5520_v23 = vpop.permute.xlu1 %5519  ;;  %v5525_v50 = vpop.permute.xlu0 %5524 }
 0xf45   :  { %v5561_v61 = vadd.f32 %v5520_v23, %v5465_v49  ;;  %v5562_v31 = vadd.f32 %v5525_v50, %v5466_v62  ;;  %v5578_v49 = vld [vmem:[%s12092_s6 + $0x10] sm:$0xff]  ;;  %v5576_v23 = vld [vmem:[%s12092_s6] sm:$0xff] }
 0xf47   :  { %v5572_v42 = vpack.c.bf16 %v5561_v61, %v5560_v44  ;;  %v5579_v44 = vld [vmem:[%s12092_s6 + $0x18] sm:$0xff] }
 0xf48   :  { %v5434_v27 = vpop.permute.xlu1 %5433  ;;  %v5439_v15 = vpop.permute.xlu0 %5438 }
 0xf49   :  { %14366 = vmatprep.subr.bf16.mxu0 %v5572_v42  ;;  %5682 = vrot.lane.b32.xlu0 %v5572_v42, %s16540_s25  ;;  %v5467_v12 = vmul.f32 %v17719_v11, %v5434_v27  ;;  %v5468_v14 = vmul.f32 %v5439_v15, %v17733_v1  ;;  %v5577_v27 = vld [vmem:[%s12092_s6 + $0x8] sm:$0xff] }
 0xf4a   :  { %14367 = vmatpush3.bf16.msra.mxu0 %v5572_v42 }
 0xf4c   :  { %v5530_v55 = vpop.permute.xlu1 %5529  ;;  %v5535_v13 = vpop.permute.xlu0 %5534 }
 0xf4d   :  { %v5563_v32 = vadd.f32 %v5530_v55, %v5467_v12  ;;  %v5564_v58 = vadd.f32 %v5535_v13, %v5468_v14  ;;  %v5944_v14 = vld [vmem:[%s12075_s22] sm:$0xff] }
 0xf4f   :  { %v5573_v45 = vpack.c.bf16 %v5563_v32, %v5562_v31 }
 0xf50   :  { %v5444_v18 = vpop.permute.xlu1 %5443  ;;  %v5449_v6 = vpop.permute.xlu0 %5448 }
 0xf51   :  { %14368 = vmatprep.subr.bf16.mxu0 %v5573_v45  ;;  %5684 = vrot.lane.b32.xlu1 %v5573_v45, %s16540_s25  ;;  %v5469_v63 = vmul.f32 %v5444_v18, %v17741_v52  ;;  %v5470_v34 = vmul.f32 %v17731_v56, %v5449_v6  ;;  %v5945_v6 = vld [vmem:[%s12075_s22 + $0x8] sm:$0xff] }
 0xf52   :  { %14369 = vmatpush3.bf16.msra.mxu0 %v5573_v45 }
 0xf54   :  { %v5540_v17 = vpop.permute.xlu1 %5539  ;;  %v5545_v57 = vpop.permute.xlu0 %5544 }
 0xf55   :  { %v5565_v54 = vadd.f32 %v5540_v17, %v5469_v63  ;;  %v5566_v41 = vadd.f32 %v5545_v57, %v5470_v34  ;;  %v16113_v34 = vld [vmem:[%s18052_s1 + $0x8] sm:$0xff]  }
 0xf57   :  { %v5574_v10 = vpack.c.bf16 %v5565_v54, %v5564_v58 }
 0xf58   :  { %v5454_v11 = vpop.permute.xlu1 %5453 }
 0xf59   :  { %14370 = vmatprep.subr.bf16.mxu0 %v5574_v10  ;;  %5686 = vrot.lane.b32.xlu0 %v5574_v10, %s16540_s25  ;;  %v5471_v35 = vmul.f32 %v17735_v59, %v5454_v11 }
 0xf5a   :  { %14371 = vmatpush3.bf16.msra.mxu0 %v5574_v10 }
 0xf5c   :  { %v5550_v1 = vpop.permute.xlu1 %5549 }
 0xf5d   :  { %v5567_v52 = vadd.f32 %v5550_v1, %v5471_v35  ;;  %5768 = vrot.lane.b32.xlu0 %v17994_v22, %s16541_s26  ;;  %v16114_v35 = vld [vmem:[%s18052_s1 + $0x38] sm:$0xff]   ;;  %v16115_v1 = vld [vmem:[%s18052_s1 + $0x40] sm:$0xff]  }
 0xf5f   :  { %v5575_v29 = vpack.c.bf16 %v5567_v52, %v5566_v41  ;;  %v16117_v41 = vld [vmem:[%s18052_s1 + $0x10] sm:$0xff]   ;;  %v16116_v52 = vld [vmem:[%s18052_s1 + $0x48] sm:$0xff]  }
 0xf61   :  { %5772 = vrot.lane.b32.xlu0 %v18008_v9, %s16541_s26  ;;  %5688 = vrot.lane.b32.xlu1 %v5575_v29, %s16540_s25 }
 0xf62   :  { %14372 = vmatprep.subr.bf16.mxu0 %v5575_v29 }
 0xf63   :  { %14373 = vmatpush3.bf16.msra.mxu0 %v5575_v29 }
 0xf65   :  { %5776 = vrot.lane.b32.xlu0 %v5572_v42, %s16541_s26  ;;  %5770 = vrot.lane.b32.xlu1 %v18000_v20, %s16541_s26 }
 0xf66   :  { %14375 = vmatmul.mubr.bf16.vlgmr.msra.gmra.mrb[184].mxu0 %v16104_v3  ;;  %v16119_v3 = vld [vmem:[%s18052_s1 + $0x50] sm:$0xff]  }
 0xf67   :  { %14394 = vmatprep.mubr.bf16.mxu0 %v16105_v16  ;;  %v16121_v16 = vld [vmem:[%s18052_s1 + $0x20] sm:$0xff]  }
 0xf69   :  { %5780 = vrot.lane.b32.xlu0 %v5574_v10, %s16541_s26  ;;  %5774 = vrot.lane.b32.xlu1 %v18016_v0, %s16541_s26 }
 0xf6d   :  { %5862 = vrot.lane.b32.xlu0 %v17994_v22, %s16542_s27  ;;  %5778 = vrot.lane.b32.xlu1 %v5573_v45, %s16541_s26 }
 0xf71   :  { %5866 = vrot.lane.b32.xlu0 %v18008_v9, %s16542_s27  ;;  %5782 = vrot.lane.b32.xlu1 %v5575_v29, %s16541_s26  ;;  %v16108_v9 = vld [vmem:[%s17987_s24 + $0x28] sm:$0xff]   ;;  %s12096_s26 = sld [smem:[%s19425_s0 + %s16548_s23]]   ;;  %s16556_s24 = smov 26  }
 0xf72   :  { %s12101_s23 = sld [smem:[%s19425_s0 + %s16555_s20]]  }
 0xf75   :  { %5870 = vrot.lane.b32.xlu0 %v5572_v42, %s16542_s27  ;;  %5864 = vrot.lane.b32.xlu1 %v18000_v20, %s16542_s27 }
 0xf79   :  { %5874 = vrot.lane.b32.xlu0 %v5574_v10, %s16542_s27  ;;  %5868 = vrot.lane.b32.xlu1 %v18016_v0, %s16542_s27 }
 0xf7d   :  { %5872 = vrot.lane.b32.xlu1 %v5573_v45, %s16542_s27 }
 0xf81   :  { %5876 = vrot.lane.b32.xlu1 %v5575_v29, %s16542_s27  ;;  %v16118_v29 = vld [vmem:[%s18052_s1 + $0x18] sm:$0xff]   ;;  %s16549_s27 = smov 20  }
 0xf82   :  { %s18194_s30 = sld [smem:[%s19425_s0 + %s16549_s27]]  }
 0xf83   :  { %s18802_s27 = sld [smem:[%s19425_s0 + %s16556_s24]]  }
 0xf9f   :  { %v5675_v56 = vpop.permute.xlu0 %5674 }
 0xfa0   :  { %14378 = vmatprep.subr.bf16.mxu0 %v5675_v56 }
 0xfa1   :  { %14379 = vmatpush3.bf16.msra.mxu0 %v5675_v56  ;;  %v16120_v56 = vld [vmem:[%s18052_s1 + $0x58] sm:$0xff]  }
 0xfa3   :  { %v5677_v59 = vpop.permute.xlu1 %5676 }
 0xfa4   :  { %14380 = vmatprep.subr.bf16.mxu0 %v5677_v59 }
 0xfa5   :  { %14381 = vmatpush3.bf16.msra.mxu0 %v5677_v59  ;;  %v16122_v59 = vld [vmem:[%s18052_s1 + $0x28] sm:$0xff]  }
 0xfab   :  { %v5679_v30 = vpop.permute.xlu0 %5678 }
 0xfac   :  { %14382 = vmatprep.subr.bf16.mxu0 %v5679_v30 }
 0xfad   :  { %14383 = vmatpush3.bf16.msra.mxu0 %v5679_v30  ;;  %v16123_v30 = vld [vmem:[%s18052_s1 + $0x80] sm:$0xff]  }
 0xfb3   :  { %v5681_v48 = vpop.permute.xlu1 %5680 }
 0xfb4   :  { %14384 = vmatprep.subr.bf16.mxu0 %v5681_v48 }
 0xfb5   :  { %14385 = vmatpush3.bf16.msra.mxu0 %v5681_v48  ;;  %v16125_v48 = vld [vmem:[%s18052_s1 + $0x60] sm:$0xff]  }
 0xfbb   :  { %v5683_v22 = vpop.permute.xlu0 %5682 }
 0xfbc   :  { %14386 = vmatprep.subr.bf16.mxu0 %v5683_v22 }
 0xfbd   :  { %14387 = vmatpush3.bf16.msra.mxu0 %v5683_v22  ;;  %v16124_v22 = vld [vmem:[%s18052_s1 + $0x88] sm:$0xff]  }
 0xfc3   :  { %v5685_v19 = vpop.permute.xlu1 %5684 }
 0xfc4   :  { %14388 = vmatprep.subr.bf16.mxu0 %v5685_v19 }
 0xfc5   :  { %14389 = vmatpush3.bf16.msra.mxu0 %v5685_v19  ;;  %v16126_v19 = vld [vmem:[%s18052_s1 + $0x68] sm:$0xff]  }
 0xfcb   :  { %v5687_v47 = vpop.permute.xlu0 %5686 }
 0xfcc   :  { %14390 = vmatprep.subr.bf16.mxu0 %v5687_v47 }
 0xfcd   :  { %14391 = vmatpush3.bf16.msra.mxu0 %v5687_v47  ;;  %v16127_v47 = vld [vmem:[%s18052_s1 + $0x90] sm:$0xff]  }
 0xfcf   :  { %v5769_v20 = vpop.permute.xlu0 %5768 }
 0xfd3   :  { %v5689_v60 = vpop.permute.xlu1 %5688  ;;  %v5773_v36 = vpop.permute.xlu0 %5772 }
 0xfd4   :  { %14392 = vmatprep.subr.bf16.mxu0 %v5689_v60 }
 0xfd5   :  { %14393 = vmatpush3.bf16.msra.mxu0 %v5689_v60  ;;  %v16129_v60 = vld [vmem:[%s18052_s1 + $0x70] sm:$0xff]  }
 0xfd6   :  { %14398 = vmatprep.subr.bf16.mxu0 %v5769_v20 }
 0xfd7   :  { %v5771_v51 = vpop.permute.xlu1 %5770  ;;  %v5777_v40 = vpop.permute.xlu0 %5776 }
 0xfd8   :  { %14395 = vmatmul.mubr.bf16.vlgmr.msra.gmra.mrb[184].mxu0 %v16106_v43  ;;  %v16128_v43 = vld [vmem:[%s18052_s1 + $0x98] sm:$0xff]  }
 0xfd9   :  { %14399 = vmatpush3.bf16.msra.mxu0 %v5769_v20  ;;  %14414 = vmatprep.mubr.bf16.mxu0 %v16107_v33  ;;  %v16130_v20 = vld [vmem:[%s18052_s1 + $0x78] sm:$0xff]   ;;  %v16131_v33 = vld [vmem:[%s18052_s1 + $0xc0] sm:$0xff]  }
 0xfda   :  { %14400 = vmatprep.subr.bf16.mxu0 %v5771_v51 }
 0xfdb   :  { %v5775_v25 = vpop.permute.xlu1 %5774  ;;  %v5781_v5 = vpop.permute.xlu0 %5780 }
 0xfdd   :  { %14401 = vmatpush3.bf16.msra.mxu0 %v5771_v51  ;;  %v16133_v51 = vld [vmem:[%s18052_s1 + $0xa0] sm:$0xff]  }
 0xfde   :  { %14402 = vmatprep.subr.bf16.mxu0 %v5773_v36 }
 0xfdf   :  { %v5779_v2 = vpop.permute.xlu1 %5778  ;;  %v5863_v24 = vpop.permute.xlu0 %5862 }
 0xfe1   :  { %14403 = vmatpush3.bf16.msra.mxu0 %v5773_v36  ;;  %v16132_v36 = vld [vmem:[%s18052_s1 + $0xc8] sm:$0xff]  }
 0xfe2   :  { %14404 = vmatprep.subr.bf16.mxu0 %v5775_v25 }
 0xfe3   :  { %v5783_v37 = vpop.permute.xlu1 %5782  ;;  %v5867_v38 = vpop.permute.xlu0 %5866 }
 0xfe5   :  { %14405 = vmatpush3.bf16.msra.mxu0 %v5775_v25  ;;  %v16134_v25 = vld [vmem:[%s18052_s1 + $0xa8] sm:$0xff]  }
 0xfe6   :  { %14406 = vmatprep.subr.bf16.mxu0 %v5777_v40 }
 0xfe7   :  { %v5865_v39 = vpop.permute.xlu1 %5864  ;;  %v5871_v46 = vpop.permute.xlu0 %5870 }
 0xfe9   :  { %14407 = vmatpush3.bf16.msra.mxu0 %v5777_v40  ;;  %v16135_v40 = vld [vmem:[%s18052_s1 + $0xd0] sm:$0xff]  }
 0xfea   :  { %14408 = vmatprep.subr.bf16.mxu0 %v5779_v2 }
 0xfeb   :  { %v5869_v21 = vpop.permute.xlu1 %5868  ;;  %v5875_v8 = vpop.permute.xlu0 %5874 }
 0xfed   :  { %14409 = vmatpush3.bf16.msra.mxu0 %v5779_v2  ;;  %v16137_v2 = vld [vmem:[%s18052_s1 + $0xb0] sm:$0xff]  }
 0xfee   :  { %14410 = vmatprep.subr.bf16.mxu0 %v5781_v5 }
 0xfef   :  { %v5873_v28 = vpop.permute.xlu1 %5872 }
 0xff1   :  { %14411 = vmatpush3.bf16.msra.mxu0 %v5781_v5  ;;  %v16136_v5 = vld [vmem:[%s18052_s1 + $0xd8] sm:$0xff]  }
 0xff2   :  { %14412 = vmatprep.subr.bf16.mxu0 %v5783_v37 }
 0xff3   :  { %v5877_v0 = vpop.permute.xlu1 %5876 }
 0xff5   :  { %14413 = vmatpush3.bf16.msra.mxu0 %v5783_v37  ;;  %v16138_v37 = vld [vmem:[%s18052_s1 + $0xb8] sm:$0xff]  }
 0xff6   :  { %14418 = vmatprep.subr.bf16.mxu0 %v5863_v24 }
 0xff8   :  { %14415 = vmatmul.mubr.bf16.vlgmr.msra.gmra.mrb[184].mxu0 %v16108_v9  ;;  %v16139_v9 = vld [vmem:[%s18052_s1 + $0xe0] sm:$0xff]  }
 0xff9   :  { %14419 = vmatpush3.bf16.msra.mxu0 %v5863_v24  ;;  %14434 = vmatprep.mubr.bf16.mxu0 %v16109_v26  ;;  %v16140_v24 = vld [vmem:[%s18052_s1 + $0xe8] sm:$0xff]   ;;  %v16141_v26 = vld [vmem:[%s18052_s1 + $0xf0] sm:$0xff]  }
 0xffa   :  { %14420 = vmatprep.subr.bf16.mxu0 %v5865_v39 }
 0xffd   :  { %14421 = vmatpush3.bf16.msra.mxu0 %v5865_v39  ;;  %v16142_v39 = vld [vmem:[%s18052_s1 + $0xf8] sm:$0xff]   ;;  %s16551_s1 = smov 21  }
 0xffe   :  { %14422 = vmatprep.subr.bf16.mxu0 %v5867_v38  ;;  %s18361_s5 = sld [smem:[%s19425_s0 + %s16551_s1]]  }
0x1001   :  { %14423 = vmatpush3.bf16.msra.mxu0 %v5867_v38 }
0x1002   :  { %14424 = vmatprep.subr.bf16.mxu0 %v5869_v21 }
0x1005   :  { %14425 = vmatpush3.bf16.msra.mxu0 %v5869_v21 }
0x1006   :  { %14426 = vmatprep.subr.bf16.mxu0 %v5871_v46 }
0x1009   :  { %14427 = vmatpush3.bf16.msra.mxu0 %v5871_v46 }
0x100a   :  { %14428 = vmatprep.subr.bf16.mxu0 %v5873_v28 }
0x100d   :  { %14429 = vmatpush3.bf16.msra.mxu0 %v5873_v28 }
0x100e   :  { %14430 = vmatprep.subr.bf16.mxu0 %v5875_v8 }
0x1011   :  { %14431 = vmatpush3.bf16.msra.mxu0 %v5875_v8 }
0x1012   :  { %14432 = vmatprep.subr.bf16.mxu0 %v5877_v0 }
0x1015   :  { %14433 = vmatpush3.bf16.msra.mxu0 %v5877_v0 }
0x1018   :  { %14435 = vmatmul.mubr.bf16.vlgmr.msra.gmra.mrb[184].mxu0 %v16110_v53 }
0x1019   :  { %14440 = vmatprep.mubr.msk.bf16.mxu0 %vm1370_vm2, %v16111_v4 }
0x10eb   :  { %v14436_v50 = vpop.f32.mrb[184].mxu0 }
0x10ec   :  { %v15542_v61 = vadd.f32 %v14436_v50, %v5578_v49  ;;  %v5920_v42 = vpop.f32.mrb[185].mxu0 }
0x10ed   :  { %v15543_v15 = vadd.f32 %v5920_v42, %v5576_v23  ;;  %v14437_v62 = vpop.f32.mrb[186].mxu0 }
0x10ee   :  { %5942 = vst.msk [vmem:[%s12109_s11] sm:$0xff] %vm5939_vm6, %v15542_v61  ;;  %v5946_v12 = vmul.f32 0.5, %v15542_v61  ;;  %v15544_v55 = vadd.f32 %v14437_v62, %v5579_v44  ;;  %v5923_v31 = vpop.f32.mrb[187].mxu0 }
0x10ef   :  { %5940 = vst.msk [vmem:[%s12108_s18] sm:$0xff] %vm5939_vm6, %v15543_v15  ;;  %v15545_v32 = vadd.f32 %v5923_v31, %v5577_v27 }
0x10f0   :  { %v5948_v13 = vmul.f32 1.442695, %v5946_v12  ;;  %5943 = vst.msk [vmem:[%s12109_s11 + $0x8] sm:$0xff] %vm5939_vm6, %v15544_v55  ;;  %v5947_v45 = vmul.f32 0.5, %v15544_v55 }
0x10f1   :  { %5941 = vst.msk [vmem:[%s12108_s18 + $0x8] sm:$0xff] %vm5939_vm6, %v15545_v32 }
0x10f2   :  { %16352 = vpow2.f32 %v5948_v13  ;;  %v5950_v18 = vmul.f32 1.442695, %v5947_v45 }
0x10f4   :  { %16354 = vpow2.f32 %v5950_v18 }
0x10fc   :  { %v16353_v63 = vpop.eup %16352 }
0x10fd   :  { %v5952_v17 = vmul.f32 %v16353_v63, %v5944_v14 }
0x10fe   :  { %v16355_v58 = vpop.eup %16354 }
0x10ff   :  { %v5954_v54 = vadd.f32 %v15543_v15, %v5952_v17  ;;  %v5953_v10 = vmul.f32 %v16355_v58, %v5945_v6 }
0x1101   :  { %v5955_v11 = vadd.f32 %v15545_v32, %v5953_v10 }
0x1103   :  { %v5956_v57 = vpack.c.bf16 %v5955_v11, %v5954_v54 }
0x1105   :  { %14438 = vmatprep.subr.bf16.mxu0 %v5956_v57  ;;  %15524 = vmatprep.subr.bf16.mxu1 %v5956_v57 }
0x1106   :  { %14439 = vmatpush3.bf16.msra.mxu0 %v5956_v57  ;;  %15525 = vmatpush3.bf16.msra.mxu1 %v5956_v57 }
0x1107   :  { %14456 = vmatprep.subr.bf16.mxu1 %v5956_v57  ;;  %14474 = vmatprep.subr.bf16.mxu0 %v5956_v57 }
0x1109   :  { %14441 = vmatmul.mubr.msk.bf16.vlgmr.msra.gmra.mrb[188].mxu0 %vm1370_vm2, %v16113_v34  ;;  %14453 = vmatmul.mubr.msk.bf16.vlgmr.msra.gmra.mrb[64].mxu1 %vm1370_vm2, %v16114_v35 }
0x110a   :  { %14457 = vmatpush3.bf16.msra.mxu1 %v5956_v57  ;;  %14475 = vmatpush3.bf16.msra.mxu0 %v5956_v57 }
0x110b   :  { %14492 = vmatprep.subr.bf16.mxu1 %v5956_v57  ;;  %14458 = vmatprep.mubr.msk.bf16.mxu1 %vm1370_vm2, %v16115_v1 }
0x110c   :  { %14444 = vmatprep.mubr.msk.bf16.mxu0 %vm1370_vm2, %v16117_v41 }
0x1111   :  { %14459 = vmatmul.mubr.msk.bf16.vlgmr.msra.gmra.mrb[68].mxu1 %vm1370_vm2, %v16116_v52  ;;  %14445 = vmatmul.mubr.msk.bf16.gmra.mrb[192].mxu0 %vm1370_vm2, %v16118_v29 }
0x1112   :  { %14493 = vmatpush3.bf16.msra.mxu1 %v5956_v57  ;;  %14462 = vmatprep.mubr.msk.bf16.mxu1 %vm1370_vm2, %v16119_v3 }
0x1113   :  { %14448 = vmatprep.mubr.msk.bf16.mxu0 %vm1370_vm2, %v16121_v16 }
0x1119   :  { %14463 = vmatmul.mubr.msk.bf16.gmra.mrb[72].mxu1 %vm1370_vm2, %v16120_v56  ;;  %14449 = vmatmul.mubr.msk.bf16.gmra.mrb[196].mxu0 %vm1370_vm2, %v16122_v59 }
0x111a   :  { %14476 = vmatprep.mubr.msk.bf16.mxu0 %vm1370_vm2, %v16123_v30  ;;  %14466 = vmatprep.mubr.msk.bf16.mxu1 %vm1370_vm2, %v16125_v48 }
0x1121   :  { %14477 = vmatmul.mubr.msk.bf16.vlgmr.msra.gmra.mrb[200].mxu0 %vm1370_vm2, %v16124_v22  ;;  %14467 = vmatmul.mubr.msk.bf16.gmra.mrb[76].mxu1 %vm1370_vm2, %v16126_v19 }
0x1122   :  { %14480 = vmatprep.mubr.msk.bf16.mxu0 %vm1370_vm2, %v16127_v47  ;;  %14470 = vmatprep.mubr.msk.bf16.mxu1 %vm1370_vm2, %v16129_v60 }
0x1129   :  { %14481 = vmatmul.mubr.msk.bf16.gmra.mrb[204].mxu0 %vm1370_vm2, %v16128_v43  ;;  %14471 = vmatmul.mubr.msk.bf16.gmra.mrb[80].mxu1 %vm1370_vm2, %v16130_v20 }
0x112a   :  { %14494 = vmatprep.mubr.msk.bf16.mxu1 %vm1370_vm2, %v16131_v33  ;;  %14484 = vmatprep.mubr.msk.bf16.mxu0 %vm1370_vm2, %v16133_v51 }
0x1131   :  { %14495 = vmatmul.mubr.msk.bf16.vlgmr.msra.gmra.mrb[84].mxu1 %vm1370_vm2, %v16132_v36  ;;  %14485 = vmatmul.mubr.msk.bf16.gmra.mrb[208].mxu0 %vm1370_vm2, %v16134_v25 }
0x1132   :  { %14498 = vmatprep.mubr.msk.bf16.mxu1 %vm1370_vm2, %v16135_v40  ;;  %14488 = vmatprep.mubr.msk.bf16.mxu0 %vm1370_vm2, %v16137_v2 }
0x1139   :  { %14499 = vmatmul.mubr.msk.bf16.gmra.mrb[88].mxu1 %vm1370_vm2, %v16136_v5  ;;  %14489 = vmatmul.mubr.msk.bf16.gmra.mrb[212].mxu0 %vm1370_vm2, %v16138_v37 }
0x113a   :  { %14502 = vmatprep.mubr.msk.bf16.mxu1 %vm1370_vm2, %v16139_v9 }
0x1141   :  { %14503 = vmatmul.mubr.msk.bf16.gmra.mrb[92].mxu1 %vm1370_vm2, %v16140_v24 }
0x1142   :  { %14506 = vmatprep.mubr.msk.bf16.mxu1 %vm1370_vm2, %v16141_v26 }
0x1149   :  { %14507 = vmatmul.mubr.msk.bf16.gmra.mrb[96].mxu1 %vm1370_vm2, %v16142_v39 }
0x11dc   :  { %v14442_v38 = vpop.f32.mrb[188].mxu0  ;;  %v14454_v21 = vpop.f32.mrb[64].mxu1 }
0x11dd   :  { %6167 = vperm.xlu0 %15938, %v14442_v38   ;;  %v6087_v46 = vpop.f32.mrb[189].mxu0  ;;  %v6135_v28 = vpop.f32.mrb[65].mxu1  ;;  %v7154_v38 = vld [vmem:[%s12096_s26] sm:$0x3] }
0x11de   :  { %v14443_v8 = vpop.f32.mrb[190].mxu0  ;;  %v14455_v0 = vpop.f32.mrb[66].mxu1  ;;  %15887 = vmatprep.subr.msk.bf16.mxu0 %vm7179_vm7, %v7154_v38 }
0x11df   :  { %6172 = vperm.xlu1 %15939, %v14443_v8   ;;  %v6090_v53 = vpop.f32.mrb[191].mxu0  ;;  %v6138_v4 = vpop.f32.mrb[67].mxu1 }
0x11e1   :  { %6227 = vperm.xlu0 %15938, %v14454_v21   ;;  %v7181_v21 = vsel %vm7179_vm7, %v7154_v38, 0 }
0x11e2   :  { %14511 = vmatpush3.bf16.msra.mxu0 %v7181_v21 }
0x11e3   :  { %6232 = vperm.xlu1 %15939, %v14455_v0  }
0x11e4   :  { %v14460_v7 = vpop.f32.mrb[68].mxu1  ;;  %v14446_v49 = vpop.f32.mrb[192].mxu0 }
0x11e5   :  { %6157 = vperm.xlu0 %15938, %v6087_v46   ;;  %v6382_v23 = vpop.f32.mrb[69].mxu1  ;;  %v6103_v50 = vpop.f32.mrb[193].mxu0 }
0x11e6   :  { %v14461_v44 = vpop.f32.mrb[70].mxu1  ;;  %v14447_v61 = vpop.f32.mrb[194].mxu0 }
0x11e7   :  { %6162 = vperm.xlu1 %15939, %v6090_v53   ;;  %v6385_v42 = vpop.f32.mrb[71].mxu1  ;;  %v6106_v27 = vpop.f32.mrb[195].mxu0 }
0x11e9   :  { %6217 = vperm.xlu0 %15938, %v6135_v28  }
0x11eb   :  { %6222 = vperm.xlu1 %15939, %v6138_v4  }
0x11ec   :  { %v14464_v15 = vpop.f32.mrb[72].mxu1  ;;  %v14450_v62 = vpop.f32.mrb[196].mxu0 }
0x11ed   :  { %6460 = vperm.xlu0 %15938, %v14460_v7   ;;  %v6398_v12 = vpop.f32.mrb[73].mxu1  ;;  %v6119_v55 = vpop.f32.mrb[197].mxu0 }
0x11ee   :  { %v14465_v31 = vpop.f32.mrb[74].mxu1  ;;  %v14451_v32 = vpop.f32.mrb[198].mxu0 }
0x11ef   :  { %6465 = vperm.xlu1 %15939, %v14461_v44   ;;  %v6401_v13 = vpop.f32.mrb[75].mxu1  ;;  %v6122_v45 = vpop.f32.mrb[199].mxu0 }
0x11f1   :  { %6187 = vperm.xlu0 %15938, %v14446_v49  }
0x11f3   :  { %6192 = vperm.xlu1 %15939, %v14447_v61  }
0x11f4   :  { %v14478_v18 = vpop.f32.mrb[200].mxu0  ;;  %v14468_v14 = vpop.f32.mrb[76].mxu1 }
0x11f5   :  { %6450 = vperm.xlu0 %15938, %v6382_v23   ;;  %v6675_v63 = vpop.f32.mrb[201].mxu0  ;;  %v6414_v6 = vpop.f32.mrb[77].mxu1 }
0x11f6   :  { %v14479_v17 = vpop.f32.mrb[202].mxu0  ;;  %v14469_v58 = vpop.f32.mrb[78].mxu1 }
0x11f7   :  { %6455 = vperm.xlu1 %15939, %v6385_v42   ;;  %v6678_v54 = vpop.f32.mrb[203].mxu0  ;;  %v6417_v10 = vpop.f32.mrb[79].mxu1 }
0x11f9   :  { %6177 = vperm.xlu0 %15938, %v6103_v50  }
0x11fb   :  { %6182 = vperm.xlu1 %15939, %v6106_v27  }
0x11fc   :  { %v14482_v11 = vpop.f32.mrb[204].mxu0  ;;  %v14472_v57 = vpop.f32.mrb[80].mxu1 }
0x11fd   :  { %6480 = vperm.xlu0 %15938, %v14464_v15   ;;  %v6691_v34 = vpop.f32.mrb[205].mxu0  ;;  %v6430_v35 = vpop.f32.mrb[81].mxu1 }
0x11fe   :  { %v14483_v1 = vpop.f32.mrb[206].mxu0  ;;  %v14473_v41 = vpop.f32.mrb[82].mxu1 }
0x11ff   :  { %6485 = vperm.xlu1 %15939, %v14465_v31   ;;  %v6694_v52 = vpop.f32.mrb[207].mxu0  ;;  %v6433_v29 = vpop.f32.mrb[83].mxu1 }
0x1201   :  { %6207 = vperm.xlu0 %15938, %v14450_v62  }
0x1203   :  { %6212 = vperm.xlu1 %15939, %v14451_v32  }
0x1204   :  { %v14496_v3 = vpop.f32.mrb[84].mxu1  ;;  %v14486_v16 = vpop.f32.mrb[208].mxu0 }
0x1205   :  { %6470 = vperm.xlu0 %15938, %v6398_v12   ;;  %v6968_v56 = vpop.f32.mrb[85].mxu1  ;;  %v6707_v59 = vpop.f32.mrb[209].mxu0 }
0x1206   :  { %v14497_v30 = vpop.f32.mrb[86].mxu1  ;;  %v14487_v48 = vpop.f32.mrb[210].mxu0 }
0x1207   :  { %6475 = vperm.xlu1 %15939, %v6401_v13   ;;  %v6971_v22 = vpop.f32.mrb[87].mxu1  ;;  %v6710_v19 = vpop.f32.mrb[211].mxu0 }
0x1209   :  { %6197 = vperm.xlu0 %15938, %v6119_v55  }
0x120b   :  { %6202 = vperm.xlu1 %15939, %v6122_v45  }
0x120c   :  { %v14500_v47 = vpop.f32.mrb[88].mxu1  ;;  %v14490_v60 = vpop.f32.mrb[212].mxu0 }
0x120d   :  { %6753 = vperm.xlu0 %15938, %v14478_v18   ;;  %v6984_v43 = vpop.f32.mrb[89].mxu1  ;;  %v6723_v20 = vpop.f32.mrb[213].mxu0 }
0x120e   :  { %v14501_v33 = vpop.f32.mrb[90].mxu1  ;;  %v14491_v51 = vpop.f32.mrb[214].mxu0 }
0x120f   :  { %6758 = vperm.xlu1 %15939, %v14479_v17   ;;  %v6987_v36 = vpop.f32.mrb[91].mxu1  ;;  %v6726_v25 = vpop.f32.mrb[215].mxu0 }
0x1211   :  { %6500 = vperm.xlu0 %15938, %v14468_v14  }
0x1213   :  { %6505 = vperm.xlu1 %15939, %v14469_v58  }
0x1214   :  { %v14504_v40 = vpop.f32.mrb[92].mxu1 }
0x1215   :  { %6743 = vperm.xlu0 %15938, %v6675_v63   ;;  %v7000_v2 = vpop.f32.mrb[93].mxu1 }
0x1216   :  { %v14505_v5 = vpop.f32.mrb[94].mxu1 }
0x1217   :  { %6748 = vperm.xlu1 %15939, %v6678_v54   ;;  %v7003_v37 = vpop.f32.mrb[95].mxu1 }
0x1219   :  { %6490 = vperm.xlu0 %15938, %v6414_v6  }
0x121b   :  { %6495 = vperm.xlu1 %15939, %v6417_v10  }
0x121c   :  { %v14508_v9 = vpop.f32.mrb[96].mxu1 }
0x121d   :  { %6773 = vperm.xlu0 %15938, %v14482_v11   ;;  %v7016_v24 = vpop.f32.mrb[97].mxu1 }
0x121e   :  { %v14509_v26 = vpop.f32.mrb[98].mxu1 }
0x121f   :  { %6778 = vperm.xlu1 %15939, %v14483_v1   ;;  %v7019_v39 = vpop.f32.mrb[99].mxu1 }
0x1221   :  { %6520 = vperm.xlu0 %15938, %v14472_v57  }
0x1223   :  { %6525 = vperm.xlu1 %15939, %v14473_v41   ;;  %v6150_v41 = vlaneseq }
0x1225   :  { %6763 = vperm.xlu0 %15938, %v6691_v34  }
0x1227   :  { %6768 = vperm.xlu1 %15939, %v6694_v52  }
0x1229   :  { %6510 = vperm.xlu0 %15938, %v6430_v35  }
0x122b   :  { %6515 = vperm.xlu1 %15939, %v6433_v29  }
0x122d   :  { %7046 = vperm.xlu0 %15938, %v14496_v3   ;;  %v6151_v3 = vand.u32 127, %v6150_v41 }
0x122f   :  { %7051 = vperm.xlu1 %15939, %v14497_v30   ;;  %vm6152_vm8 = vcmp.eq.s32.totalorder %v6151_v3, 0  ;;  %vm6445_vm9 = vcmp.eq.s32.totalorder %v6151_v3, 1  ;;  %vm6738_vm10 = vcmp.eq.s32.totalorder %v6151_v3, 2  ;;  %vm7031_vm11 = vcmp.eq.s32.totalorder %v6151_v3, 3 }
0x1231   :  { %6793 = vperm.xlu0 %15938, %v14486_v16  }
0x1233   :  { %6798 = vperm.xlu1 %15939, %v14487_v48   ;;  %v16550_v48 = vmov 0.0  }
0x1234   :  { %v18219_v21 = vsel %vm7031_vm11, 1.0, %v16550_v48 }
0x1235   :  { %7036 = vperm.xlu0 %15938, %v6968_v56  }
0x1237   :  { %7041 = vperm.xlu1 %15939, %v6971_v22   ;;  %v18198_v22 = vsel %vm6152_vm8, 1.0, %v16550_v48 }
0x1239   :  { %6783 = vperm.xlu0 %15938, %v6707_v59  }
0x123b   :  { %6788 = vperm.xlu1 %15939, %v6710_v19  }
0x123d   :  { %7066 = vperm.xlu0 %15938, %v14500_v47  }
0x123f   :  { %7071 = vperm.xlu1 %15939, %v14501_v33   ;;  %v18204_v33 = vsel %vm6445_vm9, 1.0, %v16550_v48 }
0x1241   :  { %7056 = vperm.xlu0 %15938, %v6984_v43  }
0x1243   :  { %7061 = vperm.xlu1 %15939, %v6987_v36   ;;  %v5957_v36 = vld [vmem:[%s18194_s30] sm:$0xff] }
0x1245   :  { %6803 = vperm.xlu0 %15938, %v6723_v20  }
0x1247   :  { %6808 = vperm.xlu1 %15939, %v6726_v25   ;;  %v5958_v25 = vld [vmem:[%s18194_s30 + $0x8] sm:$0xff] }
0x1249   :  { %7086 = vperm.xlu0 %15938, %v14504_v40  }
0x124b   :  { %7091 = vperm.xlu1 %15939, %v14505_v5   ;;  %v5959_v5 = vld [vmem:[%s18194_s30 + $0x10] sm:$0xff] }
0x124d   :  { %7076 = vperm.xlu0 %15938, %v7000_v2  }
0x124f   :  { %7081 = vperm.xlu1 %15939, %v7003_v37  }
0x1251   :  { %6813 = vperm.xlu0 %15938, %v14490_v60   ;;  %v5960_v60 = vld [vmem:[%s18194_s30 + $0x18] sm:$0xff] }
0x1253   :  { %6818 = vperm.xlu1 %15939, %v14491_v51  }
0x1255   :  { %7096 = vperm.xlu0 %15938, %v7016_v24   ;;  %v18215_v24 = vsel %vm6738_vm10, 1.0, %v16550_v48 }
0x1257   :  { %7101 = vperm.xlu1 %15939, %v7019_v39  }
0x1259   :  { %7106 = vperm.xlu0 %15938, %v14508_v9  }
0x125b   :  { %7111 = vperm.xlu1 %15939, %v14509_v26  }
0x125c   :  { %v6168_v46 = vpop.permute.xlu0 %6167 }
0x125d   :  { %v6237_v51 = vmul.f32 %v18198_v22, %v6168_v46 }
0x125e   :  { %v6173_v28 = vpop.permute.xlu1 %6172 }
0x125f   :  { %v6238_v19 = vmul.f32 %v18198_v22, %v6173_v28 }
0x1260   :  { %v18137_v8 = vpop.permute.xlu0 %6227 }
0x1261   :  { %v6254_v26 = vadd.f32 %v6238_v19, %v5960_v60 }
0x1262   :  { %v18139_v0 = vpop.permute.xlu1 %6232 }
0x1264   :  { %v6158_v53 = vpop.permute.xlu0 %6157 }
0x1265   :  { %v6235_v43 = vmul.f32 %v18198_v22, %v6158_v53 }
0x1266   :  { %v6163_v4 = vpop.permute.xlu1 %6162 }
0x1267   :  { %v6236_v20 = vmul.f32 %v18198_v22, %v6163_v4  ;;  %v6251_v28 = vadd.f32 %v6235_v43, %v5957_v36 }
0x1268   :  { %v18141_v7 = vpop.permute.xlu0 %6217 }
0x1269   :  { %v6252_v53 = vadd.f32 %v6236_v20, %v5958_v25 }
0x126a   :  { %v18143_v49 = vpop.permute.xlu1 %6222 }
0x126c   :  { %v6461_v23 = vpop.permute.xlu0 %6460 }
0x126d   :  { %v6530_v39 = vmul.f32 %v18204_v33, %v6461_v23 }
0x126e   :  { %v6466_v50 = vpop.permute.xlu1 %6465 }
0x126f   :  { %v6531_v40 = vmul.f32 %v18204_v33, %v6466_v50 }
0x1270   :  { %v18145_v44 = vpop.permute.xlu0 %6187 }
0x1271   :  { %v6547_v41 = vadd.f32 %v6531_v40, %v6254_v26 }
0x1272   :  { %v18147_v61 = vpop.permute.xlu1 %6192 }
0x1274   :  { %v6451_v42 = vpop.permute.xlu0 %6450 }
0x1275   :  { %v6528_v37 = vmul.f32 %v18204_v33, %v6451_v42  ;;  %v6253_v42 = vadd.f32 %v6237_v51, %v5959_v5  ;;  %v6242_v5 = vmul.f32 %v18198_v22, %v18147_v61 }
0x1276   :  { %v6456_v27 = vpop.permute.xlu1 %6455 }
0x1277   :  { %v6529_v9 = vmul.f32 %v18204_v33, %v6456_v27  ;;  %v6544_v23 = vadd.f32 %v6528_v37, %v6251_v28  ;;  %v6546_v48 = vadd.f32 %v6530_v39, %v6253_v42  ;;  %v5961_v28 = vld [vmem:[%s18194_s30 + $0x20] sm:$0xff]  ;;  %v5963_v42 = vld [vmem:[%s18194_s30 + $0x30] sm:$0xff] }
0x1278   :  { %v18149_v15 = vpop.permute.xlu0 %6177 }
0x1279   :  { %v6545_v60 = vadd.f32 %v6529_v9, %v6252_v53  ;;  %v6239_v26 = vmul.f32 %v18198_v22, %v18149_v15  ;;  %v5962_v53 = vld [vmem:[%s18194_s30 + $0x28] sm:$0xff] }
0x127a   :  { %v18151_v62 = vpop.permute.xlu1 %6182 }
0x127b   :  { %v6240_v39 = vmul.f32 %v18198_v22, %v18151_v62 }
0x127c   :  { %v18153_v12 = vpop.permute.xlu0 %6480 }
0x127e   :  { %v18155_v55 = vpop.permute.xlu1 %6485 }
0x1280   :  { %v18157_v31 = vpop.permute.xlu0 %6207 }
0x1282   :  { %v18159_v32 = vpop.permute.xlu1 %6212 }
0x1284   :  { %v18161_v13 = vpop.permute.xlu0 %6470 }
0x1286   :  { %v18163_v45 = vpop.permute.xlu1 %6475 }
0x1287   :  { %v6533_v15 = vmul.f32 %v18204_v33, %v18163_v45 }
0x1288   :  { %v18165_v18 = vpop.permute.xlu0 %6197 }
0x128a   :  { %v18167_v14 = vpop.permute.xlu1 %6202 }
0x128c   :  { %v6754_v63 = vpop.permute.xlu0 %6753 }
0x128d   :  { %v6823_v27 = vmul.f32 %v18215_v24, %v6754_v63 }
0x128e   :  { %v6759_v6 = vpop.permute.xlu1 %6758 }
0x128f   :  { %v6824_v38 = vmul.f32 %v18215_v24, %v6759_v6  ;;  %v6839_v63 = vadd.f32 %v6823_v27, %v6546_v48 }
0x1290   :  { %v18169_v17 = vpop.permute.xlu0 %6500 }
0x1292   :  { %v18171_v58 = vpop.permute.xlu1 %6505 }
0x1294   :  { %v6744_v54 = vpop.permute.xlu0 %6743 }
0x1295   :  { %v6821_v4 = vmul.f32 %v18215_v24, %v6744_v54 }
0x1296   :  { %v6749_v10 = vpop.permute.xlu1 %6748 }
0x1297   :  { %v6822_v50 = vmul.f32 %v18215_v24, %v6749_v10  ;;  %v6837_v54 = vadd.f32 %v6821_v4, %v6544_v23  ;;  %v6535_v4 = vmul.f32 %v18204_v33, %v18155_v55 }
0x1298   :  { %v18173_v11 = vpop.permute.xlu0 %6490 }
0x1299   :  { %v6838_v10 = vadd.f32 %v6822_v50, %v6545_v60 }
0x129a   :  { %v18175_v57 = vpop.permute.xlu1 %6495 }
0x129c   :  { %v18177_v34 = vpop.permute.xlu0 %6773 }
0x129e   :  { %v18179_v35 = vpop.permute.xlu1 %6778 }
0x129f   :  { %v6828_v27 = vmul.f32 %v18215_v24, %v18179_v35 }
0x12a0   :  { %v18181_v1 = vpop.permute.xlu0 %6520 }
0x12a2   :  { %v18183_v52 = vpop.permute.xlu1 %6525 }
0x12a3   :  { %19426 = vst [vmem:[#allocation2_spill] sm:$0xff] %v18183_v52  ;;  %v6840_v52 = vadd.f32 %v6824_v38, %v6547_v41  ;;  %v6532_v41 = vmul.f32 %v18204_v33, %v18161_v13 }
0x12a4   :  { %v18185_v29 = vpop.permute.xlu0 %6763 }
0x12a5   :  { %v6825_v13 = vmul.f32 %v18215_v24, %v18185_v29 }
0x12a6   :  { %v18187_v16 = vpop.permute.xlu1 %6768 }
0x12a7   :  { %v6826_v45 = vmul.f32 %v18215_v24, %v18187_v16 }
0x12a8   :  { %v18189_v56 = vpop.permute.xlu0 %6510 }
0x12aa   :  { %v18196_v59 = vpop.permute.xlu1 %6515 }
0x12ac   :  { %v7047_v30 = vpop.permute.xlu0 %7046 }
0x12ad   :  { %v7116_v43 = vmul.f32 %v18219_v21, %v7047_v30  ;;  %v5964_v30 = vld [vmem:[%s18194_s30 + $0x38] sm:$0xff] }
0x12ae   :  { %v7052_v47 = vpop.permute.xlu1 %7051  ;;  %v6258_v62 = vadd.f32 %v6242_v5, %v5964_v30  ;;  %v6246_v30 = vmul.f32 %v18198_v22, %v18159_v32 }
0x12af   :  { %v7117_v3 = vmul.f32 %v18219_v21, %v7052_v47  ;;  %v7132_v37 = vadd.f32 %v7116_v43, %v6839_v63 }
0x12b0   :  { %v18210_v2 = vpop.permute.xlu0 %6793  ;;  %v6551_v60 = vadd.f32 %v6535_v4, %v6258_v62  ;;  %v6245_v4 = vmul.f32 %v18198_v22, %v18157_v31  ;;  %v6536_v62 = vmul.f32 %v18204_v33, %v18173_v11  ;;  %v6538_v31 = vmul.f32 %v18204_v33, %v18169_v17 }
0x12b1   :  { %v7133_v36 = vadd.f32 %v7117_v3, %v6840_v52  ;;  %v6241_v52 = vmul.f32 %v18198_v22, %v18145_v44  ;;  %v6534_v44 = vmul.f32 %v18204_v33, %v18153_v12  ;;  %v6255_v3 = vadd.f32 %v6239_v26, %v5961_v28 }
0x12b2   :  { %v18221_v46 = vpop.permute.xlu1 %6798  ;;  %v6244_v28 = vmul.f32 %v18198_v22, %v18167_v14  ;;  %v6831_v17 = vmul.f32 %v18215_v24, %v18210_v2  ;;  %v6248_v2 = vmul.f32 %v18198_v22, %v18143_v49 }
0x12b3   :  { %v7147_v61 = vpack.c.bf16 %v7133_v36, %v7132_v37  ;;  %v6257_v23 = vadd.f32 %v6241_v52, %v5963_v42  ;;  %v6548_v35 = vadd.f32 %v6532_v41, %v6255_v3  ;;  %v6243_v52 = vmul.f32 %v18198_v22, %v18165_v18 }
0x12b4   :  { %v7037_v19 = vpop.permute.xlu0 %7036  ;;  %v6539_v42 = vmul.f32 %v18204_v33, %v18171_v58  ;;  %v6537_v18 = vmul.f32 %v18204_v33, %v18175_v57 }
0x12b5   :  { %v7114_v6 = vmul.f32 %v18219_v21, %v7037_v19  ;;  %v6256_v19 = vadd.f32 %v6240_v39, %v5962_v53  ;;  %v6841_v63 = vadd.f32 %v6825_v13, %v6548_v35  ;;  %v5969_v35 = vld [vmem:[%s18194_s30 + $0x60] sm:$0xff] }
0x12b6   :  { %v7042_v20 = vpop.permute.xlu1 %7041 }
0x12b7   :  { %v7115_v51 = vmul.f32 %v18219_v21, %v7042_v20  ;;  %v7130_v25 = vadd.f32 %v7114_v6, %v6837_v54  ;;  %v6827_v6 = vmul.f32 %v18215_v24, %v18177_v34  ;;  %v6549_v43 = vadd.f32 %v6533_v15, %v6256_v19  ;;  %v5967_v15 = vld [vmem:[%s18194_s30 + $0x50] sm:$0xff] }
0x12b8   :  { %v18230_v47 = vpop.permute.xlu0 %6783  ;;  %v6550_v54 = vadd.f32 %v6534_v44, %v6257_v23  ;;  %v6832_v44 = vmul.f32 %v18215_v24, %v18221_v46  ;;  %v6261_v3 = vadd.f32 %v6245_v4, %v5967_v15 }
0x12b9   :  { %v7131_v40 = vadd.f32 %v7115_v51, %v6838_v10  ;;  %v6844_v10 = vadd.f32 %v6828_v27, %v6551_v60  ;;  %v6842_v16 = vadd.f32 %v6826_v45, %v6549_v43  ;;  %v6829_v11 = vmul.f32 %v18215_v24, %v18230_v47 }
0x12ba   :  { %v18234_v9 = vpop.permute.xlu1 %6788  ;;  %v6843_v34 = vadd.f32 %v6827_v6, %v6550_v54  ;;  %v6247_v6 = vmul.f32 %v18198_v22, %v18141_v7  ;;  %v6554_v47 = vadd.f32 %v6538_v31, %v6261_v3 }
0x12bb   :  { %v7146_v38 = vpack.c.bf16 %v7131_v40, %v7130_v25  ;;  %v6830_v57 = vmul.f32 %v18215_v24, %v18234_v9 }
0x12bc   :  { %v7067_v50 = vpop.permute.xlu0 %7066  ;;  %v6847_v7 = vadd.f32 %v6831_v17, %v6554_v47 }
0x12bd   :  { %14512 = vmatprep.mubr.msk.bf16.mxu0 %vm4781_vm5, %v7146_v38  ;;  %v7120_v29 = vmul.f32 %v18219_v21, %v7067_v50  ;;  %v5968_v38 = vld [vmem:[%s18194_s30 + $0x58] sm:$0xff]  ;;  %v5966_v50 = vld [vmem:[%s18194_s30 + $0x48] sm:$0xff] }
0x12be   :  { %14513 = vmatmul.mubr.msk.bf16.vlgmr.msra.gmra.mrb[216].mxu0 %vm4781_vm5, %v7147_v61  ;;  %v7072_v55 = vpop.permute.xlu1 %7071  ;;  %v5965_v61 = vld [vmem:[%s18194_s30 + $0x40] sm:$0xff]  ;;  %v6262_v14 = vadd.f32 %v6246_v30, %v5968_v38  ;;  %v5972_v38 = vld [vmem:[%s18194_s30 + $0x78] sm:$0xff] }
0x12bf   :  { %v7121_v12 = vmul.f32 %v18219_v21, %v7072_v55  ;;  %v7136_v26 = vadd.f32 %v7120_v29, %v6843_v34  ;;  %v6259_v27 = vadd.f32 %v6243_v52, %v5965_v61  ;;  %v6260_v55 = vadd.f32 %v6244_v28, %v5966_v50  ;;  %v19427_v50 = vld [vmem:[#allocation2_spill] sm:$0xff] }
0x12c0   :  { %v7057_v48 = vpop.permute.xlu0 %7056  ;;  %v6555_v19 = vadd.f32 %v6539_v42, %v6262_v14  ;;  %v6540_v29 = vmul.f32 %v18204_v33, %v18189_v56  ;;  %v5971_v56 = vld [vmem:[%s18194_s30 + $0x70] sm:$0xff] }
0x12c1   :  { %v7118_v20 = vmul.f32 %v18219_v21, %v7057_v48  ;;  %v7137_v25 = vadd.f32 %v7121_v12, %v6844_v10  ;;  %v6552_v45 = vadd.f32 %v6536_v62, %v6259_v27  ;;  %v6553_v23 = vadd.f32 %v6537_v18, %v6260_v55  ;;  %v5970_v10 = vld [vmem:[%s18194_s30 + $0x68] sm:$0xff]  ;;  %s16558_s30 = smov 29  }
0x12c2   :  { %v7062_v51 = vpop.permute.xlu1 %7061  ;;  %v6848_v12 = vadd.f32 %v6832_v44, %v6555_v19  ;;  %v6264_v52 = vadd.f32 %v6248_v2, %v5970_v10  ;;  %s19070_s4 = sld [smem:[%s19425_s0 + %s16558_s30]]  }
0x12c3   :  { %v7119_v36 = vmul.f32 %v18219_v21, %v7062_v51  ;;  %v7134_v5 = vadd.f32 %v7118_v20, %v6841_v63  ;;  %v7149_v41 = vpack.c.bf16 %v7137_v25, %v7136_v26  ;;  %v6845_v43 = vadd.f32 %v6829_v11, %v6552_v45 }
0x12c4   :  { %v6804_v40 = vpop.permute.xlu0 %6803  ;;  %v6846_v20 = vadd.f32 %v6830_v57, %v6553_v23  ;;  %v6250_v25 = vmul.f32 %v18198_v22, %v18139_v0  ;;  %v6543_v0 = vmul.f32 %v18204_v33, %v19427_v50  ;;  %v16149_v50 = vld [vmem:[%s18361_s5 + $0x70] sm:$0xff]  }
0x12c5   :  { %v7135_v37 = vadd.f32 %v7119_v36, %v6842_v16  ;;  %v6249_v16 = vmul.f32 %v18198_v22, %v18137_v8  ;;  %v6541_v36 = vmul.f32 %v18204_v33, %v18196_v59  ;;  %v6542_v8 = vmul.f32 %v18204_v33, %v18181_v1 }
0x12c6   :  { %v6809_v39 = vpop.permute.xlu1 %6808 }
0x12c7   :  { %v7148_v53 = vpack.c.bf16 %v7135_v37, %v7134_v5  ;;  %v6263_v5 = vadd.f32 %v6247_v6, %v5969_v35  ;;  %v6833_v37 = vmul.f32 %v18215_v24, %v6804_v40  ;;  %v6834_v28 = vmul.f32 %v18215_v24, %v6809_v39 }
0x12c8   :  { %v7087_v32 = vpop.permute.xlu0 %7086  ;;  %v6557_v22 = vadd.f32 %v6541_v36, %v6264_v52  ;;  %v6265_v42 = vadd.f32 %v6249_v16, %v5971_v56 }
0x12c9   :  { %14516 = vmatprep.mubr.msk.bf16.mxu0 %vm4781_vm5, %v7148_v53  ;;  %v7124_v9 = vmul.f32 %v18219_v21, %v7087_v32  ;;  %v6556_v59 = vadd.f32 %v6540_v29, %v6263_v5 }
0x12ca   :  { %14517 = vmatmul.mubr.msk.bf16.gmra.mrb[220].mxu0 %vm4781_vm5, %v7149_v41  ;;  %v7092_v58 = vpop.permute.xlu1 %7091  ;;  %v6266_v41 = vadd.f32 %v6250_v25, %v5972_v38  ;;  %v6850_v15 = vadd.f32 %v6834_v28, %v6557_v22  ;;  %v6558_v14 = vadd.f32 %v6542_v8, %v6265_v42  ;;  %v16145_v8 = vld [vmem:[%s18361_s5 + $0x50] sm:$0xff]   ;;  %v16151_v22 = vld [vmem:[%s18361_s5] sm:$0xff]  }
0x12cb   :  { %v7125_v46 = vmul.f32 %v18219_v21, %v7092_v58  ;;  %v7140_v30 = vadd.f32 %v7124_v9, %v6847_v7  ;;  %v6849_v32 = vadd.f32 %v6833_v37, %v6556_v59  ;;  %v16146_v59 = vld [vmem:[%s18361_s5 + $0x58] sm:$0xff]  }
0x12cc   :  { %v7077_v13 = vpop.permute.xlu0 %7076  ;;  %v6559_v31 = vadd.f32 %v6543_v0, %v6266_v41  ;;  %v16150_v0 = vld [vmem:[%s18361_s5 + $0x78] sm:$0xff]   ;;  %v16153_v41 = vld [vmem:[%s18361_s5 + $0x10] sm:$0xff]  }
0x12cd   :  { %v7122_v60 = vmul.f32 %v18219_v21, %v7077_v13  ;;  %v7141_v51 = vadd.f32 %v7125_v46, %v6848_v12 }
0x12ce   :  { %v7082_v48 = vpop.permute.xlu1 %7081 }
0x12cf   :  { %v7123_v54 = vmul.f32 %v18219_v21, %v7082_v48  ;;  %v7138_v49 = vadd.f32 %v7122_v60, %v6845_v43  ;;  %v7151_v4 = vpack.c.bf16 %v7141_v51, %v7140_v30 }
0x12d0   :  { %v6814_v63 = vpop.permute.xlu0 %6813 }
0x12d1   :  { %v7139_v34 = vadd.f32 %v7123_v54, %v6846_v20  ;;  %v6835_v1 = vmul.f32 %v18215_v24, %v6814_v63 }
0x12d2   :  { %v6819_v26 = vpop.permute.xlu1 %6818 }
0x12d3   :  { %v7150_v53 = vpack.c.bf16 %v7139_v34, %v7138_v49  ;;  %v6836_v62 = vmul.f32 %v18215_v24, %v6819_v26  ;;  %v6851_v11 = vadd.f32 %v6835_v1, %v6558_v14  ;;  %v16143_v34 = vld [vmem:[%s18361_s5 + $0x40] sm:$0xff]  }
0x12d4   :  { %v7097_v61 = vpop.permute.xlu0 %7096  ;;  %14544 = vmatprep.mubr.bf16.mxu1 %v16143_v34  ;;  %v16155_v1 = vld [vmem:[%s18361_s5 + $0x20] sm:$0xff]  }
0x12d5   :  { %v7126_v40 = vmul.f32 %v18219_v21, %v7097_v61  ;;  %14520 = vmatprep.mubr.msk.bf16.mxu0 %vm4781_vm5, %v7150_v53  ;;  %v6852_v57 = vadd.f32 %v6836_v62, %v6559_v31  ;;  %v16144_v53 = vld [vmem:[%s18361_s5 + $0x48] sm:$0xff]  }
0x12d6   :  { %14521 = vmatmul.mubr.msk.bf16.gmra.mrb[224].mxu0 %vm4781_vm5, %v7151_v4  ;;  %v7102_v39 = vpop.permute.xlu1 %7101  ;;  %v16147_v4 = vld [vmem:[%s18361_s5 + $0x60] sm:$0xff]   ;;  %v16148_v61 = vld [vmem:[%s18361_s5 + $0x68] sm:$0xff]  }
0x12d7   :  { %v7127_v18 = vmul.f32 %v18219_v21, %v7102_v39  ;;  %v7142_v44 = vadd.f32 %v7126_v40, %v6849_v32  ;;  %v16152_v40 = vld [vmem:[%s18361_s5 + $0x8] sm:$0xff]   ;;  %v16154_v39 = vld [vmem:[%s18361_s5 + $0x18] sm:$0xff]  }
0x12d8   :  { %v7107_v33 = vpop.permute.xlu0 %7106 }
0x12d9   :  { %v7143_v58 = vadd.f32 %v7127_v18, %v6850_v15  ;;  %v7128_v27 = vmul.f32 %v18219_v21, %v7107_v33  ;;  %v16156_v18 = vld [vmem:[%s18361_s5 + $0x28] sm:$0xff]   ;;  %v16157_v33 = vld [vmem:[%s18361_s5 + $0x30] sm:$0xff]  }
0x12da   :  { %v7112_v55 = vpop.permute.xlu1 %7111 }
0x12db   :  { %v7152_v3 = vpack.c.bf16 %v7143_v58, %v7142_v44  ;;  %v7129_v19 = vmul.f32 %v18219_v21, %v7112_v55  ;;  %v7144_v17 = vadd.f32 %v7128_v27, %v6851_v11  ;;  %v16158_v44 = vld [vmem:[%s18361_s5 + $0x38] sm:$0xff]   ;;  %v16159_v27 = vld [vmem:[%s18361_s5 + $0x80] sm:$0xff]   ;;  %v16160_v11 = vld [vmem:[%s18361_s5 + $0x88] sm:$0xff]  }
0x12dd   :  { %v7145_v46 = vadd.f32 %v7129_v19, %v6852_v57  ;;  %14524 = vmatprep.mubr.msk.bf16.mxu0 %vm4781_vm5, %v7152_v3  ;;  %v16161_v3 = vld [vmem:[%s18361_s5 + $0x90] sm:$0xff]  }
0x12df   :  { %v7153_v24 = vpack.c.bf16 %v7145_v46, %v7144_v17  ;;  %v16162_v17 = vld [vmem:[%s18361_s5 + $0x98] sm:$0xff]  }
0x12e1   :  { %14525 = vmatmul.mubr.msk.bf16.gmra.mrb[228].mxu0 %vm4781_vm5, %v7153_v24  ;;  %v16163_v24 = vld [vmem:[%s18361_s5 + $0xa0] sm:$0xff]  }
0x1391   :  { %v14514_v13 = vpop.f32.mrb[216].mxu0 }
0x1392   :  { %v7217_v45 = vpop.f32.mrb[217].mxu0 }
0x1393   :  { %v14515_v23 = vpop.f32.mrb[218].mxu0 }
0x1394   :  { %v18334_v60 = vpack.c.bf16 %v14515_v23, %v14514_v13  ;;  %v7220_v6 = vpop.f32.mrb[219].mxu0 }
0x1395   :  { %v18336_v47 = vpack.c.bf16 %v7220_v6, %v7217_v45  ;;  %v16164_v45 = vld [vmem:[%s18361_s5 + $0xa8] sm:$0xff]  }
0x1396   :  { %7379 = vrot.lane.b32.xlu1 %v18334_v60, %s16526_s3 }
0x1397   :  { %7377 = vrot.lane.b32.xlu0 %v18336_v47, %s16526_s3 }
0x139d   :  { %v14518_v21 = vpop.f32.mrb[220].mxu0 }
0x139e   :  { %v7233_v12 = vpop.f32.mrb[221].mxu0 }
0x139f   :  { %v14519_v9 = vpop.f32.mrb[222].mxu0 }
0x13a0   :  { %v18342_v48 = vpack.c.bf16 %v14519_v9, %v14518_v21  ;;  %v7236_v35 = vpop.f32.mrb[223].mxu0 }
0x13a1   :  { %v18344_v2 = vpack.c.bf16 %v7236_v35, %v7233_v12  ;;  %v16167_v12 = vld [vmem:[%s18361_s5 + $0xc0] sm:$0xff]   ;;  %v16169_v35 = vld [vmem:[%s18361_s5 + $0xd0] sm:$0xff]  }
0x13a2   :  { %7383 = vrot.lane.b32.xlu1 %v18342_v48, %s16526_s3 }
0x13a3   :  { %7381 = vrot.lane.b32.xlu0 %v18344_v2, %s16526_s3 }
0x13a9   :  { %v14522_v43 = vpop.f32.mrb[224].mxu0 }
0x13aa   :  { %v7249_v20 = vpop.f32.mrb[225].mxu0 }
0x13ab   :  { %v14523_v54 = vpop.f32.mrb[226].mxu0 }
0x13ac   :  { %v18350_v10 = vpack.c.bf16 %v14523_v54, %v14522_v43  ;;  %v7252_v29 = vpop.f32.mrb[227].mxu0  ;;  %v16171_v43 = vld [vmem:[%s18361_s5 + $0xe0] sm:$0xff]   ;;  %v16173_v54 = vld [vmem:[%s18361_s5 + $0xf0] sm:$0xff]  }
0x13ad   :  { %v18352_v7 = vpack.c.bf16 %v7252_v29, %v7249_v20  ;;  %v16172_v20 = vld [vmem:[%s18361_s5 + $0xe8] sm:$0xff]  }
0x13ae   :  { %7387 = vrot.lane.b32.xlu1 %v18350_v10, %s16526_s3 }
0x13af   :  { %7385 = vrot.lane.b32.xlu0 %v18352_v7, %s16526_s3 }
0x13b4   :  { %v14526_v51 = vpop.f32.mrb[228].mxu0 }
0x13b5   :  { %v7265_v63 = vpop.f32.mrb[229].mxu0 }
0x13b6   :  { %v14527_v16 = vpop.f32.mrb[230].mxu0 }
0x13b7   :  { %v18363_v36 = vpack.c.bf16 %v14527_v16, %v14526_v51  ;;  %v7268_v49 = vpop.f32.mrb[231].mxu0 }
0x13b8   :  { %v18366_v25 = vpack.c.bf16 %v7268_v49, %v7265_v63 }
0x13b9   :  { %7391 = vrot.lane.b32.xlu1 %v18363_v36, %s16526_s3 }
0x13ba   :  { %7389 = vrot.lane.b32.xlu0 %v18366_v25, %s16526_s3  ;;  %s16552_s3 = smov 23  }
0x13bb   :  { %s18549_s7 = sld [smem:[%s19425_s0 + %s16552_s3]]  }
0x13bd   :  { %7710 = vrot.lane.b32.xlu1 %v18334_v60, %s16521_s16 }
0x13be   :  { %7708 = vrot.lane.b32.xlu0 %v18336_v47, %s16521_s16 }
0x13c1   :  { %7714 = vrot.lane.b32.xlu1 %v18342_v48, %s16521_s16 }
0x13c2   :  { %7712 = vrot.lane.b32.xlu0 %v18344_v2, %s16521_s16 }
0x13c5   :  { %7718 = vrot.lane.b32.xlu1 %v18350_v10, %s16521_s16 }
0x13c6   :  { %7716 = vrot.lane.b32.xlu0 %v18352_v7, %s16521_s16 }
0x13c9   :  { %7722 = vrot.lane.b32.xlu1 %v18363_v36, %s16521_s16 }
0x13ca   :  { %7720 = vrot.lane.b32.xlu0 %v18366_v25, %s16521_s16 }
0x13cd   :  { %7912 = vrot.lane.b32.xlu1 %v18334_v60, %s16528_s8 }
0x13ce   :  { %7910 = vrot.lane.b32.xlu0 %v18336_v47, %s16528_s8 }
0x13d1   :  { %7916 = vrot.lane.b32.xlu1 %v18342_v48, %s16528_s8 }
0x13d2   :  { %7914 = vrot.lane.b32.xlu0 %v18344_v2, %s16528_s8 }
0x13d5   :  { %7920 = vrot.lane.b32.xlu1 %v18350_v10, %s16528_s8 }
0x13d6   :  { %7918 = vrot.lane.b32.xlu0 %v18352_v7, %s16528_s8 }
0x13d9   :  { %7924 = vrot.lane.b32.xlu1 %v18363_v36, %s16528_s8 }
0x13da   :  { %7922 = vrot.lane.b32.xlu0 %v18366_v25, %s16528_s8 }
0x1408   :  { %v7380_v37 = vpop.permute.xlu1 %7379 }
0x1409   :  { %v7378_v5 = vpop.permute.xlu0 %7377 }
0x140a   :  { %14528 = vmatprep.subr.bf16.mxu1 %v7378_v5 }
0x140b   :  { %14529 = vmatpush3.bf16.msra.mxu1 %v7378_v5 }
0x140c   :  { %14530 = vmatprep.subr.bf16.mxu1 %v7380_v37 }
0x140f   :  { %14531 = vmatpush3.bf16.msra.mxu1 %v7380_v37 }
0x1414   :  { %v7384_v26 = vpop.permute.xlu1 %7383 }
0x1415   :  { %v7382_v30 = vpop.permute.xlu0 %7381 }
0x1416   :  { %14532 = vmatprep.subr.bf16.mxu1 %v7382_v30 }
0x1417   :  { %14533 = vmatpush3.bf16.msra.mxu1 %v7382_v30 }
0x1418   :  { %14534 = vmatprep.subr.bf16.mxu1 %v7384_v26 }
0x141b   :  { %14535 = vmatpush3.bf16.msra.mxu1 %v7384_v26 }
0x1420   :  { %v7388_v38 = vpop.permute.xlu1 %7387 }
0x1421   :  { %v7386_v56 = vpop.permute.xlu0 %7385 }
0x1422   :  { %14536 = vmatprep.subr.bf16.mxu1 %v7386_v56 }
0x1423   :  { %14537 = vmatpush3.bf16.msra.mxu1 %v7386_v56 }
0x1424   :  { %14538 = vmatprep.subr.bf16.mxu1 %v7388_v38 }
0x1427   :  { %14539 = vmatpush3.bf16.msra.mxu1 %v7388_v38 }
0x142b   :  { %v7392_v28 = vpop.permute.xlu1 %7391 }
0x142c   :  { %v7390_v52 = vpop.permute.xlu0 %7389 }
0x142d   :  { %14540 = vmatprep.subr.bf16.mxu1 %v7390_v52 }
0x142e   :  { %14541 = vmatpush3.bf16.msra.mxu1 %v7390_v52 }
0x142f   :  { %14542 = vmatprep.subr.bf16.mxu1 %v7392_v28  ;;  %v7711_v32 = vpop.permute.xlu1 %7710 }
0x1430   :  { %v7709_v42 = vpop.permute.xlu0 %7708 }
0x1432   :  { %14543 = vmatpush3.bf16.msra.mxu1 %v7392_v28 }
0x1433   :  { %14560 = vmatprep.subr.bf16.mxu1 %v18336_v47  ;;  %v7715_v62 = vpop.permute.xlu1 %7714 }
0x1434   :  { %v7713_v15 = vpop.permute.xlu0 %7712 }
0x1435   :  { %14545 = vmatmul.mubr.bf16.vlgmr.msra.gmra.mrb[100].mxu1 %v16144_v53 }
0x1436   :  { %14561 = vmatpush3.bf16.msra.mxu1 %v18336_v47  ;;  %14548 = vmatprep.mubr.bf16.mxu1 %v16145_v8  ;;  %v16166_v47 = vld [vmem:[%s18361_s5 + $0xb8] sm:$0xff]  }
0x1437   :  { %14562 = vmatprep.subr.bf16.mxu1 %v18334_v60  ;;  %v7719_v31 = vpop.permute.xlu1 %7718 }
0x1438   :  { %v7717_v14 = vpop.permute.xlu0 %7716 }
0x143a   :  { %14563 = vmatpush3.bf16.msra.mxu1 %v18334_v60  ;;  %v16165_v60 = vld [vmem:[%s18361_s5 + $0xb0] sm:$0xff]  }
0x143b   :  { %14564 = vmatprep.subr.bf16.mxu1 %v18344_v2  ;;  %v7723_v55 = vpop.permute.xlu1 %7722 }
0x143c   :  { %v7721_v58 = vpop.permute.xlu0 %7720 }
0x143d   :  { %14549 = vmatmul.mubr.bf16.gmra.mrb[104].mxu1 %v16146_v59 }
0x143e   :  { %14565 = vmatpush3.bf16.msra.mxu1 %v18344_v2  ;;  %14552 = vmatprep.mubr.bf16.mxu1 %v16147_v4  ;;  %v16170_v2 = vld [vmem:[%s18361_s5 + $0xd8] sm:$0xff]  }
0x143f   :  { %14566 = vmatprep.subr.bf16.mxu1 %v18342_v48  ;;  %v7913_v19 = vpop.permute.xlu1 %7912 }
0x1440   :  { %v7911_v57 = vpop.permute.xlu0 %7910 }
0x1442   :  { %14567 = vmatpush3.bf16.msra.mxu1 %v18342_v48  ;;  %v16168_v48 = vld [vmem:[%s18361_s5 + $0xc8] sm:$0xff]  }
0x1443   :  { %14568 = vmatprep.subr.bf16.mxu1 %v18352_v7  ;;  %v7917_v13 = vpop.permute.xlu1 %7916 }
0x1444   :  { %v7915_v46 = vpop.permute.xlu0 %7914 }
0x1445   :  { %14553 = vmatmul.mubr.bf16.gmra.mrb[108].mxu1 %v16148_v61 }
0x1446   :  { %14569 = vmatpush3.bf16.msra.mxu1 %v18352_v7  ;;  %14556 = vmatprep.mubr.bf16.mxu1 %v16149_v50 }
0x1447   :  { %14570 = vmatprep.subr.bf16.mxu1 %v18350_v10  ;;  %v7921_v6 = vpop.permute.xlu1 %7920 }
0x1448   :  { %v7919_v23 = vpop.permute.xlu0 %7918 }
0x144a   :  { %14571 = vmatpush3.bf16.msra.mxu1 %v18350_v10  ;;  %v16174_v10 = vld [vmem:[%s18361_s5 + $0xf8] sm:$0xff]   ;;  %s16559_s5 = smov 30  }
0x144b   :  { %14572 = vmatprep.subr.bf16.mxu1 %v18366_v25  ;;  %v7925_v9 = vpop.permute.xlu1 %7924  ;;  %s19085_s6 = sld [smem:[%s19425_s0 + %s16559_s5]]  }
0x144c   :  { %v7923_v21 = vpop.permute.xlu0 %7922 }
0x144d   :  { %14557 = vmatmul.mubr.bf16.gmra.mrb[112].mxu1 %v16150_v0 }
0x144e   :  { %14573 = vmatpush3.bf16.msra.mxu1 %v18366_v25  ;;  %14576 = vmatprep.mubr.bf16.mxu1 %v16151_v22 }
0x144f   :  { %14574 = vmatprep.subr.bf16.mxu1 %v18363_v36 }
0x1452   :  { %14575 = vmatpush3.bf16.msra.mxu1 %v18363_v36 }
0x1453   :  { %14592 = vmatprep.subr.bf16.mxu1 %v7709_v42 }
0x1455   :  { %14577 = vmatmul.mubr.bf16.vlgmr.msra.gmra.mrb[100].mxu1 %v16152_v40 }
0x1456   :  { %14593 = vmatpush3.bf16.msra.mxu1 %v7709_v42  ;;  %14580 = vmatprep.mubr.bf16.mxu1 %v16153_v41 }
0x1457   :  { %14594 = vmatprep.subr.bf16.mxu1 %v7711_v32 }
0x145a   :  { %14595 = vmatpush3.bf16.msra.mxu1 %v7711_v32 }
0x145b   :  { %14596 = vmatprep.subr.bf16.mxu1 %v7713_v15 }
0x145d   :  { %14581 = vmatmul.mubr.bf16.gmra.mrb[104].mxu1 %v16154_v39 }
0x145e   :  { %14597 = vmatpush3.bf16.msra.mxu1 %v7713_v15  ;;  %14584 = vmatprep.mubr.bf16.mxu1 %v16155_v1 }
0x145f   :  { %14598 = vmatprep.subr.bf16.mxu1 %v7715_v62 }
0x1462   :  { %14599 = vmatpush3.bf16.msra.mxu1 %v7715_v62 }
0x1463   :  { %14600 = vmatprep.subr.bf16.mxu1 %v7717_v14 }
0x1465   :  { %14585 = vmatmul.mubr.bf16.gmra.mrb[108].mxu1 %v16156_v18 }
0x1466   :  { %14601 = vmatpush3.bf16.msra.mxu1 %v7717_v14  ;;  %14588 = vmatprep.mubr.bf16.mxu1 %v16157_v33 }
0x1467   :  { %14602 = vmatprep.subr.bf16.mxu1 %v7719_v31 }
0x146a   :  { %14603 = vmatpush3.bf16.msra.mxu1 %v7719_v31 }
0x146b   :  { %14604 = vmatprep.subr.bf16.mxu1 %v7721_v58 }
0x146d   :  { %14589 = vmatmul.mubr.bf16.gmra.mrb[112].mxu1 %v16158_v44 }
0x146e   :  { %14605 = vmatpush3.bf16.msra.mxu1 %v7721_v58  ;;  %14608 = vmatprep.mubr.bf16.mxu1 %v16159_v27 }
0x146f   :  { %14606 = vmatprep.subr.bf16.mxu1 %v7723_v55 }
0x1472   :  { %14607 = vmatpush3.bf16.msra.mxu1 %v7723_v55 }
0x1473   :  { %14624 = vmatprep.subr.bf16.mxu1 %v7911_v57 }
0x1475   :  { %14609 = vmatmul.mubr.bf16.vlgmr.msra.gmra.mrb[100].mxu1 %v16160_v11 }
0x1476   :  { %14625 = vmatpush3.bf16.msra.mxu1 %v7911_v57  ;;  %14612 = vmatprep.mubr.bf16.mxu1 %v16161_v3 }
0x1477   :  { %14626 = vmatprep.subr.bf16.mxu1 %v7913_v19 }
0x147a   :  { %14627 = vmatpush3.bf16.msra.mxu1 %v7913_v19 }
0x147b   :  { %14628 = vmatprep.subr.bf16.mxu1 %v7915_v46 }
0x147d   :  { %14613 = vmatmul.mubr.bf16.gmra.mrb[104].mxu1 %v16162_v17 }
0x147e   :  { %14629 = vmatpush3.bf16.msra.mxu1 %v7915_v46  ;;  %14616 = vmatprep.mubr.bf16.mxu1 %v16163_v24 }
0x147f   :  { %14630 = vmatprep.subr.bf16.mxu1 %v7917_v13 }
0x1482   :  { %14631 = vmatpush3.bf16.msra.mxu1 %v7917_v13 }
0x1483   :  { %14632 = vmatprep.subr.bf16.mxu1 %v7919_v23 }
0x1485   :  { %14617 = vmatmul.mubr.bf16.gmra.mrb[108].mxu1 %v16164_v45 }
0x1486   :  { %14633 = vmatpush3.bf16.msra.mxu1 %v7919_v23  ;;  %14620 = vmatprep.mubr.bf16.mxu1 %v16165_v60 }
0x1487   :  { %14634 = vmatprep.subr.bf16.mxu1 %v7921_v6 }
0x148a   :  { %14635 = vmatpush3.bf16.msra.mxu1 %v7921_v6 }
0x148b   :  { %14636 = vmatprep.subr.bf16.mxu1 %v7923_v21 }
0x148d   :  { %14621 = vmatmul.mubr.bf16.gmra.mrb[112].mxu1 %v16166_v47 }
0x148e   :  { %14637 = vmatpush3.bf16.msra.mxu1 %v7923_v21  ;;  %14640 = vmatprep.mubr.bf16.mxu1 %v16167_v12 }
0x148f   :  { %14638 = vmatprep.subr.bf16.mxu1 %v7925_v9 }
0x1492   :  { %14639 = vmatpush3.bf16.msra.mxu1 %v7925_v9 }
0x1495   :  { %14641 = vmatmul.mubr.bf16.vlgmr.msra.gmra.mrb[100].mxu1 %v16168_v48 }
0x1496   :  { %14644 = vmatprep.mubr.bf16.mxu1 %v16169_v35 }
0x149d   :  { %14645 = vmatmul.mubr.bf16.gmra.mrb[104].mxu1 %v16170_v2 }
0x149e   :  { %14648 = vmatprep.mubr.bf16.mxu1 %v16171_v43  ;;  %v18564_v43 = vld [vmem:[%s18549_s7] sm:$0xff] }
0x149f   :  { %14688 = vmatprep.mubr.f32.mxu0 %v18564_v43 }
0x14a5   :  { %14649 = vmatmul.mubr.bf16.gmra.mrb[108].mxu1 %v16172_v20 }
0x14a6   :  { %14652 = vmatprep.mubr.bf16.mxu1 %v16173_v54 }
0x14ad   :  { %14653 = vmatmul.mubr.bf16.gmra.mrb[112].mxu1 %v16174_v10 }
0x1568   :  { %v18451_v29 = vpop.f32.mrb[100].mxu1 }
0x1569   :  { %v18453_v7 = vpop.f32.mrb[101].mxu1  ;;  %v8053_v49 = vsel %vm3077_vm3, %v18451_v29, 0.0  ;;  %v8097_v62 = vmul.f32 %v18451_v29, %v18451_v29 }
0x156a   :  { %v18455_v51 = vpop.f32.mrb[102].mxu1  ;;  %v8047_v63 = vsel %vm3077_vm3, %v18453_v7, 0.0  ;;  %v8095_v39 = vmul.f32 %v18453_v7, %v18453_v7 }
0x156b   :  { %8048 = vadd.xlane.f32.xlu0 %v8047_v63  ;;  %v18459_v16 = vpop.f32.mrb[103].mxu1  ;;  %v8056_v37 = vsel %vm3077_vm3, %v18455_v51, 0.0  ;;  %v8098_v31 = vmul.f32 %v18455_v51, %v18455_v51  ;;  %v8117_v58 = vsel %vm3077_vm3, %v8097_v62, 0.0 }
0x156c   :  { %v8050_v36 = vsel %vm3077_vm3, %v18459_v16, 0.0  ;;  %v8096_v18 = vmul.f32 %v18459_v16, %v18459_v16  ;;  %v8111_v14 = vsel %vm3077_vm3, %v8095_v39, 0.0 }
0x156d   :  { %8051 = vadd.xlane.f32.xlu1 %v8050_v36  ;;  %v8120_v3 = vsel %vm3077_vm3, %v8098_v31, 0.0 }
0x156e   :  { %v8114_v27 = vsel %vm3077_vm3, %v8096_v18, 0.0 }
0x156f   :  { %8054 = vadd.xlane.f32.xlu0 %v8053_v49 }
0x1570   :  { %v18465_v34 = vpop.f32.mrb[104].mxu1 }
0x1571   :  { %v18467_v25 = vpop.f32.mrb[105].mxu1  ;;  %v8065_v56 = vsel %vm3077_vm3, %v18465_v34, 0.0  ;;  %v8101_v55 = vmul.f32 %v18465_v34, %v18465_v34 }
0x1572   :  { %v18469_v5 = vpop.f32.mrb[106].mxu1  ;;  %v8059_v30 = vsel %vm3077_vm3, %v18467_v25, 0.0  ;;  %v8099_v44 = vmul.f32 %v18467_v25, %v18467_v25 }
0x1573   :  { %8057 = vadd.xlane.f32.xlu0 %v8056_v37  ;;  %8060 = vadd.xlane.f32.xlu1 %v8059_v30  ;;  %v18475_v26 = vpop.f32.mrb[107].mxu1  ;;  %v8068_v8 = vsel %vm3077_vm3, %v18469_v5, 0.0  ;;  %v8102_v19 = vmul.f32 %v18469_v5, %v18469_v5  ;;  %v8129_v46 = vsel %vm3077_vm3, %v8101_v55, 0.0 }
0x1574   :  { %v8062_v38 = vsel %vm3077_vm3, %v18475_v26, 0.0  ;;  %v8100_v11 = vmul.f32 %v18475_v26, %v18475_v26  ;;  %v8123_v57 = vsel %vm3077_vm3, %v8099_v44, 0.0 }
0x1575   :  { %v8132_v60 = vsel %vm3077_vm3, %v8102_v19, 0.0  ;;  %v18573_v19 = vld [vmem:[%s18549_s7 + $0x8] sm:$0xff] }
0x1576   :  { %v8126_v24 = vsel %vm3077_vm3, %v8100_v11, 0.0 }
0x1577   :  { %8066 = vadd.xlane.f32.xlu1 %v8065_v56  ;;  %8063 = vadd.xlane.f32.xlu0 %v8062_v38 }
0x1578   :  { %v18481_v52 = vpop.f32.mrb[108].mxu1 }
0x1579   :  { %v18483_v28 = vpop.f32.mrb[109].mxu1  ;;  %v8077_v61 = vsel %vm3077_vm3, %v18481_v52, 0.0  ;;  %v8105_v13 = vmul.f32 %v18481_v52, %v18481_v52 }
0x157a   :  { %v18485_v53 = vpop.f32.mrb[110].mxu1  ;;  %v8071_v59 = vsel %vm3077_vm3, %v18483_v28, 0.0  ;;  %v8103_v17 = vmul.f32 %v18483_v28, %v18483_v28 }
0x157b   :  { %8069 = vadd.xlane.f32.xlu0 %v8068_v8  ;;  %8072 = vadd.xlane.f32.xlu1 %v8071_v59  ;;  %v18491_v4 = vpop.f32.mrb[111].mxu1  ;;  %v8080_v42 = vsel %vm3077_vm3, %v18485_v53, 0.0  ;;  %v8106_v6 = vmul.f32 %v18485_v53, %v18485_v53  ;;  %v8141_v21 = vsel %vm3077_vm3, %v8105_v13, 0.0 }
0x157c   :  { %v8074_v50 = vsel %vm3077_vm3, %v18491_v4, 0.0  ;;  %v8104_v45 = vmul.f32 %v18491_v4, %v18491_v4  ;;  %v8135_v23 = vsel %vm3077_vm3, %v8103_v17, 0.0 }
0x157d   :  { %v8144_v2 = vsel %vm3077_vm3, %v8106_v6, 0.0 }
0x157e   :  { %v8138_v12 = vsel %vm3077_vm3, %v8104_v45, 0.0  ;;  %v8162_v45 = vld [vmem:[%s18549_s7 + $0x18] sm:$0xff] }
0x157f   :  { %8078 = vadd.xlane.f32.xlu1 %v8077_v61  ;;  %8075 = vadd.xlane.f32.xlu0 %v8074_v50 }
0x1580   :  { %v18497_v0 = vpop.f32.mrb[112].mxu1 }
0x1581   :  { %v18499_v22 = vpop.f32.mrb[113].mxu1  ;;  %v8089_v15 = vsel %vm3077_vm3, %v18497_v0, 0.0  ;;  %v8109_v9 = vmul.f32 %v18497_v0, %v18497_v0 }
0x1582   :  { %v18501_v40 = vpop.f32.mrb[114].mxu1  ;;  %v8083_v41 = vsel %vm3077_vm3, %v18499_v22, 0.0  ;;  %v8107_v47 = vmul.f32 %v18499_v22, %v18499_v22 }
0x1583   :  { %8081 = vadd.xlane.f32.xlu0 %v8080_v42  ;;  %8084 = vadd.xlane.f32.xlu1 %v8083_v41  ;;  %v18507_v32 = vpop.f32.mrb[115].mxu1  ;;  %v8092_v33 = vsel %vm3077_vm3, %v18501_v40, 0.0  ;;  %v8110_v20 = vmul.f32 %v18501_v40, %v18501_v40  ;;  %v8153_v54 = vsel %vm3077_vm3, %v8109_v9, 0.0  ;;  %v8165_v9 = vld [vmem:[%s18549_s7 + $0x30] sm:$0xff] }
0x1584   :  { %v8086_v1 = vsel %vm3077_vm3, %v18507_v32, 0.0  ;;  %v8108_v48 = vmul.f32 %v18507_v32, %v18507_v32  ;;  %v8147_v35 = vsel %vm3077_vm3, %v8107_v47, 0.0 }
0x1585   :  { %v8156_v63 = vsel %vm3077_vm3, %v8110_v20, 0.0 }
0x1586   :  { %v8150_v10 = vsel %vm3077_vm3, %v8108_v48, 0.0 }
0x1587   :  { %8090 = vadd.xlane.f32.xlu1 %v8089_v15  ;;  %8087 = vadd.xlane.f32.xlu0 %v8086_v1 }
0x158b   :  { %8112 = vadd.xlane.f32.xlu1 %v8111_v14  ;;  %8093 = vadd.xlane.f32.xlu0 %v8092_v33 }
0x158f   :  { %8118 = vadd.xlane.f32.xlu1 %v8117_v58  ;;  %8115 = vadd.xlane.f32.xlu0 %v8114_v27 }
0x1593   :  { %8124 = vadd.xlane.f32.xlu1 %v8123_v57  ;;  %8121 = vadd.xlane.f32.xlu0 %v8120_v3 }
0x1597   :  { %8130 = vadd.xlane.f32.xlu1 %v8129_v46  ;;  %8127 = vadd.xlane.f32.xlu0 %v8126_v24  ;;  %v18576_v46 = vld [vmem:[%s18549_s7 + $0x10] sm:$0xff] }
0x159b   :  { %8136 = vadd.xlane.f32.xlu1 %v8135_v23  ;;  %8133 = vadd.xlane.f32.xlu0 %v8132_v60  ;;  %v8163_v60 = vld [vmem:[%s18549_s7 + $0x20] sm:$0xff] }
0x159f   :  { %8142 = vadd.xlane.f32.xlu1 %v8141_v21  ;;  %8139 = vadd.xlane.f32.xlu0 %v8138_v12  ;;  %v8164_v21 = vld [vmem:[%s18549_s7 + $0x28] sm:$0xff] }
0x15a3   :  { %8148 = vadd.xlane.f32.xlu1 %v8147_v35  ;;  %8145 = vadd.xlane.f32.xlu0 %v8144_v2  ;;  %v8166_v2 = vld [vmem:[%s18549_s7 + $0x38] sm:$0xff] }
0x15a7   :  { %8154 = vadd.xlane.f32.xlu1 %v8153_v54  ;;  %8151 = vadd.xlane.f32.xlu0 %v8150_v10  ;;  %v8167_v54 = vld [vmem:[%s18549_s7 + $0x40] sm:$0xff] }
0x15ab   :  { %8157 = vadd.xlane.f32.xlu0 %v8156_v63 }
0x15f8   :  { %v8049_v36 = vpop.xlane.xlu0 %8048 }
0x15fa   :  { %v8052_v49 = vpop.xlane.xlu1 %8051 }
0x15fb   :  { %v15396_v37 = vpack.c.bf16 %v8052_v49, %v8049_v36  ;;  %v8168_v36 = vld [vmem:[%s18549_s7 + $0x48] sm:$0xff] }
0x15fc   :  { %v8055_v30 = vpop.xlane.xlu0 %8054 }
0x15fd   :  { %15397 = vmatprep.subr.bf16.mxu0 %v15396_v37 }
0x15fe   :  { %15399 = vmatpush3.bf16.msra.mxu0 %v15396_v37  ;;  %v8169_v37 = vld [vmem:[%s18549_s7 + $0x50] sm:$0xff] }
0x1600   :  { %v8058_v56 = vpop.xlane.xlu0 %8057  ;;  %v8061_v38 = vpop.xlane.xlu1 %8060 }
0x1601   :  { %v15400_v8 = vpack.c.bf16 %v8058_v56, %v8055_v30  ;;  %v8170_v56 = vld [vmem:[%s18549_s7 + $0x58] sm:$0xff] }
0x1603   :  { %15401 = vmatprep.subr.bf16.mxu0 %v15400_v8 }
0x1604   :  { %15403 = vmatpush3.bf16.msra.mxu0 %v15400_v8  ;;  %v8067_v59 = vpop.xlane.xlu1 %8066  ;;  %v8064_v61 = vpop.xlane.xlu0 %8063  ;;  %v8171_v8 = vld [vmem:[%s18549_s7 + $0x60] sm:$0xff] }
0x1605   :  { %v15404_v50 = vpack.c.bf16 %v8064_v61, %v8061_v38 }
0x1607   :  { %15405 = vmatprep.subr.bf16.mxu0 %v15404_v50 }
0x1608   :  { %15407 = vmatpush3.bf16.msra.mxu0 %v15404_v50  ;;  %v8070_v42 = vpop.xlane.xlu0 %8069  ;;  %v8073_v41 = vpop.xlane.xlu1 %8072  ;;  %v8172_v50 = vld [vmem:[%s18549_s7 + $0x68] sm:$0xff] }
0x1609   :  { %v15408_v39 = vpack.c.bf16 %v8070_v42, %v8067_v59 }
0x160b   :  { %15409 = vmatprep.subr.bf16.mxu0 %v15408_v39 }
0x160c   :  { %15411 = vmatpush3.bf16.msra.mxu0 %v15408_v39  ;;  %v8079_v15 = vpop.xlane.xlu1 %8078  ;;  %v8076_v1 = vpop.xlane.xlu0 %8075 }
0x160d   :  { %v15412_v62 = vpack.c.bf16 %v8076_v1, %v8073_v41  ;;  %v8173_v41 = vld [vmem:[%s18549_s7 + $0x70] sm:$0xff]  ;;  %v8174_v1 = vld [vmem:[%s18549_s7 + $0x78] sm:$0xff]  ;;  %s16560_s7 = smov 32  }
0x160e   :  { %s12106_s11 = sld [smem:[%s19425_s0 + %s16560_s7]]  }
0x160f   :  { %15413 = vmatprep.subr.bf16.mxu0 %v15412_v62 }
0x1610   :  { %15415 = vmatpush3.bf16.msra.mxu0 %v15412_v62  ;;  %v8082_v18 = vpop.xlane.xlu0 %8081  ;;  %v8085_v14 = vpop.xlane.xlu1 %8084 }
0x1611   :  { %v15416_v33 = vpack.c.bf16 %v8082_v18, %v8079_v15 }
0x1613   :  { %15417 = vmatprep.subr.bf16.mxu0 %v15416_v33 }
0x1614   :  { %15419 = vmatpush3.bf16.msra.mxu0 %v15416_v33  ;;  %v8091_v31 = vpop.xlane.xlu1 %8090  ;;  %v8088_v44 = vpop.xlane.xlu0 %8087 }
0x1615   :  { %v15420_v58 = vpack.c.bf16 %v8088_v44, %v8085_v14 }
0x1617   :  { %15421 = vmatprep.subr.bf16.mxu0 %v15420_v58 }
0x1618   :  { %v8113_v27 = vpop.xlane.xlu1 %8112  ;;  %15423 = vmatpush3.bf16.msra.mxu0 %v15420_v58  ;;  %v8094_v55 = vpop.xlane.xlu0 %8093 }
0x1619   :  { %v15424_v11 = vpack.c.bf16 %v8094_v55, %v8091_v31 }
0x161b   :  { %15425 = vmatprep.subr.bf16.mxu0 %v15424_v11 }
0x161c   :  { %v8119_v57 = vpop.xlane.xlu1 %8118  ;;  %15427 = vmatpush3.bf16.msra.mxu0 %v15424_v11  ;;  %v8116_v3 = vpop.xlane.xlu0 %8115 }
0x161d   :  { %v15428_v17 = vpack.c.bf16 %v8116_v3, %v8113_v27 }
0x161f   :  { %14689 = vmatmul.mubr.f32.vlgmr.msra.gmra.mrb[232].mxu0 %v18573_v19  ;;  %15429 = vmatprep.subr.bf16.mxu0 %v15428_v17 }
0x1620   :  { %v8125_v24 = vpop.xlane.xlu1 %8124  ;;  %15431 = vmatpush3.bf16.msra.mxu0 %v15428_v17  ;;  %v8122_v13 = vpop.xlane.xlu0 %8121  ;;  %14691 = vmatprep.mubr.f32.mxu0 %v18576_v46 }
0x1621   :  { %v15432_v23 = vpack.c.bf16 %v8122_v13, %v8119_v57 }
0x1623   :  { %14692 = vmatmul.mubr.f32.gmra.mrb[234].mxu0 %v8162_v45  ;;  %15433 = vmatprep.subr.bf16.mxu0 %v15432_v23 }
0x1624   :  { %v8131_v6 = vpop.xlane.xlu1 %8130  ;;  %15435 = vmatpush3.bf16.msra.mxu0 %v15432_v23  ;;  %v8128_v47 = vpop.xlane.xlu0 %8127  ;;  %14694 = vmatprep.mubr.f32.mxu0 %v8163_v60 }
0x1625   :  { %v15436_v12 = vpack.c.bf16 %v8128_v47, %v8125_v24 }
0x1627   :  { %14695 = vmatmul.mubr.f32.gmra.mrb[236].mxu0 %v8164_v21  ;;  %15437 = vmatprep.subr.bf16.mxu0 %v15436_v12 }
0x1628   :  { %v8137_v48 = vpop.xlane.xlu1 %8136  ;;  %15439 = vmatpush3.bf16.msra.mxu0 %v15436_v12  ;;  %v8134_v35 = vpop.xlane.xlu0 %8133  ;;  %14697 = vmatprep.mubr.f32.mxu0 %v8165_v9 }
0x1629   :  { %v15440_v20 = vpack.c.bf16 %v8134_v35, %v8131_v6 }
0x162b   :  { %14698 = vmatmul.mubr.f32.gmra.mrb[238].mxu0 %v8166_v2  ;;  %15441 = vmatprep.subr.bf16.mxu0 %v15440_v20 }
0x162c   :  { %v8143_v10 = vpop.xlane.xlu1 %8142  ;;  %15443 = vmatpush3.bf16.msra.mxu0 %v15440_v20  ;;  %v8140_v63 = vpop.xlane.xlu0 %8139  ;;  %14700 = vmatprep.mubr.f32.mxu0 %v8167_v54 }
0x162d   :  { %v15444_v49 = vpack.c.bf16 %v8140_v63, %v8137_v48 }
0x162f   :  { %14701 = vmatmul.mubr.f32.gmra.mrb[240].mxu0 %v8168_v36  ;;  %15445 = vmatprep.subr.bf16.mxu0 %v15444_v49 }
0x1630   :  { %15447 = vmatpush3.bf16.msra.mxu0 %v15444_v49  ;;  %v8146_v30 = vpop.xlane.xlu0 %8145  ;;  %14703 = vmatprep.mubr.f32.mxu0 %v8169_v37  ;;  %v8149_v59 = vpop.xlane.xlu1 %8148 }
0x1631   :  { %v15448_v38 = vpack.c.bf16 %v8146_v30, %v8143_v10 }
0x1633   :  { %14704 = vmatmul.mubr.f32.gmra.mrb[242].mxu0 %v8170_v56  ;;  %15449 = vmatprep.subr.bf16.mxu0 %v15448_v38 }
0x1634   :  { %15451 = vmatpush3.bf16.msra.mxu0 %v15448_v38  ;;  %v8152_v61 = vpop.xlane.xlu0 %8151  ;;  %14706 = vmatprep.mubr.f32.mxu0 %v8171_v8  ;;  %v8155_v39 = vpop.xlane.xlu1 %8154 }
0x1635   :  { %v15452_v42 = vpack.c.bf16 %v8152_v61, %v8149_v59 }
0x1637   :  { %14707 = vmatmul.mubr.f32.gmra.mrb[244].mxu0 %v8172_v50  ;;  %15453 = vmatprep.subr.bf16.mxu0 %v15452_v42 }
0x1638   :  { %15455 = vmatpush3.bf16.msra.mxu0 %v15452_v42  ;;  %v8158_v15 = vpop.xlane.xlu0 %8157  ;;  %14709 = vmatprep.mubr.f32.mxu0 %v8173_v41 }
0x1639   :  { %v15456_v62 = vpack.c.bf16 %v8158_v15, %v8155_v39 }
0x163b   :  { %14710 = vmatmul.mubr.f32.gmra.mrb[246].mxu0 %v8174_v1  ;;  %15457 = vmatprep.subr.bf16.mxu0 %v15456_v62 }
0x163c   :  { %15459 = vmatpush3.bf16.msra.mxu0 %v15456_v62  ;;  %14744 = vmatprep.mubr.f32.mxu0 %v18564_v43 }
0x163f   :  { %14745 = vmatmul.mubr.f32.vlgmr.msra.gmra.mrb[248].mxu0 %v18573_v19 }
0x1640   :  { %14747 = vmatprep.mubr.f32.mxu0 %v18576_v46 }
0x1643   :  { %14748 = vmatmul.mubr.f32.gmra.mrb[250].mxu0 %v8162_v45 }
0x1644   :  { %14750 = vmatprep.mubr.f32.mxu0 %v8163_v60 }
0x1647   :  { %14751 = vmatmul.mubr.f32.gmra.mrb[252].mxu0 %v8164_v21 }
0x1648   :  { %14753 = vmatprep.mubr.f32.mxu0 %v8165_v9 }
0x164b   :  { %14754 = vmatmul.mubr.f32.gmra.mrb[254].mxu0 %v8166_v2 }
0x164c   :  { %14756 = vmatprep.mubr.f32.mxu0 %v8167_v54 }
0x164f   :  { %14757 = vmatmul.mubr.f32.gmra.mrb[0].mxu0 %v8168_v36 }
0x1650   :  { %14759 = vmatprep.mubr.f32.mxu0 %v8169_v37 }
0x1653   :  { %14760 = vmatmul.mubr.f32.gmra.mrb[2].mxu0 %v8170_v56 }
0x1654   :  { %14762 = vmatprep.mubr.f32.mxu0 %v8171_v8 }
0x1657   :  { %14763 = vmatmul.mubr.f32.gmra.mrb[4].mxu0 %v8172_v50 }
0x1658   :  { %14765 = vmatprep.mubr.f32.mxu0 %v8173_v41 }
0x165b   :  { %14766 = vmatmul.mubr.f32.gmra.mrb[6].mxu0 %v8174_v1 }
0x16f2   :  { %v14690_v18 = vpop.f32.mrb[232].mxu0 }
0x16f3   :  { %v8241_v14 = vpop.f32.mrb[233].mxu0  ;;  %v18604_v24 = vmul.f32 0.0078125, %v14690_v18 }
0x16f4   :  { %v18608_v45 = vmul.f32 0.0078125, %v8241_v14 }
0x16f5   :  { %v8498_v60 = vmul.f32 %v18604_v24, %v18604_v24 }
0x16f6   :  { %v14693_v43 = vpop.f32.mrb[234].mxu0  ;;  %v8497_v12 = vmul.f32 %v18608_v45, %v18608_v45 }
0x16f7   :  { %v8251_v33 = vpop.f32.mrb[235].mxu0  ;;  %v18612_v6 = vmul.f32 0.0078125, %v14693_v43 }
0x16f8   :  { %v18616_v9 = vmul.f32 0.0078125, %v8251_v33 }
0x16f9   :  { %v8500_v54 = vmul.f32 %v18612_v6, %v18612_v6 }
0x16fa   :  { %v14696_v31 = vpop.f32.mrb[236].mxu0  ;;  %v8499_v37 = vmul.f32 %v18616_v9, %v18616_v9 }
0x16fb   :  { %v8261_v44 = vpop.f32.mrb[237].mxu0  ;;  %v18620_v10 = vmul.f32 0.0078125, %v14696_v31 }
0x16fc   :  { %v18624_v30 = vmul.f32 0.0078125, %v8261_v44 }
0x16fd   :  { %v8502_v50 = vmul.f32 %v18620_v10, %v18620_v10 }
0x16fe   :  { %v14699_v58 = vpop.f32.mrb[238].mxu0  ;;  %v8501_v1 = vmul.f32 %v18624_v30, %v18624_v30 }
0x16ff   :  { %v8271_v27 = vpop.f32.mrb[239].mxu0  ;;  %v18633_v42 = vmul.f32 0.0078125, %v14699_v58 }
0x1700   :  { %v18637_v62 = vmul.f32 0.0078125, %v8271_v27 }
0x1701   :  { %v8504_v58 = vmul.f32 %v18633_v42, %v18633_v42 }
0x1702   :  { %v14702_v55 = vpop.f32.mrb[240].mxu0 }
0x1703   :  { %v8281_v11 = vpop.f32.mrb[241].mxu0  ;;  %v18639_v33 = vmul.f32 0.0078125, %v14702_v55 }
0x1704   :  { %v18648_v27 = vmul.f32 0.0078125, %v8281_v11 }
0x1706   :  { %v14705_v57 = vpop.f32.mrb[242].mxu0 }
0x1707   :  { %v18596_v3 = vpop.f32.mrb[243].mxu0 }
0x1708   :  { %v18658_v11 = vmul.f32 0.0078125, %v18596_v3 }
0x170a   :  { %v18598_v19 = vpop.f32.mrb[244].mxu0 }
0x170b   :  { %v18600_v17 = vpop.f32.mrb[245].mxu0 }
0x170c   :  { %v18667_v3 = vmul.f32 0.0078125, %v18600_v17  ;;  %v8593_v17 = vld [vmem:[%s18644_s19] sm:$0xff] }
0x170e   :  { %v18602_v46 = vpop.f32.mrb[246].mxu0 }
0x170f   :  { %v18606_v13 = vpop.f32.mrb[247].mxu0 }
0x1712   :  { %v14746_v23 = vpop.f32.mrb[248].mxu0 }
0x1713   :  { %v8482_v47 = vmul.f32 0.0078125, %v14746_v23  ;;  %v8402_v21 = vpop.f32.mrb[249].mxu0 }
0x1714   :  { %v8481_v48 = vmul.f32 0.0078125, %v8402_v21 }
0x1715   :  { %v8514_v35 = vsub.f32 %v8482_v47, %v8498_v60  ;;  %v8503_v47 = vmul.f32 %v18637_v62, %v18637_v62 }
0x1716   :  { %v8513_v2 = vsub.f32 %v8481_v48, %v8497_v12  ;;  %v14749_v20 = vpop.f32.mrb[250].mxu0  ;;  %v18652_v48 = vmul.f32 0.0078125, %v14705_v57  ;;  %v18664_v57 = vmul.f32 0.0078125, %v18598_v19  ;;  %v8532_v19 = vld [vmem:[%s18629_s12 + $0x18] sm:$0xff] }
0x1717   :  { %v8546_v63 = vadd.f32 1e-05, %v8514_v35  ;;  %v8484_v36 = vmul.f32 0.0078125, %v14749_v20  ;;  %v8412_v49 = vpop.f32.mrb[251].mxu0  ;;  %v8506_v20 = vmul.f32 %v18639_v33, %v18639_v33 }
0x1718   :  { %v8545_v56 = vadd.f32 1e-05, %v8513_v2  ;;  %v8483_v38 = vmul.f32 0.0078125, %v8412_v49  ;;  %v8530_v2 = vld [vmem:[%s18629_s12 + $0x8] sm:$0xff] }
0x1719   :  { %16356 = vrsqrt.f32 %v8546_v63  ;;  %v8516_v8 = vsub.f32 %v8484_v36, %v8500_v54  ;;  %v8529_v36 = vld [vmem:[%s18629_s12] sm:$0xff] }
0x171a   :  { %16358 = vrsqrt.f32 %v8545_v56  ;;  %v8515_v59 = vsub.f32 %v8483_v38, %v8499_v37  ;;  %v14752_v61 = vpop.f32.mrb[252].mxu0  ;;  %v8505_v37 = vmul.f32 %v18648_v27, %v18648_v27 }
0x171b   :  { %v8548_v41 = vadd.f32 1e-05, %v8516_v8  ;;  %v8486_v39 = vmul.f32 0.0078125, %v14752_v61  ;;  %v8422_v15 = vpop.f32.mrb[253].mxu0 }
0x171c   :  { %v8547_v18 = vadd.f32 1e-05, %v8515_v59  ;;  %v8485_v14 = vmul.f32 0.0078125, %v8422_v15 }
0x171d   :  { %16360 = vrsqrt.f32 %v8548_v41  ;;  %v8518_v43 = vsub.f32 %v8486_v39, %v8502_v50  ;;  %v8508_v39 = vmul.f32 %v18652_v48, %v18652_v48 }
0x171e   :  { %16362 = vrsqrt.f32 %v8547_v18  ;;  %v8517_v31 = vsub.f32 %v8485_v14, %v8501_v1  ;;  %v14755_v44 = vpop.f32.mrb[254].mxu0  ;;  %v8507_v18 = vmul.f32 %v18658_v11, %v18658_v11 }
0x171f   :  { %v8550_v23 = vadd.f32 1e-05, %v8518_v43  ;;  %v8488_v60 = vmul.f32 0.0078125, %v14755_v44  ;;  %v8432_v55 = vpop.f32.mrb[255].mxu0  ;;  %v8531_v44 = vld [vmem:[%s18629_s12 + $0x10] sm:$0xff] }
0x1720   :  { %v8549_v21 = vadd.f32 1e-05, %v8517_v31  ;;  %v8487_v12 = vmul.f32 0.0078125, %v8432_v55 }
0x1721   :  { %16364 = vrsqrt.f32 %v8550_v23  ;;  %v8520_v35 = vsub.f32 %v8488_v60, %v8504_v58  ;;  %v8510_v23 = vmul.f32 %v18664_v57, %v18664_v57 }
0x1722   :  { %16366 = vrsqrt.f32 %v8549_v21  ;;  %v8519_v54 = vsub.f32 %v8487_v12, %v8503_v47  ;;  %v14758_v63 = vpop.f32.mrb[0].mxu0 }
0x1723   :  { %v16357_v49 = vpop.eup %16356  ;;  %v8552_v56 = vadd.f32 1e-05, %v8520_v35  ;;  %v8490_v38 = vmul.f32 0.0078125, %v14758_v63  ;;  %v8442_v8 = vpop.f32.mrb[1].mxu0  ;;  %v8509_v35 = vmul.f32 %v18667_v3, %v18667_v3 }
0x1724   :  { %v16359_v59 = vpop.eup %16358  ;;  %v8551_v61 = vadd.f32 1e-05, %v8519_v54  ;;  %v8489_v50 = vmul.f32 0.0078125, %v8442_v8  ;;  %v8578_v41 = vmul.f32 %v16357_v49, %v8530_v2  ;;  %v8595_v8 = vld [vmem:[%s18644_s19 + $0x10] sm:$0xff] }
0x1725   :  { %16368 = vrsqrt.f32 %v8552_v56  ;;  %v8522_v15 = vsub.f32 %v8490_v38, %v8506_v20  ;;  %v8577_v1 = vmul.f32 %v16359_v59, %v8529_v36  ;;  %v8594_v36 = vld [vmem:[%s18644_s19 + $0x8] sm:$0xff]  ;;  %v18685_v56 = vmul.f32 0.0078125, %v18602_v46  ;;  %v8533_v59 = vld [vmem:[%s18629_s12 + $0x20] sm:$0xff] }
0x1726   :  { %16370 = vrsqrt.f32 %v8551_v61  ;;  %v8521_v14 = vsub.f32 %v8489_v50, %v8505_v37  ;;  %8648 = vperm.xlu0 %15938, %v8578_v41   ;;  %v14761_v43 = vpop.f32.mrb[2].mxu0  ;;  %v8610_v31 = vmul.f32 %v8578_v41, %v18604_v24  ;;  %v8534_v37 = vld [vmem:[%s18629_s12 + $0x28] sm:$0xff]  ;;  %v18693_v41 = vmul.f32 0.0078125, %v18606_v13 }
0x1727   :  { %v16361_v58 = vpop.eup %16360  ;;  %v8554_v60 = vadd.f32 1e-05, %v8522_v15  ;;  %v8492_v55 = vmul.f32 0.0078125, %v14761_v43  ;;  %8643 = vperm.xlu1 %15939, %v8577_v1   ;;  %v8452_v47 = vpop.f32.mrb[3].mxu0  ;;  %v8609_v21 = vmul.f32 %v8577_v1, %v18608_v45 }
0x1728   :  { %v16363_v12 = vpop.eup %16362  ;;  %v8553_v24 = vadd.f32 1e-05, %v8521_v14  ;;  %v8491_v2 = vmul.f32 0.0078125, %v8452_v47  ;;  %v8580_v20 = vmul.f32 %v16361_v58, %v8532_v19  ;;  %v8626_v43 = vsub.f32 %v8594_v36, %v8610_v31  ;;  %v8536_v58 = vld [vmem:[%s18629_s12 + $0x38] sm:$0xff]  ;;  %v8535_v47 = vld [vmem:[%s18629_s12 + $0x30] sm:$0xff] }
0x1729   :  { %16372 = vrsqrt.f32 %v8554_v60  ;;  %v8524_v54 = vsub.f32 %v8492_v55, %v8508_v39  ;;  %v8625_v63 = vsub.f32 %v8593_v17, %v8609_v21  ;;  %v8579_v49 = vmul.f32 %v16363_v12, %v8531_v44 }
0x172a   :  { %16374 = vrsqrt.f32 %v8553_v24  ;;  %v8523_v45 = vsub.f32 %v8491_v2, %v8507_v18  ;;  %v14764_v38 = vpop.f32.mrb[4].mxu0  ;;  %v18690_v61 = vmul.f32 %v8580_v20, %v18612_v6  ;;  %v8512_v31 = vmul.f32 %v18685_v56, %v18685_v56 }
0x172b   :  { %v16365_v50 = vpop.eup %16364  ;;  %v8556_v39 = vadd.f32 1e-05, %v8524_v54  ;;  %v8494_v15 = vmul.f32 0.0078125, %v14764_v38  ;;  %8739 = vperm.xlu0 %15938, %v8625_v63   ;;  %8658 = vperm.xlu1 %15939, %v8580_v20   ;;  %v8462_v46 = vpop.f32.mrb[5].mxu0  ;;  %v8611_v1 = vmul.f32 %v8579_v49, %v18616_v9  ;;  %v8511_v20 = vmul.f32 %v18693_v41, %v18693_v41 }
0x172c   :  { %v16367_v19 = vpop.eup %16366  ;;  %v8555_v18 = vadd.f32 1e-05, %v8523_v45  ;;  %v8493_v14 = vmul.f32 0.0078125, %v8462_v46  ;;  %v18696_v17 = vmul.f32 %v16365_v50, %v8534_v37  ;;  %v8538_v45 = vld [vmem:[%s18629_s12 + $0x48] sm:$0xff] }
0x172d   :  { %16376 = vrsqrt.f32 %v8556_v39  ;;  %v8526_v6 = vsub.f32 %v8494_v15, %v8510_v23  ;;  %v8627_v44 = vsub.f32 %v8595_v8, %v8611_v1  ;;  %v8581_v13 = vmul.f32 %v16367_v19, %v8533_v59  ;;  %v8596_v8 = vld [vmem:[%s18644_s19 + $0x18] sm:$0xff]  ;;  %v8537_v59 = vld [vmem:[%s18629_s12 + $0x40] sm:$0xff] }
0x172e   :  { %16378 = vrsqrt.f32 %v8555_v18  ;;  %v8525_v60 = vsub.f32 %v8493_v14, %v8509_v35  ;;  %v14767_v55 = vpop.f32.mrb[6].mxu0  ;;  %v18702_v21 = vmul.f32 %v18696_v17, %v18620_v10  ;;  %v8628_v18 = vsub.f32 %v8596_v8, %v18690_v61 }
0x172f   :  { %v16369_v9 = vpop.eup %16368  ;;  %v8558_v12 = vadd.f32 1e-05, %v8526_v6  ;;  %v8496_v24 = vmul.f32 0.0078125, %v14767_v55  ;;  %8744 = vperm.xlu1 %15939, %v8626_v43   ;;  %8749 = vperm.xlu0 %15938, %v8627_v44   ;;  %v8472_v23 = vpop.f32.mrb[7].mxu0  ;;  %v8613_v35 = vmul.f32 %v8581_v13, %v18624_v30  ;;  %v8540_v43 = vld [vmem:[%s18629_s12 + $0x58] sm:$0xff]  ;;  %v8539_v6 = vld [vmem:[%s18629_s12 + $0x50] sm:$0xff] }
0x1730   :  { %v16371_v2 = vpop.eup %16370  ;;  %v8557_v10 = vadd.f32 1e-05, %v8525_v60  ;;  %v8495_v54 = vmul.f32 0.0078125, %v8472_v23  ;;  %v8584_v63 = vmul.f32 %v16369_v9, %v8536_v58  ;;  %v8542_v55 = vld [vmem:[%s18629_s12 + $0x68] sm:$0xff] }
0x1731   :  { %16380 = vrsqrt.f32 %v8558_v12  ;;  %v8528_v36 = vsub.f32 %v8496_v24, %v8512_v31  ;;  %v8583_v37 = vmul.f32 %v16371_v2, %v8535_v47  ;;  %v8599_v47 = vld [vmem:[%s18644_s19 + $0x30] sm:$0xff] }
0x1732   :  { %16382 = vrsqrt.f32 %v8557_v10  ;;  %v8527_v38 = vsub.f32 %v8495_v54, %v8511_v20  ;;  %v18713_v30 = vmul.f32 %v8584_v63, %v18633_v42  ;;  %v8597_v42 = vld [vmem:[%s18644_s19 + $0x20] sm:$0xff]  ;;  %v8544_v20 = vld [vmem:[%s18629_s12 + $0x78] sm:$0xff]  ;;  %v8598_v10 = vld [vmem:[%s18644_s19 + $0x28] sm:$0xff] }
0x1733   :  { %v16373_v50 = vpop.eup %16372  ;;  %v8560_v39 = vadd.f32 1e-05, %v8528_v36  ;;  %8653 = vperm.xlu1 %15939, %v8579_v49   ;;  %8663 = vperm.xlu0 %15938, %v8581_v13   ;;  %v8615_v15 = vmul.f32 %v8583_v37, %v18637_v62  ;;  %v8629_v58 = vsub.f32 %v8597_v42, %v8613_v35  ;;  %v8857_v35 = vld [vmem:[%s12101_s23] sm:$0xf]  ;;  %v8543_v54 = vld [vmem:[%s18629_s12 + $0x70] sm:$0xff]  ;;  %s16564_s23 = smov 36  }
0x1734   :  { %v16375_v46 = vpop.eup %16374  ;;  %v8559_v1 = vadd.f32 1e-05, %v8527_v38  ;;  %v8586_v19 = vmul.f32 %v16373_v50, %v8538_v45  ;;  %15888 = vmatprep.subr.msk.bf16.mxu0 %vm3913_vm4, %v8857_v35  ;;  %v8630_v38 = vsub.f32 %v8598_v10, %v18702_v21  ;;  %v8603_v21 = vld [vmem:[%s18644_s19 + $0x50] sm:$0xff]  ;;  %s19374_s26 = sld [smem:[%s19425_s0 + %s16564_s23]]  }
0x1735   :  { %16384 = vrsqrt.f32 %v8560_v39  ;;  %v8585_v14 = vmul.f32 %v16375_v46, %v8537_v59  ;;  %v8631_v23 = vsub.f32 %v8599_v47, %v8615_v15  ;;  %v8608_v59 = vld [vmem:[%s18644_s19 + $0x78] sm:$0xff]  ;;  %v8601_v15 = vld [vmem:[%s18644_s19 + $0x40] sm:$0xff]  ;;  %v8607_v42 = vld [vmem:[%s18644_s19 + $0x70] sm:$0xff] }
0x1736   :  { %16386 = vrsqrt.f32 %v8559_v1  ;;  %v8618_v44 = vmul.f32 %v8586_v19, %v18639_v33  ;;  %v8541_v33 = vld [vmem:[%s18629_s12 + $0x60] sm:$0xff]  ;;  %s16561_s12 = smov 31  }
0x1737   :  { %v16377_v49 = vpop.eup %16376  ;;  %8754 = vperm.xlu1 %15939, %v8628_v18   ;;  %8673 = vperm.xlu0 %15938, %v8583_v37   ;;  %v8617_v62 = vmul.f32 %v8585_v14, %v18648_v27  ;;  %v8602_v18 = vld [vmem:[%s18644_s19 + $0x48] sm:$0xff]  ;;  %s19242_s18 = sld [smem:[%s19425_s0 + %s16561_s12]]  }
0x1738   :  { %v16379_v61 = vpop.eup %16378  ;;  %v8588_v13 = vmul.f32 %v16377_v49, %v8540_v43 }
0x1739   :  { %v8587_v60 = vmul.f32 %v16379_v61, %v8539_v6  ;;  %v8633_v46 = vsub.f32 %v8601_v15, %v8617_v62 }
0x173a   :  { %v8620_v9 = vmul.f32 %v8588_v13, %v18652_v48  ;;  %v8883_v48 = vsel %vm3913_vm4, %v8857_v35, 0 }
0x173b   :  { %v16381_v31 = vpop.eup %16380  ;;  %8668 = vperm.xlu1 %15939, %v18696_v17   ;;  %8759 = vperm.xlu0 %15938, %v8629_v58   ;;  %v8619_v27 = vmul.f32 %v8587_v60, %v18658_v11 }
0x173c   :  { %v16383_v12 = vpop.eup %16382  ;;  %v8590_v24 = vmul.f32 %v16381_v31, %v8542_v55  ;;  %14769 = vmatpush3.bf16.msra.mxu0 %v8883_v48 }
0x173d   :  { %v8589_v2 = vmul.f32 %v16383_v12, %v8541_v33  ;;  %v8635_v1 = vsub.f32 %v8603_v21, %v8619_v27 }
0x173e   :  { %v8622_v36 = vmul.f32 %v8590_v24, %v18664_v57  ;;  %v8600_v57 = vld [vmem:[%s18644_s19 + $0x38] sm:$0xff] }
0x173f   :  { %v16385_v17 = vpop.eup %16384  ;;  %8678 = vperm.xlu1 %15939, %v8584_v63   ;;  %8769 = vperm.xlu0 %15938, %v8631_v23   ;;  %v8621_v11 = vmul.f32 %v8589_v2, %v18667_v3  ;;  %v8632_v3 = vsub.f32 %v8600_v57, %v18713_v30  ;;  %v8605_v30 = vld [vmem:[%s18644_s19 + $0x60] sm:$0xff] }
0x1740   :  { %v16387_v37 = vpop.eup %16386  ;;  %v8592_v45 = vmul.f32 %v16385_v17, %v8544_v20 }
0x1741   :  { %v8591_v8 = vmul.f32 %v16387_v37, %v8543_v54  ;;  %v8637_v43 = vsub.f32 %v8605_v30, %v8621_v11 }
0x1742   :  { %v8624_v50 = vmul.f32 %v8592_v45, %v18685_v56  ;;  %v8634_v56 = vsub.f32 %v8602_v18, %v8618_v44 }
0x1743   :  { %8764 = vperm.xlu1 %15939, %v8630_v38   ;;  %8683 = vperm.xlu0 %15938, %v8585_v14   ;;  %v8623_v63 = vmul.f32 %v8591_v8, %v18693_v41  ;;  %v8604_v14 = vld [vmem:[%s18644_s19 + $0x58] sm:$0xff] }
0x1744   :  { %v8640_v39 = vsub.f32 %v8608_v59, %v8624_v50  ;;  %v8636_v41 = vsub.f32 %v8604_v14, %v8620_v9 }
0x1745   :  { %v8639_v6 = vsub.f32 %v8607_v42, %v8623_v63 }
0x1747   :  { %8774 = vperm.xlu1 %15939, %v8632_v3   ;;  %8693 = vperm.xlu0 %15938, %v8587_v60  }
0x174b   :  { %8688 = vperm.xlu1 %15939, %v8586_v19   ;;  %8779 = vperm.xlu0 %15938, %v8633_v46   ;;  %v8606_v19 = vld [vmem:[%s18644_s19 + $0x68] sm:$0xff]  ;;  %s16562_s19 = smov 64  }
0x174c   :  { %v8638_v49 = vsub.f32 %v8606_v19, %v8622_v36 }
0x174f   :  { %8698 = vperm.xlu1 %15939, %v8588_v13   ;;  %8789 = vperm.xlu0 %15938, %v8635_v1  }
0x1753   :  { %8784 = vperm.xlu1 %15939, %v8634_v56   ;;  %8703 = vperm.xlu0 %15938, %v8589_v2  }
0x1757   :  { %8794 = vperm.xlu1 %15939, %v8636_v41   ;;  %8713 = vperm.xlu0 %15938, %v8591_v8  }
0x175b   :  { %8708 = vperm.xlu1 %15939, %v8590_v24   ;;  %8799 = vperm.xlu0 %15938, %v8637_v43  }
0x175f   :  { %8718 = vperm.xlu1 %15939, %v8592_v45   ;;  %8809 = vperm.xlu0 %15938, %v8639_v6  }
0x1763   :  { %8804 = vperm.xlu1 %15939, %v8638_v49  }
0x1767   :  { %8814 = vperm.xlu1 %15939, %v8640_v39  }
0x17a5   :  { %v8649_v62 = vpop.permute.xlu0 %8648 }
0x17a6   :  { %v8644_v44 = vpop.permute.xlu1 %8643  ;;  %v8722_v60 = vmul.f32 %v8649_v62, %v18459_v16 }
0x17a7   :  { %v8721_v58 = vmul.f32 %v8644_v44, %v18453_v7 }
0x17aa   :  { %v8740_v61 = vpop.permute.xlu0 %8739  ;;  %v8659_v13 = vpop.permute.xlu1 %8658 }
0x17ab   :  { %v8817_v55 = vadd.f32 %v8740_v61, %v8721_v58  ;;  %v8724_v20 = vmul.f32 %v18455_v51, %v8659_v13 }
0x17ad   :  { %v8833_v31 = vmax.f32 %v8817_v55, 0.0 }
0x17ae   :  { %v8745_v47 = vpop.permute.xlu1 %8744  ;;  %v8750_v33 = vpop.permute.xlu0 %8749 }
0x17af   :  { %v8818_v9 = vadd.f32 %v8745_v47, %v8722_v60 }
0x17b1   :  { %v8834_v27 = vmax.f32 %v8818_v9, 0.0 }
0x17b2   :  { %v8654_v12 = vpop.permute.xlu1 %8653  ;;  %v8664_v24 = vpop.permute.xlu0 %8663 }
0x17b3   :  { %v8849_v23 = vpack.c.bf16 %v8834_v27, %v8833_v31  ;;  %v8723_v2 = vmul.f32 %v18451_v29, %v8654_v12  ;;  %v8725_v38 = vmul.f32 %v8664_v24, %v18467_v25 }
0x17b5   :  { %v8819_v35 = vadd.f32 %v8750_v33, %v8723_v2  ;;  %14770 = vmatprep.mubr.msk.bf16.mxu0 %vm3077_vm3, %v8849_v23 }
0x17b6   :  { %v8755_v10 = vpop.permute.xlu1 %8754  ;;  %v8674_v7 = vpop.permute.xlu0 %8673 }
0x17b7   :  { %v8820_v54 = vadd.f32 %v8755_v10, %v8724_v20  ;;  %v8835_v16 = vmax.f32 %v8819_v35, 0.0  ;;  %v8727_v57 = vmul.f32 %v18465_v34, %v8674_v7 }
0x17b9   :  { %v8836_v36 = vmax.f32 %v8820_v54, 0.0 }
0x17ba   :  { %v8669_v48 = vpop.permute.xlu1 %8668  ;;  %v8760_v17 = vpop.permute.xlu0 %8759 }
0x17bb   :  { %v8850_v11 = vpack.c.bf16 %v8836_v36, %v8835_v16  ;;  %v8726_v29 = vmul.f32 %v8669_v48, %v18475_v26  ;;  %v8821_v51 = vadd.f32 %v8760_v17, %v8725_v38 }
0x17bd   :  { %14771 = vmatmul.mubr.msk.bf16.vlgmr.msra.gmra.mrb[8].mxu0 %vm3077_vm3, %v8850_v11  ;;  %v8837_v63 = vmax.f32 %v8821_v51, 0.0 }
0x17be   :  { %v8679_v37 = vpop.permute.xlu1 %8678  ;;  %v8770_v45 = vpop.permute.xlu0 %8769 }
0x17bf   :  { %v8728_v39 = vmul.f32 %v18469_v5, %v8679_v37  ;;  %v8823_v3 = vadd.f32 %v8770_v45, %v8727_v57 }
0x17c1   :  { %v8839_v56 = vmax.f32 %v8823_v3, 0.0 }
0x17c2   :  { %v8765_v8 = vpop.permute.xlu1 %8764  ;;  %v8684_v59 = vpop.permute.xlu0 %8683 }
0x17c3   :  { %v8822_v50 = vadd.f32 %v8765_v8, %v8726_v29  ;;  %v8729_v43 = vmul.f32 %v8684_v59, %v18483_v28 }
0x17c5   :  { %v8838_v15 = vmax.f32 %v8822_v50, 0.0 }
0x17c6   :  { %v8775_v46 = vpop.permute.xlu1 %8774  ;;  %v8694_v21 = vpop.permute.xlu0 %8693 }
0x17c7   :  { %v8851_v1 = vpack.c.bf16 %v8838_v15, %v8837_v63  ;;  %v8824_v18 = vadd.f32 %v8775_v46, %v8728_v39  ;;  %v8731_v49 = vmul.f32 %v18481_v52, %v8694_v21 }
0x17c9   :  { %v8840_v14 = vmax.f32 %v8824_v18, 0.0  ;;  %14774 = vmatprep.mubr.msk.bf16.mxu0 %vm3077_vm3, %v8851_v1 }
0x17ca   :  { %v8689_v25 = vpop.permute.xlu1 %8688  ;;  %v8780_v26 = vpop.permute.xlu0 %8779 }
0x17cb   :  { %v8852_v41 = vpack.c.bf16 %v8840_v14, %v8839_v56  ;;  %v8730_v5 = vmul.f32 %v8689_v25, %v18491_v4  ;;  %v8825_v42 = vadd.f32 %v8780_v26, %v8729_v43 }
0x17cd   :  { %14775 = vmatmul.mubr.msk.bf16.gmra.mrb[12].mxu0 %vm3077_vm3, %v8852_v41  ;;  %v8841_v44 = vmax.f32 %v8825_v42, 0.0  ;;  %v16175_v41 = vld [vmem:[%s18802_s27 + $0x40] sm:$0xff]  }
0x17ce   :  { %v8699_v34 = vpop.permute.xlu1 %8698  ;;  %v8790_v30 = vpop.permute.xlu0 %8789 }
0x17cf   :  { %v8732_v61 = vmul.f32 %v18485_v53, %v8699_v34  ;;  %v8827_v13 = vadd.f32 %v8790_v30, %v8731_v49 }
0x17d1   :  { %v8843_v9 = vmax.f32 %v8827_v13, 0.0  ;;  %v16178_v13 = vld [vmem:[%s18802_s27 + $0x58] sm:$0xff]  }
0x17d2   :  { %v8785_v6 = vpop.permute.xlu1 %8784  ;;  %v8704_v19 = vpop.permute.xlu0 %8703 }
0x17d3   :  { %v8826_v62 = vadd.f32 %v8785_v6, %v8730_v5  ;;  %v8733_v12 = vmul.f32 %v8704_v19, %v18499_v22 }
0x17d5   :  { %v8842_v58 = vmax.f32 %v8826_v62, 0.0 }
0x17d6   :  { %v8795_v60 = vpop.permute.xlu1 %8794  ;;  %v8714_v55 = vpop.permute.xlu0 %8713 }
0x17d7   :  { %v8853_v47 = vpack.c.bf16 %v8842_v58, %v8841_v44  ;;  %v8828_v33 = vadd.f32 %v8795_v60, %v8732_v61  ;;  %v8735_v20 = vmul.f32 %v18497_v0, %v8714_v55  ;;  %v16176_v44 = vld [vmem:[%s18802_s27 + $0x48] sm:$0xff]   ;;  %v16177_v61 = vld [vmem:[%s18802_s27 + $0x50] sm:$0xff]   ;;  %v16179_v58 = vld [vmem:[%s18802_s27 + $0x60] sm:$0xff]  }
0x17d8   :  { %v16180_v60 = vld [vmem:[%s18802_s27 + $0x68] sm:$0xff]   ;;  %v16181_v55 = vld [vmem:[%s18802_s27 + $0x70] sm:$0xff]  }
0x17d9   :  { %v8844_v31 = vmax.f32 %v8828_v33, 0.0  ;;  %14778 = vmatprep.mubr.msk.bf16.mxu0 %vm3077_vm3, %v8853_v47  ;;  %v16182_v47 = vld [vmem:[%s18802_s27 + $0x78] sm:$0xff]   ;;  %v16183_v33 = vld [vmem:[%s18802_s27] sm:$0xff]  }
0x17da   :  { %v8709_v28 = vpop.permute.xlu1 %8708  ;;  %v8800_v27 = vpop.permute.xlu0 %8799 }
0x17db   :  { %v8854_v4 = vpack.c.bf16 %v8844_v31, %v8843_v9  ;;  %v8734_v53 = vmul.f32 %v8709_v28, %v18507_v32  ;;  %v8829_v24 = vadd.f32 %v8800_v27, %v8733_v12  ;;  %v16184_v9 = vld [vmem:[%s18802_s27 + $0x8] sm:$0xff]   ;;  %v16185_v28 = vld [vmem:[%s18802_s27 + $0x10] sm:$0xff]   ;;  %v16186_v27 = vld [vmem:[%s18802_s27 + $0x18] sm:$0xff]  }
0x17dc   :  { %v16187_v12 = vld [vmem:[%s18802_s27 + $0x20] sm:$0xff]  }
0x17dd   :  { %14779 = vmatmul.mubr.msk.bf16.gmra.mrb[16].mxu0 %vm3077_vm3, %v8854_v4  ;;  %v8845_v10 = vmax.f32 %v8829_v24, 0.0  ;;  %v16188_v24 = vld [vmem:[%s18802_s27 + $0x28] sm:$0xff]  }
0x17de   :  { %v8719_v52 = vpop.permute.xlu1 %8718  ;;  %v8810_v23 = vpop.permute.xlu0 %8809 }
0x17df   :  { %v8736_v7 = vmul.f32 %v18501_v40, %v8719_v52  ;;  %v8831_v54 = vadd.f32 %v8810_v23, %v8735_v20 }
0x17e1   :  { %v8847_v11 = vmax.f32 %v8831_v54, 0.0 }
0x17e2   :  { %v8805_v2 = vpop.permute.xlu1 %8804 }
0x17e3   :  { %v8830_v35 = vadd.f32 %v8805_v2, %v8734_v53  ;;  %v16189_v2 = vld [vmem:[%s18802_s27 + $0x30] sm:$0xff]  }
0x17e5   :  { %v8846_v16 = vmax.f32 %v8830_v35, 0.0  ;;  %v16190_v35 = vld [vmem:[%s18802_s27 + $0x38] sm:$0xff]  }
0x17e6   :  { %v8815_v36 = vpop.permute.xlu1 %8814 }
0x17e7   :  { %v8855_v48 = vpack.c.bf16 %v8846_v16, %v8845_v10  ;;  %v8832_v17 = vadd.f32 %v8815_v36, %v8736_v7  ;;  %v16191_v7 = vld [vmem:[%s18802_s27 + $0x80] sm:$0xff]   ;;  %v16192_v16 = vld [vmem:[%s18802_s27 + $0x88] sm:$0xff]  }
0x17e9   :  { %v8848_v37 = vmax.f32 %v8832_v17, 0.0  ;;  %14782 = vmatprep.mubr.msk.bf16.mxu0 %vm3077_vm3, %v8855_v48  ;;  %v16193_v48 = vld [vmem:[%s18802_s27 + $0x90] sm:$0xff]  }
0x17eb   :  { %v8856_v22 = vpack.c.bf16 %v8848_v37, %v8847_v11  ;;  %v16194_v11 = vld [vmem:[%s18802_s27 + $0x98] sm:$0xff]  }
0x17ed   :  { %14783 = vmatmul.mubr.msk.bf16.gmra.mrb[20].mxu0 %vm3077_vm3, %v8856_v22  ;;  %v16195_v22 = vld [vmem:[%s18802_s27 + $0xa0] sm:$0xff]  }
0x17ee   :  { %14802 = vmatprep.mubr.bf16.mxu0 %v16175_v41 }
0x1890   :  { %v14772_v32 = vpop.f32.mrb[8].mxu0 }
0x1891   :  { %v8919_v45 = vpop.f32.mrb[9].mxu0 }
0x1892   :  { %v14773_v38 = vpop.f32.mrb[10].mxu0 }
0x1893   :  { %v18775_v0 = vpack.c.bf16 %v14773_v38, %v14772_v32  ;;  %v8922_v29 = vpop.f32.mrb[11].mxu0 }
0x1894   :  { %v18777_v51 = vpack.c.bf16 %v8922_v29, %v8919_v45  ;;  %v16196_v45 = vld [vmem:[%s18802_s27 + $0xa8] sm:$0xff]  }
0x1895   :  { %9081 = vrot.lane.b32.xlu1 %v18775_v0, %s16521_s16 }
0x1896   :  { %9079 = vrot.lane.b32.xlu0 %v18777_v51, %s16521_s16 }
0x18a0   :  { %v14776_v40 = vpop.f32.mrb[12].mxu0 }
0x18a1   :  { %v8935_v8 = vpop.f32.mrb[13].mxu0 }
0x18a2   :  { %v14777_v59 = vpop.f32.mrb[14].mxu0 }
0x18a3   :  { %v18783_v57 = vpack.c.bf16 %v14777_v59, %v14776_v40  ;;  %v8938_v50 = vpop.f32.mrb[15].mxu0 }
0x18a4   :  { %v18785_v63 = vpack.c.bf16 %v8938_v50, %v8935_v8  ;;  %v16199_v8 = vld [vmem:[%s18802_s27 + $0xc0] sm:$0xff]   ;;  %v16201_v50 = vld [vmem:[%s18802_s27 + $0xd0] sm:$0xff]  }
0x18a5   :  { %9085 = vrot.lane.b32.xlu1 %v18783_v57, %s16521_s16 }
0x18a6   :  { %9083 = vrot.lane.b32.xlu0 %v18785_v63, %s16521_s16 }
0x18b0   :  { %v14780_v39 = vpop.f32.mrb[16].mxu0 }
0x18b1   :  { %v8951_v3 = vpop.f32.mrb[17].mxu0 }
0x18b2   :  { %v14781_v15 = vpop.f32.mrb[18].mxu0 }
0x18b3   :  { %v18791_v46 = vpack.c.bf16 %v14781_v15, %v14780_v39  ;;  %v8954_v21 = vpop.f32.mrb[19].mxu0  ;;  %v16203_v39 = vld [vmem:[%s18802_s27 + $0xe0] sm:$0xff]   ;;  %v16205_v15 = vld [vmem:[%s18802_s27 + $0xf0] sm:$0xff]  }
0x18b4   :  { %v18793_v1 = vpack.c.bf16 %v8954_v21, %v8951_v3  ;;  %v16204_v3 = vld [vmem:[%s18802_s27 + $0xe8] sm:$0xff]  }
0x18b5   :  { %9089 = vrot.lane.b32.xlu1 %v18791_v46, %s16521_s16 }
0x18b6   :  { %9087 = vrot.lane.b32.xlu0 %v18793_v1, %s16521_s16 }
0x18c0   :  { %v14784_v18 = vpop.f32.mrb[20].mxu0 }
0x18c1   :  { %v8967_v56 = vpop.f32.mrb[21].mxu0 }
0x18c2   :  { %v14785_v14 = vpop.f32.mrb[22].mxu0 }
0x18c3   :  { %v18804_v25 = vpack.c.bf16 %v14785_v14, %v14784_v18  ;;  %v8970_v26 = vpop.f32.mrb[23].mxu0 }
0x18c4   :  { %v18807_v34 = vpack.c.bf16 %v8970_v26, %v8967_v56 }
0x18c5   :  { %9093 = vrot.lane.b32.xlu1 %v18804_v25, %s16521_s16 }
0x18c6   :  { %9091 = vrot.lane.b32.xlu0 %v18807_v34, %s16521_s16 }
0x18c9   :  { %9412 = vrot.lane.b32.xlu1 %v18775_v0, %s16519_s14 }
0x18ca   :  { %9410 = vrot.lane.b32.xlu0 %v18777_v51, %s16519_s14 }
0x18cd   :  { %9416 = vrot.lane.b32.xlu1 %v18783_v57, %s16519_s14 }
0x18ce   :  { %9414 = vrot.lane.b32.xlu0 %v18785_v63, %s16519_s14 }
0x18d1   :  { %9420 = vrot.lane.b32.xlu1 %v18791_v46, %s16519_s14 }
0x18d2   :  { %9418 = vrot.lane.b32.xlu0 %v18793_v1, %s16519_s14 }
0x18d5   :  { %9424 = vrot.lane.b32.xlu1 %v18804_v25, %s16519_s14 }
0x18d6   :  { %9422 = vrot.lane.b32.xlu0 %v18807_v34, %s16519_s14 }
0x18d9   :  { %9614 = vrot.lane.b32.xlu1 %v18775_v0, %s16520_s15 }
0x18da   :  { %9612 = vrot.lane.b32.xlu0 %v18777_v51, %s16520_s15 }
0x18dd   :  { %9618 = vrot.lane.b32.xlu1 %v18783_v57, %s16520_s15 }
0x18de   :  { %9616 = vrot.lane.b32.xlu0 %v18785_v63, %s16520_s15 }
0x18e1   :  { %9622 = vrot.lane.b32.xlu1 %v18791_v46, %s16520_s15 }
0x18e2   :  { %9620 = vrot.lane.b32.xlu0 %v18793_v1, %s16520_s15 }
0x18e5   :  { %9626 = vrot.lane.b32.xlu1 %v18804_v25, %s16520_s15 }
0x18e6   :  { %9624 = vrot.lane.b32.xlu0 %v18807_v34, %s16520_s15  ;;  %s16557_s15 = smov 28  }
0x18e7   :  { %s18990_s29 = sld [smem:[%s19425_s0 + %s16557_s15]]  }
0x1907   :  { %v9082_v43 = vpop.permute.xlu1 %9081 }
0x1908   :  { %v9080_v30 = vpop.permute.xlu0 %9079 }
0x1909   :  { %14786 = vmatprep.subr.bf16.mxu0 %v9080_v30 }
0x190a   :  { %14787 = vmatpush3.bf16.msra.mxu0 %v9080_v30 }
0x190b   :  { %14788 = vmatprep.subr.bf16.mxu0 %v9082_v43 }
0x190e   :  { %14789 = vmatpush3.bf16.msra.mxu0 %v9082_v43 }
0x1917   :  { %v9086_v42 = vpop.permute.xlu1 %9085 }
0x1918   :  { %v9084_v5 = vpop.permute.xlu0 %9083 }
0x1919   :  { %14790 = vmatprep.subr.bf16.mxu0 %v9084_v5 }
0x191a   :  { %14791 = vmatpush3.bf16.msra.mxu0 %v9084_v5 }
0x191b   :  { %14792 = vmatprep.subr.bf16.mxu0 %v9086_v42 }
0x191e   :  { %14793 = vmatpush3.bf16.msra.mxu0 %v9086_v42 }
0x1927   :  { %v9090_v19 = vpop.permute.xlu1 %9089 }
0x1928   :  { %v9088_v6 = vpop.permute.xlu0 %9087 }
0x1929   :  { %14794 = vmatprep.subr.bf16.mxu0 %v9088_v6 }
0x192a   :  { %14795 = vmatpush3.bf16.msra.mxu0 %v9088_v6 }
0x192b   :  { %14796 = vmatprep.subr.bf16.mxu0 %v9090_v19 }
0x192e   :  { %14797 = vmatpush3.bf16.msra.mxu0 %v9090_v19 }
0x1937   :  { %v9094_v62 = vpop.permute.xlu1 %9093 }
0x1938   :  { %v9092_v49 = vpop.permute.xlu0 %9091 }
0x1939   :  { %14798 = vmatprep.subr.bf16.mxu0 %v9092_v49 }
0x193a   :  { %14799 = vmatpush3.bf16.msra.mxu0 %v9092_v49 }
0x193b   :  { %14800 = vmatprep.subr.bf16.mxu0 %v9094_v62  ;;  %v9413_v4 = vpop.permute.xlu1 %9412 }
0x193c   :  { %v9411_v31 = vpop.permute.xlu0 %9410 }
0x193e   :  { %14801 = vmatpush3.bf16.msra.mxu0 %v9094_v62 }
0x193f   :  { %14818 = vmatprep.subr.bf16.mxu0 %v18777_v51  ;;  %v9417_v53 = vpop.permute.xlu1 %9416 }
0x1940   :  { %v9415_v52 = vpop.permute.xlu0 %9414 }
0x1941   :  { %14803 = vmatmul.mubr.bf16.vlgmr.msra.gmra.mrb[24].mxu0 %v16176_v44 }
0x1942   :  { %14819 = vmatpush3.bf16.msra.mxu0 %v18777_v51  ;;  %14806 = vmatprep.mubr.bf16.mxu0 %v16177_v61  ;;  %v16198_v51 = vld [vmem:[%s18802_s27 + $0xb8] sm:$0xff]  }
0x1943   :  { %14820 = vmatprep.subr.bf16.mxu0 %v18775_v0  ;;  %v9421_v20 = vpop.permute.xlu1 %9420 }
0x1944   :  { %v9419_v23 = vpop.permute.xlu0 %9418 }
0x1946   :  { %14821 = vmatpush3.bf16.msra.mxu0 %v18775_v0  ;;  %v16197_v0 = vld [vmem:[%s18802_s27 + $0xb0] sm:$0xff]  }
0x1947   :  { %14822 = vmatprep.subr.bf16.mxu0 %v18785_v63  ;;  %v9425_v54 = vpop.permute.xlu1 %9424 }
0x1948   :  { %v9423_v10 = vpop.permute.xlu0 %9422 }
0x1949   :  { %14807 = vmatmul.mubr.bf16.gmra.mrb[28].mxu0 %v16178_v13 }
0x194a   :  { %14823 = vmatpush3.bf16.msra.mxu0 %v18785_v63  ;;  %14810 = vmatprep.mubr.bf16.mxu0 %v16179_v58  ;;  %v16202_v63 = vld [vmem:[%s18802_s27 + $0xd8] sm:$0xff]  }
0x194b   :  { %14824 = vmatprep.subr.bf16.mxu0 %v18783_v57  ;;  %v9615_v17 = vpop.permute.xlu1 %9614 }
0x194c   :  { %v9613_v36 = vpop.permute.xlu0 %9612 }
0x194e   :  { %14825 = vmatpush3.bf16.msra.mxu0 %v18783_v57  ;;  %v16200_v57 = vld [vmem:[%s18802_s27 + $0xc8] sm:$0xff]  }
0x194f   :  { %14826 = vmatprep.subr.bf16.mxu0 %v18793_v1  ;;  %v9619_v32 = vpop.permute.xlu1 %9618 }
0x1950   :  { %v9617_v37 = vpop.permute.xlu0 %9616 }
0x1951   :  { %14811 = vmatmul.mubr.bf16.gmra.mrb[32].mxu0 %v16180_v60 }
0x1952   :  { %14827 = vmatpush3.bf16.msra.mxu0 %v18793_v1  ;;  %14814 = vmatprep.mubr.bf16.mxu0 %v16181_v55 }
0x1953   :  { %14828 = vmatprep.subr.bf16.mxu0 %v18791_v46  ;;  %v9623_v29 = vpop.permute.xlu1 %9622 }
0x1954   :  { %v9621_v38 = vpop.permute.xlu0 %9620 }
0x1956   :  { %14829 = vmatpush3.bf16.msra.mxu0 %v18791_v46  ;;  %v16206_v46 = vld [vmem:[%s18802_s27 + $0xf8] sm:$0xff]  }
0x1957   :  { %14830 = vmatprep.subr.bf16.mxu0 %v18807_v34  ;;  %v9627_v59 = vpop.permute.xlu1 %9626 }
0x1958   :  { %v9625_v40 = vpop.permute.xlu0 %9624 }
0x1959   :  { %14815 = vmatmul.mubr.bf16.gmra.mrb[36].mxu0 %v16182_v47 }
0x195a   :  { %14831 = vmatpush3.bf16.msra.mxu0 %v18807_v34  ;;  %14834 = vmatprep.mubr.bf16.mxu0 %v16183_v33 }
0x195b   :  { %14832 = vmatprep.subr.bf16.mxu0 %v18804_v25 }
0x195e   :  { %14833 = vmatpush3.bf16.msra.mxu0 %v18804_v25 }
0x195f   :  { %14850 = vmatprep.subr.bf16.mxu0 %v9411_v31 }
0x1961   :  { %14835 = vmatmul.mubr.bf16.vlgmr.msra.gmra.mrb[24].mxu0 %v16184_v9 }
0x1962   :  { %14851 = vmatpush3.bf16.msra.mxu0 %v9411_v31  ;;  %14838 = vmatprep.mubr.bf16.mxu0 %v16185_v28 }
0x1963   :  { %14852 = vmatprep.subr.bf16.mxu0 %v9413_v4 }
0x1966   :  { %14853 = vmatpush3.bf16.msra.mxu0 %v9413_v4 }
0x1967   :  { %14854 = vmatprep.subr.bf16.mxu0 %v9415_v52 }
0x1969   :  { %14839 = vmatmul.mubr.bf16.gmra.mrb[28].mxu0 %v16186_v27 }
0x196a   :  { %14855 = vmatpush3.bf16.msra.mxu0 %v9415_v52  ;;  %14842 = vmatprep.mubr.bf16.mxu0 %v16187_v12 }
0x196b   :  { %14856 = vmatprep.subr.bf16.mxu0 %v9417_v53 }
0x196e   :  { %14857 = vmatpush3.bf16.msra.mxu0 %v9417_v53 }
0x196f   :  { %14858 = vmatprep.subr.bf16.mxu0 %v9419_v23 }
0x1971   :  { %14843 = vmatmul.mubr.bf16.gmra.mrb[32].mxu0 %v16188_v24 }
0x1972   :  { %14859 = vmatpush3.bf16.msra.mxu0 %v9419_v23  ;;  %14846 = vmatprep.mubr.bf16.mxu0 %v16189_v2 }
0x1973   :  { %14860 = vmatprep.subr.bf16.mxu0 %v9421_v20 }
0x1976   :  { %14861 = vmatpush3.bf16.msra.mxu0 %v9421_v20 }
0x1977   :  { %14862 = vmatprep.subr.bf16.mxu0 %v9423_v10 }
0x1979   :  { %14847 = vmatmul.mubr.bf16.gmra.mrb[36].mxu0 %v16190_v35 }
0x197a   :  { %14863 = vmatpush3.bf16.msra.mxu0 %v9423_v10  ;;  %14866 = vmatprep.mubr.bf16.mxu0 %v16191_v7 }
0x197b   :  { %14864 = vmatprep.subr.bf16.mxu0 %v9425_v54 }
0x197e   :  { %14865 = vmatpush3.bf16.msra.mxu0 %v9425_v54 }
0x197f   :  { %14882 = vmatprep.subr.bf16.mxu0 %v9613_v36 }
0x1981   :  { %14867 = vmatmul.mubr.bf16.vlgmr.msra.gmra.mrb[24].mxu0 %v16192_v16 }
0x1982   :  { %14883 = vmatpush3.bf16.msra.mxu0 %v9613_v36  ;;  %14870 = vmatprep.mubr.bf16.mxu0 %v16193_v48 }
0x1983   :  { %14884 = vmatprep.subr.bf16.mxu0 %v9615_v17 }
0x1986   :  { %14885 = vmatpush3.bf16.msra.mxu0 %v9615_v17 }
0x1987   :  { %14886 = vmatprep.subr.bf16.mxu0 %v9617_v37 }
0x1989   :  { %14871 = vmatmul.mubr.bf16.gmra.mrb[28].mxu0 %v16194_v11 }
0x198a   :  { %14887 = vmatpush3.bf16.msra.mxu0 %v9617_v37  ;;  %14874 = vmatprep.mubr.bf16.mxu0 %v16195_v22 }
0x198b   :  { %14888 = vmatprep.subr.bf16.mxu0 %v9619_v32 }
0x198e   :  { %14889 = vmatpush3.bf16.msra.mxu0 %v9619_v32 }
0x198f   :  { %14890 = vmatprep.subr.bf16.mxu0 %v9621_v38 }
0x1991   :  { %14875 = vmatmul.mubr.bf16.gmra.mrb[32].mxu0 %v16196_v45 }
0x1992   :  { %14891 = vmatpush3.bf16.msra.mxu0 %v9621_v38  ;;  %14878 = vmatprep.mubr.bf16.mxu0 %v16197_v0 }
0x1993   :  { %14892 = vmatprep.subr.bf16.mxu0 %v9623_v29 }
0x1996   :  { %14893 = vmatpush3.bf16.msra.mxu0 %v9623_v29 }
0x1997   :  { %14894 = vmatprep.subr.bf16.mxu0 %v9625_v40 }
0x1999   :  { %14879 = vmatmul.mubr.bf16.gmra.mrb[36].mxu0 %v16198_v51 }
0x199a   :  { %14895 = vmatpush3.bf16.msra.mxu0 %v9625_v40  ;;  %14898 = vmatprep.mubr.bf16.mxu0 %v16199_v8 }
0x199b   :  { %14896 = vmatprep.subr.bf16.mxu0 %v9627_v59 }
0x199e   :  { %14897 = vmatpush3.bf16.msra.mxu0 %v9627_v59 }
0x19a1   :  { %14899 = vmatmul.mubr.bf16.vlgmr.msra.gmra.mrb[24].mxu0 %v16200_v57 }
0x19a2   :  { %14902 = vmatprep.mubr.bf16.mxu0 %v16201_v50 }
0x19a9   :  { %14903 = vmatmul.mubr.bf16.gmra.mrb[28].mxu0 %v16202_v63 }
0x19aa   :  { %14906 = vmatprep.mubr.bf16.mxu0 %v16203_v39  ;;  %v19005_v39 = vld [vmem:[%s18990_s29] sm:$0xff] }
0x19ab   :  { %14946 = vmatprep.mubr.f32.mxu1 %v19005_v39 }
0x19b1   :  { %14907 = vmatmul.mubr.bf16.gmra.mrb[32].mxu0 %v16204_v3 }
0x19b2   :  { %14910 = vmatprep.mubr.bf16.mxu0 %v16205_v15 }
0x19b9   :  { %14911 = vmatmul.mubr.bf16.gmra.mrb[36].mxu0 %v16206_v46 }
0x1a74   :  { %v18892_v21 = vpop.f32.mrb[24].mxu0 }
0x1a75   :  { %v18894_v1 = vpop.f32.mrb[25].mxu0  ;;  %v9755_v26 = vsel %vm1370_vm2, %v18892_v21, 0.0  ;;  %v9799_v53 = vmul.f32 %v18892_v21, %v18892_v21 }
0x1a76   :  { %v18896_v18 = vpop.f32.mrb[26].mxu0  ;;  %v9749_v56 = vsel %vm1370_vm2, %v18894_v1, 0.0  ;;  %v9797_v27 = vmul.f32 %v18894_v1, %v18894_v1 }
0x1a77   :  { %9750 = vadd.xlane.f32.xlu0 %v9749_v56  ;;  %v18900_v14 = vpop.f32.mrb[27].mxu0  ;;  %v9758_v43 = vsel %vm1370_vm2, %v18896_v18, 0.0  ;;  %v9800_v20 = vmul.f32 %v18896_v18, %v18896_v18  ;;  %v9819_v10 = vsel %vm1370_vm2, %v9799_v53, 0.0 }
0x1a78   :  { %v9752_v25 = vsel %vm1370_vm2, %v18900_v14, 0.0  ;;  %v9798_v24 = vmul.f32 %v18900_v14, %v18900_v14  ;;  %v9813_v23 = vsel %vm1370_vm2, %v9797_v27, 0.0 }
0x1a79   :  { %9753 = vadd.xlane.f32.xlu1 %v9752_v25  ;;  %v9822_v48 = vsel %vm1370_vm2, %v9800_v20, 0.0 }
0x1a7a   :  { %v9816_v7 = vsel %vm1370_vm2, %v9798_v24, 0.0 }
0x1a7b   :  { %9756 = vadd.xlane.f32.xlu0 %v9755_v26 }
0x1a7c   :  { %v18906_v41 = vpop.f32.mrb[28].mxu0 }
0x1a7d   :  { %v18908_v34 = vpop.f32.mrb[29].mxu0  ;;  %v9767_v6 = vsel %vm1370_vm2, %v18906_v41, 0.0  ;;  %v9803_v54 = vmul.f32 %v18906_v41, %v18906_v41 }
0x1a7e   :  { %v18910_v30 = vpop.f32.mrb[30].mxu0  ;;  %v9761_v5 = vsel %vm1370_vm2, %v18908_v34, 0.0  ;;  %v9801_v35 = vmul.f32 %v18908_v34, %v18908_v34 }
0x1a7f   :  { %9759 = vadd.xlane.f32.xlu0 %v9758_v43  ;;  %9762 = vadd.xlane.f32.xlu1 %v9761_v5  ;;  %v18916_v42 = vpop.f32.mrb[31].mxu0  ;;  %v9770_v61 = vsel %vm1370_vm2, %v18910_v30, 0.0  ;;  %v9804_v17 = vmul.f32 %v18910_v30, %v18910_v30  ;;  %v9831_v37 = vsel %vm1370_vm2, %v9803_v54, 0.0 }
0x1a80   :  { %v9764_v19 = vsel %vm1370_vm2, %v18916_v42, 0.0  ;;  %v9802_v16 = vmul.f32 %v18916_v42, %v18916_v42  ;;  %v9825_v36 = vsel %vm1370_vm2, %v9801_v35, 0.0 }
0x1a81   :  { %v9834_v0 = vsel %vm1370_vm2, %v9804_v17, 0.0  ;;  %v19014_v17 = vld [vmem:[%s18990_s29 + $0x8] sm:$0xff] }
0x1a82   :  { %v9828_v22 = vsel %vm1370_vm2, %v9802_v16, 0.0 }
0x1a83   :  { %9768 = vadd.xlane.f32.xlu1 %v9767_v6  ;;  %9765 = vadd.xlane.f32.xlu0 %v9764_v19 }
0x1a84   :  { %v18922_v49 = vpop.f32.mrb[32].mxu0 }
0x1a85   :  { %v18924_v62 = vpop.f32.mrb[33].mxu0  ;;  %v9779_v60 = vsel %vm1370_vm2, %v18922_v49, 0.0  ;;  %v9807_v32 = vmul.f32 %v18922_v49, %v18922_v49 }
0x1a86   :  { %v18926_v44 = vpop.f32.mrb[34].mxu0  ;;  %v9773_v13 = vsel %vm1370_vm2, %v18924_v62, 0.0  ;;  %v9805_v11 = vmul.f32 %v18924_v62, %v18924_v62 }
0x1a87   :  { %9771 = vadd.xlane.f32.xlu0 %v9770_v61  ;;  %9774 = vadd.xlane.f32.xlu1 %v9773_v13  ;;  %v18932_v58 = vpop.f32.mrb[35].mxu0  ;;  %v9782_v31 = vsel %vm1370_vm2, %v18926_v44, 0.0  ;;  %v9808_v29 = vmul.f32 %v18926_v44, %v18926_v44  ;;  %v9843_v40 = vsel %vm1370_vm2, %v9807_v32, 0.0 }
0x1a88   :  { %v9776_v55 = vsel %vm1370_vm2, %v18932_v58, 0.0  ;;  %v9806_v45 = vmul.f32 %v18932_v58, %v18932_v58  ;;  %v9837_v38 = vsel %vm1370_vm2, %v9805_v11, 0.0 }
0x1a89   :  { %v9846_v63 = vsel %vm1370_vm2, %v9808_v29, 0.0 }
0x1a8a   :  { %v9840_v8 = vsel %vm1370_vm2, %v9806_v45, 0.0  ;;  %v9864_v45 = vld [vmem:[%s18990_s29 + $0x18] sm:$0xff] }
0x1a8b   :  { %9780 = vadd.xlane.f32.xlu1 %v9779_v60  ;;  %9777 = vadd.xlane.f32.xlu0 %v9776_v55 }
0x1a8c   :  { %v18938_v47 = vpop.f32.mrb[36].mxu0 }
0x1a8d   :  { %v18940_v33 = vpop.f32.mrb[37].mxu0  ;;  %v9791_v52 = vsel %vm1370_vm2, %v18938_v47, 0.0  ;;  %v9811_v59 = vmul.f32 %v18938_v47, %v18938_v47 }
0x1a8e   :  { %v18942_v9 = vpop.f32.mrb[38].mxu0  ;;  %v9785_v28 = vsel %vm1370_vm2, %v18940_v33, 0.0  ;;  %v9809_v51 = vmul.f32 %v18940_v33, %v18940_v33 }
0x1a8f   :  { %9783 = vadd.xlane.f32.xlu0 %v9782_v31  ;;  %9786 = vadd.xlane.f32.xlu1 %v9785_v28  ;;  %v18948_v4 = vpop.f32.mrb[39].mxu0  ;;  %v9794_v2 = vsel %vm1370_vm2, %v18942_v9, 0.0  ;;  %v9812_v3 = vmul.f32 %v18942_v9, %v18942_v9  ;;  %v9855_v15 = vsel %vm1370_vm2, %v9811_v59, 0.0  ;;  %v9867_v59 = vld [vmem:[%s18990_s29 + $0x30] sm:$0xff] }
0x1a90   :  { %v9788_v12 = vsel %vm1370_vm2, %v18948_v4, 0.0  ;;  %v9810_v57 = vmul.f32 %v18948_v4, %v18948_v4  ;;  %v9849_v50 = vsel %vm1370_vm2, %v9809_v51, 0.0 }
0x1a91   :  { %v9858_v56 = vsel %vm1370_vm2, %v9812_v3, 0.0 }
0x1a92   :  { %v9852_v46 = vsel %vm1370_vm2, %v9810_v57, 0.0 }
0x1a93   :  { %9792 = vadd.xlane.f32.xlu1 %v9791_v52  ;;  %9789 = vadd.xlane.f32.xlu0 %v9788_v12 }
0x1a97   :  { %9814 = vadd.xlane.f32.xlu1 %v9813_v23  ;;  %9795 = vadd.xlane.f32.xlu0 %v9794_v2 }
0x1a9b   :  { %9820 = vadd.xlane.f32.xlu1 %v9819_v10  ;;  %9817 = vadd.xlane.f32.xlu0 %v9816_v7 }
0x1a9f   :  { %9826 = vadd.xlane.f32.xlu1 %v9825_v36  ;;  %9823 = vadd.xlane.f32.xlu0 %v9822_v48 }
0x1aa3   :  { %9832 = vadd.xlane.f32.xlu1 %v9831_v37  ;;  %9829 = vadd.xlane.f32.xlu0 %v9828_v22  ;;  %v19017_v37 = vld [vmem:[%s18990_s29 + $0x10] sm:$0xff] }
0x1aa7   :  { %9838 = vadd.xlane.f32.xlu1 %v9837_v38  ;;  %9835 = vadd.xlane.f32.xlu0 %v9834_v0  ;;  %v9865_v0 = vld [vmem:[%s18990_s29 + $0x20] sm:$0xff] }
0x1aab   :  { %9844 = vadd.xlane.f32.xlu1 %v9843_v40  ;;  %9841 = vadd.xlane.f32.xlu0 %v9840_v8  ;;  %v9866_v40 = vld [vmem:[%s18990_s29 + $0x28] sm:$0xff] }
0x1aaf   :  { %9850 = vadd.xlane.f32.xlu1 %v9849_v50  ;;  %9847 = vadd.xlane.f32.xlu0 %v9846_v63  ;;  %v9868_v63 = vld [vmem:[%s18990_s29 + $0x38] sm:$0xff] }
0x1ab3   :  { %9856 = vadd.xlane.f32.xlu1 %v9855_v15  ;;  %9853 = vadd.xlane.f32.xlu0 %v9852_v46  ;;  %v9869_v15 = vld [vmem:[%s18990_s29 + $0x40] sm:$0xff] }
0x1ab7   :  { %9859 = vadd.xlane.f32.xlu0 %v9858_v56 }
0x1b04   :  { %v9751_v25 = vpop.xlane.xlu0 %9750 }
0x1b06   :  { %v9754_v26 = vpop.xlane.xlu1 %9753 }
0x1b07   :  { %v15460_v43 = vpack.c.bf16 %v9754_v26, %v9751_v25  ;;  %v9870_v25 = vld [vmem:[%s18990_s29 + $0x48] sm:$0xff] }
0x1b08   :  { %v9757_v5 = vpop.xlane.xlu0 %9756 }
0x1b09   :  { %15461 = vmatprep.subr.bf16.mxu1 %v15460_v43 }
0x1b0a   :  { %15463 = vmatpush3.bf16.msra.mxu1 %v15460_v43  ;;  %v9871_v43 = vld [vmem:[%s18990_s29 + $0x50] sm:$0xff] }
0x1b0c   :  { %v9760_v6 = vpop.xlane.xlu0 %9759  ;;  %v9763_v19 = vpop.xlane.xlu1 %9762 }
0x1b0d   :  { %v15464_v61 = vpack.c.bf16 %v9760_v6, %v9757_v5  ;;  %v9872_v6 = vld [vmem:[%s18990_s29 + $0x58] sm:$0xff] }
0x1b0f   :  { %15465 = vmatprep.subr.bf16.mxu1 %v15464_v61 }
0x1b10   :  { %15467 = vmatpush3.bf16.msra.mxu1 %v15464_v61  ;;  %v9769_v13 = vpop.xlane.xlu1 %9768  ;;  %v9766_v60 = vpop.xlane.xlu0 %9765  ;;  %v9873_v61 = vld [vmem:[%s18990_s29 + $0x60] sm:$0xff] }
0x1b11   :  { %v15468_v55 = vpack.c.bf16 %v9766_v60, %v9763_v19 }
0x1b13   :  { %15469 = vmatprep.subr.bf16.mxu1 %v15468_v55 }
0x1b14   :  { %15471 = vmatpush3.bf16.msra.mxu1 %v15468_v55  ;;  %v9772_v31 = vpop.xlane.xlu0 %9771  ;;  %v9775_v28 = vpop.xlane.xlu1 %9774  ;;  %v9874_v55 = vld [vmem:[%s18990_s29 + $0x68] sm:$0xff] }
0x1b15   :  { %v15472_v27 = vpack.c.bf16 %v9772_v31, %v9769_v13 }
0x1b17   :  { %15473 = vmatprep.subr.bf16.mxu1 %v15472_v27 }
0x1b18   :  { %15475 = vmatpush3.bf16.msra.mxu1 %v15472_v27  ;;  %v9781_v52 = vpop.xlane.xlu1 %9780  ;;  %v9778_v12 = vpop.xlane.xlu0 %9777 }
0x1b19   :  { %v15476_v53 = vpack.c.bf16 %v9778_v12, %v9775_v28  ;;  %v9875_v28 = vld [vmem:[%s18990_s29 + $0x70] sm:$0xff]  ;;  %v9876_v12 = vld [vmem:[%s18990_s29 + $0x78] sm:$0xff] }
0x1b1b   :  { %15477 = vmatprep.subr.bf16.mxu1 %v15476_v53 }
0x1b1c   :  { %15479 = vmatpush3.bf16.msra.mxu1 %v15476_v53  ;;  %v9784_v24 = vpop.xlane.xlu0 %9783  ;;  %v9787_v23 = vpop.xlane.xlu1 %9786 }
0x1b1d   :  { %v15480_v2 = vpack.c.bf16 %v9784_v24, %v9781_v52 }
0x1b1f   :  { %15481 = vmatprep.subr.bf16.mxu1 %v15480_v2 }
0x1b20   :  { %15483 = vmatpush3.bf16.msra.mxu1 %v15480_v2  ;;  %v9793_v20 = vpop.xlane.xlu1 %9792  ;;  %v9790_v35 = vpop.xlane.xlu0 %9789 }
0x1b21   :  { %v15484_v10 = vpack.c.bf16 %v9790_v35, %v9787_v23 }
0x1b23   :  { %15485 = vmatprep.subr.bf16.mxu1 %v15484_v10 }
0x1b24   :  { %v9815_v7 = vpop.xlane.xlu1 %9814  ;;  %15487 = vmatpush3.bf16.msra.mxu1 %v15484_v10  ;;  %v9796_v54 = vpop.xlane.xlu0 %9795 }
0x1b25   :  { %v15488_v16 = vpack.c.bf16 %v9796_v54, %v9793_v20 }
0x1b27   :  { %15489 = vmatprep.subr.bf16.mxu1 %v15488_v16 }
0x1b28   :  { %v9821_v36 = vpop.xlane.xlu1 %9820  ;;  %15491 = vmatpush3.bf16.msra.mxu1 %v15488_v16  ;;  %v9818_v48 = vpop.xlane.xlu0 %9817 }
0x1b29   :  { %v15492_v11 = vpack.c.bf16 %v9818_v48, %v9815_v7 }
0x1b2b   :  { %14947 = vmatmul.mubr.f32.vlgmr.msra.gmra.mrb[116].mxu1 %v19014_v17  ;;  %15493 = vmatprep.subr.bf16.mxu1 %v15492_v11 }
0x1b2c   :  { %v9827_v22 = vpop.xlane.xlu1 %9826  ;;  %15495 = vmatpush3.bf16.msra.mxu1 %v15492_v11  ;;  %v9824_v32 = vpop.xlane.xlu0 %9823  ;;  %14949 = vmatprep.mubr.f32.mxu1 %v19017_v37 }
0x1b2d   :  { %v15496_v38 = vpack.c.bf16 %v9824_v32, %v9821_v36 }
0x1b2f   :  { %14950 = vmatmul.mubr.f32.gmra.mrb[118].mxu1 %v9864_v45  ;;  %15497 = vmatprep.subr.bf16.mxu1 %v15496_v38 }
0x1b30   :  { %v9833_v29 = vpop.xlane.xlu1 %9832  ;;  %15499 = vmatpush3.bf16.msra.mxu1 %v15496_v38  ;;  %v9830_v51 = vpop.xlane.xlu0 %9829  ;;  %14952 = vmatprep.mubr.f32.mxu1 %v9865_v0 }
0x1b31   :  { %v15500_v8 = vpack.c.bf16 %v9830_v51, %v9827_v22 }
0x1b33   :  { %14953 = vmatmul.mubr.f32.gmra.mrb[120].mxu1 %v9866_v40  ;;  %15501 = vmatprep.subr.bf16.mxu1 %v15500_v8 }
0x1b34   :  { %v9839_v57 = vpop.xlane.xlu1 %9838  ;;  %15503 = vmatpush3.bf16.msra.mxu1 %v15500_v8  ;;  %v9836_v50 = vpop.xlane.xlu0 %9835  ;;  %14955 = vmatprep.mubr.f32.mxu1 %v9867_v59 }
0x1b35   :  { %v15504_v3 = vpack.c.bf16 %v9836_v50, %v9833_v29 }
0x1b37   :  { %14956 = vmatmul.mubr.f32.gmra.mrb[122].mxu1 %v9868_v63  ;;  %15505 = vmatprep.subr.bf16.mxu1 %v15504_v3 }
0x1b38   :  { %v9845_v46 = vpop.xlane.xlu1 %9844  ;;  %15507 = vmatpush3.bf16.msra.mxu1 %v15504_v3  ;;  %v9842_v56 = vpop.xlane.xlu0 %9841  ;;  %14958 = vmatprep.mubr.f32.mxu1 %v9869_v15 }
0x1b39   :  { %v15508_v26 = vpack.c.bf16 %v9842_v56, %v9839_v57 }
0x1b3b   :  { %14959 = vmatmul.mubr.f32.gmra.mrb[124].mxu1 %v9870_v25  ;;  %15509 = vmatprep.subr.bf16.mxu1 %v15508_v26 }
0x1b3c   :  { %15511 = vmatpush3.bf16.msra.mxu1 %v15508_v26  ;;  %v9848_v5 = vpop.xlane.xlu0 %9847  ;;  %14961 = vmatprep.mubr.f32.mxu1 %v9871_v43  ;;  %v9851_v13 = vpop.xlane.xlu1 %9850 }
0x1b3d   :  { %v15512_v19 = vpack.c.bf16 %v9848_v5, %v9845_v46 }
0x1b3f   :  { %14962 = vmatmul.mubr.f32.gmra.mrb[126].mxu1 %v9872_v6  ;;  %15513 = vmatprep.subr.bf16.mxu1 %v15512_v19 }
0x1b40   :  { %15515 = vmatpush3.bf16.msra.mxu1 %v15512_v19  ;;  %v9854_v60 = vpop.xlane.xlu0 %9853  ;;  %14964 = vmatprep.mubr.f32.mxu1 %v9873_v61  ;;  %v9857_v27 = vpop.xlane.xlu1 %9856 }
0x1b41   :  { %v15516_v31 = vpack.c.bf16 %v9854_v60, %v9851_v13 }
0x1b43   :  { %14965 = vmatmul.mubr.f32.gmra.mrb[128].mxu1 %v9874_v55  ;;  %15517 = vmatprep.subr.bf16.mxu1 %v15516_v31 }
0x1b44   :  { %15519 = vmatpush3.bf16.msra.mxu1 %v15516_v31  ;;  %v9860_v52 = vpop.xlane.xlu0 %9859  ;;  %14967 = vmatprep.mubr.f32.mxu1 %v9875_v28 }
0x1b45   :  { %v15520_v53 = vpack.c.bf16 %v9860_v52, %v9857_v27 }
0x1b47   :  { %14968 = vmatmul.mubr.f32.gmra.mrb[130].mxu1 %v9876_v12  ;;  %15521 = vmatprep.subr.bf16.mxu1 %v15520_v53 }
0x1b48   :  { %15523 = vmatpush3.bf16.msra.mxu1 %v15520_v53  ;;  %15002 = vmatprep.mubr.f32.mxu1 %v19005_v39 }
0x1b4b   :  { %15003 = vmatmul.mubr.f32.vlgmr.msra.gmra.mrb[132].mxu1 %v19014_v17 }
0x1b4c   :  { %15005 = vmatprep.mubr.f32.mxu1 %v19017_v37 }
0x1b4f   :  { %15006 = vmatmul.mubr.f32.gmra.mrb[134].mxu1 %v9864_v45 }
0x1b50   :  { %15008 = vmatprep.mubr.f32.mxu1 %v9865_v0 }
0x1b53   :  { %15009 = vmatmul.mubr.f32.gmra.mrb[136].mxu1 %v9866_v40 }
0x1b54   :  { %15011 = vmatprep.mubr.f32.mxu1 %v9867_v59 }
0x1b57   :  { %15012 = vmatmul.mubr.f32.gmra.mrb[138].mxu1 %v9868_v63 }
0x1b58   :  { %15014 = vmatprep.mubr.f32.mxu1 %v9869_v15 }
0x1b5b   :  { %15015 = vmatmul.mubr.f32.gmra.mrb[140].mxu1 %v9870_v25 }
0x1b5c   :  { %15017 = vmatprep.mubr.f32.mxu1 %v9871_v43 }
0x1b5f   :  { %15018 = vmatmul.mubr.f32.gmra.mrb[142].mxu1 %v9872_v6 }
0x1b60   :  { %15020 = vmatprep.mubr.f32.mxu1 %v9873_v61 }
0x1b63   :  { %15021 = vmatmul.mubr.f32.gmra.mrb[144].mxu1 %v9874_v55 }
0x1b64   :  { %15023 = vmatprep.mubr.f32.mxu1 %v9875_v28 }
0x1b67   :  { %15024 = vmatmul.mubr.f32.gmra.mrb[146].mxu1 %v9876_v12 }
0x1bfe   :  { %v14948_v24 = vpop.f32.mrb[116].mxu1 }
0x1bff   :  { %v9943_v23 = vpop.f32.mrb[117].mxu1  ;;  %v19045_v22 = vmul.f32 0.001953125, %v14948_v24 }
0x1c00   :  { %v19049_v45 = vmul.f32 0.001953125, %v9943_v23 }
0x1c01   :  { %v10200_v0 = vmul.f32 %v19045_v22, %v19045_v22 }
0x1c02   :  { %v14951_v39 = vpop.f32.mrb[118].mxu1  ;;  %v10199_v8 = vmul.f32 %v19049_v45, %v19049_v45 }
0x1c03   :  { %v9953_v2 = vpop.f32.mrb[119].mxu1  ;;  %v19053_v29 = vmul.f32 0.001953125, %v14951_v39 }
0x1c04   :  { %v19057_v59 = vmul.f32 0.001953125, %v9953_v2 }
0x1c05   :  { %v10202_v15 = vmul.f32 %v19053_v29, %v19053_v29 }
0x1c06   :  { %v14954_v20 = vpop.f32.mrb[120].mxu1  ;;  %v10201_v43 = vmul.f32 %v19057_v59, %v19057_v59 }
0x1c07   :  { %v9963_v35 = vpop.f32.mrb[121].mxu1  ;;  %v19061_v46 = vmul.f32 0.001953125, %v14954_v20 }
0x1c08   :  { %v19065_v5 = vmul.f32 0.001953125, %v9963_v35 }
0x1c09   :  { %v10204_v55 = vmul.f32 %v19061_v46, %v19061_v46 }
0x1c0a   :  { %v14957_v10 = vpop.f32.mrb[122].mxu1  ;;  %v10203_v12 = vmul.f32 %v19065_v5, %v19065_v5 }
0x1c0b   :  { %v9973_v7 = vpop.f32.mrb[123].mxu1  ;;  %v19074_v31 = vmul.f32 0.001953125, %v14957_v10 }
0x1c0c   :  { %v19078_v53 = vmul.f32 0.001953125, %v9973_v7 }
0x1c0d   :  { %v10206_v10 = vmul.f32 %v19074_v31, %v19074_v31 }
0x1c0e   :  { %v14960_v54 = vpop.f32.mrb[124].mxu1 }
0x1c0f   :  { %v9983_v16 = vpop.f32.mrb[125].mxu1  ;;  %v19080_v2 = vmul.f32 0.001953125, %v14960_v54 }
0x1c10   :  { %v19089_v7 = vmul.f32 0.001953125, %v9983_v16 }
0x1c12   :  { %v14963_v36 = vpop.f32.mrb[126].mxu1 }
0x1c13   :  { %v19037_v48 = vpop.f32.mrb[127].mxu1 }
0x1c14   :  { %v19099_v16 = vmul.f32 0.001953125, %v19037_v48 }
0x1c16   :  { %v19039_v17 = vpop.f32.mrb[128].mxu1 }
0x1c17   :  { %v19041_v11 = vpop.f32.mrb[129].mxu1 }
0x1c18   :  { %v19108_v48 = vmul.f32 0.001953125, %v19041_v11  ;;  %v10295_v11 = vld [vmem:[%s19085_s6] sm:$0xff] }
0x1c1a   :  { %v19043_v37 = vpop.f32.mrb[130].mxu1 }
0x1c1b   :  { %v19047_v32 = vpop.f32.mrb[131].mxu1 }
0x1c1e   :  { %v15004_v38 = vpop.f32.mrb[132].mxu1 }
0x1c1f   :  { %v10184_v51 = vmul.f32 0.001953125, %v15004_v38  ;;  %v10104_v40 = vpop.f32.mrb[133].mxu1 }
0x1c20   :  { %v10183_v57 = vmul.f32 0.001953125, %v10104_v40 }
0x1c21   :  { %v10216_v50 = vsub.f32 %v10184_v51, %v10200_v0  ;;  %v10205_v51 = vmul.f32 %v19078_v53, %v19078_v53 }
0x1c22   :  { %v10215_v63 = vsub.f32 %v10183_v57, %v10199_v8  ;;  %v15007_v3 = vpop.f32.mrb[134].mxu1  ;;  %v19093_v57 = vmul.f32 0.001953125, %v14963_v36  ;;  %v19105_v36 = vmul.f32 0.001953125, %v19039_v17  ;;  %v10234_v17 = vld [vmem:[%s19070_s4 + $0x18] sm:$0xff] }
0x1c23   :  { %v10248_v56 = vadd.f32 1e-05, %v10216_v50  ;;  %v10186_v25 = vmul.f32 0.001953125, %v15007_v3  ;;  %v10114_v26 = vpop.f32.mrb[135].mxu1  ;;  %v10208_v3 = vmul.f32 %v19080_v2, %v19080_v2 }
0x1c24   :  { %v10247_v6 = vadd.f32 1e-05, %v10215_v63  ;;  %v10185_v19 = vmul.f32 0.001953125, %v10114_v26  ;;  %v10232_v63 = vld [vmem:[%s19070_s4 + $0x8] sm:$0xff] }
0x1c25   :  { %16388 = vrsqrt.f32 %v10248_v56  ;;  %v10218_v61 = vsub.f32 %v10186_v25, %v10202_v15  ;;  %v10231_v25 = vld [vmem:[%s19070_s4] sm:$0xff] }
0x1c26   :  { %16390 = vrsqrt.f32 %v10247_v6  ;;  %v10217_v13 = vsub.f32 %v10185_v19, %v10201_v43  ;;  %v15010_v60 = vpop.f32.mrb[136].mxu1  ;;  %v10207_v43 = vmul.f32 %v19089_v7, %v19089_v7 }
0x1c27   :  { %v10250_v28 = vadd.f32 1e-05, %v10218_v61  ;;  %v10188_v27 = vmul.f32 0.001953125, %v15010_v60  ;;  %v10124_v52 = vpop.f32.mrb[137].mxu1 }
0x1c28   :  { %v10249_v24 = vadd.f32 1e-05, %v10217_v13  ;;  %v10187_v23 = vmul.f32 0.001953125, %v10124_v52 }
0x1c29   :  { %16392 = vrsqrt.f32 %v10250_v28  ;;  %v10220_v39 = vsub.f32 %v10188_v27, %v10204_v55  ;;  %v10210_v27 = vmul.f32 %v19093_v57, %v19093_v57 }
0x1c2a   :  { %16394 = vrsqrt.f32 %v10249_v24  ;;  %v10219_v20 = vsub.f32 %v10187_v23, %v10203_v12  ;;  %v15013_v35 = vpop.f32.mrb[138].mxu1  ;;  %v10209_v24 = vmul.f32 %v19099_v16, %v19099_v16 }
0x1c2b   :  { %v10252_v38 = vadd.f32 1e-05, %v10220_v39  ;;  %v10190_v0 = vmul.f32 0.001953125, %v15013_v35  ;;  %v10134_v54 = vpop.f32.mrb[139].mxu1  ;;  %v10233_v35 = vld [vmem:[%s19070_s4 + $0x10] sm:$0xff] }
0x1c2c   :  { %v10251_v40 = vadd.f32 1e-05, %v10219_v20  ;;  %v10189_v8 = vmul.f32 0.001953125, %v10134_v54 }
0x1c2d   :  { %16396 = vrsqrt.f32 %v10252_v38  ;;  %v10222_v50 = vsub.f32 %v10190_v0, %v10206_v10  ;;  %v10212_v38 = vmul.f32 %v19105_v36, %v19105_v36 }
0x1c2e   :  { %16398 = vrsqrt.f32 %v10251_v40  ;;  %v10221_v15 = vsub.f32 %v10189_v8, %v10205_v51  ;;  %v15016_v56 = vpop.f32.mrb[140].mxu1 }
0x1c2f   :  { %v16389_v26 = vpop.eup %16388  ;;  %v10254_v6 = vadd.f32 1e-05, %v10222_v50  ;;  %v10192_v19 = vmul.f32 0.001953125, %v15016_v56  ;;  %v10144_v61 = vpop.f32.mrb[141].mxu1  ;;  %v10211_v50 = vmul.f32 %v19108_v48, %v19108_v48 }
0x1c30   :  { %v16391_v13 = vpop.eup %16390  ;;  %v10253_v60 = vadd.f32 1e-05, %v10221_v15  ;;  %v10191_v55 = vmul.f32 0.001953125, %v10144_v61  ;;  %v10280_v28 = vmul.f32 %v16389_v26, %v10232_v63  ;;  %v10297_v61 = vld [vmem:[%s19085_s6 + $0x10] sm:$0xff] }
0x1c31   :  { %16400 = vrsqrt.f32 %v10254_v6  ;;  %v10224_v52 = vsub.f32 %v10192_v19, %v10208_v3  ;;  %v10279_v12 = vmul.f32 %v16391_v13, %v10231_v25  ;;  %v10296_v25 = vld [vmem:[%s19085_s6 + $0x8] sm:$0xff]  ;;  %v19126_v6 = vmul.f32 0.001953125, %v19043_v37  ;;  %v10235_v13 = vld [vmem:[%s19070_s4 + $0x20] sm:$0xff] }
0x1c32   :  { %16402 = vrsqrt.f32 %v10253_v60  ;;  %v10223_v23 = vsub.f32 %v10191_v55, %v10207_v43  ;;  %10350 = vperm.xlu0 %15938, %v10280_v28   ;;  %v15019_v39 = vpop.f32.mrb[142].mxu1  ;;  %v10312_v20 = vmul.f32 %v10280_v28, %v19045_v22  ;;  %v10236_v43 = vld [vmem:[%s19070_s4 + $0x28] sm:$0xff]  ;;  %v19134_v28 = vmul.f32 0.001953125, %v19047_v32 }
0x1c33   :  { %v16393_v10 = vpop.eup %16392  ;;  %v10256_v0 = vadd.f32 1e-05, %v10224_v52  ;;  %v10194_v54 = vmul.f32 0.001953125, %v15019_v39  ;;  %10345 = vperm.xlu1 %15939, %v10279_v12   ;;  %v10154_v51 = vpop.f32.mrb[143].mxu1  ;;  %v10311_v40 = vmul.f32 %v10279_v12, %v19049_v45 }
0x1c34   :  { %v16395_v8 = vpop.eup %16394  ;;  %v10255_v22 = vadd.f32 1e-05, %v10223_v23  ;;  %v10193_v63 = vmul.f32 0.001953125, %v10154_v51  ;;  %v10282_v3 = vmul.f32 %v16393_v10, %v10234_v17  ;;  %v10328_v39 = vsub.f32 %v10296_v25, %v10312_v20  ;;  %v10238_v10 = vld [vmem:[%s19070_s4 + $0x38] sm:$0xff]  ;;  %v10237_v51 = vld [vmem:[%s19070_s4 + $0x30] sm:$0xff] }
0x1c35   :  { %16404 = vrsqrt.f32 %v10256_v0  ;;  %v10226_v15 = vsub.f32 %v10194_v54, %v10210_v27  ;;  %v10327_v56 = vsub.f32 %v10295_v11, %v10311_v40  ;;  %v10281_v26 = vmul.f32 %v16395_v8, %v10233_v35 }
0x1c36   :  { %16406 = vrsqrt.f32 %v10255_v22  ;;  %v10225_v45 = vsub.f32 %v10193_v63, %v10209_v24  ;;  %v15022_v19 = vpop.f32.mrb[144].mxu1  ;;  %v19131_v60 = vmul.f32 %v10282_v3, %v19053_v29  ;;  %v10214_v20 = vmul.f32 %v19126_v6, %v19126_v6 }
0x1c37   :  { %v16397_v55 = vpop.eup %16396  ;;  %v10258_v27 = vadd.f32 1e-05, %v10226_v15  ;;  %v10196_v52 = vmul.f32 0.001953125, %v15022_v19  ;;  %10441 = vperm.xlu0 %15938, %v10327_v56   ;;  %10360 = vperm.xlu1 %15939, %v10282_v3   ;;  %v10164_v37 = vpop.f32.mrb[145].mxu1  ;;  %v10313_v12 = vmul.f32 %v10281_v26, %v19057_v59  ;;  %v10213_v3 = vmul.f32 %v19134_v28, %v19134_v28 }
0x1c38   :  { %v16399_v17 = vpop.eup %16398  ;;  %v10257_v24 = vadd.f32 1e-05, %v10225_v45  ;;  %v10195_v23 = vmul.f32 0.001953125, %v10164_v37  ;;  %v19137_v11 = vmul.f32 %v16397_v55, %v10236_v43  ;;  %v10240_v45 = vld [vmem:[%s19070_s4 + $0x48] sm:$0xff] }
0x1c39   :  { %16408 = vrsqrt.f32 %v10258_v27  ;;  %v10228_v29 = vsub.f32 %v10196_v52, %v10212_v38  ;;  %v10329_v35 = vsub.f32 %v10297_v61, %v10313_v12  ;;  %v10283_v32 = vmul.f32 %v16399_v17, %v10235_v13  ;;  %v10298_v61 = vld [vmem:[%s19085_s6 + $0x18] sm:$0xff]  ;;  %v10239_v13 = vld [vmem:[%s19070_s4 + $0x40] sm:$0xff] }
0x1c3a   :  { %16410 = vrsqrt.f32 %v10257_v24  ;;  %v10227_v0 = vsub.f32 %v10195_v23, %v10211_v50  ;;  %v15025_v54 = vpop.f32.mrb[146].mxu1  ;;  %v19143_v40 = vmul.f32 %v19137_v11, %v19061_v46  ;;  %v10330_v24 = vsub.f32 %v10298_v61, %v19131_v60  ;;  %v10310_v61 = vld [vmem:[%s19085_s6 + $0x78] sm:$0xff] }
0x1c3b   :  { %v16401_v59 = vpop.eup %16400  ;;  %v10260_v8 = vadd.f32 1e-05, %v10228_v29  ;;  %v10198_v22 = vmul.f32 0.001953125, %v15025_v54  ;;  %10446 = vperm.xlu1 %15939, %v10328_v39   ;;  %10451 = vperm.xlu0 %15938, %v10329_v35   ;;  %v10174_v38 = vpop.f32.mrb[147].mxu1  ;;  %v10315_v50 = vmul.f32 %v10283_v32, %v19065_v5  ;;  %v10242_v39 = vld [vmem:[%s19070_s4 + $0x58] sm:$0xff]  ;;  %v10241_v29 = vld [vmem:[%s19070_s4 + $0x50] sm:$0xff] }
0x1c3c   :  { %v16403_v63 = vpop.eup %16402  ;;  %v10259_v46 = vadd.f32 1e-05, %v10227_v0  ;;  %v10197_v15 = vmul.f32 0.001953125, %v10174_v38  ;;  %v10286_v56 = vmul.f32 %v16401_v59, %v10238_v10  ;;  %v10244_v54 = vld [vmem:[%s19070_s4 + $0x68] sm:$0xff]  ;;  %v16207_v38 = vld [vmem:[%s12106_s11] sm:$0xff]  }
0x1c3d   :  { %16412 = vrsqrt.f32 %v10260_v8  ;;  %v10230_v25 = vsub.f32 %v10198_v22, %v10214_v20  ;;  %v10285_v43 = vmul.f32 %v16403_v63, %v10237_v51  ;;  %v10243_v51 = vld [vmem:[%s19070_s4 + $0x60] sm:$0xff]  ;;  %15026 = vmatprep.subr.bf16.mxu1 %v16207_v38 }
0x1c3e   :  { %16414 = vrsqrt.f32 %v10259_v46  ;;  %v10229_v19 = vsub.f32 %v10197_v15, %v10213_v3  ;;  %v19154_v5 = vmul.f32 %v10286_v56, %v19074_v31  ;;  %v10299_v31 = vld [vmem:[%s19085_s6 + $0x20] sm:$0xff]  ;;  %v10246_v3 = vld [vmem:[%s19070_s4 + $0x78] sm:$0xff]  ;;  %v10300_v46 = vld [vmem:[%s19085_s6 + $0x28] sm:$0xff]  ;;  %15027 = vmatpush3.bf16.msra.mxu1 %v16207_v38 }
0x1c3f   :  { %v16405_v55 = vpop.eup %16404  ;;  %v10262_v27 = vadd.f32 1e-05, %v10230_v25  ;;  %10355 = vperm.xlu1 %15939, %v10281_v26   ;;  %10365 = vperm.xlu0 %15938, %v10283_v32   ;;  %v10317_v52 = vmul.f32 %v10285_v43, %v19078_v53  ;;  %v10331_v10 = vsub.f32 %v10299_v31, %v10315_v50  ;;  %v10245_v15 = vld [vmem:[%s19070_s4 + $0x70] sm:$0xff] }
0x1c40   :  { %v16407_v37 = vpop.eup %16406  ;;  %v10261_v12 = vadd.f32 1e-05, %v10229_v19  ;;  %v10288_v17 = vmul.f32 %v16405_v55, %v10240_v45  ;;  %v10332_v45 = vsub.f32 %v10300_v46, %v19143_v40  ;;  %v10305_v40 = vld [vmem:[%s19085_s6 + $0x50] sm:$0xff] }
0x1c41   :  { %16416 = vrsqrt.f32 %v10262_v27  ;;  %v10287_v23 = vmul.f32 %v16407_v37, %v10239_v13  ;;  %v10302_v13 = vld [vmem:[%s19085_s6 + $0x38] sm:$0xff]  ;;  %v10303_v27 = vld [vmem:[%s19085_s6 + $0x40] sm:$0xff] }
0x1c42   :  { %16418 = vrsqrt.f32 %v10261_v12  ;;  %v10320_v35 = vmul.f32 %v10288_v17, %v19080_v2  ;;  %v10301_v2 = vld [vmem:[%s19085_s6 + $0x30] sm:$0xff]  ;;  %v10304_v12 = vld [vmem:[%s19085_s6 + $0x48] sm:$0xff] }
0x1c43   :  { %v16409_v53 = vpop.eup %16408  ;;  %10456 = vperm.xlu1 %15939, %v10330_v24   ;;  %10375 = vperm.xlu0 %15938, %v10285_v43   ;;  %v10319_v26 = vmul.f32 %v10287_v23, %v19089_v7  ;;  %v10333_v63 = vsub.f32 %v10301_v2, %v10317_v52  ;;  %v10306_v24 = vld [vmem:[%s19085_s6 + $0x58] sm:$0xff] }
0x1c44   :  { %v16411_v60 = vpop.eup %16410  ;;  %v10290_v32 = vmul.f32 %v16409_v53, %v10242_v39  ;;  %v10309_v39 = vld [vmem:[%s19085_s6 + $0x70] sm:$0xff] }
0x1c45   :  { %v10289_v0 = vmul.f32 %v16411_v60, %v10241_v29  ;;  %v10335_v52 = vsub.f32 %v10303_v27, %v10319_v26 }
0x1c46   :  { %v10322_v59 = vmul.f32 %v10290_v32, %v19093_v57 }
0x1c47   :  { %v16413_v20 = vpop.eup %16412  ;;  %10370 = vperm.xlu1 %15939, %v19137_v11   ;;  %10461 = vperm.xlu0 %15938, %v10331_v10   ;;  %v10321_v8 = vmul.f32 %v10289_v0, %v19099_v16 }
0x1c48   :  { %v16415_v22 = vpop.eup %16414  ;;  %v10292_v7 = vmul.f32 %v16413_v20, %v10244_v54 }
0x1c49   :  { %v10291_v50 = vmul.f32 %v16415_v22, %v10243_v51  ;;  %v10337_v37 = vsub.f32 %v10305_v40, %v10321_v8 }
0x1c4a   :  { %v10324_v25 = vmul.f32 %v10292_v7, %v19105_v36 }
0x1c4b   :  { %v16417_v57 = vpop.eup %16416  ;;  %10380 = vperm.xlu1 %15939, %v10286_v56   ;;  %10471 = vperm.xlu0 %15938, %v10333_v63   ;;  %v10323_v11 = vmul.f32 %v10291_v50, %v19108_v48  ;;  %v10334_v48 = vsub.f32 %v10302_v13, %v19154_v5  ;;  %v10307_v5 = vld [vmem:[%s19085_s6 + $0x60] sm:$0xff] }
0x1c4c   :  { %v16419_v16 = vpop.eup %16418  ;;  %v10294_v43 = vmul.f32 %v16417_v57, %v10246_v3 }
0x1c4d   :  { %v10293_v19 = vmul.f32 %v16419_v16, %v10245_v15 }
0x1c4e   :  { %v10326_v55 = vmul.f32 %v10294_v43, %v19126_v6  ;;  %v10336_v6 = vsub.f32 %v10304_v12, %v10320_v35 }
0x1c4f   :  { %10466 = vperm.xlu1 %15939, %v10332_v45   ;;  %10385 = vperm.xlu0 %15938, %v10287_v23   ;;  %v10325_v36 = vmul.f32 %v10293_v19, %v19134_v28  ;;  %v10338_v28 = vsub.f32 %v10306_v24, %v10322_v59  ;;  %v10339_v23 = vsub.f32 %v10307_v5, %v10323_v11 }
0x1c50   :  { %v10342_v56 = vsub.f32 %v10310_v61, %v10326_v55 }
0x1c51   :  { %v10341_v31 = vsub.f32 %v10309_v39, %v10325_v36 }
0x1c53   :  { %10476 = vperm.xlu1 %15939, %v10334_v48   ;;  %10395 = vperm.xlu0 %15938, %v10289_v0  }
0x1c57   :  { %10390 = vperm.xlu1 %15939, %v10288_v17   ;;  %10481 = vperm.xlu0 %15938, %v10335_v52   ;;  %v10308_v17 = vld [vmem:[%s19085_s6 + $0x68] sm:$0xff] }
0x1c58   :  { %v10340_v29 = vsub.f32 %v10308_v17, %v10324_v25 }
0x1c5b   :  { %10400 = vperm.xlu1 %15939, %v10290_v32   ;;  %10491 = vperm.xlu0 %15938, %v10337_v37  }
0x1c5f   :  { %10486 = vperm.xlu1 %15939, %v10336_v6   ;;  %10405 = vperm.xlu0 %15938, %v10291_v50  }
0x1c63   :  { %10496 = vperm.xlu1 %15939, %v10338_v28   ;;  %10415 = vperm.xlu0 %15938, %v10293_v19  }
0x1c67   :  { %10410 = vperm.xlu1 %15939, %v10292_v7   ;;  %10501 = vperm.xlu0 %15938, %v10339_v23  }
0x1c6b   :  { %10420 = vperm.xlu1 %15939, %v10294_v43   ;;  %10511 = vperm.xlu0 %15938, %v10341_v31  }
0x1c6f   :  { %10506 = vperm.xlu1 %15939, %v10340_v29  }
0x1c73   :  { %10516 = vperm.xlu1 %15939, %v10342_v56  }
0x1cb1   :  { %v10351_v53 = vpop.permute.xlu0 %10350 }
0x1cb2   :  { %v10346_v35 = vpop.permute.xlu1 %10345  ;;  %v10424_v10 = vmul.f32 %v10351_v53, %v18900_v14 }
0x1cb3   :  { %v10423_v32 = vmul.f32 %v10346_v35, %v18894_v1 }
0x1cb6   :  { %v10442_v26 = vpop.permute.xlu0 %10441  ;;  %v10361_v60 = vpop.permute.xlu1 %10360 }
0x1cb7   :  { %v10519_v0 = vadd.f32 %v10442_v26, %v10423_v32  ;;  %v10426_v63 = vmul.f32 %v18896_v18, %v10361_v60 }
0x1cb9   :  { %v10535_v59 = vmax.f32 %v10519_v0, 0.0 }
0x1cba   :  { %v10447_v54 = vpop.permute.xlu1 %10446  ;;  %v10452_v2 = vpop.permute.xlu0 %10451 }
0x1cbb   :  { %v10520_v51 = vadd.f32 %v10447_v54, %v10424_v10 }
0x1cbd   :  { %v10536_v20 = vmax.f32 %v10520_v51, 0.0 }
0x1cbe   :  { %v10356_v8 = vpop.permute.xlu1 %10355  ;;  %v10366_v22 = vpop.permute.xlu0 %10365 }
0x1cbf   :  { %v10551_v7 = vpack.c.bf16 %v10536_v20, %v10535_v59  ;;  %v10425_v38 = vmul.f32 %v18892_v21, %v10356_v8  ;;  %v10427_v45 = vmul.f32 %v10366_v22, %v18908_v34 }
0x1cc1   :  { %v10521_v50 = vadd.f32 %v10452_v2, %v10425_v38  ;;  %15028 = vmatprep.mubr.msk.bf16.mxu1 %vm1370_vm2, %v10551_v7 }
0x1cc2   :  { %v10457_v3 = vpop.permute.xlu1 %10456  ;;  %v10376_v1 = vpop.permute.xlu0 %10375 }
0x1cc3   :  { %v10522_v46 = vadd.f32 %v10457_v3, %v10426_v63  ;;  %v10537_v14 = vmax.f32 %v10521_v50, 0.0  ;;  %v10429_v13 = vmul.f32 %v18906_v41, %v10376_v1 }
0x1cc5   :  { %v10538_v15 = vmax.f32 %v10522_v46, 0.0 }
0x1cc6   :  { %v10371_v25 = vpop.permute.xlu1 %10370  ;;  %v10462_v57 = vpop.permute.xlu0 %10461 }
0x1cc7   :  { %v10552_v11 = vpack.c.bf16 %v10538_v15, %v10537_v14  ;;  %v10428_v21 = vmul.f32 %v10371_v25, %v18916_v42  ;;  %v10523_v18 = vadd.f32 %v10462_v57, %v10427_v45 }
0x1cc9   :  { %15029 = vmatmul.mubr.msk.bf16.vlgmr.msra.gmra.mrb[148].mxu1 %vm1370_vm2, %v10552_v11  ;;  %v10539_v36 = vmax.f32 %v10523_v18, 0.0 }
0x1cca   :  { %v10381_v16 = vpop.permute.xlu1 %10380  ;;  %v10472_v43 = vpop.permute.xlu0 %10471 }
0x1ccb   :  { %v10430_v56 = vmul.f32 %v18910_v30, %v10381_v16  ;;  %v10525_v48 = vadd.f32 %v10472_v43, %v10429_v13 }
0x1ccd   :  { %v10541_v6 = vmax.f32 %v10525_v48, 0.0 }
0x1cce   :  { %v10467_v19 = vpop.permute.xlu1 %10466  ;;  %v10386_v61 = vpop.permute.xlu0 %10385 }
0x1ccf   :  { %v10524_v55 = vadd.f32 %v10467_v19, %v10428_v21  ;;  %v10431_v23 = vmul.f32 %v10386_v61, %v18924_v62 }
0x1cd1   :  { %v10540_v27 = vmax.f32 %v10524_v55, 0.0 }
0x1cd2   :  { %v10477_v52 = vpop.permute.xlu1 %10476  ;;  %v10396_v40 = vpop.permute.xlu0 %10395 }
0x1cd3   :  { %v10553_v37 = vpack.c.bf16 %v10540_v27, %v10539_v36  ;;  %v10526_v12 = vadd.f32 %v10477_v52, %v10430_v56  ;;  %v10433_v29 = vmul.f32 %v18922_v49, %v10396_v40 }
0x1cd5   :  { %v10542_v24 = vmax.f32 %v10526_v12, 0.0  ;;  %15032 = vmatprep.mubr.msk.bf16.mxu1 %vm1370_vm2, %v10553_v37 }
0x1cd6   :  { %v10391_v34 = vpop.permute.xlu1 %10390  ;;  %v10482_v42 = vpop.permute.xlu0 %10481 }
0x1cd7   :  { %v10554_v28 = vpack.c.bf16 %v10542_v24, %v10541_v6  ;;  %v10432_v30 = vmul.f32 %v10391_v34, %v18932_v58  ;;  %v10527_v39 = vadd.f32 %v10482_v42, %v10431_v23 }
0x1cd9   :  { %15033 = vmatmul.mubr.msk.bf16.gmra.mrb[152].mxu1 %vm1370_vm2, %v10554_v28  ;;  %v10543_v35 = vmax.f32 %v10527_v39, 0.0  ;;  %v16208_v28 = vld [vmem:[%s19242_s18 + $0x60] sm:$0xff]  }
0x1cda   :  { %v10401_v41 = vpop.permute.xlu1 %10400  ;;  %v10492_v5 = vpop.permute.xlu0 %10491 }
0x1cdb   :  { %v10434_v26 = vmul.f32 %v18926_v44, %v10401_v41  ;;  %v10529_v60 = vadd.f32 %v10492_v5, %v10433_v29 }
0x1cdd   :  { %v10545_v51 = vmax.f32 %v10529_v60, 0.0 }
0x1cde   :  { %v10487_v31 = vpop.permute.xlu1 %10486  ;;  %v10406_v17 = vpop.permute.xlu0 %10405 }
0x1cdf   :  { %v10528_v53 = vadd.f32 %v10487_v31, %v10432_v30  ;;  %v10435_v8 = vmul.f32 %v10406_v17, %v18940_v33 }
0x1ce1   :  { %v10544_v32 = vmax.f32 %v10528_v53, 0.0 }
0x1ce2   :  { %v10497_v10 = vpop.permute.xlu1 %10496  ;;  %v10416_v0 = vpop.permute.xlu0 %10415 }
0x1ce3   :  { %v10555_v54 = vpack.c.bf16 %v10544_v32, %v10543_v35  ;;  %v10530_v2 = vadd.f32 %v10497_v10, %v10434_v26  ;;  %v10437_v63 = vmul.f32 %v18938_v47, %v10416_v0 }
0x1ce5   :  { %v10546_v59 = vmax.f32 %v10530_v2, 0.0  ;;  %15036 = vmatprep.mubr.msk.bf16.mxu1 %vm1370_vm2, %v10555_v54 }
0x1ce6   :  { %v10411_v62 = vpop.permute.xlu1 %10410  ;;  %v10502_v20 = vpop.permute.xlu0 %10501 }
0x1ce7   :  { %v10556_v58 = vpack.c.bf16 %v10546_v59, %v10545_v51  ;;  %v10436_v44 = vmul.f32 %v10411_v62, %v18948_v4  ;;  %v10531_v22 = vadd.f32 %v10502_v20, %v10435_v8 }
0x1ce9   :  { %15037 = vmatmul.mubr.msk.bf16.gmra.mrb[156].mxu1 %vm1370_vm2, %v10556_v58  ;;  %v10547_v3 = vmax.f32 %v10531_v22, 0.0 }
0x1cea   :  { %v10421_v49 = vpop.permute.xlu1 %10420  ;;  %v10512_v7 = vpop.permute.xlu0 %10511 }
0x1ceb   :  { %v10438_v1 = vmul.f32 %v18942_v9, %v10421_v49  ;;  %v10533_v46 = vadd.f32 %v10512_v7, %v10437_v63 }
0x1ced   :  { %v10549_v11 = vmax.f32 %v10533_v46, 0.0 }
0x1cee   :  { %v10507_v38 = vpop.permute.xlu1 %10506 }
0x1cef   :  { %v10532_v50 = vadd.f32 %v10507_v38, %v10436_v44 }
0x1cf1   :  { %v10548_v14 = vmax.f32 %v10532_v50, 0.0 }
0x1cf2   :  { %v10517_v15 = vpop.permute.xlu1 %10516 }
0x1cf3   :  { %v10557_v25 = vpack.c.bf16 %v10548_v14, %v10547_v3  ;;  %v10534_v57 = vadd.f32 %v10517_v15, %v10438_v1  ;;  %v16209_v14 = vld [vmem:[%s19242_s18 + $0x68] sm:$0xff]   ;;  %v16210_v15 = vld [vmem:[%s19242_s18 + $0x70] sm:$0xff]  }
0x1cf5   :  { %v10550_v16 = vmax.f32 %v10534_v57, 0.0  ;;  %15040 = vmatprep.mubr.msk.bf16.mxu1 %vm1370_vm2, %v10557_v25  ;;  %v16211_v25 = vld [vmem:[%s19242_s18 + $0x78] sm:$0xff]   ;;  %v16212_v57 = vld [vmem:[%s19242_s18 + $0x80] sm:$0xff]  }
0x1cf7   :  { %v10558_v33 = vpack.c.bf16 %v10550_v16, %v10549_v11  ;;  %v16213_v11 = vld [vmem:[%s19242_s18 + $0x88] sm:$0xff]   ;;  %v16214_v16 = vld [vmem:[%s19242_s18 + $0x90] sm:$0xff]  }
0x1cf9   :  { %15041 = vmatmul.mubr.msk.bf16.gmra.mrb[160].mxu1 %vm1370_vm2, %v10558_v33  ;;  %v16215_v33 = vld [vmem:[%s19242_s18 + $0x98] sm:$0xff]  }
0x1cfa   :  { %15060 = vmatprep.mubr.bf16.mxu1 %v16208_v28  ;;  %v16230_v28 = vld [vmem:[%s19242_s18 + $0x50] sm:$0xff]  }
0x1d9c   :  { %v15030_v4 = vpop.f32.mrb[148].mxu1 }
0x1d9d   :  { %v10625_v43 = vpop.f32.mrb[149].mxu1 }
0x1d9e   :  { %v15031_v45 = vpop.f32.mrb[150].mxu1 }
0x1d9f   :  { %v19215_v47 = vpack.c.bf16 %v15031_v45, %v15030_v4  ;;  %v10628_v21 = vpop.f32.mrb[151].mxu1  ;;  %v16216_v4 = vld [vmem:[%s19242_s18 + $0xa0] sm:$0xff]  }
0x1da0   :  { %v19217_v18 = vpack.c.bf16 %v10628_v21, %v10625_v43  ;;  %v16217_v43 = vld [vmem:[%s19242_s18 + $0xa8] sm:$0xff]   ;;  %v16219_v21 = vld [vmem:[%s19242_s18 + $0xb8] sm:$0xff]  }
0x1da1   :  { %10827 = vrot.lane.b32.xlu1 %v19215_v47, %s16519_s14 }
0x1da2   :  { %10825 = vrot.lane.b32.xlu0 %v19217_v18, %s16519_s14 }
0x1dac   :  { %v15034_v9 = vpop.f32.mrb[152].mxu1 }
0x1dad   :  { %v10641_v19 = vpop.f32.mrb[153].mxu1 }
0x1dae   :  { %v15035_v61 = vpop.f32.mrb[154].mxu1 }
0x1daf   :  { %v19223_v13 = vpack.c.bf16 %v15035_v61, %v15034_v9  ;;  %v10644_v55 = vpop.f32.mrb[155].mxu1  ;;  %v16221_v9 = vld [vmem:[%s19242_s18 + $0x8] sm:$0xff]  }
0x1db0   :  { %v19225_v36 = vpack.c.bf16 %v10644_v55, %v10641_v19  ;;  %v16222_v19 = vld [vmem:[%s19242_s18 + $0x10] sm:$0xff]  }
0x1db1   :  { %10831 = vrot.lane.b32.xlu1 %v19223_v13, %s16519_s14 }
0x1db2   :  { %10829 = vrot.lane.b32.xlu0 %v19225_v36, %s16519_s14 }
0x1dbc   :  { %v15038_v56 = vpop.f32.mrb[156].mxu1 }
0x1dbd   :  { %v10657_v48 = vpop.f32.mrb[157].mxu1 }
0x1dbe   :  { %v15039_v27 = vpop.f32.mrb[158].mxu1 }
0x1dbf   :  { %v19231_v52 = vpack.c.bf16 %v15039_v27, %v15038_v56  ;;  %v10660_v40 = vpop.f32.mrb[159].mxu1 }
0x1dc0   :  { %v19233_v37 = vpack.c.bf16 %v10660_v40, %v10657_v48  ;;  %v16225_v48 = vld [vmem:[%s19242_s18 + $0x28] sm:$0xff]  }
0x1dc1   :  { %10835 = vrot.lane.b32.xlu1 %v19231_v52, %s16519_s14 }
0x1dc2   :  { %10833 = vrot.lane.b32.xlu0 %v19233_v37, %s16519_s14 }
0x1dcc   :  { %v15042_v12 = vpop.f32.mrb[160].mxu1 }
0x1dcd   :  { %v10673_v6 = vpop.f32.mrb[161].mxu1 }
0x1dce   :  { %v15043_v24 = vpop.f32.mrb[162].mxu1 }
0x1dcf   :  { %v19244_v34 = vpack.c.bf16 %v15043_v24, %v15042_v12  ;;  %v10676_v42 = vpop.f32.mrb[163].mxu1 }
0x1dd0   :  { %v19247_v41 = vpack.c.bf16 %v10676_v42, %v10673_v6  ;;  %v16228_v6 = vld [vmem:[%s19242_s18 + $0x40] sm:$0xff]  }
0x1dd1   :  { %10839 = vrot.lane.b32.xlu1 %v19244_v34, %s16519_s14 }
0x1dd2   :  { %10837 = vrot.lane.b32.xlu0 %v19247_v41, %s16519_s14  ;;  %s16563_s14 = smov 33  }
0x1dd3   :  { %s19272_s22 = sld [smem:[%s19425_s0 + %s16563_s14]]  }
0x1dd5   :  { %11278 = vrot.lane.b32.xlu1 %v19215_v47, %s16562_s19 }
0x1dd6   :  { %11276 = vrot.lane.b32.xlu0 %v19217_v18, %s16562_s19 }
0x1dd9   :  { %11282 = vrot.lane.b32.xlu1 %v19223_v13, %s16562_s19  ;;  %v11728_v5 = vld [vmem:[%s19272_s22 + $0x8] sm:$0xff]  ;;  %v11727_v23 = vld [vmem:[%s19272_s22] sm:$0xff]  ;;  %v11730_v30 = vld [vmem:[%s19272_s22 + $0x18] sm:$0xff] }
0x1dda   :  { %11280 = vrot.lane.b32.xlu0 %v19225_v36, %s16562_s19  ;;  %v11729_v39 = vld [vmem:[%s19272_s22 + $0x10] sm:$0xff]  ;;  %v11732_v31 = vld [vmem:[%s19272_s22 + $0x28] sm:$0xff]  ;;  %v11731_v17 = vld [vmem:[%s19272_s22 + $0x20] sm:$0xff] }
0x1ddb   :  { %v11734_v29 = vld [vmem:[%s19272_s22 + $0x38] sm:$0xff]  ;;  %v11733_v53 = vld [vmem:[%s19272_s22 + $0x30] sm:$0xff]  ;;  %v11736_v35 = vld [vmem:[%s19272_s22 + $0x48] sm:$0xff] }
0x1ddc   :  { %v11735_v26 = vld [vmem:[%s19272_s22 + $0x40] sm:$0xff]  ;;  %v11738_v60 = vld [vmem:[%s19272_s22 + $0x58] sm:$0xff]  ;;  %v11737_v32 = vld [vmem:[%s19272_s22 + $0x50] sm:$0xff] }
0x1ddd   :  { %11286 = vrot.lane.b32.xlu1 %v19231_v52, %s16562_s19  ;;  %v11740_v10 = vld [vmem:[%s19272_s22 + $0x68] sm:$0xff]  ;;  %v11739_v0 = vld [vmem:[%s19272_s22 + $0x60] sm:$0xff]  ;;  %v11742_v54 = vld [vmem:[%s19272_s22 + $0x78] sm:$0xff] }
0x1dde   :  { %11284 = vrot.lane.b32.xlu0 %v19233_v37, %s16562_s19  ;;  %v11741_v2 = vld [vmem:[%s19272_s22 + $0x70] sm:$0xff]  ;;  %v11744_v51 = vld [vmem:[%s19272_s22 + $0x88] sm:$0xff]  ;;  %v11743_v59 = vld [vmem:[%s19272_s22 + $0x80] sm:$0xff] }
0x1ddf   :  { %v11746_v20 = vld [vmem:[%s19272_s22 + $0x98] sm:$0xff]  ;;  %v11745_v49 = vld [vmem:[%s19272_s22 + $0x90] sm:$0xff]  ;;  %v11748_v8 = vld [vmem:[%s19272_s22 + $0xa8] sm:$0xff] }
0x1de0   :  { %v11747_v44 = vld [vmem:[%s19272_s22 + $0xa0] sm:$0xff]  ;;  %v11750_v22 = vld [vmem:[%s19272_s22 + $0xb8] sm:$0xff]  ;;  %v11749_v7 = vld [vmem:[%s19272_s22 + $0xb0] sm:$0xff] }
0x1de1   :  { %11290 = vrot.lane.b32.xlu1 %v19244_v34, %s16562_s19 }
0x1de2   :  { %11288 = vrot.lane.b32.xlu0 %v19247_v41, %s16562_s19 }
0x1de5   :  { %11552 = vrot.lane.b32.xlu1 %v19215_v47, %s16560_s7 }
0x1de6   :  { %11550 = vrot.lane.b32.xlu0 %v19217_v18, %s16560_s7 }
0x1de9   :  { %11556 = vrot.lane.b32.xlu1 %v19223_v13, %s16560_s7 }
0x1dea   :  { %11554 = vrot.lane.b32.xlu0 %v19225_v36, %s16560_s7 }
0x1ded   :  { %11560 = vrot.lane.b32.xlu1 %v19231_v52, %s16560_s7 }
0x1dee   :  { %11558 = vrot.lane.b32.xlu0 %v19233_v37, %s16560_s7 }
0x1df1   :  { %11564 = vrot.lane.b32.xlu1 %v19244_v34, %s16560_s7 }
0x1df2   :  { %11562 = vrot.lane.b32.xlu0 %v19247_v41, %s16560_s7 }
0x1df5   :  { %11758 = vperm.xlu1 %15939, %v11728_v5   ;;  %v16232_v5 = vld [vmem:[%s19242_s18 + $0xc0] sm:$0xff]  }
0x1df6   :  { %11753 = vperm.xlu0 %15938, %v11727_v23   ;;  %v16233_v23 = vld [vmem:[%s19242_s18 + $0xc8] sm:$0xff]  }
0x1df9   :  { %11768 = vperm.xlu1 %15939, %v11730_v30   ;;  %v16234_v30 = vld [vmem:[%s19242_s18 + $0xd0] sm:$0xff]  }
0x1dfa   :  { %11763 = vperm.xlu0 %15938, %v11729_v39  }
0x1dfd   :  { %11778 = vperm.xlu1 %15939, %v11732_v31   ;;  %v16235_v31 = vld [vmem:[%s19242_s18 + $0xd8] sm:$0xff]  }
0x1dfe   :  { %11773 = vperm.xlu0 %15938, %v11731_v17  }
0x1e01   :  { %11788 = vperm.xlu1 %15939, %v11734_v29   ;;  %v16236_v29 = vld [vmem:[%s19242_s18 + $0xe0] sm:$0xff]  }
0x1e02   :  { %11783 = vperm.xlu0 %15938, %v11733_v53  }
0x1e05   :  { %11798 = vperm.xlu1 %15939, %v11736_v35   ;;  %v16237_v35 = vld [vmem:[%s19242_s18 + $0xe8] sm:$0xff]  }
0x1e06   :  { %11793 = vperm.xlu0 %15938, %v11735_v26  }
0x1e09   :  { %11808 = vperm.xlu1 %15939, %v11738_v60   ;;  %v16238_v60 = vld [vmem:[%s19242_s18 + $0xf0] sm:$0xff]  }
0x1e0a   :  { %11803 = vperm.xlu0 %15938, %v11737_v32  }
0x1e0d   :  { %11818 = vperm.xlu1 %15939, %v11740_v10   ;;  %v16239_v10 = vld [vmem:[%s19242_s18 + $0xf8] sm:$0xff]  }
0x1e0e   :  { %11813 = vperm.xlu0 %15938, %v11739_v0  }
0x1e11   :  { %11828 = vperm.xlu1 %15939, %v11742_v54   ;;  %v16240_v54 = vld [vmem:[%s19242_s18 + $0x100] sm:$0xff]  }
0x1e12   :  { %11823 = vperm.xlu0 %15938, %v11741_v2  }
0x1e13   :  { %v10828_v58 = vpop.permute.xlu1 %10827 }
0x1e14   :  { %v10826_v62 = vpop.permute.xlu0 %10825 }
0x1e15   :  { %11838 = vperm.xlu1 %15939, %v11744_v51   ;;  %15044 = vmatprep.subr.bf16.mxu1 %v10826_v62  ;;  %v16241_v51 = vld [vmem:[%s19242_s18 + $0x108] sm:$0xff]  }
0x1e16   :  { %11833 = vperm.xlu0 %15938, %v11743_v59   ;;  %15045 = vmatpush3.bf16.msra.mxu1 %v10826_v62  ;;  %v16242_v59 = vld [vmem:[%s19242_s18 + $0x110] sm:$0xff]   ;;  %v16243_v62 = vld [vmem:[%s19242_s18 + $0x118] sm:$0xff]  }
0x1e17   :  { %15046 = vmatprep.subr.bf16.mxu1 %v10828_v58 }
0x1e19   :  { %11848 = vperm.xlu1 %15939, %v11746_v20   ;;  %v16245_v20 = vld [vmem:[%s19242_s18 + $0x128] sm:$0xff]  }
0x1e1a   :  { %11843 = vperm.xlu0 %15938, %v11745_v49   ;;  %15047 = vmatpush3.bf16.msra.mxu1 %v10828_v58  ;;  %v16244_v58 = vld [vmem:[%s19242_s18 + $0x120] sm:$0xff]   ;;  %v16246_v49 = vld [vmem:[%s19242_s18 + $0x130] sm:$0xff]  }
0x1e1d   :  { %11858 = vperm.xlu1 %15939, %v11748_v8   ;;  %v16247_v8 = vld [vmem:[%s19242_s18 + $0x138] sm:$0xff]  }
0x1e1e   :  { %11853 = vperm.xlu0 %15938, %v11747_v44   ;;  %v16248_v44 = vld [vmem:[%s19242_s18 + $0x140] sm:$0xff]  }
0x1e21   :  { %11868 = vperm.xlu1 %15939, %v11750_v22   ;;  %v16249_v22 = vld [vmem:[%s19242_s18 + $0x148] sm:$0xff]  }
0x1e22   :  { %11863 = vperm.xlu0 %15938, %v11749_v7   ;;  %v16250_v7 = vld [vmem:[%s19242_s18 + $0x150] sm:$0xff]  }
0x1e23   :  { %v10832_v63 = vpop.permute.xlu1 %10831 }
0x1e24   :  { %v10830_v38 = vpop.permute.xlu0 %10829 }
0x1e25   :  { %15048 = vmatprep.subr.bf16.mxu1 %v10830_v38 }
0x1e26   :  { %15049 = vmatpush3.bf16.msra.mxu1 %v10830_v38  ;;  %v16251_v38 = vld [vmem:[%s19242_s18 + $0x158] sm:$0xff]  }
0x1e27   :  { %15050 = vmatprep.subr.bf16.mxu1 %v10832_v63 }
0x1e2a   :  { %15051 = vmatpush3.bf16.msra.mxu1 %v10832_v63  ;;  %v16252_v63 = vld [vmem:[%s19242_s18 + $0x160] sm:$0xff]  }
0x1e33   :  { %v10836_v3 = vpop.permute.xlu1 %10835 }
0x1e34   :  { %v10834_v50 = vpop.permute.xlu0 %10833 }
0x1e35   :  { %15052 = vmatprep.subr.bf16.mxu1 %v10834_v50 }
0x1e36   :  { %15053 = vmatpush3.bf16.msra.mxu1 %v10834_v50  ;;  %v16253_v50 = vld [vmem:[%s19242_s18 + $0x168] sm:$0xff]  }
0x1e37   :  { %15054 = vmatprep.subr.bf16.mxu1 %v10836_v3 }
0x1e3a   :  { %15055 = vmatpush3.bf16.msra.mxu1 %v10836_v3  ;;  %v16254_v3 = vld [vmem:[%s19242_s18 + $0x170] sm:$0xff]  }
0x1e43   :  { %v10840_v46 = vpop.permute.xlu1 %10839 }
0x1e44   :  { %v10838_v1 = vpop.permute.xlu0 %10837 }
0x1e45   :  { %15056 = vmatprep.subr.bf16.mxu1 %v10838_v1 }
0x1e46   :  { %15057 = vmatpush3.bf16.msra.mxu1 %v10838_v1  ;;  %v16255_v1 = vld [vmem:[%s19242_s18 + $0x178] sm:$0xff]  }
0x1e47   :  { %15058 = vmatprep.subr.bf16.mxu1 %v10840_v46  ;;  %v11279_v61 = vpop.permute.xlu1 %11278 }
0x1e48   :  { %v11277_v45 = vpop.permute.xlu0 %11276 }
0x1e4a   :  { %15059 = vmatpush3.bf16.msra.mxu1 %v10840_v46 }
0x1e4b   :  { %15084 = vmatprep.subr.bf16.mxu1 %v19217_v18  ;;  %v11283_v56 = vpop.permute.xlu1 %11282 }
0x1e4c   :  { %v11281_v55 = vpop.permute.xlu0 %11280 }
0x1e4d   :  { %15061 = vmatmul.mubr.bf16.vlgmr.msra.gmra.mrb[164].mxu1 %v16209_v14 }
0x1e4e   :  { %15085 = vmatpush3.bf16.msra.mxu1 %v19217_v18  ;;  %15064 = vmatprep.mubr.bf16.mxu1 %v16210_v15  ;;  %v16220_v18 = vld [vmem:[%s19242_s18] sm:$0xff]  }
0x1e4f   :  { %15086 = vmatprep.subr.bf16.mxu1 %v19215_v47  ;;  %v11287_v40 = vpop.permute.xlu1 %11286 }
0x1e50   :  { %v11285_v27 = vpop.permute.xlu0 %11284 }
0x1e52   :  { %15087 = vmatpush3.bf16.msra.mxu1 %v19215_v47  ;;  %v16218_v47 = vld [vmem:[%s19242_s18 + $0xb0] sm:$0xff]  }
0x1e53   :  { %15088 = vmatprep.subr.bf16.mxu1 %v19225_v36  ;;  %v11291_v24 = vpop.permute.xlu1 %11290 }
0x1e54   :  { %v11289_v12 = vpop.permute.xlu0 %11288 }
0x1e55   :  { %15065 = vmatmul.mubr.bf16.gmra.mrb[168].mxu1 %v16211_v25 }
0x1e56   :  { %15089 = vmatpush3.bf16.msra.mxu1 %v19225_v36  ;;  %15068 = vmatprep.mubr.bf16.mxu1 %v16212_v57  ;;  %v16224_v36 = vld [vmem:[%s19242_s18 + $0x20] sm:$0xff]  }
0x1e57   :  { %15090 = vmatprep.subr.bf16.mxu1 %v19223_v13  ;;  %v11553_v39 = vpop.permute.xlu1 %11552 }
0x1e58   :  { %v11551_v42 = vpop.permute.xlu0 %11550 }
0x1e5a   :  { %15091 = vmatpush3.bf16.msra.mxu1 %v19223_v13  ;;  %v16223_v13 = vld [vmem:[%s19242_s18 + $0x18] sm:$0xff]  }
0x1e5b   :  { %15092 = vmatprep.subr.bf16.mxu1 %v19233_v37  ;;  %v11557_v53 = vpop.permute.xlu1 %11556 }
0x1e5c   :  { %v11555_v17 = vpop.permute.xlu0 %11554 }
0x1e5d   :  { %15069 = vmatmul.mubr.bf16.gmra.mrb[172].mxu1 %v16213_v11 }
0x1e5e   :  { %15093 = vmatpush3.bf16.msra.mxu1 %v19233_v37  ;;  %15072 = vmatprep.mubr.bf16.mxu1 %v16214_v16  ;;  %v16227_v37 = vld [vmem:[%s19242_s18 + $0x38] sm:$0xff]  }
0x1e5f   :  { %15094 = vmatprep.subr.bf16.mxu1 %v19231_v52  ;;  %v11561_v32 = vpop.permute.xlu1 %11560 }
0x1e60   :  { %v11559_v26 = vpop.permute.xlu0 %11558 }
0x1e62   :  { %15095 = vmatpush3.bf16.msra.mxu1 %v19231_v52  ;;  %v16226_v52 = vld [vmem:[%s19242_s18 + $0x30] sm:$0xff]  }
0x1e63   :  { %15096 = vmatprep.subr.bf16.mxu1 %v19247_v41  ;;  %v11565_v2 = vpop.permute.xlu1 %11564 }
0x1e64   :  { %v11563_v0 = vpop.permute.xlu0 %11562 }
0x1e65   :  { %15073 = vmatmul.mubr.bf16.gmra.mrb[176].mxu1 %v16215_v33 }
0x1e66   :  { %15097 = vmatpush3.bf16.msra.mxu1 %v19247_v41  ;;  %15076 = vmatprep.mubr.bf16.mxu1 %v16216_v4  ;;  %v16231_v41 = vld [vmem:[%s19242_s18 + $0x58] sm:$0xff]  }
0x1e67   :  { %15098 = vmatprep.subr.bf16.mxu1 %v19244_v34 }
0x1e6a   :  { %15099 = vmatpush3.bf16.msra.mxu1 %v19244_v34  ;;  %v16229_v34 = vld [vmem:[%s19242_s18 + $0x48] sm:$0xff]  }
0x1e6b   :  { %15124 = vmatprep.subr.bf16.mxu1 %v11277_v45 }
0x1e6d   :  { %15077 = vmatmul.mubr.bf16.gmra.mrb[180].mxu1 %v16217_v43 }
0x1e6e   :  { %15080 = vmatprep.mubr.bf16.mxu1 %v16218_v47 }
0x1e74   :  { %v11759_v14 = vpop.permute.xlu1 %11758 }
0x1e75   :  { %15081 = vmatmul.mubr.bf16.gmra.mrb[184].mxu1 %v16219_v21  ;;  %v11754_v46 = vpop.permute.xlu0 %11753 }
0x1e76   :  { %15100 = vmatprep.mubr.bf16.mxu1 %v16220_v18 }
0x1e78   :  { %v11769_v25 = vpop.permute.xlu1 %11768 }
0x1e79   :  { %v11764_v15 = vpop.permute.xlu0 %11763 }
0x1e7c   :  { %v11779_v11 = vpop.permute.xlu1 %11778 }
0x1e7d   :  { %15101 = vmatmul.mubr.bf16.vlgmr.msra.gmra.mrb[164].mxu1 %v16221_v9  ;;  %v11774_v57 = vpop.permute.xlu0 %11773 }
0x1e7e   :  { %15125 = vmatpush3.bf16.msra.mxu1 %v11277_v45  ;;  %15104 = vmatprep.mubr.bf16.mxu1 %v16222_v19 }
0x1e7f   :  { %15126 = vmatprep.subr.bf16.mxu1 %v11279_v61 }
0x1e80   :  { %v11789_v33 = vpop.permute.xlu1 %11788 }
0x1e81   :  { %v11784_v16 = vpop.permute.xlu0 %11783 }
0x1e82   :  { %15127 = vmatpush3.bf16.msra.mxu1 %v11279_v61 }
0x1e83   :  { %15128 = vmatprep.subr.bf16.mxu1 %v11281_v55 }
0x1e84   :  { %v11799_v43 = vpop.permute.xlu1 %11798 }
0x1e85   :  { %15105 = vmatmul.mubr.bf16.gmra.mrb[168].mxu1 %v16223_v13  ;;  %v11794_v4 = vpop.permute.xlu0 %11793 }
0x1e86   :  { %15129 = vmatpush3.bf16.msra.mxu1 %v11281_v55  ;;  %15108 = vmatprep.mubr.bf16.mxu1 %v16224_v36 }
0x1e87   :  { %15130 = vmatprep.subr.bf16.mxu1 %v11283_v56 }
0x1e89   :  { %v11804_v55 = vpop.permute.xlu0 %11803 }
0x1e8a   :  { %15131 = vmatpush3.bf16.msra.mxu1 %v11283_v56 }
0x1e8b   :  { %15132 = vmatprep.subr.bf16.mxu1 %v11285_v27 }
0x1e8d   :  { %15109 = vmatmul.mubr.bf16.gmra.mrb[172].mxu1 %v16225_v48 }
0x1e8e   :  { %15133 = vmatpush3.bf16.msra.mxu1 %v11285_v27  ;;  %15112 = vmatprep.mubr.bf16.mxu1 %v16226_v52  ;;  %v11809_v27 = vpop.permute.xlu1 %11808 }
0x1e8f   :  { %15134 = vmatprep.subr.bf16.mxu1 %v11287_v40 }
0x1e92   :  { %15135 = vmatpush3.bf16.msra.mxu1 %v11287_v40 }
0x1e93   :  { %15136 = vmatprep.subr.bf16.mxu1 %v11289_v12 }
0x1e95   :  { %15113 = vmatmul.mubr.bf16.gmra.mrb[176].mxu1 %v16227_v37 }
0x1e96   :  { %15137 = vmatpush3.bf16.msra.mxu1 %v11289_v12  ;;  %15116 = vmatprep.mubr.bf16.mxu1 %v16228_v6  ;;  %v11814_v6 = vpop.permute.xlu0 %11813 }
0x1e97   :  { %15138 = vmatprep.subr.bf16.mxu1 %v11291_v24 }
0x1e9a   :  { %15139 = vmatpush3.bf16.msra.mxu1 %v11291_v24 }
0x1e9b   :  { %15164 = vmatprep.subr.bf16.mxu1 %v11551_v42 }
0x1e9d   :  { %15117 = vmatmul.mubr.bf16.gmra.mrb[180].mxu1 %v16229_v34 }
0x1e9e   :  { %15120 = vmatprep.mubr.bf16.mxu1 %v16230_v28 }
0x1ea5   :  { %15121 = vmatmul.mubr.bf16.gmra.mrb[184].mxu1 %v16231_v41 }
0x1ea6   :  { %15140 = vmatprep.mubr.bf16.mxu1 %v16232_v5  ;;  %v19369_v5 = vpop.permute.xlu1 %11818 }
0x1ead   :  { %15141 = vmatmul.mubr.bf16.vlgmr.msra.gmra.mrb[164].mxu1 %v16233_v23 }
0x1eae   :  { %15165 = vmatpush3.bf16.msra.mxu1 %v11551_v42  ;;  %15144 = vmatprep.mubr.bf16.mxu1 %v16234_v30 }
0x1eaf   :  { %15166 = vmatprep.subr.bf16.mxu1 %v11553_v39 }
0x1eb2   :  { %15167 = vmatpush3.bf16.msra.mxu1 %v11553_v39 }
0x1eb3   :  { %15168 = vmatprep.subr.bf16.mxu1 %v11555_v17 }
0x1eb5   :  { %15145 = vmatmul.mubr.bf16.gmra.mrb[168].mxu1 %v16235_v31 }
0x1eb6   :  { %15169 = vmatpush3.bf16.msra.mxu1 %v11555_v17  ;;  %15148 = vmatprep.mubr.bf16.mxu1 %v16236_v29 }
0x1eb7   :  { %15170 = vmatprep.subr.bf16.mxu1 %v11557_v53 }
0x1eba   :  { %15171 = vmatpush3.bf16.msra.mxu1 %v11557_v53  ;;  %v11824_v53 = vpop.permute.xlu0 %11823 }
0x1ebb   :  { %15172 = vmatprep.subr.bf16.mxu1 %v11559_v26 }
0x1ebd   :  { %15149 = vmatmul.mubr.bf16.gmra.mrb[172].mxu1 %v16237_v35 }
0x1ebe   :  { %15173 = vmatpush3.bf16.msra.mxu1 %v11559_v26  ;;  %15152 = vmatprep.mubr.bf16.mxu1 %v16238_v60 }
0x1ebf   :  { %15174 = vmatprep.subr.bf16.mxu1 %v11561_v32 }
0x1ec2   :  { %15175 = vmatpush3.bf16.msra.mxu1 %v11561_v32 }
0x1ec3   :  { %15176 = vmatprep.subr.bf16.mxu1 %v11563_v0 }
0x1ec5   :  { %15153 = vmatmul.mubr.bf16.gmra.mrb[176].mxu1 %v16239_v10 }
0x1ec6   :  { %15177 = vmatpush3.bf16.msra.mxu1 %v11563_v0  ;;  %15156 = vmatprep.mubr.bf16.mxu1 %v16240_v54 }
0x1ec7   :  { %15178 = vmatprep.subr.bf16.mxu1 %v11565_v2 }
0x1eca   :  { %15179 = vmatpush3.bf16.msra.mxu1 %v11565_v2  ;;  %v11829_v2 = vpop.permute.xlu1 %11828 }
0x1ecd   :  { %15157 = vmatmul.mubr.bf16.gmra.mrb[180].mxu1 %v16241_v51 }
0x1ece   :  { %15160 = vmatprep.mubr.bf16.mxu1 %v16242_v59 }
0x1ed5   :  { %15161 = vmatmul.mubr.bf16.gmra.mrb[184].mxu1 %v16243_v62 }
0x1ed6   :  { %15180 = vmatprep.mubr.bf16.mxu1 %v16244_v58 }
0x1edd   :  { %15181 = vmatmul.mubr.bf16.vlgmr.msra.gmra.mrb[164].mxu1 %v16245_v20 }
0x1ede   :  { %15184 = vmatprep.mubr.bf16.mxu1 %v16246_v49 }
0x1ee5   :  { %15185 = vmatmul.mubr.bf16.gmra.mrb[168].mxu1 %v16247_v8 }
0x1ee6   :  { %15188 = vmatprep.mubr.bf16.mxu1 %v16248_v44 }
0x1eed   :  { %15189 = vmatmul.mubr.bf16.gmra.mrb[172].mxu1 %v16249_v22 }
0x1eee   :  { %15192 = vmatprep.mubr.bf16.mxu1 %v16250_v7 }
0x1ef5   :  { %15193 = vmatmul.mubr.bf16.gmra.mrb[176].mxu1 %v16251_v38  ;;  %v11834_v38 = vpop.permute.xlu0 %11833 }
0x1ef6   :  { %15196 = vmatprep.mubr.bf16.mxu1 %v16252_v63 }
0x1efd   :  { %15197 = vmatmul.mubr.bf16.gmra.mrb[180].mxu1 %v16253_v50 }
0x1efe   :  { %15200 = vmatprep.mubr.bf16.mxu1 %v16254_v3 }
0x1f05   :  { %15201 = vmatmul.mubr.bf16.gmra.mrb[184].mxu1 %v16255_v1  ;;  %v11839_v1 = vpop.permute.xlu1 %11838 }
0x1fb0   :  { %v15182_v45 = vpop.f32.mrb[164].mxu1 }
0x1fb1   :  { %v11873_v47 = vadd.f32 %v15182_v45, %v11764_v15  ;;  %v11608_v21 = vpop.f32.mrb[165].mxu1 }
0x1fb2   :  { %v11871_v18 = vadd.f32 %v11754_v46, %v11608_v21  ;;  %v15183_v9 = vpop.f32.mrb[166].mxu1 }
0x1fb3   :  { %v12889_v19 = vmul.f32 -1.442695, %v11873_v47  ;;  %v11874_v61 = vadd.f32 %v15183_v9, %v11769_v25  ;;  %v11611_v13 = vpop.f32.mrb[167].mxu1 }
0x1fb4   :  { %v12887_v36 = vmul.f32 -1.442695, %v11871_v18  ;;  %v11872_v56 = vadd.f32 %v11759_v14, %v11611_v13 }
0x1fb5   :  { %16420 = vpow2.f32 %v12889_v19  ;;  %v12890_v48 = vmul.f32 -1.442695, %v11874_v61  ;;  %v11844_v19 = vpop.permute.xlu0 %11843 }
0x1fb6   :  { %16422 = vpow2.f32 %v12887_v36  ;;  %v12888_v52 = vmul.f32 -1.442695, %v11872_v56 }
0x1fb7   :  { %16424 = vpow2.f32 %v12890_v48  ;;  %v11849_v48 = vpop.permute.xlu1 %11848 }
0x1fb8   :  { %16426 = vpow2.f32 %v12888_v52  ;;  %v15186_v40 = vpop.f32.mrb[168].mxu1 }
0x1fb9   :  { %v11877_v37 = vadd.f32 %v15186_v40, %v11784_v16  ;;  %v11624_v12 = vpop.f32.mrb[169].mxu1 }
0x1fba   :  { %v11875_v24 = vadd.f32 %v11774_v57, %v11624_v12  ;;  %v15187_v34 = vpop.f32.mrb[170].mxu1 }
0x1fbb   :  { %v12893_v42 = vmul.f32 -1.442695, %v11877_v37  ;;  %v11878_v28 = vadd.f32 %v15187_v34, %v11789_v33  ;;  %v11627_v41 = vpop.f32.mrb[171].mxu1 }
0x1fbc   :  { %v12891_v23 = vmul.f32 -1.442695, %v11875_v24  ;;  %v11876_v30 = vadd.f32 %v11779_v11, %v11627_v41 }
0x1fbd   :  { %16428 = vpow2.f32 %v12893_v42  ;;  %v12894_v39 = vmul.f32 -1.442695, %v11878_v28  ;;  %v11854_v28 = vpop.permute.xlu0 %11853 }
0x1fbe   :  { %16430 = vpow2.f32 %v12891_v23  ;;  %v12892_v31 = vmul.f32 -1.442695, %v11876_v30 }
0x1fbf   :  { %v16421_v17 = vpop.eup %16420  ;;  %16432 = vpow2.f32 %v12894_v39 }
0x1fc0   :  { %v16423_v29 = vpop.eup %16422  ;;  %v11969_v35 = vadd.f32 1.0, %v16421_v17  ;;  %16434 = vpow2.f32 %v12892_v31  ;;  %v15190_v26 = vpop.f32.mrb[172].mxu1 }
0x1fc1   :  { %v16425_v60 = vpop.eup %16424  ;;  %v11967_v32 = vadd.f32 1.0, %v16423_v29  ;;  %v11881_v10 = vadd.f32 %v15190_v26, %v11804_v55  ;;  %v11640_v0 = vpop.f32.mrb[173].mxu1 }
0x1fc2   :  { %v16427_v54 = vpop.eup %16426  ;;  %16436 = vrcp.f32 %v11969_v35  ;;  %v11970_v51 = vadd.f32 1.0, %v16425_v60  ;;  %v11879_v59 = vadd.f32 %v11794_v4, %v11640_v0  ;;  %v15191_v62 = vpop.f32.mrb[174].mxu1 }
0x1fc3   :  { %16438 = vrcp.f32 %v11967_v32  ;;  %v11968_v58 = vadd.f32 1.0, %v16427_v54  ;;  %v12897_v20 = vmul.f32 -1.442695, %v11881_v10  ;;  %v11882_v49 = vadd.f32 %v15191_v62, %v11809_v27  ;;  %v11643_v8 = vpop.f32.mrb[175].mxu1  ;;  %v11859_v35 = vpop.permute.xlu1 %11858 }
0x1fc4   :  { %16440 = vrcp.f32 %v11970_v51  ;;  %v12895_v44 = vmul.f32 -1.442695, %v11879_v59  ;;  %v11880_v22 = vadd.f32 %v11799_v43, %v11643_v8  ;;  %v11864_v62 = vpop.permute.xlu0 %11863 }
0x1fc5   :  { %16442 = vrcp.f32 %v11968_v58  ;;  %v12898_v7 = vmul.f32 -1.442695, %v11882_v49 }
0x1fc6   :  { %16444 = vpow2.f32 %v12897_v20  ;;  %v12896_v63 = vmul.f32 -1.442695, %v11880_v22 }
0x1fc7   :  { %v16429_v50 = vpop.eup %16428  ;;  %16446 = vpow2.f32 %v12895_v44 }
0x1fc8   :  { %v16431_v3 = vpop.eup %16430  ;;  %v11973_v46 = vadd.f32 1.0, %v16429_v50  ;;  %16448 = vpow2.f32 %v12898_v7  ;;  %v15194_v14 = vpop.f32.mrb[176].mxu1 }
0x1fc9   :  { %v16433_v15 = vpop.eup %16432  ;;  %v11971_v25 = vadd.f32 1.0, %v16431_v3  ;;  %16450 = vpow2.f32 %v12896_v63  ;;  %v11885_v57 = vadd.f32 %v15194_v14, %v11824_v53  ;;  %v11656_v11 = vpop.f32.mrb[177].mxu1 }
0x1fca   :  { %v16435_v16 = vpop.eup %16434  ;;  %16452 = vrcp.f32 %v11973_v46  ;;  %v11974_v33 = vadd.f32 1.0, %v16433_v15  ;;  %v11883_v4 = vadd.f32 %v11814_v6, %v11656_v11  ;;  %v15195_v43 = vpop.f32.mrb[178].mxu1 }
0x1fcb   :  { %16454 = vrcp.f32 %v11971_v25  ;;  %v11972_v45 = vadd.f32 1.0, %v16435_v16  ;;  %v12901_v47 = vmul.f32 -1.442695, %v11885_v57  ;;  %v11886_v21 = vadd.f32 %v15195_v43, %v11829_v2  ;;  %v11659_v18 = vpop.f32.mrb[179].mxu1  ;;  %v11869_v7 = vpop.permute.xlu1 %11868 }
0x1fcc   :  { %v16437_v9 = vpop.eup %16436  ;;  %16456 = vrcp.f32 %v11974_v33  ;;  %v12899_v61 = vmul.f32 -1.442695, %v11883_v4  ;;  %v11884_v13 = vadd.f32 %v19369_v5, %v11659_v18 }
0x1fcd   :  { %v16439_v55 = vpop.eup %16438  ;;  %12041 = vst.msk [vmem:[%s19374_s26 + $0x10] sm:$0xff] %vm200_vm0, %v16437_v9  ;;  %16458 = vrcp.f32 %v11972_v45  ;;  %v12902_v36 = vmul.f32 -1.442695, %v11886_v21 }
0x1fce   :  { %v16441_v56 = vpop.eup %16440  ;;  %12039 = vst.msk [vmem:[%s19374_s26] sm:$0xff] %vm200_vm0, %v16439_v55  ;;  %16460 = vpow2.f32 %v12901_v47  ;;  %v12900_v27 = vmul.f32 -1.442695, %v11884_v13 }
0x1fcf   :  { %v16443_v52 = vpop.eup %16442  ;;  %12042 = vst.msk [vmem:[%s19374_s26 + $0x18] sm:$0xff] %vm200_vm0, %v16441_v56  ;;  %16462 = vpow2.f32 %v12899_v61 }
0x1fd0   :  { %v16445_v40 = vpop.eup %16444  ;;  %12040 = vst.msk [vmem:[%s19374_s26 + $0x8] sm:$0xff] %vm200_vm0, %v16443_v52  ;;  %16464 = vpow2.f32 %v12902_v36  ;;  %v15198_v37 = vpop.f32.mrb[180].mxu1 }
0x1fd1   :  { %v16447_v12 = vpop.eup %16446  ;;  %v11977_v6 = vadd.f32 1.0, %v16445_v40  ;;  %16466 = vpow2.f32 %v12900_v27  ;;  %v11889_v24 = vadd.f32 %v15198_v37, %v11844_v19  ;;  %v11672_v34 = vpop.f32.mrb[181].mxu1 }
0x1fd2   :  { %v16449_v42 = vpop.eup %16448  ;;  %v11975_v41 = vadd.f32 1.0, %v16447_v12  ;;  %v11887_v5 = vadd.f32 %v11834_v38, %v11672_v34  ;;  %v15199_v23 = vpop.f32.mrb[182].mxu1 }
0x1fd3   :  { %v16451_v30 = vpop.eup %16450  ;;  %16468 = vrcp.f32 %v11977_v6  ;;  %v11978_v39 = vadd.f32 1.0, %v16449_v42  ;;  %v12905_v31 = vmul.f32 -1.442695, %v11889_v24  ;;  %v11890_v17 = vadd.f32 %v15199_v23, %v11849_v48  ;;  %v11675_v29 = vpop.f32.mrb[183].mxu1 }
0x1fd4   :  { %v16453_v53 = vpop.eup %16452  ;;  %16470 = vrcp.f32 %v11975_v41  ;;  %v11976_v26 = vadd.f32 1.0, %v16451_v30  ;;  %v12903_v60 = vmul.f32 -1.442695, %v11887_v5  ;;  %v11888_v32 = vadd.f32 %v11839_v1, %v11675_v29 }
0x1fd5   :  { %v16455_v10 = vpop.eup %16454  ;;  %12045 = vst.msk [vmem:[%s19374_s26 + $0x30] sm:$0xff] %vm200_vm0, %v16453_v53  ;;  %16472 = vrcp.f32 %v11978_v39  ;;  %v12906_v0 = vmul.f32 -1.442695, %v11890_v17 }
0x1fd6   :  { %v16457_v54 = vpop.eup %16456  ;;  %12043 = vst.msk [vmem:[%s19374_s26 + $0x20] sm:$0xff] %vm200_vm0, %v16455_v10  ;;  %16474 = vrcp.f32 %v11976_v26  ;;  %v12904_v2 = vmul.f32 -1.442695, %v11888_v32 }
0x1fd7   :  { %v16459_v51 = vpop.eup %16458  ;;  %12046 = vst.msk [vmem:[%s19374_s26 + $0x38] sm:$0xff] %vm200_vm0, %v16457_v54  ;;  %16476 = vpow2.f32 %v12905_v31 }
0x1fd8   :  { %v16461_v59 = vpop.eup %16460  ;;  %12044 = vst.msk [vmem:[%s19374_s26 + $0x28] sm:$0xff] %vm200_vm0, %v16459_v51  ;;  %16478 = vpow2.f32 %v12903_v60  ;;  %v15202_v58 = vpop.f32.mrb[184].mxu1 }
0x1fd9   :  { %v16463_v20 = vpop.eup %16462  ;;  %v11981_v49 = vadd.f32 1.0, %v16461_v59  ;;  %16480 = vpow2.f32 %v12906_v0  ;;  %v11893_v8 = vadd.f32 %v15202_v58, %v11864_v62  ;;  %v11688_v44 = vpop.f32.mrb[185].mxu1 }
0x1fda   :  { %v16465_v22 = vpop.eup %16464  ;;  %v11979_v38 = vadd.f32 1.0, %v16463_v20  ;;  %16482 = vpow2.f32 %v12904_v2  ;;  %v11891_v63 = vadd.f32 %v11854_v28, %v11688_v44  ;;  %v15203_v50 = vpop.f32.mrb[186].mxu1 }
0x1fdb   :  { %v16467_v3 = vpop.eup %16466  ;;  %16484 = vrcp.f32 %v11981_v49  ;;  %v11982_v1 = vadd.f32 1.0, %v16465_v22  ;;  %v12909_v46 = vmul.f32 -1.442695, %v11893_v8  ;;  %v11894_v14 = vadd.f32 %v15203_v50, %v11869_v7  ;;  %v11691_v15 = vpop.f32.mrb[187].mxu1 }
0x1fdc   :  { %16486 = vrcp.f32 %v11979_v38  ;;  %v11980_v25 = vadd.f32 1.0, %v16467_v3  ;;  %v12907_v57 = vmul.f32 -1.442695, %v11891_v63  ;;  %v11892_v11 = vadd.f32 %v11859_v35, %v11691_v15 }
0x1fdd   :  { %v16469_v16 = vpop.eup %16468  ;;  %16488 = vrcp.f32 %v11982_v1  ;;  %v12910_v33 = vmul.f32 -1.442695, %v11894_v14 }
0x1fde   :  { %v16471_v4 = vpop.eup %16470  ;;  %12049 = vst.msk [vmem:[%s19374_s26 + $0x50] sm:$0xff] %vm200_vm0, %v16469_v16  ;;  %16490 = vrcp.f32 %v11980_v25  ;;  %v12908_v43 = vmul.f32 -1.442695, %v11892_v11 }
0x1fdf   :  { %v16473_v45 = vpop.eup %16472  ;;  %12047 = vst.msk [vmem:[%s19374_s26 + $0x40] sm:$0xff] %vm200_vm0, %v16471_v4  ;;  %16492 = vpow2.f32 %v12909_v46 }
0x1fe0   :  { %v16475_v47 = vpop.eup %16474  ;;  %12050 = vst.msk [vmem:[%s19374_s26 + $0x58] sm:$0xff] %vm200_vm0, %v16473_v45  ;;  %16494 = vpow2.f32 %v12907_v57 }
0x1fe1   :  { %v16477_v21 = vpop.eup %16476  ;;  %12048 = vst.msk [vmem:[%s19374_s26 + $0x48] sm:$0xff] %vm200_vm0, %v16475_v47  ;;  %16496 = vpow2.f32 %v12910_v33 }
0x1fe2   :  { %v16479_v18 = vpop.eup %16478  ;;  %v11985_v9 = vadd.f32 1.0, %v16477_v21  ;;  %16498 = vpow2.f32 %v12908_v43 }
0x1fe3   :  { %v16481_v19 = vpop.eup %16480  ;;  %v11983_v61 = vadd.f32 1.0, %v16479_v18 }
0x1fe4   :  { %v16483_v13 = vpop.eup %16482  ;;  %16500 = vrcp.f32 %v11985_v9  ;;  %v11986_v55 = vadd.f32 1.0, %v16481_v19 }
0x1fe5   :  { %v16485_v36 = vpop.eup %16484  ;;  %16502 = vrcp.f32 %v11983_v61  ;;  %v11984_v56 = vadd.f32 1.0, %v16483_v13 }
0x1fe6   :  { %v16487_v48 = vpop.eup %16486  ;;  %12053 = vst.msk [vmem:[%s19374_s26 + $0x70] sm:$0xff] %vm200_vm0, %v16485_v36  ;;  %16504 = vrcp.f32 %v11986_v55 }
0x1fe7   :  { %v16489_v27 = vpop.eup %16488  ;;  %12051 = vst.msk [vmem:[%s19374_s26 + $0x60] sm:$0xff] %vm200_vm0, %v16487_v48  ;;  %16506 = vrcp.f32 %v11984_v56 }
0x1fe8   :  { %v16491_v52 = vpop.eup %16490  ;;  %12054 = vst.msk [vmem:[%s19374_s26 + $0x78] sm:$0xff] %vm200_vm0, %v16489_v27 }
0x1fe9   :  { %v16493_v40 = vpop.eup %16492  ;;  %12052 = vst.msk [vmem:[%s19374_s26 + $0x68] sm:$0xff] %vm200_vm0, %v16491_v52 }
0x1fea   :  { %v16495_v37 = vpop.eup %16494  ;;  %v11989_v12 = vadd.f32 1.0, %v16493_v40 }
0x1feb   :  { %v16497_v6 = vpop.eup %16496  ;;  %v11987_v24 = vadd.f32 1.0, %v16495_v37 }
0x1fec   :  { %v16499_v34 = vpop.eup %16498  ;;  %16508 = vrcp.f32 %v11989_v12  ;;  %v11990_v42 = vadd.f32 1.0, %v16497_v6 }
0x1fed   :  { %16510 = vrcp.f32 %v11987_v24  ;;  %v11988_v28 = vadd.f32 1.0, %v16499_v34 }
0x1fee   :  { %v16501_v41 = vpop.eup %16500  ;;  %16512 = vrcp.f32 %v11990_v42 }
0x1fef   :  { %v16503_v5 = vpop.eup %16502  ;;  %12057 = vst.msk [vmem:[%s19374_s26 + $0x90] sm:$0xff] %vm200_vm0, %v16501_v41  ;;  %16514 = vrcp.f32 %v11988_v28 }
0x1ff0   :  { %v16505_v23 = vpop.eup %16504  ;;  %12055 = vst.msk [vmem:[%s19374_s26 + $0x80] sm:$0xff] %vm200_vm0, %v16503_v5 }
0x1ff1   :  { %v16507_v30 = vpop.eup %16506  ;;  %12058 = vst.msk [vmem:[%s19374_s26 + $0x98] sm:$0xff] %vm200_vm0, %v16505_v23 }
0x1ff2   :  { %12056 = vst.msk [vmem:[%s19374_s26 + $0x88] sm:$0xff] %vm200_vm0, %v16507_v30 }
0x1ff6   :  { %v16509_v39 = vpop.eup %16508 }
0x1ff7   :  { %v16511_v31 = vpop.eup %16510  ;;  %12061 = vst.msk [vmem:[%s19374_s26 + $0xb0] sm:$0xff] %vm200_vm0, %v16509_v39 }
0x1ff8   :  { %v16513_v17 = vpop.eup %16512  ;;  %12059 = vst.msk [vmem:[%s19374_s26 + $0xa0] sm:$0xff] %vm200_vm0, %v16511_v31 }
0x1ff9   :  { %v16515_v29 = vpop.eup %16514  ;;  %12062 = vst.msk [vmem:[%s19374_s26 + $0xb8] sm:$0xff] %vm200_vm0, %v16513_v17 }
0x1ffa   :  { %12060 = vst.msk [vmem:[%s19374_s26 + $0xa8] sm:$0xff] %vm200_vm0, %v16515_v29 }

</bundles_post_ra>
